<compile_context>
chip_gen: v5e
topology: v5e:2x2
jax: 0.10.0
libtpu: 0.0.40
codegen_flags: <defaults>
</compile_context>

<pallas_src>
import functools

import jax
import jax.numpy as jnp
from jax.experimental import pallas as pl
from jax.experimental.pallas import tpu as pltpu


# ----------------------------------------------------------------------------- helpers
def _erf(x):
    # Abramowitz & Stegun 7.1.26 rational approximation, |error| < 1.5e-7.
    # Uses only exp / mul / add / div / where, all of which lower cleanly on Mosaic.
    a1, a2, a3, a4, a5 = (0.254829592, -0.284496736, 1.421413741,
                          -1.453152027, 1.061405429)
    p = 0.3275911
    ax = jnp.abs(x)
    t = 1.0 / (1.0 + p * ax)
    poly = ((((a5 * t + a4) * t + a3) * t + a2) * t + a1) * t
    y = 1.0 - poly * jnp.exp(-ax * ax)
    return jnp.where(x < 0, -y, y)


def _gelu(x):
    # Exact (erf-based) GELU, matching torch.nn.GELU() up to ~1.5e-7.
    return 0.5 * x * (1.0 + _erf(x * 0.7071067811865476))


# ------------------------------------------------------------------------------ kernel
def _convnext_kernel(x_ref, taps_ref, pc_ref, w1_ref, b1_ref, w2_ref, o_ref, *,
                     dilation, apply_gamma):
    # x_ref    : (1, C, T)  one batch sample, PyTorch channels-first layout
    # taps_ref : (C, 8) f32  cols 0..6 = dwconv taps, col 7 = dwconv bias
    # pc_ref   : (4, C) f32  rows: LN weight, LN bias, pwconv2 bias, layer-scale gamma
    # w1_ref   : (C, I) bf16 pwconv1 weight (pre-transposed)
    # b1_ref   : (1, I) f32  pwconv1 bias
    # w2_ref   : (I, C) bf16 pwconv2 weight (pre-transposed)
    # o_ref    : (1, C, T)
    C = x_ref.shape[1]
    T = x_ref.shape[2]

    x = x_ref[0].astype(jnp.float32)               # (C, T), T on the lane axis
    taps = taps_ref[...].astype(jnp.float32)       # (C, 8)
    pc = pc_ref[...].astype(jnp.float32)           # (4, C)

    # --- depthwise Conv1d, kernel=7, padding=3*dilation, groups=C ---
    # h[c, t] = sum_k tap[c, k] * x[c, t + (k-3)*dilation]   (zero outside [0, T))
    # Implemented as lane rolls (XLU) + boundary masks; no padded copy is materialized.
    t_idx = jax.lax.broadcasted_iota(jnp.int32, (C, T), 1)
    h_ct = x * taps[:, 3:4]                        # center tap (offset 0, no mask)
    for k in range(7):                             # static, unrolled
        if k == 3:
            continue
        off = (k - 3) * dilation                   # static Python int
        shifted = pltpu.roll(x, (-off) % T, 1)     # shifted[:, t] = x[:, (t+off) % T]
        valid = (t_idx >= -off) & (t_idx < T - off)
        h_ct = h_ct + jnp.where(valid, shifted, 0.0) * taps[:, k:k + 1]
    h_ct = h_ct + taps[:, 7:8]                     # conv bias

    # --- channels-last for LayerNorm + MLP (C becomes lane / contraction axis) ---
    h = jnp.transpose(h_ct)                        # (T, C), XLU transpose

    # LayerNorm over channels, eps = 1e-6
    mu = jnp.mean(h, axis=-1, keepdims=True)
    hc = h - mu
    var = jnp.mean(hc * hc, axis=-1, keepdims=True)
    hn = hc * jax.lax.rsqrt(var + 1e-6) * pc[0:1] + pc[1:2]

    # pwconv1 -> GELU -> pwconv2 on the MXU (bf16 inputs, f32 accumulation)
    a1 = jnp.dot(hn.astype(jnp.bfloat16), w1_ref[...],
                 preferred_element_type=jnp.float32) + b1_ref[...]
    a1 = _gelu(a1)
    a2 = jnp.dot(a1.astype(jnp.bfloat16), w2_ref[...],
                 preferred_element_type=jnp.float32) + pc[2:3]
    if apply_gamma:
        a2 = a2 * pc[3:4]                          # layer scale

    # --- back to (C, T), residual add, single store ---
    o_ref[0] = (x + jnp.transpose(a2)).astype(o_ref.dtype)


# ----------------------------------------------------------------------------- wrapper
def convnext_block_pallas(x, dw_w, dw_b, ln_w, ln_b, w1, b1, w2, b2,
                          gamma=None, dilation=1):
    """Fused ConvNeXtBlock forward (groups=1, no adanorm).

    x     : (B, C, T)        (PyTorch Conv1d layout)
    dw_w  : (C, 1, 7)  dw_b : (C,)     depthwise conv
    ln_w, ln_b : (C,)                  LayerNorm affine
    w1 : (I, C)  b1 : (I,)             pwconv1 (Linear)
    w2 : (C, I)  b2 : (C,)             pwconv2 (Linear)
    gamma : (C,) or None               layer scale
    returns (B, C, T)
    """
    B, C, T = x.shape
    I = w1.shape[0]

    # dwconv taps + bias, channel-on-sublane layout for the (C, T) conv
    taps_cb = jnp.concatenate(
        [dw_w.reshape(C, 7), dw_b[:, None]], axis=1).astype(jnp.float32)     # (C, 8)

    # per-channel vectors used in (T, C) layout, channel-on-lane
    g = gamma if gamma is not None else jnp.ones((C,), jnp.float32)
    pc = jnp.stack([ln_w, ln_b, b2, g], axis=0).astype(jnp.float32)          # (4, C)

    w1_t = jnp.transpose(w1).astype(jnp.bfloat16)                            # (C, I)
    w2_t = jnp.transpose(w2).astype(jnp.bfloat16)                            # (I, C)
    b1_2 = b1[None].astype(jnp.float32)                                      # (1, I)

    # explicit scoped-VMEM budget: double-buffered x/out blocks + params + live temps
    bytes_per_step = (
        2 * 2 * C * T * 4                                        # x / out blocks, 2 bufs
        + 2 * (C * 8 * 4 + 4 * C * 4 + I * 4 + 2 * C * I * 2)    # params + bf16 weights
        + 8 * C * T * 4 + 4 * T * I * 4                          # live f32 intermediates
    )
    vmem_limit = int(min(max(bytes_per_step + (8 << 20), 16 << 20), 64 << 20))

    kernel = functools.partial(_convnext_kernel, dilation=dilation,
                               apply_gamma=gamma is not None)

    return pl.pallas_call(
        kernel,
        out_shape=jax.ShapeDtypeStruct((B, C, T), x.dtype),
        grid_spec=pltpu.PrefetchScalarGridSpec(
            num_scalar_prefetch=0,
            grid=(B,),
            in_specs=[
                pl.BlockSpec((1, C, T), lambda b: (b, 0, 0)),   # x (per sample)
                pl.BlockSpec((C, 8), lambda b: (0, 0)),         # dwconv taps + bias
                pl.BlockSpec((4, C), lambda b: (0, 0)),         # ln_w/ln_b/b2/gamma
                pl.BlockSpec((C, I), lambda b: (0, 0)),         # pwconv1 weight^T
                pl.BlockSpec((1, I), lambda b: (0, 0)),         # pwconv1 bias
                pl.BlockSpec((I, C), lambda b: (0, 0)),         # pwconv2 weight^T
            ],
            out_specs=pl.BlockSpec((1, C, T), lambda b: (b, 0, 0)),
        ),
        compiler_params=pltpu.CompilerParams(
            dimension_semantics=("parallel",),
            vmem_limit_bytes=vmem_limit,
        ),
    )(x, taps_cb, pc, w1_t, b1_2, w2_t)


# --------------------------------------------------------------------------- reference
def convnext_block_reference(x, dw_w, dw_b, ln_w, ln_b, w1, b1, w2, b2,
                             gamma, dilation, mxu_bf16):
    """Pure-JAX reference.  mxu_bf16=True mirrors the kernel's bf16 MXU rounding;
    mxu_bf16=False is the full-f32 (PyTorch-semantics) reference."""
    B, C, T = x.shape
    pad = 3 * dilation
    xt = jnp.transpose(x, (0, 2, 1)).astype(jnp.float32)                 # (B, T, C)
    xp = jnp.pad(xt, ((0, 0), (pad, pad), (0, 0)))
    taps = jnp.transpose(dw_w.reshape(C, 7), (1, 0))                     # (7, C)

    h = jnp.zeros_like(xt)
    for k in range(7):
        h = h + xp[:, k * dilation:k * dilation + T, :] * taps[k]
    h = h + dw_b

    mu = jnp.mean(h, axis=-1, keepdims=True)
    hc = h - mu
    var = jnp.mean(hc * hc, axis=-1, keepdims=True)
    hn = hc * jax.lax.rsqrt(var + 1e-6) * ln_w + ln_b

    w1_t = jnp.transpose(w1)
    w2_t = jnp.transpose(w2)
    if mxu_bf16:
        a1 = jnp.dot(hn.astype(jnp.bfloat16), w1_t.astype(jnp.bfloat16),
                     preferred_element_type=jnp.float32) + b1
        a1 = _gelu(a1)
        a2 = jnp.dot(a1.astype(jnp.bfloat16), w2_t.astype(jnp.bfloat16),
                     preferred_element_type=jnp.float32) + b2
    else:
        a1 = jnp.dot(hn, w1_t, precision=jax.lax.Precision.HIGHEST) + b1
        a1 = 0.5 * a1 * (1.0 + jax.scipy.special.erf(a1 * 0.7071067811865476))
        a2 = jnp.dot(a1, w2_t, precision=jax.lax.Precision.HIGHEST) + b2
    if gamma is not None:
        a2 = a2 * gamma

    out = xt + a2
    return jnp.transpose(out, (0, 2, 1)).astype(x.dtype)


# --------------------------------------------------------------------------------- main
if __name__ == "__main__":
    key = jax.random.PRNGKey(0)
    ks = jax.random.split(key, 9)

    B, C, T = 2, 128, 128         # batch=2, dim=128, seq=128 (lane-dense in & out)
    I = 4 * C                     # intermediate_dim = 512
    layer_scale_init_value = 0.5

    x = jax.random.normal(ks[0], (B, C, T), jnp.float32)
    dw_w = jax.random.normal(ks[1], (C, 1, 7), jnp.float32) / jnp.sqrt(7.0)
    dw_b = 0.1 * jax.random.normal(ks[2], (C,), jnp.float32)
    ln_w = 1.0 + 0.1 * jax.random.normal(ks[3], (C,), jnp.float32)
    ln_b = 0.05 * jax.random.normal(ks[4], (C,), jnp.float32)
    w1 = jax.random.normal(ks[5], (I, C), jnp.float32) / jnp.sqrt(float(C))
    b1 = 0.05 * jax.random.normal(ks[6], (I,), jnp.float32)
    w2 = jax.random.normal(ks[7], (C, I), jnp.float32) / jnp.sqrt(float(I))
    b2 = 0.05 * jax.random.normal(ks[8], (C,), jnp.float32)
    gamma = layer_scale_init_value * jnp.ones((C,), jnp.float32)

    # --- config 1: dilation=1, with layer-scale gamma ---
    out = convnext_block_pallas(x, dw_w, dw_b, ln_w, ln_b, w1, b1, w2, b2,
                                gamma=gamma, dilation=1)
    out = jax.block_until_ready(out)
    assert out.shape == (B, C, T)

    ref_matched = convnext_block_reference(x, dw_w, dw_b, ln_w, ln_b, w1, b1, w2, b2,
                                           gamma, 1, mxu_bf16=True)
    assert jnp.allclose(out, ref_matched, atol=5e-3, rtol=5e-3), \
        "Pallas ConvNeXtBlock mismatch vs bf16-matmul reference (dilation=1)"

    ref_exact = convnext_block_reference(x, dw_w, dw_b, ln_w, ln_b, w1, b1, w2, b2,
                                         gamma, 1, mxu_bf16=False)
    assert jnp.allclose(out, ref_exact, atol=2e-2, rtol=2e-2), \
        "Pallas ConvNeXtBlock mismatch vs exact f32 reference (dilation=1)"

    # --- config 2: dilation=2, no layer-scale gamma ---
    out2 = convnext_block_pallas(x, dw_w, dw_b, ln_w, ln_b, w1, b1, w2, b2,
                                 gamma=None, dilation=2)
    out2 = jax.block_until_ready(out2)
    ref2 = convnext_block_reference(x, dw_w, dw_b, ln_w, ln_b, w1, b1, w2, b2,
                                    None, 2, mxu_bf16=True)
    assert jnp.allclose(out2, ref2, atol=5e-3, rtol=5e-3), \
        "Pallas ConvNeXtBlock mismatch vs bf16-matmul reference (dilation=2, no gamma)"

    print("KERNEL_OK")
</pallas_src>

<mosaic_0001>
module attributes {stable_mosaic.version = 11 : i64} {
  func.func @_convnext_kernel(%arg0: i32, %arg1: memref<1x128x128xf32, #tpu.memory_space<vmem>>, %arg2: memref<128x8xf32, #tpu.memory_space<vmem>>, %arg3: memref<4x128xf32, #tpu.memory_space<vmem>>, %arg4: memref<128x512xbf16, #tpu.memory_space<vmem>>, %arg5: memref<1x512xf32, #tpu.memory_space<vmem>>, %arg6: memref<512x128xbf16, #tpu.memory_space<vmem>>, %arg7: memref<1x128x128xf32, #tpu.memory_space<vmem>>) attributes {dimension_semantics = [#tpu.dimension_semantics<parallel>], iteration_bounds = array<i64: 2>, scalar_prefetch = 0 : i64, scratch_operands = 0 : i64, tpu.core_type = #tpu.core_type<tc>, window_params = [{transform_indices = @transform_0, window_bounds = array<i64: 1, 128, 128>}, {pipeline_mode = #tpu.pipeline_mode<synchronous>, transform_indices = @transform_1, window_bounds = array<i64: 128, 8>}, {pipeline_mode = #tpu.pipeline_mode<synchronous>, transform_indices = @transform_2, window_bounds = array<i64: 4, 128>}, {pipeline_mode = #tpu.pipeline_mode<synchronous>, transform_indices = @transform_3, window_bounds = array<i64: 128, 512>}, {pipeline_mode = #tpu.pipeline_mode<synchronous>, transform_indices = @transform_4, window_bounds = array<i64: 1, 512>}, {pipeline_mode = #tpu.pipeline_mode<synchronous>, transform_indices = @transform_5, window_bounds = array<i64: 512, 128>}, {transform_indices = @transform_6, window_bounds = array<i64: 1, 128, 128>}]} {
    %c0 = arith.constant 0 : index
    %c0_0 = arith.constant 0 : index
    %c0_1 = arith.constant 0 : index
    %0 = vector.load %arg1[%c0, %c0_0, %c0_1] : memref<1x128x128xf32, #tpu.memory_space<vmem>>, vector<1x128x128xf32>
    %1 = vector.shape_cast %0 : vector<1x128x128xf32> to vector<128x128xf32>
    %c0_2 = arith.constant 0 : index
    %c0_3 = arith.constant 0 : index
    %2 = vector.load %arg2[%c0_2, %c0_3] : memref<128x8xf32, #tpu.memory_space<vmem>>, vector<128x8xf32>
    %c0_4 = arith.constant 0 : index
    %c0_5 = arith.constant 0 : index
    %3 = vector.load %arg3[%c0_4, %c0_5] : memref<4x128xf32, #tpu.memory_space<vmem>>, vector<4x128xf32>
    %4 = tpu.iota {dimensions = array<i32: 1>} : vector<128x128xi32>
    %5 = vector.extract_strided_slice %2 {offsets = [0, 3], sizes = [128, 1], strides = [1, 1]} : vector<128x8xf32> to vector<128x1xf32>
    %6 = vector.broadcast %5 : vector<128x1xf32> to vector<128x128xf32>
    %7 = arith.mulf %1, %6 : vector<128x128xf32>
    %c3_i32 = arith.constant 3 : i32
    %8 = tpu.dynamic_rotate %1 by %c3_i32 dim 1 : vector<128x128xf32>, i32 -> vector<128x128xf32>
    %c3_i32_6 = arith.constant 3 : i32
    %9 = vector.broadcast %c3_i32_6 : i32 to vector<128x128xi32>
    %10 = arith.cmpi sge, %4, %9 : vector<128x128xi32>
    %c131_i32 = arith.constant 131 : i32
    %11 = vector.broadcast %c131_i32 : i32 to vector<128x128xi32>
    %12 = arith.cmpi slt, %4, %11 : vector<128x128xi32>
    %13 = arith.andi %10, %12 : vector<128x128xi1>
    %cst = arith.constant 0.000000e+00 : f32
    %14 = vector.broadcast %cst : f32 to vector<128x128xf32>
    %15 = arith.select %13, %8, %14 : vector<128x128xi1>, vector<128x128xf32>
    %16 = vector.extract_strided_slice %2 {offsets = [0, 0], sizes = [128, 1], strides = [1, 1]} : vector<128x8xf32> to vector<128x1xf32>
    %17 = vector.broadcast %16 : vector<128x1xf32> to vector<128x128xf32>
    %18 = arith.mulf %15, %17 : vector<128x128xf32>
    %19 = arith.addf %7, %18 : vector<128x128xf32>
    %c2_i32 = arith.constant 2 : i32
    %20 = tpu.dynamic_rotate %1 by %c2_i32 dim 1 : vector<128x128xf32>, i32 -> vector<128x128xf32>
    %c2_i32_7 = arith.constant 2 : i32
    %21 = vector.broadcast %c2_i32_7 : i32 to vector<128x128xi32>
    %22 = arith.cmpi sge, %4, %21 : vector<128x128xi32>
    %c130_i32 = arith.constant 130 : i32
    %23 = vector.broadcast %c130_i32 : i32 to vector<128x128xi32>
    %24 = arith.cmpi slt, %4, %23 : vector<128x128xi32>
    %25 = arith.andi %22, %24 : vector<128x128xi1>
    %cst_8 = arith.constant 0.000000e+00 : f32
    %26 = vector.broadcast %cst_8 : f32 to vector<128x128xf32>
    %27 = arith.select %25, %20, %26 : vector<128x128xi1>, vector<128x128xf32>
    %28 = vector.extract_strided_slice %2 {offsets = [0, 1], sizes = [128, 1], strides = [1, 1]} : vector<128x8xf32> to vector<128x1xf32>
    %29 = vector.broadcast %28 : vector<128x1xf32> to vector<128x128xf32>
    %30 = arith.mulf %27, %29 : vector<128x128xf32>
    %31 = arith.addf %19, %30 : vector<128x128xf32>
    %c1_i32 = arith.constant 1 : i32
    %32 = tpu.dynamic_rotate %1 by %c1_i32 dim 1 : vector<128x128xf32>, i32 -> vector<128x128xf32>
    %c1_i32_9 = arith.constant 1 : i32
    %33 = vector.broadcast %c1_i32_9 : i32 to vector<128x128xi32>
    %34 = arith.cmpi sge, %4, %33 : vector<128x128xi32>
    %c129_i32 = arith.constant 129 : i32
    %35 = vector.broadcast %c129_i32 : i32 to vector<128x128xi32>
    %36 = arith.cmpi slt, %4, %35 : vector<128x128xi32>
    %37 = arith.andi %34, %36 : vector<128x128xi1>
    %cst_10 = arith.constant 0.000000e+00 : f32
    %38 = vector.broadcast %cst_10 : f32 to vector<128x128xf32>
    %39 = arith.select %37, %32, %38 : vector<128x128xi1>, vector<128x128xf32>
    %40 = vector.extract_strided_slice %2 {offsets = [0, 2], sizes = [128, 1], strides = [1, 1]} : vector<128x8xf32> to vector<128x1xf32>
    %41 = vector.broadcast %40 : vector<128x1xf32> to vector<128x128xf32>
    %42 = arith.mulf %39, %41 : vector<128x128xf32>
    %43 = arith.addf %31, %42 : vector<128x128xf32>
    %c127_i32 = arith.constant 127 : i32
    %44 = tpu.dynamic_rotate %1 by %c127_i32 dim 1 : vector<128x128xf32>, i32 -> vector<128x128xf32>
    %c-1_i32 = arith.constant -1 : i32
    %45 = vector.broadcast %c-1_i32 : i32 to vector<128x128xi32>
    %46 = arith.cmpi sge, %4, %45 : vector<128x128xi32>
    %c127_i32_11 = arith.constant 127 : i32
    %47 = vector.broadcast %c127_i32_11 : i32 to vector<128x128xi32>
    %48 = arith.cmpi slt, %4, %47 : vector<128x128xi32>
    %49 = arith.andi %46, %48 : vector<128x128xi1>
    %cst_12 = arith.constant 0.000000e+00 : f32
    %50 = vector.broadcast %cst_12 : f32 to vector<128x128xf32>
    %51 = arith.select %49, %44, %50 : vector<128x128xi1>, vector<128x128xf32>
    %52 = vector.extract_strided_slice %2 {offsets = [0, 4], sizes = [128, 1], strides = [1, 1]} : vector<128x8xf32> to vector<128x1xf32>
    %53 = vector.broadcast %52 : vector<128x1xf32> to vector<128x128xf32>
    %54 = arith.mulf %51, %53 : vector<128x128xf32>
    %55 = arith.addf %43, %54 : vector<128x128xf32>
    %c126_i32 = arith.constant 126 : i32
    %56 = tpu.dynamic_rotate %1 by %c126_i32 dim 1 : vector<128x128xf32>, i32 -> vector<128x128xf32>
    %c-2_i32 = arith.constant -2 : i32
    %57 = vector.broadcast %c-2_i32 : i32 to vector<128x128xi32>
    %58 = arith.cmpi sge, %4, %57 : vector<128x128xi32>
    %c126_i32_13 = arith.constant 126 : i32
    %59 = vector.broadcast %c126_i32_13 : i32 to vector<128x128xi32>
    %60 = arith.cmpi slt, %4, %59 : vector<128x128xi32>
    %61 = arith.andi %58, %60 : vector<128x128xi1>
    %cst_14 = arith.constant 0.000000e+00 : f32
    %62 = vector.broadcast %cst_14 : f32 to vector<128x128xf32>
    %63 = arith.select %61, %56, %62 : vector<128x128xi1>, vector<128x128xf32>
    %64 = vector.extract_strided_slice %2 {offsets = [0, 5], sizes = [128, 1], strides = [1, 1]} : vector<128x8xf32> to vector<128x1xf32>
    %65 = vector.broadcast %64 : vector<128x1xf32> to vector<128x128xf32>
    %66 = arith.mulf %63, %65 : vector<128x128xf32>
    %67 = arith.addf %55, %66 : vector<128x128xf32>
    %c125_i32 = arith.constant 125 : i32
    %68 = tpu.dynamic_rotate %1 by %c125_i32 dim 1 : vector<128x128xf32>, i32 -> vector<128x128xf32>
    %c-3_i32 = arith.constant -3 : i32
    %69 = vector.broadcast %c-3_i32 : i32 to vector<128x128xi32>
    %70 = arith.cmpi sge, %4, %69 : vector<128x128xi32>
    %c125_i32_15 = arith.constant 125 : i32
    %71 = vector.broadcast %c125_i32_15 : i32 to vector<128x128xi32>
    %72 = arith.cmpi slt, %4, %71 : vector<128x128xi32>
    %73 = arith.andi %70, %72 : vector<128x128xi1>
    %cst_16 = arith.constant 0.000000e+00 : f32
    %74 = vector.broadcast %cst_16 : f32 to vector<128x128xf32>
    %75 = arith.select %73, %68, %74 : vector<128x128xi1>, vector<128x128xf32>
    %76 = vector.extract_strided_slice %2 {offsets = [0, 6], sizes = [128, 1], strides = [1, 1]} : vector<128x8xf32> to vector<128x1xf32>
    %77 = vector.broadcast %76 : vector<128x1xf32> to vector<128x128xf32>
    %78 = arith.mulf %75, %77 : vector<128x128xf32>
    %79 = arith.addf %67, %78 : vector<128x128xf32>
    %80 = vector.extract_strided_slice %2 {offsets = [0, 7], sizes = [128, 1], strides = [1, 1]} : vector<128x8xf32> to vector<128x1xf32>
    %81 = vector.broadcast %80 : vector<128x1xf32> to vector<128x128xf32>
    %82 = arith.addf %79, %81 : vector<128x128xf32>
    %83 = tpu.transpose %82, [1, 0] : vector<128x128xf32> -> vector<128x128xf32>
    %cst_17 = arith.constant dense<0.000000e+00> : vector<128xf32>
    %84 = vector.multi_reduction <add>, %83, %cst_17 [1] : vector<128x128xf32> to vector<128xf32>
    %85 = vector.shape_cast %84 : vector<128xf32> to vector<128x1xf32>
    %cst_18 = arith.constant 1.280000e+02 : f32
    %86 = vector.broadcast %cst_18 : f32 to vector<128x1xf32>
    %87 = arith.divf %85, %86 : vector<128x1xf32>
    %88 = vector.broadcast %87 : vector<128x1xf32> to vector<128x128xf32>
    %89 = arith.subf %83, %88 : vector<128x128xf32>
    %90 = arith.mulf %89, %89 : vector<128x128xf32>
    %cst_19 = arith.constant dense<0.000000e+00> : vector<128xf32>
    %91 = vector.multi_reduction <add>, %90, %cst_19 [1] : vector<128x128xf32> to vector<128xf32>
    %92 = vector.shape_cast %91 : vector<128xf32> to vector<128x1xf32>
    %cst_20 = arith.constant 1.280000e+02 : f32
    %93 = vector.broadcast %cst_20 : f32 to vector<128x1xf32>
    %94 = arith.divf %92, %93 : vector<128x1xf32>
    %cst_21 = arith.constant 9.99999997E-7 : f32
    %95 = vector.broadcast %cst_21 : f32 to vector<128x1xf32>
    %96 = arith.addf %94, %95 : vector<128x1xf32>
    %97 = math.rsqrt %96 : vector<128x1xf32>
    %98 = vector.broadcast %97 : vector<128x1xf32> to vector<128x128xf32>
    %99 = arith.mulf %89, %98 : vector<128x128xf32>
    %100 = vector.extract_strided_slice %3 {offsets = [0, 0], sizes = [1, 128], strides = [1, 1]} : vector<4x128xf32> to vector<1x128xf32>
    %101 = vector.broadcast %100 : vector<1x128xf32> to vector<128x128xf32>
    %102 = arith.mulf %99, %101 : vector<128x128xf32>
    %103 = vector.extract_strided_slice %3 {offsets = [1, 0], sizes = [1, 128], strides = [1, 1]} : vector<4x128xf32> to vector<1x128xf32>
    %104 = vector.broadcast %103 : vector<1x128xf32> to vector<128x128xf32>
    %105 = arith.addf %102, %104 : vector<128x128xf32>
    %106 = arith.truncf %105 : vector<128x128xf32> to vector<128x128xbf16>
    %c0_22 = arith.constant 0 : index
    %c0_23 = arith.constant 0 : index
    %107 = vector.load %arg4[%c0_22, %c0_23] : memref<128x512xbf16, #tpu.memory_space<vmem>>, vector<128x512xbf16>
    %cst_24 = arith.constant dense<0.000000e+00> : vector<128x512xf32>
    %108 = tpu.matmul %106, %107, %cst_24 {dimension_numbers = #tpu.dot_dimension_numbers<[1], [0], [0], [1], [0, 0, 1, 1], [], []>} : vector<128x128xbf16>, vector<128x512xbf16>, vector<128x512xf32> -> vector<128x512xf32>
    %c0_25 = arith.constant 0 : index
    %c0_26 = arith.constant 0 : index
    %109 = vector.load %arg5[%c0_25, %c0_26] : memref<1x512xf32, #tpu.memory_space<vmem>>, vector<1x512xf32>
    %110 = vector.broadcast %109 : vector<1x512xf32> to vector<128x512xf32>
    %111 = arith.addf %108, %110 : vector<128x512xf32>
    %cst_27 = arith.constant 5.000000e-01 : f32
    %112 = vector.broadcast %cst_27 : f32 to vector<128x512xf32>
    %113 = arith.mulf %112, %111 : vector<128x512xf32>
    %cst_28 = arith.constant 0.707106769 : f32
    %114 = vector.broadcast %cst_28 : f32 to vector<128x512xf32>
    %115 = arith.mulf %111, %114 : vector<128x512xf32>
    %116 = math.absf %115 : vector<128x512xf32>
    %cst_29 = arith.constant 0.327591091 : f32
    %117 = vector.broadcast %cst_29 : f32 to vector<128x512xf32>
    %118 = arith.mulf %117, %116 : vector<128x512xf32>
    %cst_30 = arith.constant 1.000000e+00 : f32
    %119 = vector.broadcast %cst_30 : f32 to vector<128x512xf32>
    %120 = arith.addf %119, %118 : vector<128x512xf32>
    %cst_31 = arith.constant 1.000000e+00 : f32
    %121 = vector.broadcast %cst_31 : f32 to vector<128x512xf32>
    %122 = arith.divf %121, %120 : vector<128x512xf32>
    %cst_32 = arith.constant 1.06140542 : f32
    %123 = vector.broadcast %cst_32 : f32 to vector<128x512xf32>
    %124 = arith.mulf %123, %122 : vector<128x512xf32>
    %cst_33 = arith.constant -1.45315206 : f32
    %125 = vector.broadcast %cst_33 : f32 to vector<128x512xf32>
    %126 = arith.addf %124, %125 : vector<128x512xf32>
    %127 = arith.mulf %126, %122 : vector<128x512xf32>
    %cst_34 = arith.constant 1.42141378 : f32
    %128 = vector.broadcast %cst_34 : f32 to vector<128x512xf32>
    %129 = arith.addf %127, %128 : vector<128x512xf32>
    %130 = arith.mulf %129, %122 : vector<128x512xf32>
    %cst_35 = arith.constant -0.284496725 : f32
    %131 = vector.broadcast %cst_35 : f32 to vector<128x512xf32>
    %132 = arith.addf %130, %131 : vector<128x512xf32>
    %133 = arith.mulf %132, %122 : vector<128x512xf32>
    %cst_36 = arith.constant 0.254829586 : f32
    %134 = vector.broadcast %cst_36 : f32 to vector<128x512xf32>
    %135 = arith.addf %133, %134 : vector<128x512xf32>
    %136 = arith.mulf %135, %122 : vector<128x512xf32>
    %cst_37 = arith.constant 0.000000e+00 : f32
    %137 = vector.broadcast %cst_37 : f32 to vector<128x512xf32>
    %138 = arith.subf %137, %116 : vector<128x512xf32>
    %139 = arith.mulf %138, %116 : vector<128x512xf32>
    %140 = math.exp %139 : vector<128x512xf32>
    %141 = arith.mulf %136, %140 : vector<128x512xf32>
    %cst_38 = arith.constant 1.000000e+00 : f32
    %142 = vector.broadcast %cst_38 : f32 to vector<128x512xf32>
    %143 = arith.subf %142, %141 : vector<128x512xf32>
    %cst_39 = arith.constant 0.000000e+00 : f32
    %144 = vector.broadcast %cst_39 : f32 to vector<128x512xf32>
    %145 = arith.cmpf olt, %115, %144 : vector<128x512xf32>
    %cst_40 = arith.constant 0.000000e+00 : f32
    %146 = vector.broadcast %cst_40 : f32 to vector<128x512xf32>
    %147 = arith.subf %146, %143 : vector<128x512xf32>
    %148 = arith.select %145, %147, %143 : vector<128x512xi1>, vector<128x512xf32>
    %cst_41 = arith.constant 1.000000e+00 : f32
    %149 = vector.broadcast %cst_41 : f32 to vector<128x512xf32>
    %150 = arith.addf %149, %148 : vector<128x512xf32>
    %151 = arith.mulf %113, %150 : vector<128x512xf32>
    %152 = arith.truncf %151 : vector<128x512xf32> to vector<128x512xbf16>
    %c0_42 = arith.constant 0 : index
    %c0_43 = arith.constant 0 : index
    %153 = vector.load %arg6[%c0_42, %c0_43] : memref<512x128xbf16, #tpu.memory_space<vmem>>, vector<512x128xbf16>
    %cst_44 = arith.constant dense<0.000000e+00> : vector<128x128xf32>
    %154 = tpu.matmul %152, %153, %cst_44 {dimension_numbers = #tpu.dot_dimension_numbers<[1], [0], [0], [1], [0, 0, 1, 1], [], []>} : vector<128x512xbf16>, vector<512x128xbf16>, vector<128x128xf32> -> vector<128x128xf32>
    %155 = vector.extract_strided_slice %3 {offsets = [2, 0], sizes = [1, 128], strides = [1, 1]} : vector<4x128xf32> to vector<1x128xf32>
    %156 = vector.broadcast %155 : vector<1x128xf32> to vector<128x128xf32>
    %157 = arith.addf %154, %156 : vector<128x128xf32>
    %158 = vector.extract_strided_slice %3 {offsets = [3, 0], sizes = [1, 128], strides = [1, 1]} : vector<4x128xf32> to vector<1x128xf32>
    %159 = vector.broadcast %158 : vector<1x128xf32> to vector<128x128xf32>
    %160 = arith.mulf %157, %159 : vector<128x128xf32>
    %161 = tpu.transpose %160, [1, 0] : vector<128x128xf32> -> vector<128x128xf32>
    %162 = arith.addf %1, %161 : vector<128x128xf32>
    %c0_45 = arith.constant 0 : index
    %c0_46 = arith.constant 0 : index
    %c0_47 = arith.constant 0 : index
    %163 = vector.load %arg7[%c0_45, %c0_46, %c0_47] : memref<1x128x128xf32, #tpu.memory_space<vmem>>, vector<1x128x128xf32>
    %164 = vector.shape_cast %163 : vector<1x128x128xf32> to vector<128x128xf32>
    %165 = vector.shape_cast %162 : vector<128x128xf32> to vector<1x128x128xf32>
    tpu.vector_store %arg7[%c0_45, %c0_46, %c0_47], %165 {strides = array<i32>} : memref<1x128x128xf32, #tpu.memory_space<vmem>>, vector<1x128x128xf32>,
    return
  }
  func.func @transform_0(%arg0: i32) -> (i32, i32, i32) {
    %c0_i32 = arith.constant 0 : i32
    %c0_i32_0 = arith.constant 0 : i32
    %c0_i32_1 = arith.constant 0 : i32
    return %arg0, %c0_i32, %c0_i32_0 : i32, i32, i32
  }
  func.func @transform_1(%arg0: i32) -> (i32, i32) {
    %c0_i32 = arith.constant 0 : i32
    %c0_i32_0 = arith.constant 0 : i32
    %c0_i32_1 = arith.constant 0 : i32
    return %c0_i32, %c0_i32_0 : i32, i32
  }
  func.func @transform_2(%arg0: i32) -> (i32, i32) {
    %c0_i32 = arith.constant 0 : i32
    %c0_i32_0 = arith.constant 0 : i32
    %c0_i32_1 = arith.constant 0 : i32
    return %c0_i32, %c0_i32_0 : i32, i32
  }
  func.func @transform_3(%arg0: i32) -> (i32, i32) {
    %c0_i32 = arith.constant 0 : i32
    %c0_i32_0 = arith.constant 0 : i32
    %c0_i32_1 = arith.constant 0 : i32
    return %c0_i32, %c0_i32_0 : i32, i32
  }
  func.func @transform_4(%arg0: i32) -> (i32, i32) {
    %c0_i32 = arith.constant 0 : i32
    %c0_i32_0 = arith.constant 0 : i32
    %c0_i32_1 = arith.constant 0 : i32
    return %c0_i32, %c0_i32_0 : i32, i32
  }
  func.func @transform_5(%arg0: i32) -> (i32, i32) {
    %c0_i32 = arith.constant 0 : i32
    %c0_i32_0 = arith.constant 0 : i32
    %c0_i32_1 = arith.constant 0 : i32
    return %c0_i32, %c0_i32_0 : i32, i32
  }
  func.func @transform_6(%arg0: i32) -> (i32, i32, i32) {
    %c0_i32 = arith.constant 0 : i32
    %c0_i32_0 = arith.constant 0 : i32
    %c0_i32_1 = arith.constant 0 : i32
    return %arg0, %c0_i32, %c0_i32_0 : i32, i32, i32
  }
}

</mosaic_0001>

<bundles_post_ra>
// kernel: tpu_custom_call.1
= control target key start
LH: loop header
LB: loop body
LE: loop exit
PB: predicated region body
PF: predicated region fallthrough
CT: control target
= control target key end

     0   :  { %11 = vsyncpa [#allocation3], 0  ;;  %s11410_s0 = inlined_call_operand.hbm [shape: f32[2,128,128], index: 0, kind: input, shape index: {}]   ;;  %s11411_s1 = inlined_call_operand.vmem [shape: f32[128,8], index: 1, kind: input, shape index: {}]   ;;  %s11412_s2 = inlined_call_operand.vmem [shape: f32[4,128], index: 2, kind: input, shape index: {}]   ;;  %s11413_s3 = inlined_call_operand.hbm [shape: bf16[128,512], index: 3, kind: input, shape index: {}]   ;;  %s11414_s4 = inlined_call_operand.vmem [shape: f32[1,512], index: 4, kind: input, shape index: {}]   ;;  %s11415_s5 = inlined_call_operand.hbm [shape: bf16[512,128], index: 5, kind: input, shape index: {}]   ;;  %s11416_s6 = inlined_call_operand.hbm [shape: f32[2,128,128], index: 6, kind: output, shape index: {}]  }
   0x1   :  { %13 = vsyncpa [#allocation3 + $0x1], 0 }
   0x2   :  { %14 = vsyncpa [#allocation6], 0 }
   0x3   :  { %15 = vsyncpa [#allocation4], 0 }
   0x4   :  { %17 = vsyncpa [#allocation4 + $0x1], 0  ;;  %s6472_s21 = smov 0   ;;  %s6474_s22 = smov 0  }
   0x5   :  { %s6476_s23 = smov 0   ;;  %s6478_s24 = smov 0  }
   0x6 LB: > { %s6493_s25 = sadd.s32 4294967295, %s6410_s24   ;;  %s5431_s26 = sadd.s32 4294967294, %s6410_s24   ;;  %s6410_s24 = sphi %s6478_s24, %s12348_s24   ;;  %s6406_s23 = sphi %s6476_s23, %s12347_s23   ;;  %s6402_s22 = sphi %s6474_s22, %s12346_s22   ;;  %s6398_s21 = sphi %s6472_s21, %s12345_s21  }
   0x7   : > { %p43_p0 = scmp.ne.s32.totalorder %s6402_s22, %s6398_s21  ;;  %p44_p1 = scmp.eq.s32.totalorder %s6493_s25, 0 }
   0x8   : > { %p172_p2 = scmp.eq.s32.totalorder %s6493_s25, 1  ;;  %p178_p3 = scmp.eq.s32.totalorder %s5431_s26, 1 }
   0x9   : > { %p6502_p4 = por %p44_p1, %p43_p0  ;;  %p5432_p5 = scmp.ge.s32.totalorder %s6410_s24, 1 }
   0xa   : > { %p6507_p6 = por %p178_p3, %p43_p0  ;;  %p185_p7 = scmp.lt.s32.totalorder %s6410_s24, 3 }
   0xb   : > { %s202_s7 = sshll.u32 %s11413_s3, 4  ;;  %s6412_s9 = smov [#allocation5]   ;;  %s203_s7 = int_to_ptr.hbm [resolvable:$true] %s202_s7 }
   0xc   : > { %p6515_p8 = pnand %p5432_p5, %p185_p7  ;;  %s204_s10 = sshll.u32 %s6412_s9, 4  ;;  %s205_s10 = int_to_ptr.vmem [resolvable:$true] %s204_s10 }
   0xd   : > { %s219_s13 = sshll.u32 %s11415_s5, 4  ;;  %s6413_s14 = smov 256   ;;  %s220_s13 = int_to_ptr.hbm [resolvable:$true] %s219_s13 }
   0xe   : > { %p5783_p9 = pneg %p6515_p8  ;;  %s6414_s15 = smov 16  }
   0xf   : > { %s6415_s16 = smov [#allocation7]   ;;  %s6416_s18 = smov 64  }
  0x10   : > { %p5784_p10 = pnand %p5783_p9, %p44_p1  ;;  %s221_s17 = sshll.u32 %s6415_s16, 4  ;;  %s222_s17 = int_to_ptr.vmem [resolvable:$true] %s221_s17 }
  0x11   : > { %s6417_s19 = smov 4   ;;  %s6528_s20 = sadd.s32 1, %s6410_s24  }
  0x12   : > { %5786 = dma.hbm_to_vmem [thread:$0]  (!%p5784_p10), %s203_s7, 4096, %s205_s10, [#allocation6], %s6413_s14, %s6413_s14, %s6414_s15  }
  0x13   : > { %5789 = dma.hbm_to_vmem [thread:$0]  (!%p5784_p10), %s220_s13, 4096, %s222_s17, [#allocation6], %s6416_s18, %s6416_s18, %s6417_s19  }
  0x14   : > { %s27_s26 = ssub.s32 %s6410_s24, %s6528_s20  ;;  %s30_s29 = sadd.s32 1, %s6406_s23 }
  0x15   : > { %p28_p12 = scmp.eq.s32.totalorder %s27_s26, 0  ;;  %p37_p13 = scmp.ne.s32.totalorder %s6406_s23, %s6402_s22 }
  0x16   : > { %p38_p0 = scmp.eq.s32.totalorder %s6410_s24, 0  ;;  %p5800_p7 = scmp.lt.s32.totalorder %s6410_s24, 2 }
  0x17   : > { %s6537_s30 = scalar_select %p28_p12, %s6406_s23, %s30_s29  }
  0x18   : > { %p39_p3 = por %p38_p0, %p37_p13  ;;  %p6541_p5 = por %p172_p2, %p37_p13 }
  0x19   : > { %s235_s9 = sand.u32 1, %s6406_s23   ;;  %s5705_s11 = sshll.u32 %s6410_s24, 7 }
  0x1a   : > { %s5436_s10 = sshll.u32 %s235_s9, 7  ;;  %s244_s14 = scalar_lea.hbm %s11410_s0, %s5705_s11 }
  0x1b   : > { %s239_s15 = scalar_lea.vmem [#allocation2], %s5436_s10  ;;  %s245_s17 = sshll.u32 %s244_s14, 4  ;;  %s246_s17 = int_to_ptr.hbm [resolvable:$true] %s245_s17 }
  0x1c   : > { %s247_s16 = sshll.u32 %s239_s15, 4  ;;  %p6551_p9 = pnand %p5800_p7, %p39_p3  ;;  %s248_s16 = int_to_ptr.vmem [resolvable:$true] %s247_s16 }
  0x1d   : > { %s236_s19 = scalar_lea.sflag [#allocation3], %s235_s9  ;;  %s6310_s26 = sshra.s32 %s246_s17, 4  ;;  %s6311_s26 = int_to_ptr.hbm [resolvable:$true] %s6310_s26 }
  0x1e   : > { %s6312_s29 = scalar_lea.hbm %s6311_s26, 128  ;;  %p6314_p10 = pneg %p6551_p9 }
  0x1f   : > { %p6313_p2 = scmp.ne.s32.totalorder %s6311_s26, %s6312_s29  ;;  %s6317_s12 = scalar_lea.hbm %s11410_s0, 256 }
  0x20   : > { %p6318_p0 = scmp.lt.s32.totalorder %s6311_s26, %s11410_s0  ;;  %p6319_p3 = scmp.lt.s32.totalorder %s6317_s12, %s6312_s29 }
  0x21   : > { %p6315_p12 = pnand %p6314_p10, %p6313_p2 }
  0x22   : > { %p6320_p7 = por %p6319_p3, %p6318_p0 }
  0x23   : > { %p6316_p13 = pneg %p6315_p12 }
  0x25   : > { %p6321_p11 = pnand %p6320_p7, %p6316_p13 }
  0x27   : > { %6324 = shalt.err (!%p6321_p11)
}
  0x28   : > { %s6418_s9 = smov 128   ;;  %s6419_s15 = smov 8  }
  0x29   : > { %5793 = dma.hbm_to_vmem [thread:$0]  (!%p6551_p9), %s246_s17, 2048, %s248_s16, %s236_s19, %s6418_s9, %s6418_s9, %s6419_s15  }
  0x2a   : > { %259 = sbr.rel (%p6515_p8) target bundleno = 2319 (0x90f), region = 44 }
  0x2f   : > { %s6568_s11 = sand.u32 1, %s6402_s22  }
  0x30   : > { %s5440_s26 = sshll.u32 %s6568_s11, 7  ;;  %s262_s29 = scalar_lea.sflag [#allocation3], %s6568_s11 }
  0x31   : > { %s6574_s10 = scalar_lea.vmem [#allocation2], %s5440_s26 }
  0x32   : > { %6385 = dma.done.wait (%p6502_p4), %s262_s29, 2048  }
  0x33   : > { %6387 = vsyncadd (%p6502_p4), %s262_s29, 4294965248 }
  0x34   : > { %6389 = dma.done.wait (%p44_p1), [#allocation6], 8192  }
  0x35   : > { %6391 = vsyncadd (%p44_p1), [#allocation6], 4294959104  ;;  %v6420_v0 = vmov 3   ;;  %v6587_v1 = vld [vmem:[%s11411_s1 + $0x20] sm:$0xff]  ;;  %v6592_v2 = vld [vmem:[%s11411_s1 + $0x10] sm:$0xff]  ;;  %s6421_s14 = smov 3  }
  0x36   : > { %5863 = vset.pattern.permute.xlu2 %v6420_v0  ;;  %5862 = vset.pattern.permute.xlu1 %v6420_v0  ;;  %v6597_v3 = vld [vmem:[%s11411_s1] sm:$0xff]  ;;  %v6605_v4 = vld [vmem:[%s11411_s1 + $0x28] sm:$0xff]  ;;  %v6610_v5 = vld [vmem:[%s11411_s1 + $0x18] sm:$0xff]  ;;  %v6422_v19 = vmov 0   ;;  %s6423_s9 = smov 2   ;;  %v6424_v46 = vmov 1  }
  0x37   : > { %5861 = vset.pattern.permute.xlu0 %v6420_v0  ;;  %11648 = vst [vmem:[#allocation12_spill] sm:$0xff] %v6597_v3  ;;  %362 = vperm.xlu2 %5863, %v6587_v1   ;;  %v6615_v6 = vld [vmem:[%s11411_s1 + $0x8] sm:$0xff]  ;;  %v6623_v7 = vld [vmem:[%s11411_s1 + $0x40] sm:$0xff]  ;;  %v6628_v8 = vld [vmem:[%s11411_s1 + $0x38] sm:$0xff]  ;;  %s6425_s15 = smov 1   ;;  %s6427_s29 = smov 127  }
  0x38   : > { %352 = vperm.xlu1 %5862, %v6592_v2   ;;  %342 = vperm.xlu0 %5861, %v6597_v3   ;;  %11649 = vst [vmem:[#allocation13_spill] sm:$0xff] %v6605_v4  ;;  %v6633_v9 = vld [vmem:[%s11411_s1 + $0x30] sm:$0xff]  ;;  %v6641_v10 = vld [vmem:[%s11411_s1 + $0x58] sm:$0xff]  ;;  %v6651_v12 = vld [vmem:[%s11411_s1 + $0x48] sm:$0xff]  ;;  %s6431_s8 = smov 126   ;;  %s6432_s16 = smov 125  }
  0x39   : > { %11650 = vst [vmem:[#allocation14_spill] sm:$0xff] %v6623_v7  ;;  %v6646_v11 = vld [vmem:[%s11411_s1 + $0x50] sm:$0xff]  ;;  %v6664_v14 = vld [vmem:[%s11411_s1 + $0x68] sm:$0xff]  ;;  %v6669_v15 = vld [vmem:[%s11411_s1 + $0x60] sm:$0xff]  ;;  %s11343_s13 = scalar_lea.vmem [#allocation8], %s5440_s26  ;;  %s5770_s26 = sshll.u32 %s6493_s25, 7 }
  0x3a   : > { %11651 = vst [vmem:[#allocation15_spill] sm:$0xff] %v6628_v8  ;;  %v6659_v13 = vld [vmem:[%s11411_s1 + $0x70] sm:$0xff]  ;;  %v6675_v16 = vld [vmem:[%s6574_s10 + $0x8] sm:$0xff]  ;;  %v6678_v17 = vld [vmem:[%s6574_s10] sm:$0xff]  ;;  %s5336_s17 = sshll.u32 %s11343_s13, 4  ;;  %s6360_s19 = scalar_lea.hbm %s11416_s6, 256  ;;  %s5337_s17 = int_to_ptr.vmem [resolvable:$true] %s5336_s17 }
  0x3b   : > { %11652 = vst [vmem:[#allocation16_spill] sm:$0xff] %v6633_v9  ;;  %v6683_v18 = vld [vmem:[%s11411_s1 + $0x78] sm:$0xff]  ;;  %v6691_v20 = vld [vmem:[%s6574_s10 + $0x20] sm:$0xff]  ;;  %v6697_v22 = vld [vmem:[%s6574_s10 + $0x10] sm:$0xff] }
  0x3c   : > { %11653 = vst [vmem:[#allocation17_spill] sm:$0xff] %v6651_v12  ;;  %v6694_v21 = vld [vmem:[%s6574_s10 + $0x18] sm:$0xff]  ;;  %v6709_v24 = vld [vmem:[%s6574_s10 + $0x30] sm:$0xff]  ;;  %v6712_v25 = vld [vmem:[%s6574_s10 + $0x28] sm:$0xff] }
  0x3d   : > { %11654 = vst [vmem:[#allocation18_spill] sm:$0xff] %v6675_v16  ;;  %v6706_v23 = vld [vmem:[%s6574_s10 + $0x38] sm:$0xff]  ;;  %v6721_v26 = vld [vmem:[%s6574_s10 + $0x50] sm:$0xff]  ;;  %v6724_v27 = vld [vmem:[%s6574_s10 + $0x48] sm:$0xff] }
  0x3e   : > { %11655 = vst [vmem:[#allocation19_spill] sm:$0xff] %v6706_v23  ;;  %v6727_v28 = vld [vmem:[%s6574_s10 + $0x40] sm:$0xff]  ;;  %v6736_v29 = vld [vmem:[%s6574_s10 + $0x68] sm:$0xff]  ;;  %v6742_v31 = vld [vmem:[%s6574_s10 + $0x58] sm:$0xff] }
  0x3f   : > { %367 = vperm.xlu2 %5863, %v6605_v4   ;;  %11656 = vst [vmem:[#allocation20_spill] sm:$0xff] %v6709_v24  ;;  %v6739_v30 = vld [vmem:[%s6574_s10 + $0x60] sm:$0xff]  ;;  %v6751_v32 = vld [vmem:[%s6574_s10 + $0x78] sm:$0xff]  ;;  %v6754_v33 = vld [vmem:[%s6574_s10 + $0x70] sm:$0xff] }
  0x40   : > { %357 = vperm.xlu1 %5862, %v6610_v5   ;;  %347 = vperm.xlu0 %5861, %v6615_v6   ;;  %11657 = vst [vmem:[#allocation21_spill] sm:$0xff] %v6712_v25 }
  0x41   : > { %11658 = vst [vmem:[#allocation22_spill] sm:$0xff] %v6727_v28 }
  0x42   : > { %11659 = vst [vmem:[#allocation23_spill] sm:$0xff] %v6736_v29 }
  0x47   : > { %382 = vperm.xlu2 %5863, %v6623_v7  }
  0x48   : > { %377 = vperm.xlu1 %5862, %v6628_v8   ;;  %372 = vperm.xlu0 %5861, %v6633_v9  }
  0x4f   : > { %397 = vperm.xlu2 %5863, %v6641_v10  }
  0x50   : > { %392 = vperm.xlu1 %5862, %v6646_v11   ;;  %387 = vperm.xlu0 %5861, %v6651_v12  }
  0x57   : > { %412 = vperm.xlu2 %5863, %v6659_v13  }
  0x58   : > { %407 = vperm.xlu1 %5862, %v6664_v14   ;;  %402 = vperm.xlu0 %5861, %v6669_v15  }
  0x5f   : > { %438 = vrot.lane.b32.xlu2 %v6675_v16, %s6421_s14 }
  0x60   : > { %436 = vrot.lane.b32.xlu1 %v6678_v17, %s6421_s14  ;;  %417 = vperm.xlu0 %5861, %v6683_v18  }
  0x61   : > { %5864 = vset.pattern.permute.xlu2 %v6422_v19  ;;  %5866 = vset.pattern.permute.xlu1 %v6422_v19 }
  0x67   : > { %444 = vrot.lane.b32.xlu2 %v6691_v20, %s6421_s14 }
  0x68   : > { %442 = vrot.lane.b32.xlu1 %v6694_v21, %s6421_s14  ;;  %440 = vrot.lane.b32.xlu0 %v6697_v22, %s6421_s14 }
  0x69   : > { %5865 = vset.pattern.permute.xlu0 %v6422_v19 }
  0x6f   : > { %450 = vrot.lane.b32.xlu2 %v6706_v23, %s6421_s14 }
  0x70   : > { %448 = vrot.lane.b32.xlu1 %v6709_v24, %s6421_s14  ;;  %446 = vrot.lane.b32.xlu0 %v6712_v25, %s6421_s14 }
  0x77   : > { %456 = vrot.lane.b32.xlu2 %v6721_v26, %s6421_s14 }
  0x78   : > { %454 = vrot.lane.b32.xlu1 %v6724_v27, %s6421_s14  ;;  %452 = vrot.lane.b32.xlu0 %v6727_v28, %s6421_s14 }
  0x7f   : > { %462 = vrot.lane.b32.xlu2 %v6736_v29, %s6421_s14 }
  0x80   : > { %460 = vrot.lane.b32.xlu1 %v6739_v30, %s6421_s14  ;;  %458 = vrot.lane.b32.xlu0 %v6742_v31, %s6421_s14 }
  0x87   : > { %488 = vperm.xlu2 %5864, %v6597_v3  }
  0x88   : > { %466 = vrot.lane.b32.xlu1 %v6751_v32, %s6421_s14  ;;  %464 = vrot.lane.b32.xlu0 %v6754_v33, %s6421_s14 }
  0x8f   : > { %500 = vperm.xlu2 %5864, %v6610_v5  }
  0x90   : > { %496 = vperm.xlu1 %5866, %v6592_v2   ;;  %492 = vperm.xlu0 %5865, %v6615_v6  }
  0x91   : > { %v6764_v34 = vpop.permute.xlu2 %362 }
  0x92   : > { %11660 = vst [vmem:[#allocation24_spill] sm:$0xff] %v6764_v34  ;;  %v6426_v34 = vmov 2  }
  0x97   : > { %508 = vperm.xlu2 %5864, %v6605_v4  }
  0x98   : > { %504 = vperm.xlu1 %5866, %v6587_v1   ;;  %512 = vperm.xlu0 %5865, %v6633_v9  }
  0x99   : > { %v6769_v35 = vpop.permute.xlu2 %367 }
  0x9a   : > { %11661 = vst [vmem:[#allocation25_spill] sm:$0xff] %v6769_v35 }
  0x9f   : > { %520 = vperm.xlu2 %5864, %v6623_v7  }
  0xa0   : > { %516 = vperm.xlu1 %5866, %v6628_v8   ;;  %524 = vperm.xlu0 %5865, %v6651_v12  }
  0xa1   : > { %v6774_v36 = vpop.permute.xlu2 %382 }
  0xa7   : > { %532 = vperm.xlu2 %5864, %v6641_v10  }
  0xa8   : > { %528 = vperm.xlu1 %5866, %v6646_v11   ;;  %536 = vperm.xlu0 %5865, %v6669_v15  }
  0xa9   : > { %v6779_v37 = vpop.permute.xlu2 %397 }
  0xaa   : > { %v6781_v38 = vpop.permute.xlu1 %352  ;;  %v6783_v39 = vpop.permute.xlu0 %342 }
  0xab   : > { %11662 = vst [vmem:[#allocation26_spill] sm:$0xff] %v6781_v38 }
  0xac   : > { %11663 = vst [vmem:[#allocation27_spill] sm:$0xff] %v6783_v39 }
  0xaf   : > { %544 = vperm.xlu2 %5864, %v6659_v13  }
  0xb0   : > { %540 = vperm.xlu1 %5866, %v6664_v14   ;;  %548 = vperm.xlu0 %5865, %v6683_v18  }
  0xb1   : > { %v6788_v40 = vpop.permute.xlu2 %412 }
  0xb2   : > { %v6790_v41 = vpop.permute.xlu1 %357  ;;  %v6792_v42 = vpop.permute.xlu0 %347 }
  0xb3   : > { %11664 = vst [vmem:[#allocation28_spill] sm:$0xff] %v6790_v41 }
  0xb4   : > { %11665 = vst [vmem:[#allocation29_spill] sm:$0xff] %v6792_v42 }
  0xb7   : > { %585 = vrot.lane.b32.xlu2 %v6675_v16, %s6423_s9 }
  0xb8   : > { %583 = vrot.lane.b32.xlu1 %v6678_v17, %s6423_s9  ;;  %587 = vrot.lane.b32.xlu0 %v6697_v22, %s6423_s9 }
  0xb9   : > { %v6802_v44 = vpop.permute.xlu2 %438  ;;  %5868 = vset.pattern.permute.xlu0 %v6424_v46  ;;  %5867 = vset.pattern.permute.xlu2 %v6424_v46 }
  0xba   : > { %v6800_v43 = vpop.permute.xlu1 %377  ;;  %11667 = vst [vmem:[#allocation31_spill] sm:$0xff] %v6802_v44  ;;  %v6804_v45 = vpop.permute.xlu0 %372  ;;  %5869 = vset.pattern.permute.xlu1 %v6424_v46 }
  0xbb   : > { %11666 = vst [vmem:[#allocation30_spill] sm:$0xff] %v6800_v43 }
  0xbc   : > { %11668 = vst [vmem:[#allocation32_spill] sm:$0xff] %v6804_v45 }
  0xbf   : > { %591 = vrot.lane.b32.xlu2 %v6691_v20, %s6423_s9 }
  0xc0   : > { %589 = vrot.lane.b32.xlu1 %v6694_v21, %s6423_s9  ;;  %593 = vrot.lane.b32.xlu0 %v6712_v25, %s6423_s9 }
  0xc1   : > { %v6814_v48 = vpop.permute.xlu2 %444 }
  0xc2   : > { %v6812_v47 = vpop.permute.xlu1 %392  ;;  %11670 = vst [vmem:[#allocation34_spill] sm:$0xff] %v6814_v48  ;;  %v6816_v49 = vpop.permute.xlu0 %387 }
  0xc3   : > { %11669 = vst [vmem:[#allocation33_spill] sm:$0xff] %v6812_v47 }
  0xc7   : > { %597 = vrot.lane.b32.xlu2 %v6706_v23, %s6423_s9 }
  0xc8   : > { %595 = vrot.lane.b32.xlu1 %v6709_v24, %s6423_s9  ;;  %599 = vrot.lane.b32.xlu0 %v6727_v28, %s6423_s9 }
  0xc9   : > { %v6826_v51 = vpop.permute.xlu2 %450 }
  0xca   : > { %v6824_v50 = vpop.permute.xlu1 %407  ;;  %11672 = vst [vmem:[#allocation36_spill] sm:$0xff] %v6826_v51  ;;  %v6828_v52 = vpop.permute.xlu0 %402 }
  0xcb   : > { %11671 = vst [vmem:[#allocation35_spill] sm:$0xff] %v6824_v50 }
  0xcf   : > { %603 = vrot.lane.b32.xlu2 %v6721_v26, %s6423_s9 }
  0xd0   : > { %601 = vrot.lane.b32.xlu1 %v6724_v27, %s6423_s9  ;;  %605 = vrot.lane.b32.xlu0 %v6742_v31, %s6423_s9 }
  0xd1   : > { %v6836_v53 = vpop.permute.xlu2 %456 }
  0xd2   : > { %v6838_v54 = vpop.permute.xlu1 %436  ;;  %v6840_v55 = vpop.permute.xlu0 %417 }
  0xd3   : > { %11673 = vst [vmem:[#allocation37_spill] sm:$0xff] %v6838_v54 }
  0xd7   : > { %609 = vrot.lane.b32.xlu2 %v6736_v29, %s6423_s9 }
  0xd8   : > { %607 = vrot.lane.b32.xlu1 %v6739_v30, %s6423_s9  ;;  %611 = vrot.lane.b32.xlu0 %v6754_v33, %s6423_s9 }
  0xd9   : > { %v6848_v56 = vpop.permute.xlu2 %462 }
  0xda   : > { %11674 = vst [vmem:[#allocation38_spill] sm:$0xff] %v6848_v56  ;;  %v6850_v57 = vpop.permute.xlu1 %442  ;;  %v6852_v58 = vpop.permute.xlu0 %440 }
  0xdb   : > { %11675 = vst [vmem:[#allocation39_spill] sm:$0xff] %v6850_v57 }
  0xdc   : > { %11676 = vst [vmem:[#allocation40_spill] sm:$0xff] %v6852_v58 }
  0xdf   : > { %635 = vperm.xlu2 %5867, %v6597_v3  }
  0xe0   : > { %613 = vrot.lane.b32.xlu1 %v6751_v32, %s6423_s9  ;;  %639 = vperm.xlu0 %5868, %v6615_v6  }
  0xe1   : > { %v6858_v59 = vpop.permute.xlu2 %488 }
  0xe2   : > { %11677 = vst [vmem:[#allocation41_spill] sm:$0xff] %v6858_v59  ;;  %v6860_v60 = vpop.permute.xlu1 %448  ;;  %v6862_v61 = vpop.permute.xlu0 %446 }
  0xe3   : > { %11678 = vst [vmem:[#allocation42_spill] sm:$0xff] %v6860_v60 }
  0xe4   : > { %11679 = vst [vmem:[#allocation43_spill] sm:$0xff] %v6862_v61 }
  0xe7   : > { %647 = vperm.xlu2 %5867, %v6610_v5  }
  0xe8   : > { %643 = vperm.xlu1 %5869, %v6592_v2   ;;  %659 = vperm.xlu0 %5868, %v6633_v9  }
  0xe9   : > { %v6867_v62 = vpop.permute.xlu2 %500 }
  0xea   : > { %11680 = vst [vmem:[#allocation44_spill] sm:$0xff] %v6867_v62  ;;  %v6869_v63 = vpop.permute.xlu1 %454  ;;  %v6871_v0 = vpop.permute.xlu0 %452 }
  0xef   : > { %655 = vperm.xlu2 %5867, %v6605_v4  }
  0xf0   : > { %651 = vperm.xlu1 %5869, %v6587_v1   ;;  %671 = vperm.xlu0 %5868, %v6651_v12  }
  0xf1   : > { %v6876_v19 = vpop.permute.xlu2 %508 }
  0xf2   : > { %11681 = vst [vmem:[#allocation45_spill] sm:$0xff] %v6876_v19  ;;  %v6878_v46 = vpop.permute.xlu1 %460  ;;  %v6880_v43 = vpop.permute.xlu0 %458 }
  0xf7   : > { %667 = vperm.xlu2 %5867, %v6623_v7  }
  0xf8   : > { %663 = vperm.xlu1 %5869, %v6628_v8   ;;  %683 = vperm.xlu0 %5868, %v6669_v15  }
  0xf9   : > { %v6885_v51 = vpop.permute.xlu2 %520 }
  0xfa   : > { %v6887_v41 = vpop.permute.xlu1 %466  ;;  %v6889_v62 = vpop.permute.xlu0 %464 }
  0xff   : > { %679 = vperm.xlu2 %5867, %v6641_v10  }
 0x100   : > { %675 = vperm.xlu1 %5869, %v6646_v11   ;;  %695 = vperm.xlu0 %5868, %v6683_v18  }
 0x101   : > { %v6894_v57 = vpop.permute.xlu2 %532 }
 0x102   : > { %v6896_v45 = vpop.permute.xlu1 %496  ;;  %v6898_v60 = vpop.permute.xlu0 %492 }
 0x103   : > { %11682 = vst [vmem:[#allocation46_spill] sm:$0xff] %v6896_v45 }
 0x104   : > { %11683 = vst [vmem:[#allocation47_spill] sm:$0xff] %v6898_v60 }
 0x107   : > { %691 = vperm.xlu2 %5867, %v6659_v13  }
 0x108   : > { %687 = vperm.xlu1 %5869, %v6664_v14   ;;  %734 = vrot.lane.b32.xlu0 %v6697_v22, %s6425_s15 }
 0x109   : > { %v6904_v35 = vpop.permute.xlu2 %544  ;;  %5871 = vset.pattern.permute.xlu0 %v6426_v34 }
 0x10a   : > { %v6906_v19 = vpop.permute.xlu1 %504  ;;  %v6908_v61 = vpop.permute.xlu0 %512 }
 0x10b   : > { %11684 = vst [vmem:[#allocation48_spill] sm:$0xff] %v6906_v19 }
 0x10c   : > { %11685 = vst [vmem:[#allocation49_spill] sm:$0xff] %v6908_v61 }
 0x10f   : > { %732 = vrot.lane.b32.xlu2 %v6675_v16, %s6425_s15 }
 0x110   : > { %730 = vrot.lane.b32.xlu1 %v6678_v17, %s6425_s15  ;;  %740 = vrot.lane.b32.xlu0 %v6712_v25, %s6425_s15 }
 0x111   : > { %5870 = vset.pattern.permute.xlu2 %v6426_v34  ;;  %v6916_v59 = vpop.permute.xlu2 %585  ;;  %5872 = vset.pattern.permute.xlu1 %v6426_v34 }
 0x112   : > { %11686 = vst [vmem:[#allocation50_spill] sm:$0xff] %v6916_v59  ;;  %v6918_v39 = vpop.permute.xlu1 %516  ;;  %v6920_v19 = vpop.permute.xlu0 %524 }
 0x113   : > { %11687 = vst [vmem:[#allocation51_spill] sm:$0xff] %v6918_v39 }
 0x117   : > { %738 = vrot.lane.b32.xlu2 %v6691_v20, %s6425_s15 }
 0x118   : > { %736 = vrot.lane.b32.xlu1 %v6694_v21, %s6425_s15  ;;  %746 = vrot.lane.b32.xlu0 %v6727_v28, %s6425_s15 }
 0x119   : > { %v6928_v61 = vpop.permute.xlu2 %591 }
 0x11a   : > { %11688 = vst [vmem:[#allocation52_spill] sm:$0xff] %v6928_v61  ;;  %v6930_v48 = vpop.permute.xlu1 %528  ;;  %v6932_v54 = vpop.permute.xlu0 %536 }
 0x11f   : > { %744 = vrot.lane.b32.xlu2 %v6706_v23, %s6425_s15 }
 0x120   : > { %742 = vrot.lane.b32.xlu1 %v6709_v24, %s6425_s15  ;;  %752 = vrot.lane.b32.xlu0 %v6742_v31, %s6425_s15 }
 0x121   : > { %v6940_v34 = vpop.permute.xlu2 %597 }
 0x122   : > { %11689 = vst [vmem:[#allocation53_spill] sm:$0xff] %v6940_v34  ;;  %v6942_v39 = vpop.permute.xlu1 %540  ;;  %v6944_v38 = vpop.permute.xlu0 %548 }
 0x123   : > { %11690 = vst [vmem:[#allocation54_spill] sm:$0xff] %v6942_v39 }
 0x127   : > { %750 = vrot.lane.b32.xlu2 %v6721_v26, %s6425_s15 }
 0x128   : > { %748 = vrot.lane.b32.xlu1 %v6724_v27, %s6425_s15  ;;  %758 = vrot.lane.b32.xlu0 %v6754_v33, %s6425_s15 }
 0x129   : > { %v6952_v61 = vpop.permute.xlu2 %603 }
 0x12a   : > { %v6954_v45 = vpop.permute.xlu1 %583  ;;  %v6956_v58 = vpop.permute.xlu0 %587 }
 0x12b   : > { %11691 = vst [vmem:[#allocation55_spill] sm:$0xff] %v6954_v45 }
 0x12c   : > { %11692 = vst [vmem:[#allocation56_spill] sm:$0xff] %v6956_v58 }
 0x12f   : > { %756 = vrot.lane.b32.xlu2 %v6736_v29, %s6425_s15 }
 0x130   : > { %754 = vrot.lane.b32.xlu1 %v6739_v30, %s6425_s15  ;;  %786 = vperm.xlu0 %5871, %v6615_v6  }
 0x131   : > { %v6963_v34 = vpop.permute.xlu2 %609 }
 0x132   : > { %11693 = vst [vmem:[#allocation57_spill] sm:$0xff] %v6963_v34  ;;  %v6965_v59 = vpop.permute.xlu1 %589  ;;  %v6967_v60 = vpop.permute.xlu0 %593  ;;  %v338_v34 = vlaneseq }
 0x133   : > { %11694 = vst [vmem:[#allocation58_spill] sm:$0xff] %v6965_v59 }
 0x134   : > { %11695 = vst [vmem:[#allocation59_spill] sm:$0xff] %v6967_v60 }
 0x137   : > { %782 = vperm.xlu2 %5870, %v6597_v3  }
 0x138   : > { %760 = vrot.lane.b32.xlu1 %v6751_v32, %s6425_s15  ;;  %806 = vperm.xlu0 %5871, %v6633_v9   ;;  %s5335_s15 = scalar_lea.hbm %s11416_s6, %s5770_s26 }
 0x139   : > { %v6973_v45 = vpop.permute.xlu2 %635  ;;  %s5338_s18 = sshll.u32 %s5335_s15, 4  ;;  %s5339_s18 = int_to_ptr.hbm [resolvable:$true] %s5338_s18 }
 0x13a   : > { %11696 = vst [vmem:[#allocation60_spill] sm:$0xff] %v6973_v45  ;;  %v6975_v58 = vpop.permute.xlu1 %595  ;;  %v6977_v42 = vpop.permute.xlu0 %599 }
 0x13b   : > { %11697 = vst [vmem:[#allocation61_spill] sm:$0xff] %v6975_v58 }
 0x13f   : > { %794 = vperm.xlu2 %5870, %v6610_v5  }
 0x140   : > { %790 = vperm.xlu1 %5872, %v6592_v2   ;;  %818 = vperm.xlu0 %5871, %v6651_v12  }
 0x141   : > { %v6982_v59 = vpop.permute.xlu2 %647 }
 0x142   : > { %11698 = vst [vmem:[#allocation62_spill] sm:$0xff] %v6982_v59  ;;  %v6984_v60 = vpop.permute.xlu1 %601  ;;  %v6986_v44 = vpop.permute.xlu0 %605 }
 0x147   : > { %802 = vperm.xlu2 %5870, %v6605_v4  }
 0x148   : > { %798 = vperm.xlu1 %5872, %v6587_v1   ;;  %830 = vperm.xlu0 %5871, %v6669_v15  }
 0x149   : > { %v6991_v58 = vpop.permute.xlu2 %655 }
 0x14a   : > { %11699 = vst [vmem:[#allocation63_spill] sm:$0xff] %v6991_v58  ;;  %v6993_v45 = vpop.permute.xlu1 %607  ;;  %v6995_v9 = vpop.permute.xlu0 %611 }
 0x14f   : > { %814 = vperm.xlu2 %5870, %v6623_v7  }
 0x150   : > { %810 = vperm.xlu1 %5872, %v6628_v8   ;;  %842 = vperm.xlu0 %5871, %v6683_v18   ;;  %v11426_v8 = vmov 7  }
 0x151   : > { %v7000_v59 = vpop.permute.xlu2 %667 }
 0x152   : > { %v7002_v12 = vpop.permute.xlu1 %613  ;;  %v7004_v4 = vpop.permute.xlu0 %639 }
 0x153   : > { %11700 = vst [vmem:[#allocation64_spill] sm:$0xff] %v7004_v4 }
 0x157   : > { %826 = vperm.xlu2 %5870, %v6641_v10  }
 0x158   : > { %822 = vperm.xlu1 %5872, %v6646_v11   ;;  %881 = vrot.lane.b32.xlu0 %v6697_v22, %s6427_s29 }
 0x159   : > { %v7010_v15 = vpop.permute.xlu2 %679  ;;  %5877 = vset.pattern.permute.xlu0 %v11426_v8  ;;  %v11428_v8 = vmov 4  }
 0x15a   : > { %v7012_v58 = vpop.permute.xlu1 %643  ;;  %v7015_v18 = vpop.permute.xlu0 %659 }
 0x15b   : > { %11701 = vst [vmem:[#allocation65_spill] sm:$0xff] %v7012_v58 }
 0x15c   : > { %11702 = vst [vmem:[#allocation66_spill] sm:$0xff] %v7015_v18 }
 0x15f   : > { %838 = vperm.xlu2 %5870, %v6659_v13  }
 0x160   : > { %834 = vperm.xlu1 %5872, %v6664_v14   ;;  %887 = vrot.lane.b32.xlu0 %v6712_v25, %s6427_s29 }
 0x161   : > { %v7021_v11 = vpop.permute.xlu2 %691 }
 0x162   : > { %v7023_v4 = vpop.permute.xlu1 %651  ;;  %v7025_v7 = vpop.permute.xlu0 %671 }
 0x163   : > { %11703 = vst [vmem:[#allocation67_spill] sm:$0xff] %v7023_v4  ;;  %v11430_v4 = vmov 6  }
 0x167   : > { %879 = vrot.lane.b32.xlu2 %v6675_v16, %s6427_s29 }
 0x168   : > { %877 = vrot.lane.b32.xlu1 %v6678_v17, %s6427_s29  ;;  %893 = vrot.lane.b32.xlu0 %v6727_v28, %s6427_s29 }
 0x169   : > { %5873 = vset.pattern.permute.xlu1 %v11428_v8  ;;  %v7034_v14 = vpop.permute.xlu2 %732  ;;  %5874 = vset.pattern.permute.xlu2 %v11430_v4 }
 0x16a   : > { %11704 = vst [vmem:[#allocation68_spill] sm:$0xff] %v7034_v14  ;;  %v7036_v18 = vpop.permute.xlu1 %663  ;;  %v7038_v58 = vpop.permute.xlu0 %683 }
 0x16b   : > { %11705 = vst [vmem:[#allocation69_spill] sm:$0xff] %v7036_v18 }
 0x16f   : > { %885 = vrot.lane.b32.xlu2 %v6691_v20, %s6427_s29 }
 0x170   : > { %883 = vrot.lane.b32.xlu1 %v6694_v21, %s6427_s29  ;;  %1028 = vrot.lane.b32.xlu0 %v6697_v22, %s6431_s8 }
 0x171   : > { %v7047_v8 = vpop.permute.xlu2 %738 }
 0x172   : > { %11706 = vst [vmem:[#allocation70_spill] sm:$0xff] %v7047_v8  ;;  %v7049_v14 = vpop.permute.xlu1 %675  ;;  %v7051_v18 = vpop.permute.xlu0 %695 }
 0x173   : > { %11707 = vst [vmem:[#allocation71_spill] sm:$0xff] %v7049_v14  ;;  %v428_v14 = vmul.f32 %v6774_v36, %v6727_v28 }
 0x177   : > { %891 = vrot.lane.b32.xlu2 %v6706_v23, %s6427_s29 }
 0x178   : > { %889 = vrot.lane.b32.xlu1 %v6709_v24, %s6427_s29  ;;  %1319 = vperm.xlu0 %5877, %v6597_v3  }
 0x179   : > { %v7058_v4 = vpop.permute.xlu2 %744 }
 0x17a   : > { %11708 = vst [vmem:[#allocation72_spill] sm:$0xff] %v7058_v4  ;;  %v7060_v50 = vpop.permute.xlu1 %687  ;;  %v7062_v29 = vpop.permute.xlu0 %734  ;;  %v7075_v4 = vand.u32 127, %v338_v34 }
 0x17b   : > { %11709 = vst [vmem:[#allocation73_spill] sm:$0xff] %v7060_v50 }
 0x17c   : > { %11710 = vst [vmem:[#allocation74_spill] sm:$0xff] %v7062_v29  ;;  %vm762_vm0 = vcmp.ge.s32.totalorder %v7075_v4, 1  ;;  %vm468_vm1 = vcmp.ge.s32.totalorder %v7075_v4, 3  ;;  %vm615_vm2 = vcmp.ge.s32.totalorder %v7075_v4, 2  ;;  %vm1204_vm3 = vcmp.lt.s32.totalorder %v7075_v4, 125 }
 0x17d   : > { %vm910_vm4 = vcmp.lt.s32.totalorder %v7075_v4, 127  ;;  %vm1057_vm5 = vcmp.lt.s32.totalorder %v7075_v4, 126 }
 0x17f   : > { %1024 = vrot.lane.b32.xlu2 %v6678_v17, %s6431_s8 }
 0x180   : > { %929 = vperm.xlu1 %5873, %v6597_v3   ;;  %1034 = vrot.lane.b32.xlu0 %v6712_v25, %s6431_s8 }
 0x181   : > { %v7069_v8 = vpop.permute.xlu2 %750 }
 0x182   : > { %11711 = vst [vmem:[#allocation75_spill] sm:$0xff] %v7069_v8  ;;  %v7071_v23 = vpop.permute.xlu1 %730  ;;  %v7073_v24 = vpop.permute.xlu0 %740 }
 0x183   : > { %11712 = vst [vmem:[#allocation76_spill] sm:$0xff] %v7071_v23  ;;  %v11718_v23 = vmov 4  }
 0x184   : > { %11713 = vst [vmem:[#allocation77_spill] sm:$0xff] %v7073_v24 }
 0x187   : > { %1171 = vrot.lane.b32.xlu2 %v6678_v17, %s6432_s16 }
 0x188   : > { %933 = vperm.xlu1 %5873, %v6615_v6   ;;  %1331 = vperm.xlu0 %5877, %v6610_v5  }
 0x189   : > { %v757_v29 = vpop.permute.xlu2 %756 }
 0x18a   : > { %v7082_v25 = vpop.permute.xlu1 %736  ;;  %v747_v50 = vpop.permute.xlu0 %746  ;;  %v7086_v24 = vsel %vm762_vm0, %v757_v29, 0.0  ;;  %v11438_v29 = vmov 5  }
 0x18b   : > { %11714 = vst [vmem:[#allocation78_spill] sm:$0xff] %v7082_v25 }
 0x18c   : > { %11715 = vst [vmem:[#allocation79_spill] sm:$0xff] %v7086_v24 }
 0x18f   : > { %1223 = vperm.xlu2 %5874, %v6597_v3   ;;  %v626_v3 = vsel %vm615_vm2, %v6977_v42, 0.0  ;;  %v482_v42 = vsel %vm468_vm1, %v6880_v43, 0.0 }
 0x190   : > { %1026 = vrot.lane.b32.xlu1 %v6675_v16, %s6431_s8  ;;  %1040 = vrot.lane.b32.xlu0 %v6727_v28, %s6431_s8  ;;  %v706_v47 = vmul.f32 %v7000_v59, %v626_v3  ;;  %v562_v43 = vmul.f32 %v6894_v57, %v482_v42 }
 0x191   : > { %v7093_v17 = vpop.permute.xlu2 %782  ;;  %5902 = vset.pattern.permute.xlu0 %v11718_v23 }
 0x192   : > { %11716 = vst [vmem:[#allocation80_spill] sm:$0xff] %v7093_v17  ;;  %v7095_v34 = vpop.permute.xlu1 %742  ;;  %v753_v25 = vpop.permute.xlu0 %752 }
 0x193   : > { %11717 = vst [vmem:[#allocation81_spill] sm:$0xff] %v7095_v34  ;;  %v776_v39 = vsel %vm762_vm0, %v753_v25, 0.0  ;;  %v11720_v25 = vmov 6  }
 0x197   : > { %1173 = vrot.lane.b32.xlu2 %v6675_v16, %s6432_s16 }
 0x198   : > { %937 = vperm.xlu1 %5873, %v6592_v2   ;;  %1189 = vrot.lane.b32.xlu0 %v6724_v27, %s6432_s16 }
 0x199   : > { %5876 = vset.pattern.permute.xlu2 %v11438_v29  ;;  %v7106_v17 = vpop.permute.xlu2 %794  ;;  %v479_v29 = vsel %vm468_vm1, %v6871_v0, 0.0  ;;  %v773_v0 = vsel %vm762_vm0, %v747_v50, 0.0 }
 0x19a   : > { %11719 = vst [vmem:[#allocation82_spill] sm:$0xff] %v7106_v17  ;;  %v749_v34 = vpop.permute.xlu1 %748  ;;  %v759_v24 = vpop.permute.xlu0 %758  ;;  %v559_v8 = vmul.f32 %v6885_v51, %v479_v29  ;;  %v627_v29 = vsel %vm615_vm2, %v6984_v60, 0.0 }
 0x19b   : > { %v7110_v56 = vsel %vm762_vm0, %v759_v24, 0.0  ;;  %v774_v60 = vsel %vm762_vm0, %v749_v34, 0.0  ;;  %v632_v34 = vsel %vm615_vm2, %v6995_v9, 0.0 }
 0x19f   : > { %1084 = vperm.xlu2 %5876, %v6592_v2  }
 0x1a0   : > { %5875 = vset.pattern.permute.xlu1 %v11720_v25  ;;  %899 = vrot.lane.b32.xlu0 %v6742_v31, %s6427_s29 }
 0x1a1   : > { %1227 = vperm.xlu1 %5875, %v6615_v6   ;;  %v7121_v17 = vpop.permute.xlu2 %802 }
 0x1a2   : > { %11721 = vst [vmem:[#allocation83_spill] sm:$0xff] %v7121_v17  ;;  %v755_v16 = vpop.permute.xlu1 %754  ;;  %v7124_v24 = vpop.permute.xlu0 %786  ;;  %v575_v17 = vadd.f32 %v559_v8, %v428_v14  ;;  %v629_v8 = vsel %vm615_vm2, %v6986_v44, 0.0  ;;  %v480_v14 = vsel %vm468_vm1, %v6869_v63, 0.0  ;;  %v431_v44 = vmul.f32 %v6779_v37, %v6742_v31 }
 0x1a3   : > { %v707_v63 = vmul.f32 %v7025_v7, %v627_v29 }
 0x1a4   : > { %v722_v3 = vadd.f32 %v706_v47, %v575_v17  ;;  %v429_v47 = vmul.f32 %v6816_v49, %v6724_v27  ;;  %v560_v17 = vmul.f32 %v6920_v19, %v480_v14  ;;  %v578_v57 = vadd.f32 %v562_v43, %v431_v44 }
 0x1a5   : > { %v485_v49 = vsel %vm468_vm1, %v6889_v62, 0.0  ;;  %v483_v62 = vsel %vm468_vm1, %v6878_v46, 0.0  ;;  %v630_v14 = vsel %vm615_vm2, %v6993_v45, 0.0  ;;  %v712_v46 = vmul.f32 %v7021_v11, %v632_v34 }
 0x1a6   : > { %v576_v19 = vadd.f32 %v560_v17, %v429_v47  ;;  %v563_v29 = vmul.f32 %v6932_v54, %v483_v62  ;;  %v434_v47 = vmul.f32 %v6788_v40, %v6754_v33 }
 0x1a7   : > { %1175 = vrot.lane.b32.xlu2 %v6697_v22, %s6432_s16 }
 0x1a8   : > { %973 = vperm.xlu0 %5902, %v6641_v10   ;;  %5879 = vset.pattern.permute.xlu2 %v11720_v25 }
 0x1a9   : > { %5878 = vset.pattern.permute.xlu1 %v11718_v23  ;;  %v815_v51 = vpop.permute.xlu2 %814 }
 0x1aa   : > { %941 = vperm.xlu1 %5878, %v6610_v5   ;;  %v7143_v36 = vpop.permute.xlu1 %760  ;;  %v7146_v59 = vpop.permute.xlu0 %806  ;;  %v853_v50 = vmul.f32 %v815_v51, %v773_v0  ;;  %v709_v0 = vmul.f32 %v7010_v15, %v629_v8  ;;  %v11722_v51 = vmov 7   ;;  %v565_v8 = vmul.f32 %v6904_v35, %v485_v49 }
 0x1ab   : > { %v710_v35 = vmul.f32 %v7038_v58, %v630_v14 }
 0x1ac   : > { %v7158_v28 = vadd.f32 %v853_v50, %v722_v3  ;;  %v725_v7 = vadd.f32 %v709_v0, %v578_v57  ;;  %v723_v3 = vadd.f32 %v707_v63, %v576_v19  ;;  %v581_v17 = vadd.f32 %v565_v8, %v434_v47  ;;  %v11728_v8 = vld [vmem:[#allocation12_spill] sm:$0xff] }
 0x1ad   : > { %v435_v57 = vmul.f32 %v6840_v55, %v6751_v32  ;;  %v11723_v55 = vmov 5  }
 0x1ae   : > { %v728_v54 = vadd.f32 %v712_v46, %v581_v17  ;;  %v11729_v46 = vld [vmem:[#allocation38_spill] sm:$0xff] }
 0x1af   : > { %1231 = vperm.xlu2 %5879, %v6592_v2  }
 0x1b0   : > { %1195 = vrot.lane.b32.xlu0 %v6739_v30, %s6432_s16 }
 0x1b1   : > { %v827_v42 = vpop.permute.xlu2 %826 }
 0x1b2   : > { %1030 = vrot.lane.b32.xlu1 %v6694_v21, %s6431_s8  ;;  %v7177_v31 = vpop.permute.xlu1 %790  ;;  %v819_v37 = vpop.permute.xlu0 %818  ;;  %v856_v15 = vmul.f32 %v827_v42, %v776_v39  ;;  %v432_v39 = vmul.f32 %v6828_v52, %v6739_v30  ;;  %v777_v30 = vsel %vm762_vm0, %v755_v16, 0.0  ;;  %v633_v16 = vsel %vm615_vm2, %v7002_v12, 0.0 }
 0x1b3   : > { %5880 = vset.pattern.permute.xlu1 %v11722_v51  ;;  %v854_v50 = vmul.f32 %v819_v37, %v774_v60  ;;  %v780_v12 = vsel %vm762_vm0, %v7143_v36, 0.0  ;;  %v628_v37 = vsel %vm615_vm2, %v6952_v61, 0.0 }
 0x1b4   : > { %v7190_v43 = vadd.f32 %v856_v15, %v725_v7  ;;  %v579_v45 = vadd.f32 %v563_v29, %v432_v39  ;;  %v11725_v15 = vld [vmem:[#allocation33_spill] sm:$0xff] }
 0x1b5   : > { %v7195_v9 = vadd.f32 %v854_v50, %v723_v3  ;;  %v430_v34 = vmul.f32 %v11725_v15, %v6721_v26  ;;  %v11726_v3 = vld [vmem:[#allocation71_spill] sm:$0xff] }
 0x1b6   : > { %v726_v44 = vadd.f32 %v710_v35, %v579_v45  ;;  %v708_v50 = vmul.f32 %v11726_v3, %v628_v37  ;;  %v484_v35 = vsel %vm468_vm1, %v11729_v46, 0.0  ;;  %v11731_v45 = vld [vmem:[#allocation57_spill] sm:$0xff]  ;;  %v11743_v46 = vld [vmem:[#allocation15_spill] sm:$0xff] }
 0x1b7   : > { %5881 = vset.pattern.permute.xlu2 %v11718_v23 }
 0x1b8   : > { %905 = vrot.lane.b32.xlu0 %v6754_v33, %s6427_s29  ;;  %945 = vperm.xlu2 %5881, %v6587_v1   ;;  %v486_v33 = vsel %vm468_vm1, %v6887_v41, 0.0 }
 0x1b9   : > { %v839_v52 = vpop.permute.xlu2 %838  ;;  %v566_v60 = vmul.f32 %v6944_v38, %v486_v33 }
 0x1ba   : > { %1323 = vperm.xlu1 %5880, %v6615_v6   ;;  %v7208_v40 = vpop.permute.xlu1 %798  ;;  %v831_v11 = vpop.permute.xlu0 %830  ;;  %v859_v58 = vmul.f32 %v839_v52, %v7110_v56  ;;  %v713_v56 = vmul.f32 %v7051_v18, %v633_v16  ;;  %v481_v18 = vsel %vm468_vm1, %v6836_v53, 0.0  ;;  %v11727_v53 = vld [vmem:[#allocation75_spill] sm:$0xff]  ;;  %v631_v52 = vsel %vm615_vm2, %v11731_v45, 0.0  ;;  %v11745_v45 = vld [vmem:[#allocation29_spill] sm:$0xff] }
 0x1bb   : > { %v857_v0 = vmul.f32 %v831_v11, %v777_v30  ;;  %v582_v41 = vadd.f32 %v566_v60, %v435_v57  ;;  %v561_v36 = vmul.f32 %v6930_v48, %v481_v18  ;;  %v775_v48 = vsel %vm762_vm0, %v11727_v53, 0.0  ;;  %v11733_v11 = vld [vmem:[#allocation35_spill] sm:$0xff] }
 0x1bc   : > { %v7217_v63 = vadd.f32 %v859_v58, %v728_v54  ;;  %v11732_v54 = vld [vmem:[#allocation23_spill] sm:$0xff] }
 0x1bd   : > { %v7222_v49 = vadd.f32 %v857_v0, %v726_v44  ;;  %v729_v42 = vadd.f32 %v713_v56, %v582_v41  ;;  %v577_v62 = vadd.f32 %v561_v36, %v430_v34  ;;  %v433_v58 = vmul.f32 %v11733_v11, %v11732_v54  ;;  %v11734_v44 = vld [vmem:[#allocation73_spill] sm:$0xff]  ;;  %v11739_v36 = vld [vmem:[#allocation16_spill] sm:$0xff]  ;;  %v11746_v54 = vld [vmem:[#allocation47_spill] sm:$0xff] }
 0x1be   : > { %v711_v0 = vmul.f32 %v11734_v44, %v631_v52  ;;  %v11747_v44 = vld [vmem:[#allocation50_spill] sm:$0xff] }
 0x1bf   : > { %v724_v39 = vadd.f32 %v708_v50, %v577_v62  ;;  %v11740_v50 = vld [vmem:[#allocation14_spill] sm:$0xff] }
 0x1c0   : > { %985 = vperm.xlu0 %5902, %v6659_v13   ;;  %1032 = vrot.lane.b32.xlu2 %v6691_v20, %s6431_s8 }
 0x1c1   : > { %v7231_v19 = vpop.permute.xlu2 %879  ;;  %5883 = vset.pattern.permute.xlu2 %v11722_v51 }
 0x1c2   : > { %1177 = vrot.lane.b32.xlu1 %v6694_v21, %s6432_s16  ;;  %v7235_v32 = vpop.permute.xlu1 %810  ;;  %v843_v38 = vpop.permute.xlu0 %842 }
 0x1c3   : > { %5882 = vset.pattern.permute.xlu1 %v11723_v55  ;;  %v860_v7 = vmul.f32 %v843_v38, %v780_v12  ;;  %v11735_v12 = vld [vmem:[#allocation79_spill] sm:$0xff]  ;;  %v11736_v38 = vld [vmem:[#allocation13_spill] sm:$0xff] }
 0x1c5   : > { %v7246_v21 = vadd.f32 %v860_v7, %v729_v42  ;;  %v11738_v7 = vld [vmem:[#allocation21_spill] sm:$0xff] }
 0x1c7   : > { %11724 = vst [vmem:[#allocation84_spill] sm:$0xff] %v7246_v21 }
 0x1c8   : > { %5911 = vset.pattern.permute.xlu0 %v11723_v55  ;;  %1327 = vperm.xlu2 %5883, %v6592_v2   ;;  %v11730_v2 = vld [vmem:[#allocation54_spill] sm:$0xff] }
 0x1c9   : > { %1076 = vperm.xlu0 %5911, %v11728_v8   ;;  %v7257_v14 = vpop.permute.xlu2 %885  ;;  %v564_v17 = vmul.f32 %v11730_v2, %v484_v35 }
 0x1ca   : > { %1092 = vperm.xlu1 %5882, %v6587_v1   ;;  %v823_v61 = vpop.permute.xlu1 %822  ;;  %v7260_v29 = vpop.permute.xlu0 %881 }
 0x1cb   : > { %v855_v47 = vmul.f32 %v823_v61, %v775_v48  ;;  %v580_v33 = vadd.f32 %v564_v17, %v433_v58  ;;  %v11741_v61 = vld [vmem:[#allocation20_spill] sm:$0xff]  ;;  %v11744_v17 = vld [vmem:[#allocation18_spill] sm:$0xff] }
 0x1cc   : > { %v421_v52 = vmul.f32 %v11745_v45, %v11744_v17 }
 0x1cd   : > { %v7266_v30 = vadd.f32 %v855_v47, %v724_v39  ;;  %v727_v60 = vadd.f32 %v711_v0, %v580_v33  ;;  %v11742_v39 = vld [vmem:[#allocation31_spill] sm:$0xff]  ;;  %v619_v0 = vsel %vm615_vm2, %v11747_v44, 0.0  ;;  %v11748_v33 = vld [vmem:[#allocation64_spill] sm:$0xff] }
 0x1ce   : > { %v472_v47 = vsel %vm468_vm1, %v11742_v39, 0.0 }
 0x1cf   : > { %v552_v11 = vmul.f32 %v11746_v54, %v472_v47  ;;  %v11753_v54 = vld [vmem:[#allocation56_spill] sm:$0xff] }
 0x1d0   : > { %1179 = vrot.lane.b32.xlu2 %v6691_v20, %s6432_s16 }
 0x1d1   : > { %1080 = vperm.xlu0 %5911, %v6615_v6   ;;  %v7277_v16 = vpop.permute.xlu2 %891  ;;  %5886 = vset.pattern.permute.xlu2 %v11723_v55 }
 0x1d2   : > { %5884 = vset.pattern.permute.xlu1 %v11718_v23  ;;  %v835_v57 = vpop.permute.xlu1 %834  ;;  %v7280_v56 = vpop.permute.xlu0 %887 }
 0x1d3   : > { %v858_v41 = vmul.f32 %v835_v57, %v11735_v12  ;;  %949 = vperm.xlu1 %5884, %v11736_v38   ;;  %v699_v57 = vmul.f32 %v11748_v33, %v619_v0  ;;  %v11754_v33 = vld [vmem:[#allocation46_spill] sm:$0xff] }
 0x1d5   : > { %v7285_v18 = vadd.f32 %v858_v41, %v727_v60  ;;  %v11749_v60 = vld [vmem:[#allocation68_spill] sm:$0xff]  ;;  %v568_v41 = vadd.f32 %v552_v11, %v421_v52  ;;  %v620_v11 = vsel %vm615_vm2, %v11753_v54, 0.0 }
 0x1d6   : > { %v766_v12 = vsel %vm762_vm0, %v11749_v60, 0.0  ;;  %v11755_v60 = vld [vmem:[#allocation74_spill] sm:$0xff] }
 0x1d7   : > { %11737 = vst [vmem:[#allocation33_spill] sm:$0xff] %v7285_v18  ;;  %v11771_v18 = vld [vmem:[#allocation70_spill] sm:$0xff] }
 0x1d8   : > { %1096 = vperm.xlu2 %5886, %v11736_v38  }
 0x1d9   : > { %1088 = vperm.xlu0 %5911, %v6610_v5   ;;  %v7289_v6 = vpop.permute.xlu2 %1024 }
 0x1da   : > { %v7291_v20 = vpop.permute.xlu1 %877  ;;  %v7293_v42 = vpop.permute.xlu0 %893 }
 0x1db   : > { %5885 = vset.pattern.permute.xlu1 %v11720_v25 }
 0x1dc   : > { %1239 = vperm.xlu1 %5885, %v6587_v1  }
 0x1e0   : > { %1181 = vrot.lane.b32.xlu2 %v11738_v7, %s6432_s16  ;;  %v846_v7 = vmul.f32 %v7124_v24, %v766_v12  ;;  %v767_v12 = vsel %vm762_vm0, %v11755_v60, 0.0 }
 0x1e1   : > { %1100 = vperm.xlu0 %5911, %v11739_v36   ;;  %v1172_v37 = vpop.permute.xlu2 %1171  ;;  %5888 = vset.pattern.permute.xlu2 %v11720_v25 }
 0x1e2   : > { %v7300_v15 = vpop.permute.xlu1 %883  ;;  %v1029_v34 = vpop.permute.xlu0 %1028  ;;  %v1206_v3 = vsel %vm1204_vm3, %v1172_v37, 0.0 }
 0x1e3   : > { %v1061_v37 = vsel %vm1057_vm5, %v1029_v34, 0.0 }
 0x1e4   : > { %5887 = vset.pattern.permute.xlu1 %v11718_v23 }
 0x1e5   : > { %953 = vperm.xlu1 %5887, %v11739_v36  }
 0x1e8   : > { %1243 = vperm.xlu2 %5888, %v11736_v38  }
 0x1e9   : > { %1108 = vperm.xlu0 %5911, %v11740_v50   ;;  %v1224_v62 = vpop.permute.xlu2 %1223 }
 0x1ea   : > { %v7310_v53 = vpop.permute.xlu1 %889  ;;  %v7312_v48 = vpop.permute.xlu0 %1319  ;;  %v7314_v8 = vmul.f32 %v1224_v62, %v1206_v3  ;;  %v715_v3 = vadd.f32 %v699_v57, %v568_v41  ;;  %v913_v62 = vsel %vm910_vm4, %v7231_v19, 0.0  ;;  %v11756_v41 = vld [vmem:[#allocation26_spill] sm:$0xff] }
 0x1ec   : > { %v862_v24 = vadd.f32 %v846_v7, %v715_v3  ;;  %v422_v7 = vmul.f32 %v11756_v41, %v6697_v22 }
 0x1ed   : > { %1036 = vrot.lane.b32.xlu1 %v11741_v61, %s6431_s8 }
 0x1ee   : > { %5889 = vset.pattern.permute.xlu1 %v11722_v51 }
 0x1f0   : > { %5890 = vset.pattern.permute.xlu2 %v11718_v23 }
 0x1f1   : > { %1120 = vperm.xlu0 %5911, %v6641_v10   ;;  %957 = vperm.xlu2 %5890, %v11743_v46   ;;  %v7325_v35 = vpop.permute.xlu2 %1173 }
 0x1f2   : > { %v7327_v2 = vpop.permute.xlu1 %929  ;;  %v7332_v58 = vpop.permute.xlu0 %1034 }
 0x1f5   : > { %1335 = vperm.xlu1 %5889, %v6587_v1   ;;  %v11750_v1 = vld [vmem:[#allocation19_spill] sm:$0xff] }
 0x1f9   : > { %1132 = vperm.xlu0 %5911, %v6659_v13   ;;  %1038 = vrot.lane.b32.xlu2 %v11750_v1, %s6431_s8  ;;  %v1085_v39 = vpop.permute.xlu2 %1084  ;;  %v11752_v13 = vld [vmem:[#allocation40_spill] sm:$0xff] }
 0x1fa   : > { %v934_v47 = vpop.permute.xlu1 %933  ;;  %v7353_v17 = vpop.permute.xlu0 %1331  ;;  %v1141_v45 = vmul.f32 %v1085_v39, %v1061_v37  ;;  %5892 = vset.pattern.permute.xlu2 %v11722_v51  ;;  %v473_v19 = vsel %vm468_vm1, %v11752_v13, 0.0  ;;  %v11757_v37 = vld [vmem:[#allocation65_spill] sm:$0xff] }
 0x1fb   : > { %11751 = vst [vmem:[#allocation71_spill] sm:$0xff] %v7353_v17  ;;  %v993_v52 = vmul.f32 %v934_v47, %v913_v62  ;;  %v553_v57 = vmul.f32 %v11754_v33, %v473_v19  ;;  %v700_v3 = vmul.f32 %v11757_v37, %v620_v11  ;;  %v847_v62 = vmul.f32 %v7177_v31, %v767_v12  ;;  %v11758_v33 = vld [vmem:[#allocation17_spill] sm:$0xff] }
 0x1fd   : > { %v7356_v34 = vadd.f32 %v993_v52, %v862_v24  ;;  %1183 = vrot.lane.b32.xlu1 %v11741_v61, %s6432_s16 }
 0x1fe   : > { %5891 = vset.pattern.permute.xlu1 %v11723_v55 }
 0x201   : > { %5913 = vset.pattern.permute.xlu0 %v11720_v25  ;;  %1339 = vperm.xlu2 %5892, %v11736_v38   ;;  %v1176_v44 = vpop.permute.xlu2 %1175  ;;  %v569_v38 = vadd.f32 %v553_v57, %v422_v7  ;;  %v6211_v7 = vld [vmem:[%s11411_s1 + $0x30] sm:$0xff] }
 0x202   : > { %v7369_v0 = vpop.permute.xlu1 %1026  ;;  %1235 = vperm.xlu0 %5913, %v6610_v5   ;;  %v7373_v61 = vpop.permute.xlu0 %1040  ;;  %v914_v5 = vsel %vm910_vm4, %v7260_v29, 0.0  ;;  %v916_v29 = vsel %vm910_vm4, %v7257_v14, 0.0  ;;  %v1208_v41 = vsel %vm1204_vm3, %v1176_v44, 0.0 }
 0x203   : > { %v716_v39 = vadd.f32 %v700_v3, %v569_v38 }
 0x205   : > { %1104 = vperm.xlu1 %5891, %v11743_v46   ;;  %v863_v52 = vadd.f32 %v847_v62, %v716_v39  ;;  %v11759_v62 = vld [vmem:[#allocation22_spill] sm:$0xff] }
 0x209   : > { %1185 = vrot.lane.b32.xlu2 %v11750_v1, %s6432_s16  ;;  %v1232_v47 = vpop.permute.xlu2 %1231 }
 0x20a   : > { %v938_v24 = vpop.permute.xlu1 %937  ;;  %1247 = vperm.xlu0 %5913, %v11739_v36   ;;  %v7389_v22 = vpop.permute.xlu0 %1189  ;;  %5896 = vset.pattern.permute.xlu2 %v11718_v23 }
 0x20b   : > { %v994_v13 = vmul.f32 %v938_v24, %v914_v5  ;;  %v11760_v24 = vld [vmem:[#allocation37_spill] sm:$0xff] }
 0x20d   : > { %v1010_v19 = vadd.f32 %v994_v13, %v863_v52  ;;  %5893 = vset.pattern.permute.xlu1 %v11718_v23  ;;  %v471_v52 = vsel %vm468_vm1, %v11760_v24, 0.0  ;;  %v1064_v13 = vsel %vm1057_vm5, %v7332_v58, 0.0  ;;  %v11765_v58 = vld [vmem:[#allocation48_spill] sm:$0xff] }
 0x20e   : > { %961 = vperm.xlu1 %5893, %v11740_v50  }
 0x20f   : > { %v1157_v31 = vadd.f32 %v1141_v45, %v1010_v19 }
 0x211   : > { %895 = vrot.lane.b32.xlu2 %v6724_v27, %s6427_s29 }
 0x212   : > { %v900_v1 = vpop.permute.xlu0 %899  ;;  %v946_v36 = vpop.permute.xlu2 %945  ;;  %1255 = vperm.xlu0 %5913, %v11740_v50  }
 0x213   : > { %v7400_v54 = vmul.f32 %v946_v36, %v916_v29  ;;  %v7402_v11 = vpop.permute.xlu1 %1227  ;;  %v923_v45 = vsel %vm910_vm4, %v900_v1, 0.0  ;;  %v11762_v1 = vld [vmem:[#allocation55_spill] sm:$0xff] }
 0x214   : > { %v618_v36 = vsel %vm615_vm2, %v11762_v1, 0.0  ;;  %v11768_v1 = vld [vmem:[#allocation24_spill] sm:$0xff] }
 0x216   : > { %5894 = vset.pattern.permute.xlu1 %v11720_v25 }
 0x217   : > { %1251 = vperm.xlu1 %5894, %v11743_v46   ;;  %v1288_v46 = vmul.f32 %v1232_v47, %v1208_v41 }
 0x219   : > { %965 = vperm.xlu2 %5896, %v11758_v33  }
 0x21a   : > { %v974_v57 = vpop.permute.xlu0 %973  ;;  %v7409_v60 = vpop.permute.xlu2 %1032  ;;  %1267 = vperm.xlu0 %5913, %v6641_v10   ;;  %v1304_v10 = vadd.f32 %v1288_v46, %v1157_v31  ;;  %v11761_v31 = vld [vmem:[#allocation34_spill] sm:$0xff] }
 0x21b   : > { %v1003_v14 = vmul.f32 %v974_v57, %v923_v45  ;;  %v475_v29 = vsel %vm468_vm1, %v11761_v31, 0.0  ;;  %v6214_v45 = vld [vmem:[%s6574_s10] sm:$0xff]  ;;  %v11764_v57 = vld [vmem:[#allocation41_spill] sm:$0xff] }
 0x21c   : > { %v7412_v50 = vpop.permute.xlu1 %941  ;;  %v555_v41 = vmul.f32 %v11765_v58, %v475_v29  ;;  %v6216_v29 = vld [vmem:[%s6574_s10 + $0x20] sm:$0xff]  ;;  %v11770_v58 = vld [vmem:[#allocation67_spill] sm:$0xff] }
 0x21d   : > { %v7415_v12 = vadd.f32 %v1003_v14, %v7190_v43  ;;  %v6212_v43 = vld [vmem:[%s11411_s1 + $0x70] sm:$0xff]  ;;  %v551_v14 = vmul.f32 %v11764_v57, %v471_v52 }
 0x21f   : > { %5895 = vset.pattern.permute.xlu1 %v11722_v51 }
 0x220   : > { %1343 = vperm.xlu1 %5895, %v6211_v7   ;;  %v7472_v7 = vld [vmem:[%s11411_s1 + $0x50] sm:$0xff] }
 0x221   : > { %1042 = vrot.lane.b32.xlu2 %v6724_v27, %s6431_s8  ;;  %v7440_v27 = vld [vmem:[%s11411_s1 + $0x48] sm:$0xff] }
 0x222   : > { %v7425_v37 = vpop.permute.xlu0 %1195  ;;  %v1328_v3 = vpop.permute.xlu2 %1327  ;;  %5897 = vset.pattern.permute.xlu2 %v11723_v55  ;;  %1279 = vperm.xlu0 %5913, %v6212_v43  }
 0x223   : > { %v7431_v44 = vadd.f32 %v1328_v3, %v1304_v10  ;;  %v11766_v3 = vld [vmem:[#allocation52_spill] sm:$0xff] }
 0x224   : > { %v7433_v38 = vpop.permute.xlu1 %1030 }
 0x228   : > { %1187 = vrot.lane.b32.xlu1 %v11759_v62, %s6432_s16  ;;  %v11767_v62 = vld [vmem:[#allocation76_spill] sm:$0xff] }
 0x229   : > { %1112 = vperm.xlu2 %5897, %v7440_v27  }
 0x22a   : > { %v906_v5 = vpop.permute.xlu0 %905  ;;  %v7443_v39 = vpop.permute.xlu2 %1179  ;;  %5919 = vset.pattern.permute.xlu0 %v11722_v51 }
 0x22b   : > { %1375 = vperm.xlu0 %5919, %v6212_v43   ;;  %v926_v19 = vsel %vm910_vm4, %v906_v5, 0.0  ;;  %v622_v43 = vsel %vm615_vm2, %v11766_v3, 0.0  ;;  %v765_v5 = vsel %vm762_vm0, %v11767_v62, 0.0  ;;  %v769_v3 = vsel %vm762_vm0, %v11771_v18, 0.0 }
 0x22c   : > { %v7446_v47 = vpop.permute.xlu1 %1323  ;;  %v702_v21 = vmul.f32 %v11770_v58, %v622_v43  ;;  %v912_v62 = vsel %vm910_vm4, %v7291_v20, 0.0 }
 0x230   : > { %897 = vrot.lane.b32.xlu1 %v6721_v26, %s6427_s29  ;;  %v11763_v26 = vld [vmem:[#allocation27_spill] sm:$0xff] }
 0x231   : > { %5898 = vset.pattern.permute.xlu2 %v11718_v23  ;;  %v420_v33 = vmul.f32 %v6214_v45, %v11763_v26  ;;  %v424_v45 = vmul.f32 %v6216_v29, %v11768_v1  ;;  %v11769_v26 = vld [vmem:[#allocation60_spill] sm:$0xff]  ;;  %v849_v29 = vmul.f32 %v7208_v40, %v769_v3  ;;  %v992_v1 = vmul.f32 %v7327_v2, %v912_v62  ;;  %v11774_v40 = vld [vmem:[#allocation59_spill] sm:$0xff]  ;;  %v11775_v3 = vld [vmem:[#allocation45_spill] sm:$0xff] }
 0x232   : > { %v986_v46 = vpop.permute.xlu0 %985  ;;  %969 = vperm.xlu2 %5898, %v7472_v7   ;;  %v1097_v10 = vpop.permute.xlu2 %1096  ;;  %v698_v57 = vmul.f32 %v11769_v26, %v618_v36  ;;  %v6217_v36 = vld [vmem:[%s11411_s1 + $0x38] sm:$0xff]  ;;  %v1063_v2 = vsel %vm1057_vm5, %v7409_v60, 0.0 }
 0x233   : > { %v1006_v24 = vmul.f32 %v986_v46, %v926_v19  ;;  %v7481_v52 = vmul.f32 %v1097_v10, %v1064_v13  ;;  %v567_v19 = vadd.f32 %v551_v14, %v420_v33  ;;  %v571_v46 = vadd.f32 %v555_v41, %v424_v45  ;;  %v11772_v10 = vld [vmem:[#allocation80_spill] sm:$0xff]  ;;  %v11773_v26 = vld [vmem:[#allocation43_spill] sm:$0xff] }
 0x234   : > { %v7483_v31 = vpop.permute.xlu1 %1177  ;;  %v845_v17 = vmul.f32 %v11772_v10, %v765_v5  ;;  %v623_v41 = vsel %vm615_vm2, %v11774_v40, 0.0 }
 0x235   : > { %v7496_v13 = vadd.f32 %v1006_v24, %v7217_v63  ;;  %v714_v43 = vadd.f32 %v698_v57, %v567_v19  ;;  %v718_v18 = vadd.f32 %v702_v21, %v571_v46  ;;  %v476_v63 = vsel %vm468_vm1, %v11773_v26, 0.0  ;;  %v11776_v19 = vld [vmem:[#allocation77_spill] sm:$0xff]  ;;  %v6219_v26 = vld [vmem:[%s6574_s10 + $0x50] sm:$0xff] }
 0x236   : > { %v1059_v21 = vsel %vm1057_vm5, %v7289_v6, 0.0  ;;  %v556_v62 = vmul.f32 %v11775_v3, %v476_v63  ;;  %v770_v6 = vsel %vm762_vm0, %v11776_v19, 0.0  ;;  %v11779_v63 = vld [vmem:[#allocation83_spill] sm:$0xff] }
 0x237   : > { %v861_v20 = vadd.f32 %v845_v17, %v714_v43  ;;  %v865_v33 = vadd.f32 %v849_v29, %v718_v18  ;;  %v6218_v29 = vld [vmem:[%s6574_s10 + $0x28] sm:$0xff]  ;;  %v11778_v43 = vld [vmem:[#allocation63_spill] sm:$0xff] }
 0x238   : > { %1347 = vperm.xlu1 %5895, %v6217_v36   ;;  %v11777_v36 = vld [vmem:[#allocation25_spill] sm:$0xff]  ;;  %v703_v18 = vmul.f32 %v11778_v43, %v623_v41 }
 0x239   : > { %v1008_v24 = vadd.f32 %v992_v1, %v861_v20  ;;  %v1012_v45 = vadd.f32 %v7400_v54, %v865_v33  ;;  %v425_v60 = vmul.f32 %v6218_v29, %v11777_v36  ;;  %v850_v20 = vmul.f32 %v11779_v63, %v770_v6  ;;  %v11781_v43 = vld [vmem:[#allocation61_spill] sm:$0xff]  ;;  %v6222_v63 = vld [vmem:[%s6574_s10 + $0x30] sm:$0xff] }
 0x23a   : > { %5899 = vset.pattern.permute.xlu2 %v11720_v25  ;;  %v1182_v14 = vpop.permute.xlu2 %1181  ;;  %v917_v33 = vsel %vm910_vm4, %v7280_v56, 0.0 }
 0x23b   : > { %v1077_v5 = vpop.permute.xlu0 %1076  ;;  %1259 = vperm.xlu2 %5899, %v7440_v27   ;;  %v572_v1 = vadd.f32 %v556_v62, %v425_v60  ;;  %v1211_v40 = vsel %vm1204_vm3, %v1182_v14, 0.0  ;;  %v1207_v14 = vsel %vm1204_vm3, %v7325_v35, 0.0 }
 0x23c   : > { %v1093_v17 = vpop.permute.xlu1 %1092  ;;  %v1139_v57 = vmul.f32 %v1077_v5, %v1059_v21 }
 0x23d   : > { %v1143_v58 = vmul.f32 %v1093_v17, %v1063_v2  ;;  %v719_v41 = vadd.f32 %v703_v18, %v572_v1  ;;  %v624_v18 = vsel %vm615_vm2, %v11781_v43, 0.0 }
 0x23e   : > { %v1155_v46 = vadd.f32 %v1139_v57, %v1008_v24  ;;  %v6220_v24 = vld [vmem:[%s11411_s1 + $0x40] sm:$0xff] }
 0x23f   : > { %v1159_v10 = vadd.f32 %v1143_v58, %v1012_v45  ;;  %v866_v45 = vadd.f32 %v850_v20, %v719_v41  ;;  %v1287_v58 = vmul.f32 %v7402_v11, %v1207_v14  ;;  %v11782_v20 = vld [vmem:[#allocation32_spill] sm:$0xff] }
 0x240   : > { %1044 = vrot.lane.b32.xlu1 %v6219_v26, %s6431_s8  ;;  %v7529_v54 = vadd.f32 %v7314_v8, %v1155_v46  ;;  %v1060_v8 = vsel %vm1057_vm5, %v7369_v0, 0.0  ;;  %v919_v46 = vsel %vm910_vm4, %v7277_v16, 0.0  ;;  %v6223_v14 = vld [vmem:[%s6574_s10 + $0x60] sm:$0xff] }
 0x241   : > { %5900 = vset.pattern.permute.xlu1 %v11723_v55 }
 0x242   : > { %v1244_v21 = vpop.permute.xlu2 %1243 }
 0x243   : > { %v1081_v2 = vpop.permute.xlu0 %1080  ;;  %v1291_v5 = vmul.f32 %v1244_v21, %v1211_v40  ;;  %5901 = vset.pattern.permute.xlu2 %v11722_v51  ;;  %v11783_v40 = vld [vmem:[#allocation49_spill] sm:$0xff] }
 0x244   : > { %v1140_v17 = vmul.f32 %v1081_v2, %v1060_v8  ;;  %1351 = vperm.xlu2 %5901, %v6220_v24   ;;  %v11785_v8 = vld [vmem:[#allocation66_spill] sm:$0xff] }
 0x245   : > { %v950_v56 = vpop.permute.xlu1 %949 }
 0x246   : > { %v997_v57 = vmul.f32 %v950_v56, %v917_v33  ;;  %v1156_v0 = vadd.f32 %v1140_v17, %v7356_v34  ;;  %v6221_v34 = vld [vmem:[%s6574_s10 + $0x58] sm:$0xff]  ;;  %v426_v33 = vmul.f32 %v6222_v63, %v11782_v20  ;;  %v11787_v63 = vld [vmem:[#allocation58_spill] sm:$0xff]  ;;  %v11788_v20 = vld [vmem:[#allocation44_spill] sm:$0xff] }
 0x248   : > { %v1013_v3 = vadd.f32 %v997_v57, %v866_v45  ;;  %1116 = vperm.xlu1 %5900, %v7472_v7   ;;  %v1303_v62 = vadd.f32 %v1287_v58, %v1156_v0 }
 0x24a   : > { %v1160_v19 = vadd.f32 %v7481_v52, %v1013_v3  ;;  %v7553_v6 = vadd.f32 %v7446_v47, %v1303_v62  ;;  %v1210_v52 = vsel %vm1204_vm3, %v7443_v39, 0.0  ;;  %v11780_v47 = vld [vmem:[#allocation42_spill] sm:$0xff]  ;;  %v11784_v39 = vld [vmem:[#allocation81_spill] sm:$0xff] }
 0x24b   : > { %v7558_v35 = vpop.permute.xlu0 %1088  ;;  %v958_v29 = vpop.permute.xlu2 %957  ;;  %v477_v16 = vsel %vm468_vm1, %v11780_v47, 0.0  ;;  %v771_v41 = vsel %vm762_vm0, %v11784_v39, 0.0  ;;  %v6225_v39 = vld [vmem:[%s6574_s10 + $0x18] sm:$0xff] }
 0x24c   : > { %v1307_v11 = vadd.f32 %v1291_v5, %v1160_v19  ;;  %v7560_v36 = vmul.f32 %v958_v29, %v919_v46  ;;  %1046 = vrot.lane.b32.xlu2 %v6221_v34, %s6431_s8  ;;  %v557_v21 = vmul.f32 %v11783_v40, %v477_v16  ;;  %v704_v5 = vmul.f32 %v11785_v8, %v624_v18  ;;  %v7599_v46 = vld [vmem:[%s11411_s1 + $0x60] sm:$0xff]  ;;  %v11786_v16 = vld [vmem:[#allocation39_spill] sm:$0xff]  ;;  %v11789_v40 = vld [vmem:[#allocation78_spill] sm:$0xff] }
 0x24d   : > { %5905 = vset.pattern.permute.xlu2 %v11718_v23  ;;  %v851_v24 = vmul.f32 %v7146_v59, %v771_v41  ;;  %v474_v43 = vsel %vm468_vm1, %v11786_v16, 0.0  ;;  %v11790_v41 = vld [vmem:[#allocation28_spill] sm:$0xff] }
 0x24e   : > { %v1240_v60 = vpop.permute.xlu1 %1239  ;;  %v573_v17 = vadd.f32 %v557_v21, %v426_v33  ;;  %v554_v33 = vmul.f32 %v11788_v20, %v474_v43  ;;  %v768_v21 = vsel %vm762_vm0, %v11789_v40, 0.0  ;;  %v423_v8 = vmul.f32 %v6225_v39, %v11790_v41  ;;  %v11798_v20 = vld [vmem:[#allocation72_spill] sm:$0xff] }
 0x24f   : > { %v1290_v1 = vmul.f32 %v1240_v60, %v1210_v52  ;;  %v1062_v40 = vsel %vm1057_vm5, %v7433_v38, 0.0 }
 0x250   : > { %1191 = vrot.lane.b32.xlu1 %v6219_v26, %s6432_s16  ;;  %v720_v57 = vadd.f32 %v704_v5, %v573_v17  ;;  %v918_v26 = vsel %vm910_vm4, %v7310_v53, 0.0  ;;  %v11791_v5 = vld [vmem:[#allocation62_spill] sm:$0xff] }
 0x251   : > { %5903 = vset.pattern.permute.xlu1 %v11720_v25  ;;  %v1306_v2 = vadd.f32 %v1290_v1, %v1159_v10 }
 0x252   : > { %v867_v0 = vadd.f32 %v851_v24, %v720_v57  ;;  %v11793_v57 = vld [vmem:[#allocation51_spill] sm:$0xff] }
 0x253   : > { %v1101_v56 = vpop.permute.xlu0 %1100  ;;  %v7584_v45 = vpop.permute.xlu2 %1038 }
 0x254   : > { %901 = vrot.lane.b32.xlu2 %v6223_v14, %s6427_s29 }
 0x257   : > { %v954_v58 = vpop.permute.xlu1 %953 }
 0x258   : > { %v998_v3 = vmul.f32 %v954_v58, %v918_v26  ;;  %1263 = vperm.xlu1 %5903, %v7472_v7   ;;  %v11794_v58 = vld [vmem:[#allocation82_spill] sm:$0xff] }
 0x25a   : > { %v1014_v10 = vadd.f32 %v998_v3, %v867_v0  ;;  %v848_v0 = vmul.f32 %v11794_v58, %v768_v21  ;;  %v11795_v3 = vld [vmem:[#allocation53_spill] sm:$0xff] }
 0x25b   : > { %v7592_v62 = vpop.permute.xlu0 %1108  ;;  %v1340_v59 = vpop.permute.xlu2 %1339  ;;  %v6227_v21 = vld [vmem:[%s6574_s10 + $0x68] sm:$0xff] }
 0x25c   : > { %v7594_v19 = vadd.f32 %v1340_v59, %v1307_v11  ;;  %977 = vperm.xlu2 %5905, %v7599_v46   ;;  %v915_v59 = vsel %vm910_vm4, %v7300_v15, 0.0 }
 0x25f   : > { %v1037_v29 = vpop.permute.xlu1 %1036 }
 0x260   : > { %v1065_v53 = vsel %vm1057_vm5, %v1037_v29, 0.0  ;;  %5904 = vset.pattern.permute.xlu1 %v11722_v51 }
 0x261   : > { %v1145_v52 = vmul.f32 %v1101_v56, %v1065_v53  ;;  %1355 = vperm.xlu1 %5904, %v7440_v27   ;;  %v621_v27 = vsel %vm615_vm2, %v11787_v63, 0.0  ;;  %v11792_v56 = vld [vmem:[#allocation36_spill] sm:$0xff]  ;;  %v6226_v53 = vld [vmem:[%s6574_s10 + $0x38] sm:$0xff] }
 0x262   : > { %v701_v17 = vmul.f32 %v11791_v5, %v621_v27  ;;  %v995_v27 = vmul.f32 %v7412_v50, %v915_v59 }
 0x263   : > { %v7606_v60 = vadd.f32 %v1145_v52, %v1014_v10  ;;  %v7608_v11 = vpop.permute.xlu0 %1120  ;;  %v7610_v47 = vpop.permute.xlu2 %1185  ;;  %v625_v10 = vsel %vm615_vm2, %v11795_v3, 0.0  ;;  %v11796_v52 = vld [vmem:[#allocation30_spill] sm:$0xff] }
 0x264   : > { %1048 = vrot.lane.b32.xlu2 %v6223_v14, %s6431_s8  ;;  %v570_v14 = vadd.f32 %v554_v33, %v423_v8  ;;  %v427_v16 = vmul.f32 %v6226_v53, %v11796_v52  ;;  %v772_v33 = vsel %vm762_vm0, %v11798_v20, 0.0  ;;  %v1142_v8 = vmul.f32 %v7558_v35, %v1062_v40 }
 0x265   : > { %5906 = vset.pattern.permute.xlu2 %v11723_v55  ;;  %v852_v41 = vmul.f32 %v7235_v32, %v772_v33  ;;  %v7667_v32 = vld [vmem:[%s11411_s1 + $0x68] sm:$0xff]  ;;  %v1066_v35 = vsel %vm1057_vm5, %v7584_v45, 0.0 }
 0x266   : > { %v717_v43 = vadd.f32 %v701_v17, %v570_v14 }
 0x267   : > { %v1336_v18 = vpop.permute.xlu1 %1335 }
 0x268   : > { %v7617_v1 = vadd.f32 %v1336_v18, %v1306_v2  ;;  %v11797_v18 = vld [vmem:[#allocation69_spill] sm:$0xff]  ;;  %v864_v39 = vadd.f32 %v848_v0, %v717_v43 }
 0x269   : > { %1193 = vrot.lane.b32.xlu1 %v6221_v34, %s6432_s16  ;;  %v478_v34 = vsel %vm468_vm1, %v11792_v56, 0.0  ;;  %v705_v63 = vmul.f32 %v11797_v18, %v625_v10 }
 0x26a   : > { %v558_v26 = vmul.f32 %v11793_v57, %v478_v34  ;;  %v1011_v17 = vadd.f32 %v995_v27, %v864_v39  ;;  %v1209_v34 = vsel %vm1204_vm3, %v7483_v31, 0.0 }
 0x26b   : > { %v7630_v2 = vpop.permute.xlu0 %1132  ;;  %v896_v24 = vpop.permute.xlu2 %895 }
 0x26c   : > { %1124 = vperm.xlu2 %5906, %v7599_v46   ;;  %v574_v15 = vadd.f32 %v558_v26, %v427_v16  ;;  %v921_v50 = vsel %vm910_vm4, %v896_v24, 0.0  ;;  %v1158_v26 = vadd.f32 %v1142_v8, %v1011_v17 }
 0x26e   : > { %v721_v5 = vadd.f32 %v705_v63, %v574_v15 }
 0x26f   : > { %v1184_v29 = vpop.permute.xlu1 %1183 }
 0x270   : > { %v868_v57 = vadd.f32 %v852_v41, %v721_v5  ;;  %v1212_v53 = vsel %vm1204_vm3, %v1184_v29, 0.0  ;;  %v6230_v41 = vld [vmem:[%s6574_s10 + $0x70] sm:$0xff] }
 0x271   : > { %903 = vrot.lane.b32.xlu1 %v6227_v21, %s6427_s29 }
 0x272   : > { %v1015_v0 = vadd.f32 %v7560_v36, %v868_v57  ;;  %v1067_v36 = vsel %vm1057_vm5, %v7373_v61, 0.0 }
 0x273   : > { %v966_v56 = vpop.permute.xlu2 %965  ;;  %v1147_v29 = vmul.f32 %v7592_v62, %v1067_v36  ;;  %v1213_v62 = vsel %vm1204_vm3, %v7610_v47, 0.0  ;;  %v1215_v47 = vsel %vm1204_vm3, %v7389_v22, 0.0  ;;  %v6232_v22 = vld [vmem:[%s11411_s1 + $0x78] sm:$0xff] }
 0x274   : > { %v1236_v38 = vpop.permute.xlu0 %1235  ;;  %v1001_v14 = vmul.f32 %v966_v56, %v921_v50  ;;  %5907 = vset.pattern.permute.xlu2 %v11718_v23  ;;  %v6231_v56 = vld [vmem:[%s6574_s10 + $0x78] sm:$0xff] }
 0x275   : > { %v1289_v58 = vmul.f32 %v1236_v38, %v1209_v34  ;;  %981 = vperm.xlu2 %5907, %v7667_v32  }
 0x276   : > { %v1017_v31 = vadd.f32 %v1001_v14, %v7195_v9  ;;  %v920_v9 = vsel %vm910_vm4, %v7293_v42, 0.0 }
 0x277   : > { %v1105_v24 = vpop.permute.xlu1 %1104  ;;  %v7675_v3 = vadd.f32 %v1289_v58, %v1158_v26 }
 0x278   : > { %v1146_v10 = vmul.f32 %v1105_v24, %v1066_v35 }
 0x279   : > { %1359 = vperm.xlu1 %5904, %v7472_v7  }
 0x27a   : > { %v1162_v59 = vadd.f32 %v1146_v10, %v1015_v0 }
 0x27b   : > { %v1043_v52 = vpop.permute.xlu2 %1042 }
 0x27c   : > { %v1248_v16 = vpop.permute.xlu0 %1247  ;;  %v1068_v42 = vsel %vm1057_vm5, %v1043_v52, 0.0 }
 0x27d   : > { %v1292_v43 = vmul.f32 %v1248_v16, %v1212_v53  ;;  %5908 = vset.pattern.permute.xlu2 %v11720_v25 }
 0x27e   : > { %1271 = vperm.xlu2 %5908, %v7599_v46  }
 0x27f   : > { %v1308_v45 = vadd.f32 %v1292_v43, %v7606_v60  ;;  %v6229_v60 = vld [vmem:[%s11411_s1 + $0x58] sm:$0xff] }
 0x280   : > { %v962_v7 = vpop.permute.xlu1 %961 }
 0x281   : > { %v1000_v18 = vmul.f32 %v962_v7, %v920_v9  ;;  %1050 = vrot.lane.b32.xlu1 %v6227_v21, %s6431_s8 }
 0x282   : > { %5909 = vset.pattern.permute.xlu1 %v11723_v55 }
 0x283   : > { %v1016_v63 = vadd.f32 %v1000_v18, %v7158_v28  ;;  %v1113_v27 = vpop.permute.xlu2 %1112 }
 0x284   : > { %v1148_v20 = vmul.f32 %v1113_v27, %v1068_v42  ;;  %v1256_v34 = vpop.permute.xlu0 %1255 }
 0x285   : > { %v1163_v33 = vadd.f32 %v1147_v29, %v1016_v63 }
 0x286   : > { %v1164_v61 = vadd.f32 %v1148_v20, %v1017_v31  ;;  %5910 = vset.pattern.permute.xlu2 %v11722_v51 }
 0x287   : > { %1363 = vperm.xlu2 %5910, %v6229_v60  }
 0x289   : > { %1128 = vperm.xlu1 %5909, %v7667_v32   ;;  %v1252_v28 = vpop.permute.xlu1 %1251 }
 0x28a   : > { %v1293_v40 = vmul.f32 %v1252_v28, %v1213_v62 }
 0x28c   : > { %v1309_v15 = vadd.f32 %v1293_v40, %v1162_v59  ;;  %v970_v39 = vpop.permute.xlu2 %969 }
 0x28f   : > { %1052 = vrot.lane.b32.xlu2 %v6230_v41, %s6431_s8 }
 0x290   : > { %5915 = vset.pattern.permute.xlu2 %v11718_v23 }
 0x291   : > { %1197 = vrot.lane.b32.xlu1 %v6227_v21, %s6432_s16 }
 0x292   : > { %v1344_v8 = vpop.permute.xlu1 %1343  ;;  %5912 = vset.pattern.permute.xlu1 %v11720_v25 }
 0x293   : > { %v7708_v5 = vadd.f32 %v1344_v8, %v1308_v45 }
 0x295   : > { %v1260_v17 = vpop.permute.xlu2 %1259 }
 0x296   : > { %v1295_v50 = vmul.f32 %v1260_v17, %v1215_v47  ;;  %v11799_v47 = vld [vmem:[#allocation71_spill] sm:$0xff] }
 0x297   : > { %907 = vrot.lane.b32.xlu2 %v6231_v56, %s6427_s29  ;;  %v1385_v17 = vadd.f32 %v11799_v47, %v7675_v3  ;;  %v6434_v47 = vmov 128.0   ;;  %s5324_s29 = scalar_lea.sflag [#allocation4], %s6568_s11 }
 0x298   : > { %v7716_v21 = vadd.f32 %v1295_v50, %v1164_v61  ;;  %5921 = vrcp.f32 %v6434_v47 }
 0x299   : > { %1275 = vperm.xlu1 %5912, %v7667_v32  }
 0x29a   : > { %v1188_v23 = vpop.permute.xlu1 %1187 }
 0x29b   : > { %v1214_v38 = vsel %vm1204_vm3, %v1188_v23, 0.0 }
 0x29c   : > { %v1294_v14 = vmul.f32 %v1256_v34, %v1214_v38  ;;  %v1268_v38 = vpop.permute.xlu0 %1267 }
 0x29e   : > { %v1310_v57 = vadd.f32 %v1294_v14, %v1163_v33  ;;  %v1352_v26 = vpop.permute.xlu2 %1351 }
 0x29f   : > { %989 = vperm.xlu2 %5915, %v6232_v22  }
 0x2a0   : > { %v7720_v58 = vadd.f32 %v1352_v26, %v1310_v57 }
 0x2a1   : > { %5914 = vset.pattern.permute.xlu1 %v11722_v51 }
 0x2a2   : > { %1367 = vperm.xlu1 %5914, %v7599_v46   ;;  %v898_v35 = vpop.permute.xlu1 %897 }
 0x2a3   : > { %v922_v31 = vsel %vm910_vm4, %v898_v35, 0.0 }
 0x2a4   : > { %v1002_v24 = vmul.f32 %v970_v39, %v922_v31  ;;  %v1382_v39 = vadd.f32 %v7312_v48, %v7529_v54 }
 0x2a6   : > { %v1018_v0 = vadd.f32 %v1002_v24, %v7266_v30  ;;  %v1047_v10 = vpop.permute.xlu2 %1046 }
 0x2a7   : > { %v1070_v59 = vsel %vm1057_vm5, %v1047_v10, 0.0  ;;  %1054 = vrot.lane.b32.xlu2 %v6231_v56, %s6431_s8  ;;  %v11800_v10 = vld [vmem:[#allocation33_spill] sm:$0xff]  ;;  %s6354_s8 = sshra.s32 %s5339_s18, 4  ;;  %s6355_s8 = int_to_ptr.hbm [resolvable:$true] %s6354_s8 }
 0x2a8   : > { %v1150_v53 = vmul.f32 %v7608_v11, %v1070_v59  ;;  %5917 = vset.pattern.permute.xlu2 %v11722_v51  ;;  %s6356_s25 = scalar_lea.hbm %s6355_s8, 128  ;;  %p6361_p11 = scmp.lt.s32.totalorder %s6355_s8, %s11416_s6 }
 0x2a9   : > { %p6357_p1 = scmp.ne.s32.totalorder %s6355_s8, %s6356_s25  ;;  %p6362_p9 = scmp.lt.s32.totalorder %s6360_s19, %s6356_s25 }
 0x2aa   : > { %1199 = vrot.lane.b32.xlu1 %v6230_v41, %s6432_s16  ;;  %v1348_v46 = vpop.permute.xlu1 %1347  ;;  %v7737_v52 = vadd.f32 %v1150_v53, %v7415_v12 }
 0x2ab   : > { %v1389_v16 = vadd.f32 %v1348_v46, %v1309_v15  ;;  %5916 = vset.pattern.permute.xlu1 %v11723_v55  ;;  %p6358_p4 = pnand %p6357_p1, %p6541_p5  ;;  %p6363_p2 = por %p6362_p9, %p6361_p11 }
 0x2ad   : > { %p6359_p8 = pneg %p6358_p4 }
 0x2ae   : > { %v902_v30 = vpop.permute.xlu2 %901 }
 0x2af   : > { %1371 = vperm.xlu2 %5917, %v7667_v32   ;;  %v924_v9 = vsel %vm910_vm4, %v902_v30, 0.0  ;;  %p6364_p10 = pnand %p6363_p2, %p6359_p8 }
 0x2b2   : > { %1136 = vperm.xlu1 %5916, %v6232_v22   ;;  %v1045_v43 = vpop.permute.xlu1 %1044 }
 0x2b3   : > { %v1069_v36 = vsel %vm1057_vm5, %v1045_v43, 0.0 }
 0x2b6   : > { %v978_v11 = vpop.permute.xlu2 %977 }
 0x2b7   : > { %v1004_v7 = vmul.f32 %v978_v11, %v924_v9  ;;  %5918 = vset.pattern.permute.xlu2 %v11720_v25  ;;  %v1280_v9 = vpop.permute.xlu0 %1279 }
 0x2b8   : > { %1283 = vperm.xlu2 %5918, %v6232_v22  }
 0x2b9   : > { %v1020_v12 = vadd.f32 %v1004_v7, %v7222_v49 }
 0x2ba   : > { %1201 = vrot.lane.b32.xlu1 %v6231_v56, %s6432_s16  ;;  %v1117_v55 = vpop.permute.xlu1 %1116 }
 0x2bb   : > { %v1149_v45 = vmul.f32 %v1117_v55, %v1069_v36  ;;  %5920 = vset.pattern.permute.xlu1 %v11722_v51  ;;  %v1218_v51 = vsel %vm1204_vm3, %v7425_v37, 0.0 }
 0x2bd   : > { %v1165_v32 = vadd.f32 %v1149_v45, %v1018_v0 }
 0x2be   : > { %v1049_v18 = vpop.permute.xlu2 %1048 }
 0x2bf   : > { %v1071_v49 = vsel %vm1057_vm5, %v1049_v18, 0.0 }
 0x2c2   : > { %1379 = vperm.xlu1 %5920, %v6232_v22   ;;  %v1192_v29 = vpop.permute.xlu1 %1191 }
 0x2c3   : > { %v1216_v42 = vsel %vm1204_vm3, %v1192_v29, 0.0 }
 0x2c6   : > { %v1125_v63 = vpop.permute.xlu2 %1124 }
 0x2c7   : > { %v1151_v61 = vmul.f32 %v1125_v63, %v1071_v49  ;;  %v1376_v63 = vpop.permute.xlu0 %1375  ;;  %v11801_v49 = vld [vmem:[#allocation84_spill] sm:$0xff] }
 0x2c9   : > { %v1167_v62 = vadd.f32 %v1151_v61, %v1020_v12 }
 0x2ca   : > { %v1264_v27 = vpop.permute.xlu1 %1263 }
 0x2cb   : > { %v1296_v20 = vmul.f32 %v1264_v27, %v1216_v42 }
 0x2cd   : > { %v1312_v25 = vadd.f32 %v1296_v20, %v1165_v32 }
 0x2cf   : > { %v982_v33 = vpop.permute.xlu2 %981 }
 0x2d3   : > { %v1356_v28 = vpop.permute.xlu1 %1355 }
 0x2d4   : > { %v1391_v34 = vadd.f32 %v1356_v28, %v7716_v21 }
 0x2d8   : > { %v1272_v60 = vpop.permute.xlu2 %1271 }
 0x2d9   : > { %v1298_v40 = vmul.f32 %v1272_v60, %v1218_v51 }
 0x2db   : > { %v1314_v15 = vadd.f32 %v1298_v40, %v1167_v62  ;;  %v1194_v41 = vpop.permute.xlu1 %1193 }
 0x2de   : > { %1398 = vxpose.xlu2.b32.start [1/16] %v1382_v39, 128 }
 0x2e1   : > { %v1364_v48 = vpop.permute.xlu2 %1363 }
 0x2e3   : > { %v904_v8 = vpop.permute.xlu1 %903 }
 0x2e6   : > { %1399 = vxpose.xlu2.b32.cont [2/16] %v7553_v6, 128 }
 0x2e9   : > { %v1053_v6 = vpop.permute.xlu2 %1052 }
 0x2ea   : > { %v1073_v30 = vsel %vm1057_vm5, %v1053_v6, 0.0 }
 0x2eb   : > { %v1360_v37 = vpop.permute.xlu1 %1359  ;;  %v1153_v36 = vmul.f32 %v7630_v2, %v1073_v30 }
 0x2ed   : > { %v1169_v45 = vadd.f32 %v1153_v36, %v7496_v13 }
 0x2ee   : > { %1400 = vxpose.xlu2.b32.cont [3/16] %v7431_v44, 128 }
 0x2f1   : > { %v908_v3 = vpop.permute.xlu2 %907 }
 0x2f2   : > { %v927_v29 = vsel %vm910_vm4, %v908_v3, 0.0 }
 0x2f3   : > { %v1051_v50 = vpop.permute.xlu1 %1050 }
 0x2f4   : > { %v1072_v21 = vsel %vm1057_vm5, %v1051_v50, 0.0 }
 0x2f6   : > { %1401 = vxpose.xlu2.b32.cont [4/16] %v1385_v17, 128  ;;  %v5922_v17 = vpop.eup %5921 }
 0x2f7   : > { %vm1467_vm6 = vweird.f32 %v5922_v17 }
 0x2fb   : > { %v1129_v56 = vpop.permute.xlu1 %1128 }
 0x2fc   : > { %v1152_v0 = vmul.f32 %v1129_v56, %v1072_v21 }
 0x2fe   : > { %1402 = vxpose.xlu2.b32.cont [5/16] %v7617_v1, 128  ;;  %v1217_v1 = vsel %vm1204_vm3, %v1194_v41, 0.0 }
 0x2ff   : > { %v1297_v14 = vmul.f32 %v1268_v38, %v1217_v1 }
 0x301   : > { %v1313_v57 = vadd.f32 %v1297_v14, %v7737_v52 }
 0x303   : > { %v1198_v54 = vpop.permute.xlu1 %1197  ;;  %v1393_v22 = vadd.f32 %v1364_v48, %v1313_v57 }
 0x304   : > { %v1219_v24 = vsel %vm1204_vm3, %v1198_v54, 0.0 }
 0x306   : > { %1403 = vxpose.xlu2.b32.cont [6/16] %v7594_v19, 128  ;;  %v1392_v19 = vadd.f32 %v1360_v37, %v1312_v25  ;;  %v1463_v37 = vmul.f32 128.0, %v5922_v17 }
 0x308   : > { %v1464_v50 = vsub.f32 1.0, %v1463_v37  ;;  %v5534_v37 = vld [vmem:[#allocation5 + $0xa8] sm:$0xf] }
 0x30a   : > { %v1465_v56 = vmul.f32 %v5922_v17, %v1464_v50  ;;  %v5729_v50 = vld [vmem:[#allocation5 + $0xb4] sm:$0xf0] }
 0x30b   : > { %v1276_v44 = vpop.permute.xlu1 %1275 }
 0x30c   : > { %v1299_v53 = vmul.f32 %v1276_v44, %v1219_v24  ;;  %v1466_v48 = vadd.f32 %v5922_v17, %v1465_v56 }
 0x30e   : > { %1404 = vxpose.xlu2.b32.cont [7/16] %v7708_v5, 128  ;;  %v990_v5 = vpop.permute.xlu2 %989  ;;  %v7790_v54 = vsel %vm1467_vm6, %v5922_v17, %v1466_v48  ;;  %v5528_v17 = vld [vmem:[#allocation5 + $0xb0] sm:$0xf0]  ;;  %v5535_v48 = vor.u32 %v5729_v50, %v5534_v37 }
 0x30f   : > { %v1007_v42 = vmul.f32 %v990_v5, %v927_v29  ;;  %11802 = vst [vmem:[#allocation75_spill] sm:$0xff] %v7790_v54  ;;  %v5737_v29 = vld [vmem:[#allocation5 + $0xf4] sm:$0xf0] }
 0x311   : > { %v1023_v61 = vadd.f32 %v1007_v42, %v11801_v49  ;;  %v5730_v49 = vld [vmem:[#allocation5 + $0xc4] sm:$0xf] }
 0x314   : > { %v1368_v23 = vpop.permute.xlu1 %1367 }
 0x315   : > { %v1394_v46 = vadd.f32 %v1368_v23, %v1314_v15 }
 0x316   : > { %1405 = vxpose.xlu2.b32.cont [8/16] %v1389_v16, 128  ;;  %v1055_v31 = vpop.permute.xlu2 %1054 }
 0x317   : > { %v1074_v27 = vsel %vm1057_vm5, %v1055_v31, 0.0 }
 0x31c   : > { %v1200_v26 = vpop.permute.xlu1 %1199 }
 0x31d   : > { %v1220_v11 = vsel %vm1204_vm3, %v1200_v26, 0.0 }
 0x31e   : > { %1406 = vxpose.xlu2.b32.cont [9/16] %v7720_v58, 128  ;;  %v925_v58 = vsel %vm910_vm4, %v904_v8, 0.0  ;;  %v1372_v7 = vpop.permute.xlu2 %1371  ;;  %v1300_v55 = vmul.f32 %v1280_v9, %v1220_v11 }
 0x31f   : > { %v1005_v35 = vmul.f32 %v982_v33, %v925_v58 }
 0x320   : > { %v1316_v18 = vadd.f32 %v1300_v55, %v1169_v45  ;;  %v5734_v55 = vld [vmem:[#allocation5 + $0xe4] sm:$0xf] }
 0x321   : > { %v1021_v59 = vadd.f32 %v1005_v35, %v11800_v10 }
 0x322   : > { %v1396_v2 = vadd.f32 %v1376_v63, %v1316_v18  ;;  %v5566_v18 = vld [vmem:[#allocation5 + $0xe8] sm:$0xf] }
 0x323   : > { %v1168_v16 = vadd.f32 %v1152_v0, %v1021_v59  ;;  %v5567_v42 = vor.u32 %v5737_v29, %v5566_v18  ;;  %v5719_v29 = vld [vmem:[#allocation5 + $0x6c] sm:$0xf] }
 0x324   : > { %v1137_v52 = vpop.permute.xlu1 %1136 }
 0x325   : > { %v1315_v43 = vadd.f32 %v1299_v53, %v1168_v16  ;;  %v1154_v25 = vmul.f32 %v1137_v52, %v1074_v27  ;;  %v5735_v27 = vld [vmem:[#allocation5 + $0xec] sm:$0xf]  ;;  %2099 = vmatpush.bf16.msra.mxu2 %v5567_v42 }
 0x326   : > { %1407 = vxpose.xlu2.b32.cont [10/16] %v1391_v34, 128  ;;  %v1284_v33 = vpop.permute.xlu2 %1283 }
 0x327   : > { %v1395_v12 = vadd.f32 %v1372_v7, %v1315_v43  ;;  %v1170_v51 = vadd.f32 %v1154_v25, %v1023_v61  ;;  %v5558_v7 = vld [vmem:[#allocation5 + $0xe0] sm:$0xf] }
 0x328   : > { %v5542_v25 = vld [vmem:[#allocation5 + $0xc0] sm:$0xf] }
 0x32c   : > { %v1202_v32 = vpop.permute.xlu1 %1201 }
 0x32d   : > { %v1221_v20 = vsel %vm1204_vm3, %v1202_v32, 0.0  ;;  %v5560_v32 = vld [vmem:[#allocation5 + $0xf0] sm:$0xf0] }
 0x32e   : > { %1408 = vxpose.xlu2.b32.cont [11/16] %v1392_v19, 128  ;;  %v1301_v13 = vmul.f32 %v1284_v33, %v1221_v20  ;;  %v5563_v63 = vor.u32 %v5734_v55, %v5560_v32  ;;  %v5568_v20 = vld [vmem:[#allocation5 + $0xf8] sm:$0xf0]  ;;  %v5732_v33 = vld [vmem:[#allocation5 + $0xcc] sm:$0xf0]  ;;  %v5502_v55 = vld [vmem:[#allocation5 + $0x68] sm:$0xf] }
 0x32f   : > { %v5543_v61 = vor.u32 %v5732_v33, %v5542_v25  ;;  %v5480_v33 = vld [vmem:[#allocation5 + $0x50] sm:$0xf0] }
 0x330   : > { %v1317_v62 = vadd.f32 %v1301_v13, %v1170_v51  ;;  %2050 = vmatpush.bf16.msra.mxu1 %v5563_v63  ;;  %v5544_v13 = vld [vmem:[#allocation5 + $0xd0] sm:$0xf0]  ;;  %v5550_v51 = vld [vmem:[#allocation5 + $0xc8] sm:$0xf]  ;;  %v5504_v63 = vld [vmem:[#allocation5 + $0x78] sm:$0xf0] }
 0x331   : > { %v5507_v42 = vor.u32 %v5719_v29, %v5504_v63 }
 0x334   : > { %v1380_v60 = vpop.permute.xlu1 %1379 }
 0x335   : > { %v1397_v28 = vadd.f32 %v1380_v60, %v1317_v62  ;;  %v5733_v60 = vld [vmem:[#allocation5 + $0xd4] sm:$0xf0]  ;;  %v5547_v62 = vor.u32 %v5730_v49, %v5544_v13  ;;  %v5486_v49 = vld [vmem:[#allocation5 + $0x48] sm:$0xf] }
 0x336   : > { %1409 = vxpose.xlu2.b32.cont [12/16] %v1393_v22, 128 }
 0x337   : > { %2051 = vmatpush.bf16.msra.mxu1 %v5547_v62  ;;  %v5488_v62 = vld [vmem:[#allocation5 + $0x58] sm:$0xf0] }
 0x33e   : > { %1410 = vxpose.xlu2.b32.cont [13/16] %v1394_v46, 128 }
 0x346   : > { %1411 = vxpose.xlu2.b32.cont [14/16] %v1395_v12, 128  ;;  %v5736_v12 = vld [vmem:[#allocation5 + $0xec] sm:$0xf0] }
 0x347   : > { %v5559_v45 = vor.u32 %v5736_v12, %v5558_v7  ;;  %v5496_v12 = vld [vmem:[#allocation5 + $0x70] sm:$0xf0] }
 0x349   : > { %2001 = vmatpush.bf16.msra.mxu0 %v5559_v45  ;;  %v5721_v45 = vld [vmem:[#allocation5 + $0x74] sm:$0xf0] }
 0x34a   : > { %v5503_v18 = vor.u32 %v5721_v45, %v5502_v55 }
 0x34d   : > { %2002 = vmatpush.bf16.msra.mxu0 %v5543_v61  ;;  %v5717_v61 = vld [vmem:[#allocation5 + $0x54] sm:$0xf0] }
 0x34e   : > { %1412 = vxpose.xlu2.b32.cont [15/16] %v1396_v2, 128  ;;  %v5571_v2 = vor.u32 %v5735_v27, %v5568_v20  ;;  %v5478_v27 = vld [vmem:[#allocation5 + $0x40] sm:$0xf]  ;;  %v5716_v20 = vld [vmem:[#allocation5 + $0x4c] sm:$0xf0] }
 0x34f   : > { %v5479_v25 = vor.u32 %v5716_v20, %v5478_v27 }
 0x350   : > { %2148 = vmatpush.bf16.msra.mxu3 %v5571_v2  ;;  %v5714_v2 = vld [vmem:[#allocation5 + $0x44] sm:$0xf] }
 0x351   : > { %v5483_v13 = vor.u32 %v5714_v2, %v5480_v33 }
 0x356   : > { %1413 = vxpose.xlu2.b32.end [16/16] %v1397_v28, 128  ;;  %v5551_v28 = vor.u32 %v5733_v60, %v5550_v51  ;;  %v5487_v51 = vor.u32 %v5717_v61, %v5486_v49  ;;  %v5715_v60 = vld [vmem:[#allocation5 + $0x4c] sm:$0xf] }
 0x358   : > { %2100 = vmatpush.bf16.msra.mxu2 %v5551_v28  ;;  %v5491_v28 = vor.u32 %v5715_v60, %v5488_v62 }
 0x35c   : > { %2101 = vmatpush.bf16.msra.mxu2 %v5535_v48  ;;  %v5472_v48 = vld [vmem:[#allocation5 + $0x38] sm:$0xf0] }
 0x377   : > { %v1414_v40 = vpop.trf.xlu2 }
 0x378   : > { %1430 = vadd.xlane.f32.xlu1 %v1414_v40 }
 0x37f   : > { %v1415_v15 = vpop.trf.xlu2 }
 0x380   : > { %1432 = vadd.xlane.f32.xlu0 %v1415_v15 }
 0x387   : > { %v1416_v39 = vpop.trf.xlu2 }
 0x388   : > { %1434 = vadd.xlane.f32.xlu1 %v1416_v39 }
 0x38f   : > { %v1417_v4 = vpop.trf.xlu2 }
 0x390   : > { %1436 = vadd.xlane.f32.xlu0 %v1417_v4 }
 0x397   : > { %v1418_v41 = vpop.trf.xlu2 }
 0x398   : > { %1438 = vadd.xlane.f32.xlu1 %v1418_v41 }
 0x39f   : > { %v1419_v8 = vpop.trf.xlu2 }
 0x3a0   : > { %1440 = vadd.xlane.f32.xlu0 %v1419_v8 }
 0x3a7   : > { %v7793_v34 = vpop.trf.xlu2 }
 0x3af   : > { %v7802_v14 = vpop.trf.xlu2 }
 0x3b7   : > { %v7812_v21 = vpop.trf.xlu2 }
 0x3bf   : > { %v7821_v59 = vpop.trf.xlu2 }
 0x3c7   : > { %v7830_v43 = vpop.trf.xlu2 }
 0x3cf   : > { %v7837_v36 = vpop.trf.xlu2 }
 0x3d7   : > { %v7848_v63 = vpop.trf.xlu2 }
 0x3eb   : > { %v1431_v6 = vpop.xlane.xlu1 %1430 }
 0x3ec   : > { %v1469_v44 = vmul.f32 %v7790_v54, %v1431_v6  ;;  %v5727_v6 = vld [vmem:[#allocation5 + $0xac] sm:$0xf] }
 0x3ee   : > { %v7795_v3 = vsub.f32 %v1414_v40, %v1469_v44  ;;  %v5731_v40 = vld [vmem:[#allocation5 + $0xcc] sm:$0xf]  ;;  %v5536_v44 = vld [vmem:[#allocation5 + $0xb8] sm:$0xf0] }
 0x3f0   : > { %v1501_v23 = vmul.f32 %v7795_v3, %v7795_v3 }
 0x3f2   : > { %1517 = vadd.xlane.f32.xlu1 %v1501_v23  ;;  %v5539_v23 = vor.u32 %v5727_v6, %v5536_v44 }
 0x3f3   : > { %v1433_v1 = vpop.xlane.xlu0 %1432 }
 0x3f4   : > { %v1470_v38 = vmul.f32 %v7790_v54, %v1433_v1  ;;  %v5510_v1 = vld [vmem:[#allocation5 + $0x80] sm:$0xf] }
 0x3f6   : > { %v7800_v19 = vsub.f32 %v1415_v15, %v1470_v38  ;;  %v5552_v15 = vld [vmem:[#allocation5 + $0xd8] sm:$0xf0]  ;;  %v5724_v38 = vld [vmem:[#allocation5 + $0x8c] sm:$0xf0] }
 0x3f8   : > { %v1502_v5 = vmul.f32 %v7800_v19, %v7800_v19 }
 0x3fa   : > { %1519 = vadd.xlane.f32.xlu0 %v1502_v5  ;;  %1442 = vadd.xlane.f32.xlu1 %v7793_v34  ;;  %v5722_v5 = vld [vmem:[#allocation5 + $0x84] sm:$0xf] }
 0x3fb   : > { %v1435_v57 = vpop.xlane.xlu1 %1434 }
 0x3fc   : > { %v1471_v26 = vmul.f32 %v7790_v54, %v1435_v57  ;;  %v5511_v57 = vor.u32 %v5724_v38, %v5510_v1  ;;  %v5708_v1 = vld [vmem:[#allocation5 + $0xc] sm:$0xf0]  ;;  %v5706_v38 = vld [vmem:[#allocation5 + $0x4] sm:$0xf] }
 0x3fe   : > { %v7808_v22 = vsub.f32 %v1416_v39, %v1471_v26  ;;  %v5555_v39 = vor.u32 %v5731_v40, %v5552_v15  ;;  %v5512_v26 = vld [vmem:[#allocation5 + $0x90] sm:$0xf0]  ;;  %v5462_v40 = vld [vmem:[#allocation5 + $0x20] sm:$0xf]  ;;  %v5712_v15 = vld [vmem:[#allocation5 + $0x2c] sm:$0xf0] }
 0x400   : > { %v1503_v58 = vmul.f32 %v7808_v22, %v7808_v22  ;;  %2149 = vmatpush.bf16.msra.mxu3 %v5555_v39  ;;  %v5710_v39 = vld [vmem:[#allocation5 + $0x24] sm:$0xf] }
 0x402   : > { %1521 = vadd.xlane.f32.xlu1 %v1503_v58  ;;  %1444 = vadd.xlane.f32.xlu0 %v7802_v14  ;;  %v5518_v58 = vld [vmem:[#allocation5 + $0x88] sm:$0xf] }
 0x403   : > { %v1437_v35 = vpop.xlane.xlu0 %1436 }
 0x404   : > { %v1472_v31 = vmul.f32 %v7790_v54, %v1437_v35  ;;  %2150 = vmatpush.bf16.msra.mxu3 %v5539_v23  ;;  %v5725_v35 = vld [vmem:[#allocation5 + $0x94] sm:$0xf0]  ;;  %v5446_v23 = vld [vmem:[#allocation5] sm:$0xf] }
 0x406   : > { %v7816_v24 = vsub.f32 %v1417_v4, %v1472_v31  ;;  %v5526_v4 = vld [vmem:[#allocation5 + $0xa0] sm:$0xf]  ;;  %v5515_v31 = vor.u32 %v5722_v5, %v5512_v26  ;;  %v5448_v26 = vld [vmem:[#allocation5 + $0x10] sm:$0xf0] }
 0x408   : > { %v1504_v0 = vmul.f32 %v7816_v24, %v7816_v24 }
 0x40a   : > { %1523 = vadd.xlane.f32.xlu0 %v1504_v0  ;;  %1446 = vadd.xlane.f32.xlu1 %v7812_v21  ;;  %v5519_v0 = vor.u32 %v5725_v35, %v5518_v58  ;;  %v5454_v58 = vld [vmem:[#allocation5 + $0x8] sm:$0xf]  ;;  %v5451_v35 = vor.u32 %v5706_v38, %v5448_v26 }
 0x40b   : > { %v1439_v10 = vpop.xlane.xlu1 %1438 }
 0x40c   : > { %v1473_v53 = vmul.f32 %v7790_v54, %v1439_v10  ;;  %v5723_v10 = vld [vmem:[#allocation5 + $0x8c] sm:$0xf]  ;;  %2102 = vmatpush.bf16.msra.mxu2 %v5519_v0 }
 0x40d   : > { %v5707_v0 = vld [vmem:[#allocation5 + $0xc] sm:$0xf] }
 0x40e   : > { %v7824_v46 = vsub.f32 %v1418_v41, %v1473_v53  ;;  %v5728_v41 = vld [vmem:[#allocation5 + $0xac] sm:$0xf0]  ;;  %v5520_v53 = vld [vmem:[#allocation5 + $0x98] sm:$0xf0] }
 0x40f   : > { %v5527_v47 = vor.u32 %v5728_v41, %v5526_v4  ;;  %v5463_v4 = vor.u32 %v5712_v15, %v5462_v40  ;;  %v5464_v41 = vld [vmem:[#allocation5 + $0x30] sm:$0xf0] }
 0x410   : > { %v1505_v52 = vmul.f32 %v7824_v46, %v7824_v46  ;;  %2103 = vmatpush.bf16.msra.mxu2 %v5503_v18  ;;  %v5467_v37 = vor.u32 %v5710_v39, %v5464_v41 }
 0x411   : > { %2003 = vmatpush.bf16.msra.mxu0 %v5527_v47  ;;  %v5713_v47 = vld [vmem:[#allocation5 + $0x34] sm:$0xf0] }
 0x412   : > { %1525 = vadd.xlane.f32.xlu1 %v1505_v52  ;;  %1448 = vadd.xlane.f32.xlu0 %v7821_v59  ;;  %v5523_v52 = vor.u32 %v5723_v10, %v5520_v53  ;;  %v5456_v10 = vld [vmem:[#allocation5 + $0x18] sm:$0xf0] }
 0x413   : > { %v1441_v16 = vpop.xlane.xlu0 %1440 }
 0x414   : > { %v1474_v30 = vmul.f32 %v7790_v54, %v1441_v16  ;;  %v5494_v16 = vld [vmem:[#allocation5 + $0x60] sm:$0xf]  ;;  %2151 = vmatpush.bf16.msra.mxu3 %v5523_v52  ;;  %2104 = vmatpush.bf16.msra.mxu2 %v5487_v51  ;;  %v5459_v52 = vor.u32 %v5707_v0, %v5456_v10 }
 0x415   : > { %2004 = vmatpush.bf16.msra.mxu0 %v5511_v57  ;;  %v5447_v57 = vor.u32 %v5708_v1, %v5446_v23 }
 0x416   : > { %v7832_v9 = vsub.f32 %v1419_v8, %v1474_v30  ;;  %v5726_v8 = vld [vmem:[#allocation5 + $0xa4] sm:$0xf]  ;;  %v5720_v30 = vld [vmem:[#allocation5 + $0x6c] sm:$0xf0] }
 0x417   : > { %v5531_v56 = vor.u32 %v5726_v8, %v5528_v17  ;;  %v5495_v7 = vor.u32 %v5720_v30, %v5494_v16  ;;  %v5470_v8 = vld [vmem:[#allocation5 + $0x28] sm:$0xf] }
 0x418   : > { %v1506_v11 = vmul.f32 %v7832_v9, %v7832_v9  ;;  %2152 = vmatpush.bf16.msra.mxu3 %v5507_v42  ;;  %v5471_v50 = vor.u32 %v5713_v47, %v5470_v8  ;;  %v7863_v47 = vpop.trf.xlu2 }
 0x419   : > { %2052 = vmatpush.bf16.msra.mxu1 %v5531_v56  ;;  %2005 = vmatpush.bf16.msra.mxu0 %v5495_v7  ;;  %v5711_v56 = vld [vmem:[#allocation5 + $0x2c] sm:$0xf] }
 0x41a   : > { %1527 = vadd.xlane.f32.xlu0 %v1506_v11  ;;  %1450 = vadd.xlane.f32.xlu1 %v7830_v43  ;;  %v5718_v11 = vld [vmem:[#allocation5 + $0x64] sm:$0xf]  ;;  %v5475_v44 = vor.u32 %v5711_v56, %v5472_v48 }
 0x41b   : > { %v5499_v32 = vor.u32 %v5718_v11, %v5496_v12  ;;  %2105 = vmatpush.bf16.msra.mxu2 %v5471_v50 }
 0x41c   : > { %2153 = vmatpush.bf16.msra.mxu3 %v5491_v28 }
 0x41d   : > { %2053 = vmatpush.bf16.msra.mxu1 %v5515_v31  ;;  %2006 = vmatpush.bf16.msra.mxu0 %v5479_v25  ;;  %v5709_v31 = vld [vmem:[#allocation5 + $0x14] sm:$0xf0] }
 0x41e   : > { %v5455_v53 = vor.u32 %v5709_v31, %v5454_v58 }
 0x420   : > { %2154 = vmatpush.bf16.msra.mxu3 %v5475_v44  ;;  %2106 = vmatpush.bf16.msra.mxu2 %v5455_v53 }
 0x421   : > { %2054 = vmatpush.bf16.msra.mxu1 %v5499_v32  ;;  %2007 = vmatpush.bf16.msra.mxu0 %v5463_v4 }
 0x422   : > { %1452 = vadd.xlane.f32.xlu0 %v7837_v36 }
 0x424   : > { %2155 = vmatpush.bf16.msra.mxu3 %v5459_v52 }
 0x425   : > { %2055 = vmatpush.bf16.msra.mxu1 %v5483_v13  ;;  %2008 = vmatpush.bf16.msra.mxu0 %v5447_v57 }
 0x429   : > { %2056 = vmatpush.bf16.msra.mxu1 %v5467_v37 }
 0x42d   : > { %2057 = vmatpush.bf16.msra.mxu1 %v5451_v35 }
 0x465   : > { %v1518_v17 = vpop.xlane.xlu1 %1517 }
 0x466   : > { %v1549_v6 = vmul.f32 %v1518_v17, %v7790_v54 }
 0x468   : > { %v1565_v5 = vadd.f32 1e-06, %v1549_v6 }
 0x46a   : > { %5923 = vrsqrt.f32 %v1565_v5  ;;  %vm1587_vm8 = vweird.f32 %v1565_v5 }
 0x46d   : > { %v1520_v16 = vpop.xlane.xlu0 %1519  ;;  %v1443_v30 = vpop.xlane.xlu1 %1442 }
 0x46e   : > { %v1550_v11 = vmul.f32 %v1520_v16, %v7790_v54  ;;  %v1475_v7 = vmul.f32 %v7790_v54, %v1443_v30 }
 0x470   : > { %v5924_v12 = vpop.eup %5923  ;;  %v1566_v55 = vadd.f32 1e-06, %v1550_v11  ;;  %v7844_v45 = vsub.f32 %v7793_v34, %v1475_v7 }
 0x471   : > { %v1582_v32 = vmul.f32 %v5924_v12, %v1565_v5  ;;  %vm1588_vm7 = vweird.f32 %v5924_v12 }
 0x472   : > { %5925 = vrsqrt.f32 %v1566_v55  ;;  %v1507_v18 = vmul.f32 %v7844_v45, %v7844_v45  ;;  %vm1589_vm9 = vmor %vm1587_vm8, %vm1588_vm7  ;;  %vm1597_vm11 = vweird.f32 %v1566_v55 }
 0x473   : > { %v1583_v29 = vmul.f32 %v5924_v12, %v1582_v32 }
 0x474   : > { %1529 = vadd.xlane.f32.xlu1 %v1507_v18 }
 0x475   : > { %v1584_v42 = vmul.f32 0.5, %v1583_v29  ;;  %v1522_v27 = vpop.xlane.xlu1 %1521  ;;  %v1445_v20 = vpop.xlane.xlu0 %1444 }
 0x476   : > { %v1551_v2 = vmul.f32 %v1522_v27, %v7790_v54  ;;  %v1476_v25 = vmul.f32 %v7790_v54, %v1445_v20 }
 0x477   : > { %v1585_v33 = vsub.f32 1.5, %v1584_v42 }
 0x478   : > { %v5926_v49 = vpop.eup %5925  ;;  %v1567_v34 = vadd.f32 1e-06, %v1551_v2  ;;  %v7853_v61 = vsub.f32 %v7802_v14, %v1476_v25  ;;  %v337_v14 = vld [vmem:[%s11412_s2] sm:$0xf] }
 0x479   : > { %v1586_v13 = vmul.f32 %v5924_v12, %v1585_v33  ;;  %v1592_v51 = vmul.f32 %v5926_v49, %v1566_v55  ;;  %vm1598_vm10 = vweird.f32 %v5926_v49  ;;  %v7869_v48 = vperm.slane %v337_v14, 0 }
 0x47a   : > { %5927 = vrsqrt.f32 %v1567_v34  ;;  %v1508_v60 = vmul.f32 %v7853_v61, %v7853_v61  ;;  %vm1599_vm12 = vmor %vm1597_vm11, %vm1598_vm10  ;;  %vm1607_vm14 = vweird.f32 %v1567_v34 }
 0x47b   : > { %v1593_v62 = vmul.f32 %v5926_v49, %v1592_v51  ;;  %v1590_v28 = vsel %vm1589_vm9, %v5924_v12, %v1586_v13  ;;  %v7886_v12 = vpop.trf.xlu2 }
 0x47c   : > { %1531 = vadd.xlane.f32.xlu0 %v1508_v60  ;;  %1454 = vadd.xlane.f32.xlu1 %v7848_v63  ;;  %v1741_v37 = vmul.f32 %v1590_v28, %v7795_v3 }
 0x47d   : > { %v1594_v40 = vmul.f32 0.5, %v1593_v62  ;;  %v1524_v15 = vpop.xlane.xlu0 %1523  ;;  %v1447_v39 = vpop.xlane.xlu1 %1446 }
 0x47e   : > { %v1552_v4 = vmul.f32 %v1524_v15, %v7790_v54  ;;  %v1477_v41 = vmul.f32 %v7790_v54, %v1447_v39  ;;  %v1758_v3 = vmul.f32 %v7869_v48, %v1741_v37 }
 0x47f   : > { %v1595_v8 = vsub.f32 1.5, %v1594_v40 }
 0x480   : > { %v5928_v17 = vpop.eup %5927  ;;  %v1568_v50 = vadd.f32 1e-06, %v1552_v4  ;;  %v7867_v56 = vsub.f32 %v7812_v21, %v1477_v41  ;;  %v7876_v21 = vperm.slane %v337_v14, 1 }
 0x481   : > { %v1596_v6 = vmul.f32 %v5926_v49, %v1595_v8  ;;  %v1602_v44 = vmul.f32 %v5928_v17, %v1567_v34  ;;  %vm1608_vm13 = vweird.f32 %v5928_v17 }
 0x482   : > { %5929 = vrsqrt.f32 %v1568_v50  ;;  %v1509_v23 = vmul.f32 %v7867_v56, %v7867_v56  ;;  %v1775_v16 = vadd.f32 %v7876_v21, %v1758_v3  ;;  %vm7890_vm15 = vmor %vm1607_vm14, %vm1608_vm13  ;;  %vm1617_vm1 = vweird.f32 %v1568_v50 }
 0x483   : > { %v1600_v1 = vsel %vm1599_vm12, %v5926_v49, %v1596_v6  ;;  %v1603_v38 = vmul.f32 %v5928_v17, %v1602_v44  ;;  %v7905_v39 = vpop.trf.xlu2 }
 0x484   : > { %v1742_v5 = vmul.f32 %v1600_v1, %v7800_v19  ;;  %1533 = vadd.xlane.f32.xlu1 %v1509_v23  ;;  %1456 = vadd.xlane.f32.xlu0 %v7863_v47 }
 0x485   : > { %v1604_v57 = vmul.f32 0.5, %v1603_v38  ;;  %v1526_v26 = vpop.xlane.xlu1 %1525  ;;  %v1449_v58 = vpop.xlane.xlu0 %1448 }
 0x486   : > { %v1553_v35 = vmul.f32 %v1526_v26, %v7790_v54  ;;  %v1478_v31 = vmul.f32 %v7790_v54, %v1449_v58  ;;  %v1759_v0 = vmul.f32 %v7869_v48, %v1742_v5 }
 0x487   : > { %v1605_v10 = vsub.f32 1.5, %v1604_v57 }
 0x488   : > { %v5930_v53 = vpop.eup %5929  ;;  %v1569_v52 = vadd.f32 1e-06, %v1553_v35  ;;  %v7882_v19 = vsub.f32 %v7821_v59, %v1478_v31  ;;  %v1776_v30 = vadd.f32 %v7876_v21, %v1759_v0 }
 0x489   : > { %v1606_v11 = vmul.f32 %v5928_v17, %v1605_v10  ;;  %v1612_v7 = vmul.f32 %v5930_v53, %v1568_v50  ;;  %vm1618_vm0 = vweird.f32 %v5930_v53 }
 0x48a   : > { %5931 = vrsqrt.f32 %v1569_v52  ;;  %v1791_v55 = vpack.c.bf16 %v1776_v30, %v1775_v16  ;;  %v1510_v32 = vmul.f32 %v7882_v19, %v7882_v19  ;;  %vm1619_vm2 = vmor %vm1617_vm1, %vm1618_vm0  ;;  %vm1627_vm4 = vweird.f32 %v1569_v52 }
 0x48b   : > { %v1613_v18 = vmul.f32 %v5930_v53, %v1612_v7  ;;  %v1610_v59 = vsel %vm7890_vm15, %v5928_v17, %v1606_v11 }
 0x48c   : > { %2009 = vmatmul.bf16.vlgmr.msra.gmra.mxu0 %v1791_v55  ;;  %2058 = vmatmul.bf16.vlgmr.msra.gmra.mxu1 %v1791_v55  ;;  %v1743_v34 = vmul.f32 %v1610_v59, %v7808_v22 }
 0x48d   : > { %v1614_v42 = vmul.f32 0.5, %v1613_v18  ;;  %2107 = vmatmul.bf16.vlgmr.msra.gmra.mxu2 %v1791_v55  ;;  %2156 = vmatmul.bf16.vlgmr.msra.gmra.mxu3 %v1791_v55  ;;  %v1528_v27 = vpop.xlane.xlu0 %1527  ;;  %v1451_v20 = vpop.xlane.xlu1 %1450 }
 0x48e   : > { %1535 = vadd.xlane.f32.xlu0 %v1510_v32  ;;  %1458 = vadd.xlane.f32.xlu1 %v7886_v12  ;;  %v1554_v2 = vmul.f32 %v1528_v27, %v7790_v54  ;;  %v1479_v25 = vmul.f32 %v7790_v54, %v1451_v20  ;;  %v1760_v22 = vmul.f32 %v7869_v48, %v1743_v34 }
 0x48f   : > { %v1615_v33 = vsub.f32 1.5, %v1614_v42 }
 0x490   : > { %v5932_v49 = vpop.eup %5931  ;;  %v1570_v13 = vadd.f32 1e-06, %v1554_v2  ;;  %v7901_v51 = vsub.f32 %v7830_v43, %v1479_v25  ;;  %v1777_v6 = vadd.f32 %v7876_v21, %v1760_v22 }
 0x491   : > { %v1616_v60 = vmul.f32 %v5930_v53, %v1615_v33  ;;  %v1622_v62 = vmul.f32 %v5932_v49, %v1569_v52  ;;  %vm1628_vm3 = vweird.f32 %v5932_v49 }
 0x492   : > { %5933 = vrsqrt.f32 %v1570_v13  ;;  %v1511_v28 = vmul.f32 %v7901_v51, %v7901_v51  ;;  %vm1629_vm5 = vmor %vm1627_vm4, %vm1628_vm3  ;;  %vm1637_vm7 = vweird.f32 %v1570_v13 }
 0x493   : > { %v1620_v40 = vsel %vm1619_vm2, %v5930_v53, %v1616_v60  ;;  %v1623_v15 = vmul.f32 %v5932_v49, %v1622_v62 }
 0x494   : > { %v1744_v14 = vmul.f32 %v1620_v40, %v7816_v24 }
 0x495   : > { %v1624_v4 = vmul.f32 0.5, %v1623_v15  ;;  %v1453_v41 = vpop.xlane.xlu0 %1452 }
 0x496   : > { %1537 = vadd.xlane.f32.xlu1 %v1511_v28  ;;  %1460 = vadd.xlane.f32.xlu0 %v7905_v39  ;;  %v1480_v43 = vmul.f32 %v7790_v54, %v1453_v41  ;;  %v1761_v8 = vmul.f32 %v7869_v48, %v1744_v14 }
 0x497   : > { %v1625_v17 = vsub.f32 1.5, %v1624_v4 }
 0x498   : > { %v5934_v37 = vpop.eup %5933  ;;  %v7913_v50 = vsub.f32 %v7837_v36, %v1480_v43  ;;  %v1778_v24 = vadd.f32 %v7876_v21, %v1761_v8 }
 0x499   : > { %v1626_v44 = vmul.f32 %v5932_v49, %v1625_v17  ;;  %v1632_v23 = vmul.f32 %v5934_v37, %v1570_v13  ;;  %vm1638_vm6 = vweird.f32 %v5934_v37 }
 0x49a   : > { %v1792_v1 = vpack.c.bf16 %v1778_v24, %v1777_v6  ;;  %v1512_v38 = vmul.f32 %v7913_v50, %v7913_v50  ;;  %vm1639_vm8 = vmor %vm1637_vm7, %vm1638_vm6 }
 0x49b   : > { %v1633_v5 = vmul.f32 %v5934_v37, %v1632_v23  ;;  %v1630_v3 = vsel %vm1629_vm5, %v5932_v49, %v1626_v44 }
 0x49c   : > { %2014 = vmatmul.bf16.gmra.mxu0 %v1792_v1  ;;  %2063 = vmatmul.bf16.gmra.mxu1 %v1792_v1  ;;  %v1745_v26 = vmul.f32 %v1630_v3, %v7824_v46 }
 0x49d   : > { %v1634_v57 = vmul.f32 0.5, %v1633_v5  ;;  %2112 = vmatmul.bf16.gmra.mxu2 %v1792_v1  ;;  %2161 = vmatmul.bf16.gmra.mxu3 %v1792_v1 }
 0x49e   : > { %1539 = vadd.xlane.f32.xlu0 %v1512_v38  ;;  %v1762_v0 = vmul.f32 %v7869_v48, %v1745_v26 }
 0x49f   : > { %v1635_v36 = vsub.f32 1.5, %v1634_v57  ;;  %v1831_v57 = vld [vmem:[%s11414_s4] sm:$0xf] }
 0x4a0   : > { %v1779_v53 = vadd.f32 %v7876_v21, %v1762_v0 }
 0x4a1   : > { %v1636_v58 = vmul.f32 %v5934_v37, %v1635_v36  ;;  %v7960_v36 = vperm.slane %v1831_v57, 0 }
 0x4a3   : > { %v1640_v35 = vsel %vm1639_vm8, %v5934_v37, %v1636_v58  ;;  %11809 = vst [vmem:[#allocation23_spill] sm:$0xff] %v7960_v36 }
 0x4a4   : > { %v1746_v31 = vmul.f32 %v1640_v35, %v7832_v9 }
 0x4a6   : > { %v1763_v10 = vmul.f32 %v7869_v48, %v1746_v31 }
 0x4a8   : > { %v1780_v52 = vadd.f32 %v7876_v21, %v1763_v10  ;;  %v7973_v10 = vperm.slane %v1831_v57, 2 }
 0x4aa   : > { %v1793_v16 = vpack.c.bf16 %v1780_v52, %v1779_v53  ;;  %11811 = vst [vmem:[#allocation73_spill] sm:$0xff] %v7973_v10 }
 0x4ac   : > { %2019 = vmatmul.bf16.gmra.mxu0 %v1793_v16  ;;  %2068 = vmatmul.bf16.gmra.mxu1 %v1793_v16 }
 0x4ad   : > { %2117 = vmatmul.bf16.gmra.mxu2 %v1793_v16  ;;  %2166 = vmatmul.bf16.gmra.mxu3 %v1793_v16  ;;  %v7976_v16 = vperm.slane %v1831_v57, 3 }
 0x4af   : > { %11812 = vst [vmem:[#allocation79_spill] sm:$0xff] %v7976_v16 }
 0x4e7   : > { %v1530_v46 = vpop.xlane.xlu1 %1529 }
 0x4e8   : > { %v1555_v30 = vmul.f32 %v1530_v46, %v7790_v54 }
 0x4ea   : > { %v1571_v11 = vadd.f32 1e-06, %v1555_v30 }
 0x4ec   : > { %5935 = vrsqrt.f32 %v1571_v11  ;;  %vm1647_vm10 = vweird.f32 %v1571_v11 }
 0x4ef   : > { %v1532_v7 = vpop.xlane.xlu0 %1531  ;;  %v1455_v9 = vpop.xlane.xlu1 %1454 }
 0x4f0   : > { %v1556_v55 = vmul.f32 %v1532_v7, %v7790_v54  ;;  %v1481_v32 = vmul.f32 %v7790_v54, %v1455_v9 }
 0x4f2   : > { %v5936_v18 = vpop.eup %5935  ;;  %v1572_v29 = vadd.f32 1e-06, %v1556_v55  ;;  %v7929_v59 = vsub.f32 %v7848_v63, %v1481_v32 }
 0x4f3   : > { %v1642_v42 = vmul.f32 %v5936_v18, %v1571_v11  ;;  %vm1648_vm9 = vweird.f32 %v5936_v18 }
 0x4f4   : > { %11805 = vst [vmem:[#allocation12_spill] sm:$0xff] %v7929_v59  ;;  %5937 = vrsqrt.f32 %v1572_v29  ;;  %v1513_v27 = vmul.f32 %v7929_v59, %v7929_v59  ;;  %vm1649_vm11 = vmor %vm1647_vm10, %vm1648_vm9  ;;  %vm1657_vm13 = vweird.f32 %v1572_v29 }
 0x4f5   : > { %v1643_v20 = vmul.f32 %v5936_v18, %v1642_v42 }
 0x4f6   : > { %1541 = vadd.xlane.f32.xlu1 %v1513_v27 }
 0x4f7   : > { %v1644_v2 = vmul.f32 0.5, %v1643_v20  ;;  %v1534_v25 = vpop.xlane.xlu1 %1533  ;;  %v1457_v33 = vpop.xlane.xlu0 %1456 }
 0x4f8   : > { %v1482_v49 = vmul.f32 %v7790_v54, %v1457_v33  ;;  %v1557_v53 = vmul.f32 %v1534_v25, %v7790_v54 }
 0x4f9   : > { %v1645_v34 = vsub.f32 1.5, %v1644_v2 }
 0x4fa   : > { %v5938_v13 = vpop.eup %5937  ;;  %v7935_v60 = vsub.f32 %v7863_v47, %v1482_v49  ;;  %v7987_v9 = vadd.f32 1e-06, %v1557_v53 }
 0x4fb   : > { %v1646_v62 = vmul.f32 %v5936_v18, %v1645_v34  ;;  %v1652_v63 = vmul.f32 %v5938_v13, %v1572_v29  ;;  %vm1658_vm12 = vweird.f32 %v5938_v13 }
 0x4fc   : > { %11806 = vst [vmem:[#allocation38_spill] sm:$0xff] %v7935_v60  ;;  %v1514_v28 = vmul.f32 %v7935_v60, %v7935_v60  ;;  %vm1659_vm14 = vmor %vm1657_vm13, %vm1658_vm12  ;;  %5939 = vrsqrt.f32 %v7987_v9  ;;  %vm1667_vm15 = vweird.f32 %v7987_v9 }
 0x4fd   : > { %v1653_v40 = vmul.f32 %v5938_v13, %v1652_v63  ;;  %v1650_v15 = vsel %vm1649_vm11, %v5936_v18, %v1646_v62 }
 0x4fe   : > { %1543 = vadd.xlane.f32.xlu2 %v1514_v28  ;;  %v1747_v43 = vmul.f32 %v1650_v15, %v7844_v45 }
 0x4ff   : > { %v1654_v14 = vmul.f32 0.5, %v1653_v40 }
 0x500   : > { %v1764_v44 = vmul.f32 %v7869_v48, %v1747_v43 }
 0x501   : > { %v1655_v22 = vsub.f32 1.5, %v1654_v14  ;;  %v1536_v4 = vpop.xlane.xlu0 %1535  ;;  %v1459_v41 = vpop.xlane.xlu1 %1458 }
 0x502   : > { %v1483_v47 = vmul.f32 %v7790_v54, %v1459_v41  ;;  %v1781_v38 = vadd.f32 %v7876_v21, %v1764_v44  ;;  %v1558_v55 = vmul.f32 %v1536_v4, %v7790_v54  ;;  %v8019_v62 = vpop.eup %5939 }
 0x503   : > { %v1656_v8 = vmul.f32 %v5938_v13, %v1655_v22  ;;  %v1662_v15 = vmul.f32 %v8019_v62, %v7987_v9  ;;  %vm1668_vm0 = vweird.f32 %v8019_v62 }
 0x504   : > { %v7942_v17 = vsub.f32 %v7886_v12, %v1483_v47  ;;  %v8001_v27 = vadd.f32 1e-06, %v1558_v55  ;;  %vm8100_vm3 = vmor %vm1667_vm15, %vm1668_vm0 }
 0x505   : > { %v1660_v37 = vsel %vm1659_vm14, %v5938_v13, %v1656_v8  ;;  %v1663_v8 = vmul.f32 %v8019_v62, %v1662_v15 }
 0x506   : > { %11807 = vst [vmem:[#allocation54_spill] sm:$0xff] %v7942_v17  ;;  %v1748_v6 = vmul.f32 %v1660_v37, %v7853_v61  ;;  %v1515_v24 = vmul.f32 %v7942_v17, %v7942_v17  ;;  %5941 = vrsqrt.f32 %v8001_v27  ;;  %vm1677_vm1 = vweird.f32 %v8001_v27 }
 0x508   : > { %1545 = vadd.xlane.f32.xlu0 %v1515_v24  ;;  %v1765_v23 = vmul.f32 %v7869_v48, %v1748_v6 }
 0x509   : > { %v1461_v45 = vpop.xlane.xlu0 %1460  ;;  %v2010_v26 = vpop.f32.mrf.mxu0 }
 0x50a   : > { %v1484_v1 = vmul.f32 %v7790_v54, %v1461_v45  ;;  %v1782_v5 = vadd.f32 %v7876_v21, %v1765_v23  ;;  %v7963_v58 = vadd.f32 %v2010_v26, %v7960_v36  ;;  %v2059_v35 = vpop.f32.mrf.mxu1 }
 0x50c   : > { %v7953_v12 = vsub.f32 %v7905_v39, %v1484_v1  ;;  %v1794_v3 = vpack.c.bf16 %v1782_v5, %v1781_v38  ;;  %v7965_v39 = vperm.slane %v1831_v57, 1  ;;  %v7968_v31 = vmul.f32 0.70710677, %v7963_v58  ;;  %v8035_v41 = vpop.eup %5941 }
 0x50d   : > { %v1672_v24 = vmul.f32 %v8035_v41, %v8001_v27  ;;  %v1664_v38 = vmul.f32 0.5, %v1663_v8  ;;  %vm1678_vm4 = vweird.f32 %v8035_v41 }
 0x50e   : > { %11808 = vst [vmem:[#allocation57_spill] sm:$0xff] %v7953_v12  ;;  %2024 = vmatmul.bf16.gmra.mxu0 %v1794_v3  ;;  %2073 = vmatmul.bf16.gmra.mxu1 %v1794_v3  ;;  %v1516_v61 = vmul.f32 %v7953_v12, %v7953_v12  ;;  %v7971_v0 = vadd.f32 %v2059_v35, %v7965_v39  ;;  %v7979_v46 = vand.u32 2147483647, %v7968_v31  ;;  %vm8141_vm8 = vmor %vm1677_vm1, %vm1678_vm4 }
 0x50f   : > { %2122 = vmatmul.bf16.gmra.mxu2 %v1794_v3  ;;  %2171 = vmatmul.bf16.gmra.mxu3 %v1794_v3  ;;  %11810 = vst [vmem:[#allocation35_spill] sm:$0xff] %v7965_v39  ;;  %v1673_v3 = vmul.f32 %v8035_v41, %v1672_v24 }
 0x510   : > { %1547 = vadd.xlane.f32.xlu1 %v1516_v61  ;;  %v2108_v52 = vpop.f32.mrf.mxu2  ;;  %v7982_v30 = vmul.f32 0.70710677, %v7971_v0  ;;  %v2157_v11 = vpop.f32.mrf.mxu3  ;;  %v2389_v18 = vmul.f32 0.3275911, %v7979_v46 }
 0x511   : > { %v7985_v7 = vadd.f32 %v2108_v52, %v7973_v10  ;;  %v7991_v32 = vadd.f32 %v2157_v11, %v7976_v16  ;;  %v2012_v33 = vpop.f32.mrf.mxu0  ;;  %v1665_v52 = vsub.f32 1.5, %v1664_v38  ;;  %v1538_v11 = vpop.xlane.xlu1 %1537 }
 0x512   : > { %v7995_v29 = vand.u32 2147483647, %v7982_v30  ;;  %v8006_v2 = vadd.f32 1.0, %v2389_v18  ;;  %v8017_v13 = vadd.f32 %v2012_v33, %v7960_v36  ;;  %v2061_v40 = vpop.f32.mrf.mxu1  ;;  %v1559_v8 = vmul.f32 %v1538_v11, %v7790_v54 }
 0x513   : > { %v7998_v42 = vmul.f32 0.70710677, %v7985_v7  ;;  %v8004_v20 = vmul.f32 0.70710677, %v7991_v32  ;;  %v8033_v4 = vadd.f32 %v2061_v40, %v7965_v39 }
 0x514   : > { %v2390_v25 = vmul.f32 0.3275911, %v7995_v29  ;;  %5943 = vrcp.f32 %v8006_v2  ;;  %v8029_v22 = vmul.f32 0.70710677, %v8017_v13  ;;  %v8104_v11 = vadd.f32 1e-06, %v1559_v8 }
 0x515   : > { %v8010_v49 = vand.u32 2147483647, %v7998_v42  ;;  %v8014_v34 = vand.u32 2147483647, %v8004_v20  ;;  %11813 = vst [vmem:[#allocation13_spill] sm:$0xff] %v8033_v4  ;;  %vm2522_vm5 = vweird.f32 %v8006_v2 }
 0x516   : > { %v8022_v63 = vadd.f32 1.0, %v2390_v25  ;;  %v8045_v6 = vand.u32 2147483647, %v8029_v22  ;;  %v8050_v44 = vmul.f32 0.70710677, %v8033_v4  ;;  %v1674_v25 = vmul.f32 0.5, %v1673_v3 }
 0x517   : > { %v2391_v28 = vmul.f32 0.3275911, %v8010_v49  ;;  %v2392_v14 = vmul.f32 0.3275911, %v8014_v34 }
 0x518   : > { %5945 = vrcp.f32 %v8022_v63  ;;  %11814 = vst [vmem:[#allocation21_spill] sm:$0xff] %v8050_v44  ;;  %v2110_v1 = vpop.f32.mrf.mxu2  ;;  %v2393_v5 = vmul.f32 0.3275911, %v8045_v6  ;;  %v8061_v61 = vand.u32 2147483647, %v8050_v44  ;;  %v2159_v18 = vpop.f32.mrf.mxu3  ;;  %v1675_v38 = vsub.f32 1.5, %v1674_v25 }
 0x519   : > { %v8037_v43 = vadd.f32 1.0, %v2391_v28  ;;  %v8042_v37 = vadd.f32 1.0, %v2392_v14  ;;  %v8066_v35 = vadd.f32 %v2110_v1, %v7973_v10  ;;  %v1666_v1 = vmul.f32 %v8019_v62, %v1665_v52 }
 0x51a   : > { %v8039_v47 = vpop.eup %5943  ;;  %v8070_v55 = vadd.f32 1.0, %v2393_v5  ;;  %v2394_v33 = vmul.f32 0.3275911, %v8061_v61  ;;  %v1676_v12 = vmul.f32 %v8035_v41, %v1675_v38  ;;  %v2543_v52 = vand.u32 2147483648, %v8022_v63 }
 0x51b   : > { %v2518_v23 = vmul.f32 %v8039_v47, %v8006_v2  ;;  %5947 = vrcp.f32 %v8037_v43  ;;  %11815 = vst [vmem:[#allocation16_spill] sm:$0xff] %v8066_v35  ;;  %v8077_v14 = vmul.f32 0.70710677, %v8066_v35  ;;  %vm2523_vm2 = vweird.f32 %v8039_v47 }
 0x51c   : > { %5949 = vrcp.f32 %v8042_v37  ;;  %v8092_v3 = vadd.f32 1.0, %v2394_v33  ;;  %vm8117_vm6 = vmor %vm2522_vm5, %vm2523_vm2  ;;  %vm2537_vm10 = vweird.f32 %v8022_v63  ;;  %vm2552_vm14 = vweird.f32 %v8037_v43 }
 0x51d   : > { %v2519_v57 = vsub.f32 1.0, %v2518_v23  ;;  %11816 = vst [vmem:[#allocation14_spill] sm:$0xff] %v8077_v14  ;;  %v8083_v23 = vadd.f32 %v2159_v18, %v7976_v16  ;;  %5951 = vrcp.f32 %v8070_v55  ;;  %v8098_v9 = vand.u32 2147483647, %v8077_v14 }
 0x51e   : > { %v8055_v45 = vpop.eup %5945  ;;  %v2528_v18 = vand.u32 2147483648, %v8006_v2  ;;  %5953 = vrcp.f32 %v8092_v3  ;;  %vm2567_vm1 = vweird.f32 %v8042_v37  ;;  %v2603_v44 = vand.u32 2147483648, %v8092_v3 }
 0x51f   : > { %v2533_v26 = vmul.f32 %v8055_v45, %v8022_v63  ;;  %v2520_v40 = vmul.f32 %v8039_v47, %v2519_v57  ;;  %11817 = vst [vmem:[#allocation20_spill] sm:$0xff] %v8083_v23  ;;  %v8108_v33 = vmul.f32 0.70710677, %v8083_v23  ;;  %vm2538_vm7 = vweird.f32 %v8055_v45 }
 0x520   : > { %v2529_v38 = vor.u32 1.1754944e-38, %v2528_v18  ;;  %5955 = vrsqrt.f32 %v8104_v11  ;;  %vm8149_vm11 = vmor %vm2537_vm10, %vm2538_vm7  ;;  %v1680_v18 = vsel %vm8141_vm8, %v8035_v41, %v1676_v12  ;;  %v2556_v12 = vand.u32 2147483647, %v8037_v43 }
 0x521   : > { %v8068_v53 = vpop.eup %5947  ;;  %v2534_v15 = vsub.f32 1.0, %v2533_v26  ;;  %v2521_v57 = vadd.f32 %v8039_v47, %v2520_v40  ;;  %11820 = vst [vmem:[#allocation31_spill] sm:$0xff] %v8108_v33  ;;  %v1670_v40 = vsel %vm8100_vm3, %v8019_v62, %v1666_v1  ;;  %v2558_v41 = vand.u32 2147483648, %v8037_v43 }
 0x522   : > { %v8073_v28 = vpop.eup %5949  ;;  %v2548_v24 = vmul.f32 %v8068_v53, %v8037_v43  ;;  %v1749_v14 = vmul.f32 %v1670_v40, %v7867_v56  ;;  %vm2553_vm13 = vweird.f32 %v8068_v53  ;;  %vm2557_vm3 = vcmp.eq.f32.partialorder %v2556_v12, 8.507059e+37 }
 0x523   : > { %v2563_v5 = vmul.f32 %v8073_v28, %v8042_v37  ;;  %v2535_v26 = vmul.f32 %v8055_v45, %v2534_v15  ;;  %v2526_v15 = vand.u32 2147483647, %v8006_v2  ;;  %v8123_v60 = vpop.eup %5951  ;;  %v2525_v62 = vsel %vm8117_vm6, %v8039_v47, %v2521_v57  ;;  %vm8178_vm0 = vmor %vm2552_vm14, %vm2553_vm13 }
 0x524   : > { %v2549_v25 = vsub.f32 1.0, %v2548_v24  ;;  %v2541_v24 = vand.u32 2147483647, %v8022_v63  ;;  %v2395_v2 = vmul.f32 0.3275911, %v8098_v9  ;;  %v2578_v27 = vmul.f32 %v8123_v60, %v8070_v55  ;;  %v8164_v40 = vpop.eup %5953 }
 0x525   : > { %v2564_v17 = vsub.f32 1.0, %v2563_v5  ;;  %v2536_v1 = vadd.f32 %v8055_v45, %v2535_v26  ;;  %v8134_v5 = vand.u32 2147483647, %v8108_v33  ;;  %vm2527_vm9 = vcmp.eq.f32.partialorder %v2526_v15, 8.507059e+37 }
 0x526   : > { %v2550_v59 = vmul.f32 %v8068_v53, %v2549_v25  ;;  %v8147_v57 = vsel %vm2527_vm9, %v2529_v38, %v2525_v62  ;;  %vm2542_vm12 = vcmp.eq.f32.partialorder %v2541_v24, 8.507059e+37  ;;  %v8162_v25 = vadd.f32 1.0, %v2395_v2  ;;  %v8186_v43 = vpop.eup %5955 }
 0x527   : > { %v2565_v56 = vmul.f32 %v8073_v28, %v2564_v17  ;;  %v2540_v63 = vsel %vm8149_vm11, %v8055_v45, %v2536_v1  ;;  %v2544_v15 = vor.u32 1.1754944e-38, %v2543_v52  ;;  %v2396_v17 = vmul.f32 0.3275911, %v8134_v5  ;;  %v1540_v1 = vpop.xlane.xlu0 %1539 }
 0x528   : > { %v2551_v8 = vadd.f32 %v8068_v53, %v2550_v59  ;;  %v3477_v62 = vmul.f32 1.0614054, %v8147_v57  ;;  %vm2568_vm15 = vweird.f32 %v8073_v28  ;;  %v2579_v59 = vsub.f32 1.0, %v2578_v27 }
 0x529   : > { %v8173_v45 = vsel %vm2542_vm12, %v2544_v15, %v2540_v63  ;;  %v2566_v24 = vadd.f32 %v8073_v28, %v2565_v56  ;;  %v1750_v2 = vmul.f32 %v1680_v18, %v7882_v19  ;;  %v2573_v52 = vand.u32 2147483648, %v8042_v37  ;;  %vm8198_vm2 = vmor %vm2567_vm1, %vm2568_vm15 }
 0x52a   : > { %v2593_v47 = vmul.f32 %v8164_v40, %v8092_v3  ;;  %5957 = vrcp.f32 %v8162_v25  ;;  %v2555_v26 = vsel %vm8178_vm0, %v8068_v53, %v2551_v8  ;;  %v2571_v19 = vand.u32 2147483647, %v8042_v37 }
 0x52b   : > { %v8193_v56 = vadd.f32 1.0, %v2396_v17  ;;  %v3478_v27 = vmul.f32 1.0614054, %v8173_v45  ;;  %v2559_v18 = vor.u32 1.1754944e-38, %v2558_v41  ;;  %v1560_v15 = vmul.f32 %v1540_v1, %v7790_v54 }
 0x52c   : > { %v3541_v33 = vadd.f32 -1.4531521, %v3477_v62  ;;  %v2570_v53 = vsel %vm8198_vm2, %v8073_v28, %v2566_v24  ;;  %v2580_v37 = vmul.f32 %v8123_v60, %v2579_v59  ;;  %v2574_v17 = vor.u32 1.1754944e-38, %v2573_v52 }
 0x52d   : > { %v8207_v8 = vsel %vm2557_vm3, %v2559_v18, %v2555_v26  ;;  %v2594_v41 = vsub.f32 1.0, %v2593_v47  ;;  %v1767_v38 = vmul.f32 %v7869_v48, %v1750_v2  ;;  %vm2572_vm4 = vcmp.eq.f32.partialorder %v2571_v19, 8.507059e+37 }
 0x52e   : > { %5959 = vrcp.f32 %v8193_v56  ;;  %v1766_v23 = vmul.f32 %v7869_v48, %v1749_v14  ;;  %v1682_v62 = vmul.f32 %v8186_v43, %v8104_v11  ;;  %v3542_v12 = vadd.f32 -1.4531521, %v3478_v27 }
 0x52f   : > { %v8216_v28 = vsel %vm2572_vm4, %v2574_v17, %v2570_v53  ;;  %v8218_v24 = vadd.f32 1e-06, %v1560_v15  ;;  %v3605_v59 = vmul.f32 %v3541_v33, %v8147_v57  ;;  %v3479_v52 = vmul.f32 1.0614054, %v8207_v8 }
 0x530   : > { %v8212_v1 = vpop.eup %5957  ;;  %v2581_v2 = vadd.f32 %v8123_v60, %v2580_v37  ;;  %vm2583_vm5 = vweird.f32 %v8123_v60  ;;  %vm2582_vm6 = vweird.f32 %v8070_v55  ;;  %v2588_v14 = vand.u32 2147483648, %v8070_v55 }
 0x531   : > { %v2595_v47 = vmul.f32 %v8164_v40, %v2594_v41  ;;  %v1784_v26 = vadd.f32 %v7876_v21, %v1767_v38  ;;  %v3480_v19 = vmul.f32 1.0614054, %v8216_v28  ;;  %v2586_v27 = vand.u32 2147483647, %v8070_v55  ;;  %vm8236_vm7 = vmor %vm2582_vm6, %vm2583_vm5 }
 0x532   : > { %v2608_v33 = vmul.f32 %v8212_v1, %v8162_v25  ;;  %v1783_v18 = vadd.f32 %v7876_v21, %v1766_v23  ;;  %v1683_v63 = vmul.f32 %v8186_v43, %v1682_v62  ;;  %v4053_v15 = vsub.f32 0.0, %v7979_v46 }
 0x533   : > { %5961 = vrsqrt.f32 %v8218_v24  ;;  %v3669_v17 = vadd.f32 1.4214138, %v3605_v59  ;;  %v3606_v55 = vmul.f32 %v3542_v12, %v8173_v45  ;;  %v2585_v41 = vsel %vm8236_vm7, %v8123_v60, %v2581_v2 }
 0x534   : > { %v8240_v37 = vpop.eup %5959  ;;  %v1795_v23 = vpack.c.bf16 %v1784_v26, %v1783_v18  ;;  %v3543_v38 = vadd.f32 -1.4531521, %v3479_v52  ;;  %v2589_v62 = vor.u32 1.1754944e-38, %v2588_v14  ;;  %v2596_v54 = vadd.f32 %v8164_v40, %v2595_v47 }
 0x535   : > { %vm2598_vm8 = vweird.f32 %v8164_v40  ;;  %v3544_v35 = vadd.f32 -1.4531521, %v3480_v19  ;;  %vm2587_vm9 = vcmp.eq.f32.partialorder %v2586_v27, 8.507059e+37  ;;  %v2609_v4 = vsub.f32 1.0, %v2608_v33 }
 0x536   : > { %2029 = vmatmul.bf16.gmra.mxu0 %v1795_v23  ;;  %2078 = vmatmul.bf16.gmra.mxu1 %v1795_v23  ;;  %v8249_v59 = vsel %vm2587_vm9, %v2589_v62, %v2585_v41  ;;  %vm2597_vm10 = vweird.f32 %v8092_v3  ;;  %v2601_v60 = vand.u32 2147483647, %v8092_v3  ;;  %v2623_v12 = vmul.f32 %v8240_v37, %v8193_v56 }
 0x537   : > { %2127 = vmatmul.bf16.gmra.mxu2 %v1795_v23  ;;  %2176 = vmatmul.bf16.gmra.mxu3 %v1795_v23  ;;  %v4117_v52 = vmul.f32 %v4053_v15, %v7979_v46  ;;  %v4054_v2 = vsub.f32 0.0, %v7995_v29  ;;  %vm8259_vm11 = vmor %vm2597_vm10, %vm2598_vm8  ;;  %v3733_v26 = vmul.f32 %v3669_v17, %v8147_v57  ;;  %v3670_v3 = vadd.f32 1.4214138, %v3606_v55 }
 0x538   : > { %v3607_v19 = vmul.f32 %v3543_v38, %v8207_v8  ;;  %v2600_v27 = vsel %vm8259_vm11, %v8164_v40, %v2596_v54  ;;  %v3608_v46 = vmul.f32 %v3544_v35, %v8216_v28  ;;  %v3481_v33 = vmul.f32 1.0614054, %v8249_v59 }
 0x539   : > { %v8263_v47 = vpop.eup %5961  ;;  %v2604_v18 = vor.u32 1.1754944e-38, %v2603_v44  ;;  %v2610_v15 = vmul.f32 %v8212_v1, %v2609_v4  ;;  %v8273_v53 = vmul.f32 0.5, %v1683_v63  ;;  %vm2602_vm12 = vcmp.eq.f32.partialorder %v2601_v60, 8.507059e+37 }
 0x53a   : > { %v2624_v41 = vsub.f32 1.0, %v2623_v12  ;;  %v8276_v17 = vmul.f32 0.5, %v7963_v58  ;;  %v4181_v55 = vmul.f32 1.442695, %v4117_v52  ;;  %v3797_v38 = vadd.f32 -0.28449672, %v3733_v26 }
 0x53b   : > { %v8278_v23 = vsel %vm2602_vm12, %v2604_v18, %v2600_v27  ;;  %v3734_v54 = vmul.f32 %v3670_v3, %v8173_v45  ;;  %v4118_v35 = vmul.f32 %v4054_v2, %v7995_v29  ;;  %v3671_v40 = vadd.f32 1.4214138, %v3607_v19 }
 0x53c   : > { %v3672_v62 = vadd.f32 1.4214138, %v3608_v46  ;;  %v3545_v44 = vadd.f32 -1.4531521, %v3481_v33  ;;  %v2611_v4 = vadd.f32 %v8212_v1, %v2610_v15  ;;  %vm2613_vm13 = vweird.f32 %v8212_v1 }
 0x53d   : > { %v1685_v63 = vsub.f32 1.5, %v8273_v53  ;;  %v3482_v58 = vmul.f32 1.0614054, %v8278_v23  ;;  %v2618_v60 = vand.u32 2147483648, %v8162_v25  ;;  %v2625_v12 = vmul.f32 %v8240_v37, %v2624_v41 }
 0x53e   : > { %v4055_v52 = vsub.f32 0.0, %v8010_v49  ;;  %v1692_v29 = vmul.f32 %v8263_v47, %v8218_v24  ;;  %vm2612_vm14 = vweird.f32 %v8162_v25  ;;  %v2616_v2 = vand.u32 2147483647, %v8162_v25 }
 0x53f   : > { %v3861_v14 = vmul.f32 %v3797_v38, %v8147_v57  ;;  %v3798_v26 = vadd.f32 -0.28449672, %v3734_v54  ;;  %v4183_v3 = vmul.f32 1.442695, %v4118_v35  ;;  %v4056_v19 = vsub.f32 0.0, %v8014_v34  ;;  %vm2614_vm15 = vmor %vm2612_vm14, %vm2613_vm13 }
 0x540   : > { %v3735_v27 = vmul.f32 %v3671_v40, %v8207_v8  ;;  %v3736_v46 = vmul.f32 %v3672_v62, %v8216_v28  ;;  %v3609_v33 = vmul.f32 %v3545_v44, %v8249_v59  ;;  %v2615_v18 = vsel %vm2614_vm15, %v8212_v1, %v2611_v4 }
 0x541   : > { %v3546_v15 = vadd.f32 -1.4531521, %v3482_v58  ;;  %v2619_v53 = vor.u32 1.1754944e-38, %v2618_v60  ;;  %v2626_v41 = vadd.f32 %v8240_v37, %v2625_v12  ;;  %vm2628_vm0 = vweird.f32 %v8240_v37 }
 0x542   : > { %v4119_v25 = vmul.f32 %v4055_v52, %v8010_v49  ;;  %v1693_v38 = vmul.f32 %v8263_v47, %v1692_v29  ;;  %vm2617_vm1 = vcmp.eq.f32.partialorder %v2616_v2, 8.507059e+37  ;;  %v2633_v54 = vand.u32 2147483648, %v8193_v56 }
 0x543   : > { %v3862_v35 = vmul.f32 %v3798_v26, %v8173_v45  ;;  %v8305_v40 = vsel %vm2617_vm1, %v2619_v53, %v2615_v18  ;;  %vm2627_vm2 = vweird.f32 %v8193_v56  ;;  %v2631_v1 = vand.u32 2147483647, %v8193_v56 }
 0x544   : > { %5963 = vpow2.f32 %v4181_v55  ;;  %v3799_v62 = vadd.f32 -0.28449672, %v3735_v27  ;;  %v3800_v44 = vadd.f32 -0.28449672, %v3736_v46  ;;  %v3673_v4 = vadd.f32 1.4214138, %v3609_v33  ;;  %vm8309_vm3 = vmor %vm2627_vm2, %vm2628_vm0 }
 0x545   : > { %v3925_v49 = vadd.f32 0.2548296, %v3861_v14  ;;  %v4120_v60 = vmul.f32 %v4056_v19, %v8014_v34  ;;  %v3610_v12 = vmul.f32 %v3546_v15, %v8278_v23  ;;  %v2630_v52 = vsel %vm8309_vm3, %v8240_v37, %v2626_v41  ;;  %v2015_v37 = vpop.f32.mrf.mxu0 }
 0x546   : > { %5965 = vpow2.f32 %v4183_v3  ;;  %v1694_v29 = vmul.f32 0.5, %v1693_v38  ;;  %v3483_v56 = vmul.f32 1.0614054, %v8305_v40  ;;  %v2634_v55 = vor.u32 1.1754944e-38, %v2633_v54 }
 0x547   : > { %vm1687_vm4 = vweird.f32 %v8104_v11  ;;  %v3926_v2 = vadd.f32 0.2548296, %v3862_v35  ;;  %v4185_v26 = vmul.f32 1.442695, %v4119_v25  ;;  %v4057_v27 = vsub.f32 0.0, %v8045_v6 }
 0x548   : > { %vm2632_vm5 = vcmp.eq.f32.partialorder %v2631_v1, 8.507059e+37  ;;  %v3863_v34 = vmul.f32 %v3799_v62, %v8207_v8  ;;  %v3864_v14 = vmul.f32 %v3800_v44, %v8216_v28  ;;  %v3737_v19 = vmul.f32 %v3673_v4, %v8249_v59 }
 0x549   : > { %v8324_v46 = vsel %vm2632_vm5, %v2634_v55, %v2630_v52  ;;  %v3989_v3 = vmul.f32 %v3925_v49, %v8147_v57  ;;  %v8328_v33 = vmul.f32 0.5, %v7971_v0  ;;  %v4187_v18 = vmul.f32 1.442695, %v4120_v60  ;;  %v2064_v60 = vpop.f32.mrf.mxu1 }
 0x54a   : > { %v3674_v15 = vadd.f32 1.4214138, %v3610_v12  ;;  %v5964_v53 = vpop.eup %5963  ;;  %v1686_v41 = vmul.f32 %v8186_v43, %v1685_v63  ;;  %vm1688_vm6 = vweird.f32 %v8186_v43  ;;  %v1695_v25 = vsub.f32 1.5, %v1694_v29 }
 0x54b   : > { %v3547_v38 = vadd.f32 -1.4531521, %v3483_v56  ;;  %v3990_v54 = vmul.f32 %v3926_v2, %v8173_v45  ;;  %v4121_v35 = vmul.f32 %v4057_v27, %v8045_v6  ;;  %v3484_v1 = vmul.f32 1.0614054, %v8324_v46  ;;  %vm8351_vm9 = vmor %vm1687_vm4, %vm1688_vm6 }
 0x54c   : > { %v8336_v57 = vadd.f32 %v2015_v37, %v7960_v36  ;;  %v5966_v0 = vpop.eup %5965  ;;  %v3927_v62 = vadd.f32 0.2548296, %v3863_v34  ;;  %5967 = vpow2.f32 %v4185_v26  ;;  %v3928_v44 = vadd.f32 0.2548296, %v3864_v14 }
 0x54d   : > { %v3801_v4 = vadd.f32 -0.28449672, %v3737_v19  ;;  %v4309_v58 = vmul.f32 %v5964_v53, %v3989_v3  ;;  %5969 = vpow2.f32 %v4187_v18  ;;  %v3738_v63 = vmul.f32 %v3674_v15, %v8278_v23 }
 0x54e   : > { %v4058_v49 = vsub.f32 0.0, %v8061_v61  ;;  %v1696_v45 = vmul.f32 %v8263_v47, %v1695_v25  ;;  %vm1697_vm7 = vweird.f32 %v8218_v24  ;;  %vm1698_vm8 = vweird.f32 %v8263_v47 }
 0x54f   : > { %v3611_v6 = vmul.f32 %v3547_v38, %v8305_v40  ;;  %v4310_v12 = vmul.f32 %v5966_v0, %v3990_v54  ;;  %v4189_v52 = vmul.f32 1.442695, %v4121_v35  ;;  %v3548_v29 = vadd.f32 -1.4531521, %v3484_v1  ;;  %vm8362_vm11 = vmor %vm1697_vm7, %vm1698_vm8 }
 0x550   : > { %v8345_v56 = vmul.f32 0.70710677, %v8336_v57  ;;  %v3991_v24 = vmul.f32 %v3927_v62, %v8207_v8  ;;  %v3992_v2 = vmul.f32 %v3928_v44, %v8216_v28  ;;  %v3865_v26 = vmul.f32 %v3801_v4, %v8249_v59 }
 0x551   : > { %v8359_v27 = vadd.f32 %v2064_v60, %v7965_v39  ;;  %v4373_v34 = vsub.f32 1.0, %v4309_v58  ;;  %vm4437_vm10 = vcmp.lt.f32.partialorder %v7968_v31, 0.0  ;;  %v3802_v11 = vadd.f32 -0.28449672, %v3738_v63 }
 0x552   : > { %11837 = vst [vmem:[#allocation15_spill] sm:$0xff] %v8345_v56  ;;  %v4122_v19 = vmul.f32 %v4058_v49, %v8061_v61  ;;  %v5968_v37 = vpop.eup %5967  ;;  %v1690_v8 = vsel %vm8351_vm9, %v8186_v43, %v1686_v41  ;;  %vm4438_vm12 = vcmp.lt.f32.partialorder %v7982_v30, 0.0  ;;  %v8372_v28 = vmul.f32 0.5, %v7985_v7 }
 0x553   : > { %v1700_v3 = vsel %vm8362_vm11, %v8263_v47, %v1696_v45  ;;  %v3675_v18 = vadd.f32 1.4214138, %v3611_v6  ;;  %v5970_v15 = vpop.eup %5969  ;;  %v4374_v53 = vsub.f32 1.0, %v4310_v12  ;;  %5971 = vpow2.f32 %v4189_v52  ;;  %v2113_v45 = vpop.f32.mrf.mxu2 }
 0x554   : > { %v3612_v61 = vmul.f32 %v3548_v29, %v8324_v46  ;;  %v8379_v25 = vand.u32 2147483647, %v8345_v56  ;;  %v8381_v38 = vmul.f32 %v5968_v37, %v3991_v24  ;;  %v8383_v43 = vmul.f32 %v5970_v15, %v3992_v2  ;;  %v5741_v56 = vld [vmem:[#allocation7 + $0x18] sm:$0xff] }
 0x555   : > { %v3929_v41 = vadd.f32 0.2548296, %v3865_v26  ;;  %v8386_v7 = vmul.f32 0.70710677, %v8359_v27  ;;  %v4501_v54 = vsub.f32 0.0, %v4373_v34  ;;  %v3866_v47 = vmul.f32 %v3802_v11, %v8278_v23 }
 0x556   : > { %v4191_v35 = vmul.f32 1.442695, %v4122_v19  ;;  %v4059_v1 = vsub.f32 0.0, %v8098_v9  ;;  %v1751_v0 = vmul.f32 %v1690_v8, %v7901_v51  ;;  %v8392_v62 = vmul.f32 0.5, %v7991_v32 }
 0x557   : > { %11842 = vst [vmem:[#allocation18_spill] sm:$0xff] %v8386_v7  ;;  %v8395_v44 = vmul.f32 0.5, %v8017_v13  ;;  %v3739_v4 = vmul.f32 %v3675_v18, %v8305_v40  ;;  %v4502_v58 = vsub.f32 0.0, %v4374_v53  ;;  %v1752_v63 = vmul.f32 %v1700_v3, %v7913_v50  ;;  %v2017_v3 = vpop.f32.mrf.mxu0 }
 0x558   : > { %v3676_v49 = vadd.f32 1.4214138, %v3612_v61  ;;  %v2397_v60 = vmul.f32 0.3275911, %v8379_v25  ;;  %v4375_v6 = vsub.f32 1.0, %v8381_v38  ;;  %vm4439_vm13 = vcmp.lt.f32.partialorder %v7998_v42, 0.0 }
 0x559   : > { %v4376_v51 = vsub.f32 1.0, %v8383_v43  ;;  %v3993_v32 = vmul.f32 %v3929_v41, %v8249_v59  ;;  %v8405_v13 = vand.u32 2147483647, %v8386_v7  ;;  %v5972_v12 = vpop.eup %5971  ;;  %v4565_v52 = vsel %vm4437_vm10, %v4501_v54, %v4373_v34  ;;  %v2162_v59 = vpop.f32.mrf.mxu3 }
 0x55a   : > { %vm4440_vm14 = vcmp.lt.f32.partialorder %v8004_v20, 0.0  ;;  %v3930_v50 = vadd.f32 0.2548296, %v3866_v47  ;;  %5973 = vpow2.f32 %v4191_v35  ;;  %v4123_v29 = vmul.f32 %v4059_v1, %v8098_v9 }
 0x55b   : > { %v3803_v55 = vadd.f32 -0.28449672, %v3739_v4  ;;  %v4060_v24 = vsub.f32 0.0, %v8134_v5  ;;  %v8413_v2 = vadd.f32 %v2113_v45, %v7973_v10  ;;  %v1768_v26 = vmul.f32 %v7869_v48, %v1751_v0  ;;  %v11844_v4 = vld [vmem:[#allocation13_spill] sm:$0xff] }
 0x55c   : > { %v4566_v14 = vsel %vm4438_vm12, %v4502_v58, %v4374_v53  ;;  %v3740_v31 = vmul.f32 %v3676_v49, %v8324_v46  ;;  %v8419_v34 = vadd.f32 1.0, %v2397_v60  ;;  %v1769_v11 = vmul.f32 %v7869_v48, %v1752_v63 }
 0x55d   : > { %v4503_v19 = vsub.f32 0.0, %v4375_v6  ;;  %v4504_v9 = vsub.f32 0.0, %v4376_v51  ;;  %v4313_v37 = vmul.f32 %v5972_v12, %v3993_v32  ;;  %v2398_v8 = vmul.f32 0.3275911, %v8405_v13 }
 0x55e   : > { %v3994_v18 = vmul.f32 %v3930_v50, %v8278_v23  ;;  %v8425_v15 = vadd.f32 %v2162_v59, %v7976_v16  ;;  %v1785_v30 = vadd.f32 %v7876_v21, %v1768_v26  ;;  %v1786_v53 = vadd.f32 %v7876_v21, %v1769_v11 }
 0x55f   : > { %v3867_v61 = vmul.f32 %v3803_v55, %v8305_v40  ;;  %v4193_v38 = vmul.f32 1.442695, %v4123_v29  ;;  %v4124_v43 = vmul.f32 %v4060_v24, %v8134_v5  ;;  %v8432_v41 = vmul.f32 0.70710677, %v8413_v2  ;;  %v11849_v24 = vld [vmem:[#allocation16_spill] sm:$0xff] }
 0x560   : > { %v5974_v54 = vpop.eup %5973  ;;  %vm4441_vm15 = vcmp.lt.f32.partialorder %v8029_v22, 0.0  ;;  %v3804_v47 = vadd.f32 -0.28449672, %v3740_v31  ;;  %5975 = vrcp.f32 %v8419_v34  ;;  %v8437_v23 = vadd.f32 %v2017_v3, %v7960_v36 }
 0x561   : > { %11843 = vst [vmem:[#allocation29_spill] sm:$0xff] %v8432_v41  ;;  %v1796_v35 = vpack.c.bf16 %v1786_v53, %v1785_v30  ;;  %v4629_v1 = vadd.f32 1.0, %v4565_v52  ;;  %v4377_v0 = vsub.f32 1.0, %v4313_v37  ;;  %v8440_v58 = vmul.f32 0.5, %v11844_v4 }
 0x562   : > { %v8442_v63 = vadd.f32 1.0, %v2398_v8  ;;  %v4630_v5 = vadd.f32 1.0, %v4566_v14  ;;  %v4567_v49 = vsel %vm4439_vm13, %v4503_v19, %v4375_v6  ;;  %v4314_v60 = vmul.f32 %v5974_v54, %v3994_v18  ;;  %v11850_v8 = vld [vmem:[#allocation20_spill] sm:$0xff] }
 0x563   : > { %v8447_v45 = vmul.f32 0.70710677, %v8425_v15  ;;  %2034 = vmatmul.bf16.gmra.mxu0 %v1796_v35  ;;  %2083 = vmatmul.bf16.gmra.mxu1 %v1796_v35  ;;  %v4568_v32 = vsel %vm4440_vm14, %v4504_v9, %v4376_v51  ;;  %v3931_v12 = vadd.f32 0.2548296, %v3867_v61  ;;  %5977 = vpow2.f32 %v4193_v38  ;;  %v11848_v51 = vld [vmem:[#allocation21_spill] sm:$0xff] }
 0x564   : > { %11845 = vst [vmem:[#allocation47_spill] sm:$0xff] %v8442_v63  ;;  %v8452_v52 = vand.u32 2147483647, %v8432_v41  ;;  %2132 = vmatmul.bf16.gmra.mxu2 %v1796_v35  ;;  %2181 = vmatmul.bf16.gmra.mxu3 %v1796_v35  ;;  %v3868_v50 = vmul.f32 %v3804_v47, %v8324_v46  ;;  %v4195_v42 = vmul.f32 1.442695, %v4124_v43  ;;  %v4061_v6 = vsub.f32 0.0, %v8379_v25 }
 0x565   : > { %11846 = vst [vmem:[#allocation50_spill] sm:$0xff] %v8447_v45  ;;  %v8457_v29 = vmul.f32 0.70710677, %v8437_v23  ;;  %v8460_v55 = vmul.f32 %v4629_v1, %v8276_v17  ;;  %v4505_v20 = vsub.f32 0.0, %v4377_v0  ;;  %vm4442_vm0 = vcmp.lt.f32.partialorder %v11848_v51, 0.0  ;;  %v2066_v17 = vpop.f32.mrf.mxu1 }
 0x566   : > { %v8464_v59 = vmul.f32 0.5, %v11849_v24  ;;  %5979 = vrcp.f32 %v8442_v63  ;;  %v8467_v26 = vpop.eup %5975  ;;  %v8470_v14 = vmul.f32 %v4630_v5, %v8328_v33  ;;  %v4631_v31 = vadd.f32 1.0, %v4567_v49  ;;  %v11855_v24 = vld [vmem:[#allocation14_spill] sm:$0xff] }
 0x567   : > { %11847 = vst [vmem:[#allocation64_spill] sm:$0xff] %v8457_v29  ;;  %v4378_v11 = vsub.f32 1.0, %v4314_v60  ;;  %v8473_v19 = vand.u32 2147483647, %v8447_v45  ;;  %v4632_v9 = vadd.f32 1.0, %v4568_v32  ;;  %v3995_v37 = vmul.f32 %v3931_v12, %v8305_v40 }
 0x568   : > { %v8477_v3 = vmul.f32 0.5, %v11850_v8  ;;  %v2399_v18 = vmul.f32 0.3275911, %v8452_v52  ;;  %v3932_v30 = vadd.f32 0.2548296, %v3868_v50  ;;  %5981 = vpow2.f32 %v4195_v42 }
 0x569   : > { %v4125_v53 = vmul.f32 %v4061_v6, %v8379_v25  ;;  %v8482_v33 = vand.u32 2147483647, %v8457_v29  ;;  %v5978_v61 = vpop.eup %5977  ;;  %v4569_v38 = vsel %vm4441_vm15, %v4505_v20, %v4377_v0  ;;  %v2638_v43 = vmul.f32 %v8467_v26, %v8419_v34 }
 0x56a   : > { %v4062_v40 = vsub.f32 0.0, %v8405_v13  ;;  %v8490_v54 = vadd.f32 %v2066_v17, %v7965_v39  ;;  %v8493_v47 = vmul.f32 %v4631_v31, %v8372_v28  ;;  %v4506_v35 = vsub.f32 0.0, %v4378_v11 }
 0x56b   : > { %v8496_v25 = vmul.f32 0.5, %v8336_v57  ;;  %v2400_v1 = vmul.f32 0.3275911, %v8473_v19  ;;  %v8502_v22 = vmul.f32 %v4632_v9, %v8392_v62  ;;  %v8504_v0 = vmul.f32 %v5978_v61, %v3995_v37 }
 0x56c   : > { %v8499_v4 = vpop.eup %5979  ;;  %v2648_v5 = vand.u32 2147483648, %v8419_v34  ;;  %v8507_v49 = vadd.f32 1.0, %v2399_v18  ;;  %v4633_v60 = vadd.f32 1.0, %v4569_v38  ;;  %v3996_v28 = vmul.f32 %v3932_v30, %v8324_v46  ;;  %v5761_v18 = vld [vmem:[#allocation7 + $0xb8] sm:$0xff] }
 0x56d   : > { %11851 = vst [vmem:[#allocation68_spill] sm:$0xff] %v8496_v25  ;;  %v4197_v32 = vmul.f32 1.442695, %v4125_v53  ;;  %v2401_v57 = vmul.f32 0.3275911, %v8482_v33  ;;  %v2639_v12 = vsub.f32 1.0, %v2638_v43  ;;  %v4126_v42 = vmul.f32 %v4062_v40, %v8405_v13  ;;  %5144 = vmatpush.bf16.msrb.mxu2 %v5761_v18 }
 0x56e   : > { %11852 = vst [vmem:[#allocation19_spill] sm:$0xff] %v8499_v4  ;;  %v2663_v50 = vand.u32 2147483648, %v8442_v63  ;;  %v8514_v62 = vmul.f32 0.70710677, %v8490_v54  ;;  %v5982_v6 = vpop.eup %5981  ;;  %v4570_v20 = vsel %vm4442_vm0, %v4506_v35, %v4378_v11  ;;  %vm4443_vm1 = vcmp.lt.f32.partialorder %v11855_v24, 0.0  ;;  %v5745_v30 = vld [vmem:[#allocation7 + $0x38] sm:$0xff] }
 0x56f   : > { %11853 = vst [vmem:[#allocation40_spill] sm:$0xff] %v8507_v49  ;;  %v2653_v46 = vmul.f32 %v8499_v4, %v8442_v63  ;;  %v4063_v31 = vsub.f32 0.0, %v8452_v52  ;;  %v8522_v17 = vadd.f32 1.0, %v2400_v1  ;;  %v4379_v9 = vsub.f32 1.0, %v8504_v0  ;;  %v5769_v53 = vld [vmem:[#allocation7 + $0xf8] sm:$0xff]  ;;  %v2115_v1 = vpop.f32.mrf.mxu2  ;;  %5046 = vmatpush.bf16.msrb.mxu0 %v5745_v30 }
 0x570   : > { %11854 = vst [vmem:[#allocation56_spill] sm:$0xff] %v8514_v62  ;;  %v8525_v37 = vor.u32 1.1754944e-38, %v2648_v5  ;;  %v8528_v13 = vmul.f32 0.5, %v8359_v27  ;;  %5983 = vrcp.f32 %v8507_v49  ;;  %v8532_v51 = vmul.f32 %v4633_v60, %v8395_v44  ;;  %v11859_v5 = vld [vmem:[#allocation31_spill] sm:$0xff]  ;;  %5193 = vmatpush.bf16.msrb.mxu3 %v5769_v53 }
 0x571   : > { %11856 = vst [vmem:[#allocation46_spill] sm:$0xff] %v8522_v17  ;;  %v8534_v11 = vmul.f32 %v5982_v6, %v3996_v28  ;;  %5985 = vpow2.f32 %v4197_v32  ;;  %v8536_v8 = vadd.f32 1.0, %v2401_v57  ;;  %v4634_v61 = vadd.f32 1.0, %v4570_v20  ;;  %v2164_v57 = vpop.f32.mrf.mxu3  ;;  %v5753_v6 = vld [vmem:[#allocation7 + $0x78] sm:$0xff] }
 0x572   : > { %11857 = vst [vmem:[#allocation74_spill] sm:$0xff] %v8528_v13  ;;  %v8539_v38 = vmul.f32 %v8467_v26, %v2639_v12  ;;  %v4199_v43 = vmul.f32 1.442695, %v4126_v42  ;;  %v8542_v27 = vand.u32 2147483647, %v8514_v62  ;;  %v2654_v40 = vsub.f32 1.0, %v2653_v46  ;;  %v1542_v42 = vpop.xlane.xlu1 %1541  ;;  %5095 = vmatpush.bf16.msrb.mxu1 %v5753_v6 }
 0x573   : > { %v8544_v35 = vor.u32 1.1754944e-38, %v2663_v50  ;;  %v4127_v44 = vmul.f32 %v4063_v31, %v8452_v52  ;;  %5987 = vrcp.f32 %v8522_v17  ;;  %v4507_v0 = vsub.f32 0.0, %v4379_v9  ;;  %v11867_v13 = vld [vmem:[#allocation75_spill] sm:$0xff] }
 0x574   : > { %vm4444_vm2 = vcmp.lt.f32.partialorder %v11859_v5, 0.0  ;;  %v8550_v60 = vmul.f32 0.5, %v8413_v2  ;;  %v2678_v28 = vand.u32 2147483648, %v8507_v49  ;;  %v4064_v32 = vsub.f32 0.0, %v8473_v19  ;;  %v5757_v63 = vld [vmem:[#allocation7 + $0x98] sm:$0xff] }
 0x575   : > { %11858 = vst [vmem:[#allocation26_spill] sm:$0xff] %v8544_v35  ;;  %v4380_v12 = vsub.f32 1.0, %v8534_v11  ;;  %v8556_v52 = vmul.f32 0.5, %v8425_v15  ;;  %5989 = vrcp.f32 %v8536_v8  ;;  %v4065_v50 = vsub.f32 0.0, %v8482_v33  ;;  %v5760_v11 = vld [vmem:[#allocation7 + $0xb0] sm:$0xff] }
 0x576   : > { %11860 = vst [vmem:[#allocation65_spill] sm:$0xff] %v8550_v60  ;;  %v8560_v20 = vpop.eup %5983  ;;  %v8563_v2 = vmul.f32 %v4634_v61, %v8440_v58  ;;  %5991 = vpow2.f32 %v4199_v43  ;;  %v2402_v46 = vmul.f32 0.3275911, %v8542_v27  ;;  %v8567_v31 = vadd.f32 %v2115_v1, %v7973_v10  ;;  %v5744_v15 = vld [vmem:[#allocation7 + $0x30] sm:$0xff]  ;;  %v1544_v61 = vpop.xlane.xlu2 %1543  ;;  %5145 = vmatpush.bf16.msrb.mxu2 %v5760_v11 }
 0x577   : > { %11861 = vst [vmem:[#allocation17_spill] sm:$0xff] %v8556_v52  ;;  %v8569_v18 = vpop.eup %5985  ;;  %v8572_v30 = vmul.f32 %v8499_v4, %v2654_v40  ;;  %v4201_v53 = vmul.f32 1.442695, %v4127_v44  ;;  %v8575_v52 = vmul.f32 0.5, %v8437_v23  ;;  %v8578_v58 = vadd.f32 %v2164_v57, %v7976_v16  ;;  %v2020_v60 = vpop.f32.mrf.mxu0  ;;  %5047 = vmatpush.bf16.msrb.mxu0 %v5744_v15  ;;  %v5768_v44 = vld [vmem:[#allocation7 + $0xf0] sm:$0xff] }
 0x578   : > { %11862 = vst [vmem:[#allocation22_spill] sm:$0xff] %v8560_v20  ;;  %v4571_v43 = vsel %vm4443_vm1, %v4507_v0, %v4379_v9  ;;  %v8582_v1 = vor.u32 1.1754944e-38, %v2678_v28  ;;  %v4128_v45 = vmul.f32 %v4064_v32, %v8473_v19  ;;  %v1561_v40 = vmul.f32 %v1542_v42, %v11867_v13  ;;  %v5752_v23 = vld [vmem:[#allocation7 + $0x70] sm:$0xff]  ;;  %5194 = vmatpush.bf16.msrb.mxu3 %v5768_v44 }
 0x579   : > { %11863 = vst [vmem:[#allocation37_spill] sm:$0xff] %v8569_v18  ;;  %v8586_v41 = vpop.eup %5987  ;;  %v4508_v57 = vsub.f32 0.0, %v4380_v12  ;;  %v2668_v6 = vmul.f32 %v8560_v20, %v8507_v49  ;;  %v4129_v24 = vmul.f32 %v4065_v50, %v8482_v33  ;;  %v4066_v9 = vsub.f32 0.0, %v8542_v27  ;;  %5096 = vmatpush.bf16.msrb.mxu1 %v5752_v23  ;;  %v5743_v49 = vld [vmem:[#allocation7 + $0x28] sm:$0xff] }
 0x57a   : > { %11864 = vst [vmem:[#allocation34_spill] sm:$0xff] %v8572_v30  ;;  %v8592_v0 = vadd.f32 1.0, %v2402_v46  ;;  %v8595_v19 = vmul.f32 0.70710677, %v8567_v31  ;;  %v8597_v28 = vadd.f32 1e-06, %v1561_v40  ;;  %v1562_v32 = vmul.f32 %v1544_v61, %v11867_v13 }
 0x57b   : > { %11865 = vst [vmem:[#allocation55_spill] sm:$0xff] %v8575_v52  ;;  %v8600_v42 = vpop.eup %5989  ;;  %5993 = vpow2.f32 %v4201_v53  ;;  %v2693_v11 = vand.u32 2147483648, %v8522_v17  ;;  %v8604_v15 = vmul.f32 0.70710677, %v8578_v58  ;;  %v2021_v33 = vadd.f32 %v2020_v60, %v7960_v36  ;;  %5048 = vmatpush.bf16.msrb.mxu0 %v5743_v49 }
 0x57c   : > { %11866 = vst [vmem:[#allocation27_spill] sm:$0xff] %v8582_v1  ;;  %v8607_v50 = vpop.eup %5991  ;;  %v4635_v46 = vadd.f32 1.0, %v4571_v43  ;;  %v2683_v40 = vmul.f32 %v8586_v41, %v8522_v17  ;;  %v4203_v62 = vmul.f32 1.442695, %v4128_v45  ;;  %5995 = vrsqrt.f32 %v8597_v28 }
 0x57d   : > { %11868 = vst [vmem:[#allocation41_spill] sm:$0xff] %v8586_v41  ;;  %v4572_v53 = vsel %vm4444_vm2, %v4508_v57, %v4380_v12  ;;  %v2669_v61 = vsub.f32 1.0, %v2668_v6  ;;  %v4130_v44 = vmul.f32 %v4066_v9, %v8542_v27  ;;  %v8615_v7 = vadd.f32 1e-06, %v1562_v32 }
 0x57e   : > { %11869 = vst [vmem:[#allocation48_spill] sm:$0xff] %v8592_v0  ;;  %v2698_v60 = vmul.f32 %v8600_v42, %v8536_v8  ;;  %v4205_v23 = vmul.f32 1.442695, %v4129_v24  ;;  %5997 = vrcp.f32 %v8592_v0  ;;  %v2339_v43 = vand.u32 2147483647, %v8595_v19 }
 0x57f   : > { %11870 = vst [vmem:[#allocation52_spill] sm:$0xff] %v8595_v19  ;;  %v8622_v45 = vmul.f32 0.5, %v8490_v54  ;;  %v2340_v5 = vand.u32 2147483647, %v8604_v15  ;;  %v8625_v12 = vmul.f32 0.70710677, %v2021_v33  ;;  %5999 = vrsqrt.f32 %v8615_v7 }
 0x580   : > { %11871 = vst [vmem:[#allocation76_spill] sm:$0xff] %v8604_v15  ;;  %v4636_v27 = vadd.f32 1.0, %v4572_v53  ;;  %v2684_v57 = vsub.f32 1.0, %v2683_v40  ;;  %v8628_v6 = vor.u32 1.1754944e-38, %v2693_v11  ;;  %6001 = vpow2.f32 %v4203_v62 }
 0x581   : > { %11872 = vst [vmem:[#allocation24_spill] sm:$0xff] %v8607_v50  ;;  %v2069_v50 = vpop.f32.mrf.mxu1  ;;  %v8630_v24 = vpop.eup %5993  ;;  %v8633_v9 = vmul.f32 %v4635_v46, %v8464_v59  ;;  %v4207_v54 = vmul.f32 1.442695, %v4130_v44  ;;  %v8640_v19 = vmul.f32 %v8560_v20, %v2669_v61  ;;  %v2699_v53 = vsub.f32 1.0, %v2698_v60 }
 0x582   : > { %11873 = vst [vmem:[#allocation60_spill] sm:$0xff] %v8622_v45  ;;  %v8637_v45 = vadd.f32 %v2069_v50, %v7965_v39  ;;  %v5996_v15 = vpop.eup %5995  ;;  %6003 = vpow2.f32 %v4205_v23  ;;  %v2403_v11 = vmul.f32 0.3275911, %v2339_v43  ;;  %v2404_v40 = vmul.f32 0.3275911, %v2340_v5 }
 0x583   : > { %11874 = vst [vmem:[#allocation67_spill] sm:$0xff] %v8625_v12  ;;  %v1702_v59 = vmul.f32 %v5996_v15, %v8597_v28  ;;  %v8648_v44 = vmul.f32 %v4636_v27, %v8477_v3  ;;  %v8651_v50 = vmul.f32 %v8586_v41, %v2684_v57  ;;  %v8654_v61 = vmul.f32 0.5, %v8567_v31  ;;  %v1546_v3 = vpop.xlane.xlu0 %1545 }
 0x584   : > { %11875 = vst [vmem:[#allocation70_spill] sm:$0xff] %v8628_v6  ;;  %v8645_v46 = vpop.eup %5997  ;;  %v8657_v60 = vmul.f32 0.5, %v8578_v58  ;;  %6005 = vpow2.f32 %v4207_v54  ;;  %v8661_v62 = vmul.f32 0.5, %v2021_v33  ;;  %v8664_v32 = vmul.f32 0.70710677, %v8637_v45  ;;  %v2118_v58 = vpop.f32.mrf.mxu2 }
 0x585   : > { %11876 = vst [vmem:[#allocation80_spill] sm:$0xff] %v8630_v24  ;;  %v2341_v24 = vand.u32 2147483647, %v8625_v12  ;;  %v8659_v23 = vpop.eup %5999  ;;  %v1703_v12 = vmul.f32 %v5996_v15, %v1702_v59  ;;  %v8669_v57 = vmul.f32 %v8600_v42, %v2699_v53  ;;  %v8671_v31 = vadd.f32 1.0, %v2403_v11  ;;  %v1548_v6 = vpop.xlane.xlu1 %1547 }
 0x586   : > { %11877 = vst [vmem:[#allocation43_spill] sm:$0xff] %v8640_v19  ;;  %v8666_v27 = vpop.eup %6001  ;;  %v8677_v33 = vmul.f32 %v8645_v46, %v8592_v0  ;;  %v8679_v54 = vadd.f32 1.0, %v2404_v40  ;;  %v4068_v53 = vsub.f32 0.0, %v2340_v5  ;;  %v1563_v1 = vmul.f32 %v1546_v3, %v11867_v13  ;;  %v2167_v40 = vpop.f32.mrf.mxu3 }
 0x587   : > { %11878 = vst [vmem:[#allocation59_spill] sm:$0xff] %v8645_v46  ;;  %v2405_v59 = vmul.f32 0.3275911, %v2341_v24  ;;  %v8686_v17 = vand.u32 2147483647, %v8664_v32  ;;  %v8689_v41 = vadd.f32 %v2118_v58, %v7973_v10  ;;  %vm1708_vm3 = vweird.f32 %v5996_v15 }
 0x588   : > { %11879 = vst [vmem:[#allocation45_spill] sm:$0xff] %v8651_v50  ;;  %v4069_v50 = vsub.f32 0.0, %v2341_v24  ;;  %6007 = vrcp.f32 %v8671_v31  ;;  %v1564_v19 = vmul.f32 %v1548_v6, %v11867_v13  ;;  %vm1707_vm4 = vweird.f32 %v8597_v28 }
 0x589   : > { %11880 = vst [vmem:[#allocation77_spill] sm:$0xff] %v8654_v61  ;;  %v4067_v61 = vsub.f32 0.0, %v2339_v43  ;;  %6009 = vrcp.f32 %v8679_v54  ;;  %v4132_v58 = vmul.f32 %v4068_v53, %v2340_v5  ;;  %vm1709_vm5 = vmor %vm1707_vm4, %vm1708_vm3  ;;  %vm1718_vm6 = vweird.f32 %v8659_v23 }
 0x58a   : > { %11881 = vst [vmem:[#allocation25_spill] sm:$0xff] %v8657_v60  ;;  %v1712_v60 = vmul.f32 %v8659_v23, %v8615_v7  ;;  %v8704_v13 = vmul.f32 0.70710677, %v8689_v41  ;;  %v8707_v6 = vadd.f32 %v2167_v40, %v7976_v16  ;;  %vm1717_vm7 = vweird.f32 %v8615_v7 }
 0x58b   : > { %11882 = vst [vmem:[#allocation63_spill] sm:$0xff] %v8661_v62  ;;  %v1704_v62 = vmul.f32 0.5, %v1703_v12  ;;  %v4131_v12 = vmul.f32 %v4067_v61, %v2339_v43  ;;  %v2406_v43 = vmul.f32 0.3275911, %v8686_v17  ;;  %v4133_v5 = vmul.f32 %v4069_v50, %v2341_v24  ;;  %vm1719_vm8 = vmor %vm1717_vm7, %vm1718_vm6  ;;  %v11896_v50 = vld [vmem:[#allocation38_spill] sm:$0xff] }
 0x58c   : > { %11883 = vst [vmem:[#allocation83_spill] sm:$0xff] %v8664_v32  ;;  %v1713_v11 = vmul.f32 %v8659_v23, %v1712_v60  ;;  %v8696_v60 = vadd.f32 1.0, %v2405_v59  ;;  %v8700_v32 = vadd.f32 1e-06, %v1563_v1  ;;  %v11891_v59 = vld [vmem:[#allocation12_spill] sm:$0xff]  ;;  %v2714_v1 = vsub.f32 1.0, %v8677_v33 }
 0x58d   : > { %11884 = vst [vmem:[#allocation42_spill] sm:$0xff] %v8666_v27  ;;  %v8681_v27 = vpop.eup %6003  ;;  %v1705_v52 = vsub.f32 1.5, %v1704_v62  ;;  %v8717_v53 = vmul.f32 0.5, %v8637_v45  ;;  %v4209_v40 = vmul.f32 1.442695, %v4131_v12  ;;  %v2071_v45 = vpop.f32.mrf.mxu1  ;;  %vm2643_vm15 = vweird.f32 %v8467_v26 }
 0x58e   : > { %11885 = vst [vmem:[#allocation61_spill] sm:$0xff] %v8671_v31  ;;  %v1714_v25 = vmul.f32 0.5, %v1713_v11  ;;  %v8693_v35 = vpop.eup %6005  ;;  %6011 = vrcp.f32 %v8696_v60  ;;  %v2768_v33 = vand.u32 2147483648, %v8696_v60  ;;  %v8728_v24 = vmul.f32 0.70710677, %v8707_v6 }
 0x58f   : > { %11886 = vst [vmem:[#allocation32_spill] sm:$0xff] %v8679_v54  ;;  %v1706_v3 = vmul.f32 %v5996_v15, %v1705_v52  ;;  %v8719_v11 = vpop.eup %6007  ;;  %6013 = vrsqrt.f32 %v8700_v32  ;;  %v2343_v12 = vand.u32 2147483647, %v8704_v13  ;;  %vm1727_vm10 = vweird.f32 %v8700_v32 }
 0x590   : > { %11887 = vst [vmem:[#allocation49_spill] sm:$0xff] %v8681_v27  ;;  %v1715_v62 = vsub.f32 1.5, %v1714_v25  ;;  %v8712_v25 = vadd.f32 1e-06, %v1564_v19  ;;  %v8724_v7 = vpop.eup %6009  ;;  %v4211_v19 = vmul.f32 1.442695, %v4132_v58  ;;  %vm2642_vm0 = vweird.f32 %v8419_v34 }
 0x591   : > { %11888 = vst [vmem:[#allocation81_spill] sm:$0xff] %v8693_v35  ;;  %v1710_v61 = vsel %vm1709_vm5, %v5996_v15, %v1706_v3  ;;  %v2022_v3 = vpop.f32.mrf.mxu0  ;;  %v4213_v58 = vmul.f32 1.442695, %v4133_v5  ;;  %v5759_v35 = vld [vmem:[#allocation7 + $0xa8] sm:$0xff]  ;;  %vm2702_vm2 = vweird.f32 %v8536_v8 }
 0x592   : > { %11889 = vst [vmem:[#allocation66_spill] sm:$0xff] %v8696_v60  ;;  %v1753_v52 = vmul.f32 %v1710_v61, %v11891_v59  ;;  %v1716_v28 = vmul.f32 %v8659_v23, %v1715_v62  ;;  %v8731_v59 = vadd.f32 1.0, %v2406_v43  ;;  %6015 = vrsqrt.f32 %v8712_v25  ;;  %5146 = vmatpush.bf16.msrb.mxu2 %v5759_v35  ;;  %v2169_v35 = vpop.f32.mrf.mxu3 }
 0x593   : > { %11890 = vst [vmem:[#allocation39_spill] sm:$0xff] %v8704_v13  ;;  %v8739_v15 = vadd.f32 %v2022_v3, %v7960_v36  ;;  %v8743_v43 = vmul.f32 %v8645_v46, %v2714_v1  ;;  %6017 = vpow2.f32 %v4209_v40  ;;  %v4070_v3 = vsub.f32 0.0, %v8686_v17 }
 0x594   : > { %11892 = vst [vmem:[#allocation58_spill] sm:$0xff] %v8717_v53  ;;  %v1720_v62 = vsel %vm1719_vm8, %v8659_v23, %v1716_v28  ;;  %v1770_v23 = vmul.f32 %v7869_v48, %v1753_v52  ;;  %v2728_v28 = vmul.f32 %v8719_v11, %v8671_v31  ;;  %v8748_v52 = vadd.f32 %v2071_v45, %v7965_v39  ;;  %v8750_v13 = vpop.eup %6011  ;;  %v2120_v31 = vpop.f32.mrf.mxu2 }
 0x595   : > { %11893 = vst [vmem:[#allocation44_spill] sm:$0xff] %v8719_v11  ;;  %v1754_v61 = vmul.f32 %v1720_v62, %v11896_v50  ;;  %v5767_v62 = vld [vmem:[#allocation7 + $0xe8] sm:$0xff]  ;;  %v2743_v50 = vmul.f32 %v8724_v7, %v8679_v54  ;;  %6019 = vpow2.f32 %v4211_v19  ;;  %v8757_v1 = vpop.eup %6013  ;;  %v2407_v40 = vmul.f32 0.3275911, %v2343_v12 }
 0x596   : > { %11894 = vst [vmem:[#allocation78_spill] sm:$0xff] %v8724_v7  ;;  %6021 = vrcp.f32 %v8731_v59  ;;  %v1787_v45 = vadd.f32 %v7876_v21, %v1770_v23  ;;  %5195 = vmatpush.bf16.msrb.mxu3 %v5767_v62  ;;  %v2729_v5 = vsub.f32 1.0, %v2728_v28  ;;  %v8762_v19 = vor.u32 1.1754944e-38, %v2768_v33 }
 0x597   : > { %11895 = vst [vmem:[#allocation28_spill] sm:$0xff] %v8728_v24  ;;  %v1771_v53 = vmul.f32 %v7869_v48, %v1754_v61  ;;  %v8755_v61 = vand.u32 2147483647, %v8728_v24  ;;  %6023 = vpow2.f32 %v4213_v58  ;;  %v8765_v24 = vmul.f32 0.70710677, %v8739_v15 }
 0x598   : > { %11897 = vst [vmem:[#allocation62_spill] sm:$0xff] %v8731_v59  ;;  %v8767_v49 = vpop.eup %6015  ;;  %v2744_v54 = vsub.f32 1.0, %v2743_v50  ;;  %v8770_v27 = vmul.f32 0.70710677, %v8748_v52  ;;  %v8776_v33 = vadd.f32 %v2120_v31, %v7973_v10  ;;  %v1722_v28 = vmul.f32 %v8757_v1, %v8700_v32 }
 0x599   : > { %11898 = vst [vmem:[#allocation36_spill] sm:$0xff] %v8743_v43  ;;  %v1788_v46 = vadd.f32 %v7876_v21, %v1771_v53  ;;  %v4071_v43 = vsub.f32 0.0, %v2343_v12  ;;  %v2758_v53 = vmul.f32 %v8750_v13, %v8696_v60  ;;  %v2408_v23 = vmul.f32 0.3275911, %v8755_v61  ;;  %v8780_v58 = vpop.eup %6017 }
 0x59a   : > { %11899 = vst [vmem:[#allocation51_spill] sm:$0xff] %v8750_v13  ;;  %v4134_v62 = vmul.f32 %v4070_v3, %v8686_v17  ;;  %v8784_v50 = vmul.f32 0.5, %v8689_v41  ;;  %v8794_v31 = vmul.f32 %v8719_v11, %v2729_v5  ;;  %v8797_v60 = vmul.f32 0.5, %v8707_v6  ;;  %v5751_v11 = vld [vmem:[#allocation7 + $0x68] sm:$0xff] }
 0x59b   : > { %11900 = vst [vmem:[#allocation82_spill] sm:$0xff] %v8762_v19  ;;  %v1797_v20 = vpack.c.bf16 %v1788_v46, %v1787_v45  ;;  %v8786_v19 = vadd.f32 1.0, %v2407_v40  ;;  %v8789_v46 = vadd.f32 %v2169_v35, %v7976_v16  ;;  %v8791_v45 = vpop.eup %6019  ;;  %v8800_v17 = vand.u32 2147483647, %v8765_v24  ;;  %5097 = vmatpush.bf16.msrb.mxu1 %v5751_v11 }
 0x59c   : > { %11901 = vst [vmem:[#allocation53_spill] sm:$0xff] %v8765_v24  ;;  %v1732_v41 = vmul.f32 %v8767_v49, %v8712_v25  ;;  %v8804_v3 = vpop.eup %6021  ;;  %v8807_v40 = vmul.f32 %v8724_v7, %v2744_v54  ;;  %v2783_v35 = vand.u32 2147483648, %v8731_v59  ;;  %v4135_v5 = vmul.f32 %v4071_v43, %v2343_v12 }
 0x59d   : > { %11902 = vst [vmem:[#allocation30_spill] sm:$0xff] %v8770_v27  ;;  %2039 = vmatmul.bf16.gmra.mxu0 %v1797_v20  ;;  %2088 = vmatmul.bf16.gmra.mxu1 %v1797_v20  ;;  %v8813_v6 = vpop.eup %6023  ;;  %v8815_v24 = vadd.f32 1.0, %v2408_v23  ;;  %v4215_v54 = vmul.f32 1.442695, %v4134_v62  ;;  %6025 = vrcp.f32 %v8786_v19  ;;  %v4072_v12 = vsub.f32 0.0, %v8755_v61 }
 0x59e   : > { %11903 = vst [vmem:[#allocation69_spill] sm:$0xff] %v8780_v58  ;;  %2137 = vmatmul.bf16.gmra.mxu2 %v1797_v20  ;;  %2186 = vmatmul.bf16.gmra.mxu3 %v1797_v20  ;;  %v1723_v20 = vmul.f32 %v8757_v1, %v1722_v28  ;;  %v2025_v58 = vpop.f32.mrf.mxu0  ;;  %v8824_v43 = vmul.f32 0.70710677, %v8789_v46  ;;  %v2798_v23 = vand.u32 2147483648, %v8786_v19  ;;  %v8831_v28 = vor.u32 1.1754944e-38, %v2783_v35  ;;  %v2074_v35 = vpop.f32.mrf.mxu1 }
 0x59f   : > { %11904 = vst [vmem:[#allocation72_spill] sm:$0xff] %v8784_v50  ;;  %v8811_v50 = vand.u32 2147483647, %v8770_v27  ;;  %v2409_v27 = vmul.f32 0.3275911, %v8800_v17  ;;  %6027 = vrcp.f32 %v8815_v24  ;;  %v4136_v11 = vmul.f32 %v4072_v12, %v8755_v61 }
 0x5a0   : > { %11905 = vst [vmem:[#allocation71_spill] sm:$0xff] %v8786_v19  ;;  %v4217_v62 = vmul.f32 1.442695, %v4135_v5  ;;  %v1724_v30 = vmul.f32 0.5, %v1723_v20  ;;  %6029 = vpow2.f32 %v4215_v54  ;;  %v8849_v5 = vor.u32 1.1754944e-38, %v2798_v23 }
 0x5a1   : > { %11906 = vst [vmem:[#allocation33_spill] sm:$0xff] %v8791_v45  ;;  %v8818_v45 = vmul.f32 0.70710677, %v8776_v33  ;;  %v2410_v7 = vmul.f32 0.3275911, %v8811_v50  ;;  %v2813_v20 = vand.u32 2147483648, %v8815_v24  ;;  %v8865_v23 = vadd.f32 %v2074_v35, %v7965_v39 }
 0x5a2   : > { %11907 = vst [vmem:[#allocation84_spill] sm:$0xff] %v8794_v31  ;;  %v8839_v31 = vmul.f32 0.5, %v8739_v15  ;;  %6031 = vpow2.f32 %v4217_v62  ;;  %v8862_v61 = vmul.f32 0.5, %v8748_v52  ;;  %v4074_v62 = vsub.f32 0.0, %v8811_v50 }
 0x5a3   : > { %11908 = vst [vmem:[#allocation13_spill] sm:$0xff] %v8797_v60  ;;  %v2759_v60 = vsub.f32 1.0, %v2758_v53  ;;  %v2773_v53 = vmul.f32 %v8804_v3, %v8731_v59  ;;  %v2347_v59 = vand.u32 2147483647, %v8818_v45  ;;  %vm1728_vm9 = vweird.f32 %v8757_v1 }
 0x5a4   : > { %11909 = vst [vmem:[#allocation21_spill] sm:$0xff] %v8804_v3  ;;  %vm1738_vm11 = vweird.f32 %v8767_v49  ;;  %vm8911_vm12 = vmor %vm1727_vm10, %vm1728_vm9  ;;  %vm1737_vm13 = vweird.f32 %v8712_v25  ;;  %vm2703_vm9 = vweird.f32 %v8600_v42 }
 0x5a5   : > { %11910 = vst [vmem:[#allocation16_spill] sm:$0xff] %v8807_v40  ;;  %v8835_v40 = vadd.f32 %v2025_v58, %v7960_v36  ;;  %v8843_v18 = vmul.f32 %v8750_v13, %v2759_v60  ;;  %v2774_v58 = vsub.f32 1.0, %v2773_v53  ;;  %v8856_v60 = vadd.f32 1.0, %v2410_v7  ;;  %vm8935_vm14 = vmor %vm1737_vm13, %vm1738_vm11 }
 0x5a6   : > { %11911 = vst [vmem:[#allocation20_spill] sm:$0xff] %v8813_v6  ;;  %v1733_v6 = vmul.f32 %v8767_v49, %v1732_v41  ;;  %v8847_v41 = vand.u32 2147483647, %v8824_v43  ;;  %v2411_v12 = vmul.f32 0.3275911, %v2347_v59  ;;  %v1725_v53 = vsub.f32 1.5, %v1724_v30  ;;  %vm9307_vm10 = vmor %vm2642_vm0, %vm2643_vm15 }
 0x5a7   : > { %11912 = vst [vmem:[#allocation14_spill] sm:$0xff] %v8815_v24  ;;  %v8859_v54 = vmul.f32 0.70710677, %v8835_v40 }
 0x5a8   : > { %11913 = vst [vmem:[#allocation31_spill] sm:$0xff] %v8818_v45  ;;  %v1734_v15 = vmul.f32 0.5, %v1733_v6  ;;  %v4073_v6 = vsub.f32 0.0, %v8800_v17  ;;  %v8873_v45 = vmul.f32 %v8804_v3, %v2774_v58  ;;  %v8886_v13 = vadd.f32 1.0, %v2411_v12 }
 0x5a9   : > { %11914 = vst [vmem:[#allocation75_spill] sm:$0xff] %v8824_v43  ;;  %v2412_v43 = vmul.f32 0.3275911, %v8847_v41  ;;  %v1726_v58 = vmul.f32 %v8757_v1, %v1725_v53 }
 0x5aa   : > { %11915 = vst [vmem:[#allocation12_spill] sm:$0xff] %v8831_v28  ;;  %v8851_v28 = vadd.f32 1.0, %v2409_v27  ;;  %v4219_v27 = vmul.f32 1.442695, %v4136_v11  ;;  %v1735_v30 = vsub.f32 1.5, %v1734_v15  ;;  %v8880_v11 = vor.u32 1.1754944e-38, %v2813_v20  ;;  %v8893_v15 = vpop.f32.mrf.mxu0 }
 0x5ab   : > { %11916 = vst [vmem:[#allocation38_spill] sm:$0xff] %v8839_v31  ;;  %v8853_v31 = vpop.eup %6025  ;;  %v8901_v12 = vadd.f32 1.0, %v2412_v43 }
 0x5ac   : > { %11917 = vst [vmem:[#allocation85_spill] sm:$0xff] %v8843_v18  ;;  %v8870_v7 = vpop.eup %6027  ;;  %v2788_v52 = vmul.f32 %v8853_v31, %v8786_v19  ;;  %6033 = vrcp.f32 %v8851_v28  ;;  %v2123_v18 = vpop.f32.mrf.mxu2  ;;  %v1736_v53 = vmul.f32 %v8767_v49, %v1735_v30 }
 0x5ad   : > { %11918 = vst [vmem:[#allocation86_spill] sm:$0xff] %v8849_v5  ;;  %v8878_v35 = vpop.eup %6029  ;;  %6035 = vrcp.f32 %v8856_v60  ;;  %v8884_v5 = vand.u32 2147483647, %v8859_v54  ;;  %v8907_v19 = vadd.f32 %v2123_v18, %v7973_v10  ;;  %v1730_v18 = vsel %vm8911_vm12, %v8757_v1, %v1726_v58  ;;  %vm9332_vm12 = vmor %vm2702_vm2, %vm2703_vm9 }
 0x5ae   : > { %11919 = vst [vmem:[#allocation87_spill] sm:$0xff] %v8851_v28  ;;  %v8895_v20 = vpop.eup %6031  ;;  %v2789_v3 = vsub.f32 1.0, %v2788_v52  ;;  %6037 = vpow2.f32 %v4219_v27  ;;  %v1740_v30 = vsel %vm8935_vm14, %v8767_v49, %v1736_v53  ;;  %v11940_v27 = vld [vmem:[#allocation54_spill] sm:$0xff]  ;;  %v8957_v1 = vmul.f32 0.5, %v8789_v46  ;;  %v2172_v53 = vpop.f32.mrf.mxu3 }
 0x5af   : > { %11920 = vst [vmem:[#allocation88_spill] sm:$0xff] %v8853_v31  ;;  %6039 = vrcp.f32 %v8886_v13  ;;  %v8943_v58 = vmul.f32 0.70710677, %v8907_v19 }
 0x5b0   : > { %11921 = vst [vmem:[#allocation89_spill] sm:$0xff] %v8856_v60  ;;  %6041 = vrcp.f32 %v8901_v12 }
 0x5b1   : > { %11922 = vst [vmem:[#allocation90_spill] sm:$0xff] %v8859_v54  ;;  %v4137_v54 = vmul.f32 %v4073_v6, %v8800_v17 }
 0x5b2   : > { %11923 = vst [vmem:[#allocation91_spill] sm:$0xff] %v8862_v61  ;;  %v4075_v61 = vsub.f32 0.0, %v2347_v59  ;;  %v8916_v43 = vpop.eup %6033 }
 0x5b3   : > { %11924 = vst [vmem:[#allocation92_spill] sm:$0xff] %v8870_v7  ;;  %v4221_v6 = vmul.f32 1.442695, %v4137_v54  ;;  %v8946_v54 = vmul.f32 %v8853_v31, %v2789_v3  ;;  %v2818_v17 = vmul.f32 %v8916_v43, %v8851_v28 }
 0x5b4   : > { %11925 = vst [vmem:[#allocation93_spill] sm:$0xff] %v8873_v45  ;;  %v8891_v45 = vmul.f32 0.70710677, %v8865_v23 }
 0x5b5   : > { %11926 = vst [vmem:[#allocation94_spill] sm:$0xff] %v8878_v35  ;;  %v2803_v35 = vmul.f32 %v8870_v7, %v8815_v24  ;;  %6043 = vpow2.f32 %v4221_v6 }
 0x5b6   : > { %11927 = vst [vmem:[#allocation95_spill] sm:$0xff] %v8880_v11  ;;  %v4138_v11 = vmul.f32 %v4074_v62, %v8811_v50  ;;  %v2413_v50 = vmul.f32 0.3275911, %v8884_v5  ;;  %v8924_v32 = vand.u32 2147483647, %v8891_v45  ;;  %v4076_v62 = vsub.f32 0.0, %v8847_v41 }
 0x5b7   : > { %11928 = vst [vmem:[#allocation96_spill] sm:$0xff] %v8886_v13  ;;  %v2804_v25 = vsub.f32 1.0, %v2803_v35  ;;  %v8954_v35 = vmul.f32 0.5, %v8776_v33 }
 0x5b8   : > { %11929 = vst [vmem:[#allocation97_spill] sm:$0xff] %v8891_v45  ;;  %v4223_v52 = vmul.f32 1.442695, %v4138_v11  ;;  %v1755_v45 = vmul.f32 %v1730_v18, %v11940_v27  ;;  %v8951_v24 = vadd.f32 1.0, %v2413_v50  ;;  %v2414_v49 = vmul.f32 0.3275911, %v8924_v32 }
 0x5b9   : > { %11930 = vst [vmem:[#allocation98_spill] sm:$0xff] %v8895_v20  ;;  %v4139_v20 = vmul.f32 %v4075_v61, %v2347_v59  ;;  %v8926_v59 = vpop.f32.mrf.mxu1  ;;  %v8928_v61 = vpop.eup %6035  ;;  %v4140_v18 = vmul.f32 %v4076_v62, %v8847_v41  ;;  %v11945_v50 = vld [vmem:[#allocation57_spill] sm:$0xff]  ;;  %v8969_v33 = vmul.f32 %v8870_v7, %v2804_v25 }
 0x5ba   : > { %11931 = vst [vmem:[#allocation99_spill] sm:$0xff] %v8901_v12  ;;  %v8960_v0 = vpop.eup %6037  ;;  %v2833_v3 = vmul.f32 %v8928_v61, %v8856_v60  ;;  %v1756_v27 = vmul.f32 %v1740_v30, %v11945_v50  ;;  %6045 = vpow2.f32 %v4223_v52  ;;  %v1772_v62 = vmul.f32 %v7869_v48, %v1755_v45 }
 0x5bb   : > { %11934 = vst [vmem:[#allocation100_spill] sm:$0xff] %v8916_v43  ;;  %v4225_v11 = vmul.f32 1.442695, %v4139_v20  ;;  %v8973_v20 = vand.u32 2147483647, %v8943_v58  ;;  %6047 = vrcp.f32 %v8951_v24  ;;  %v8983_v30 = vadd.f32 1.0, %v2414_v49 }
 0x5bc   : > { %11935 = vst [vmem:[#allocation101_spill] sm:$0xff] %v8928_v61  ;;  %v8986_v52 = vadd.f32 %v2172_v53, %v7976_v16  ;;  %v2834_v50 = vsub.f32 1.0, %v2833_v3  ;;  %v4227_v46 = vmul.f32 1.442695, %v4140_v18  ;;  %v4077_v49 = vsub.f32 0.0, %v8884_v5  ;;  %v5742_v3 = vld [vmem:[#allocation7 + $0x20] sm:$0xff] }
 0x5bd   : > { %11938 = vst [vmem:[#allocation102_spill] sm:$0xff] %v8943_v58  ;;  %6049 = vpow2.f32 %v4225_v11  ;;  %v8988_v58 = vpop.f32.mrf.mxu2  ;;  %v2415_v53 = vmul.f32 0.3275911, %v8973_v20  ;;  %v5750_v18 = vld [vmem:[#allocation7 + $0x60] sm:$0xff]  ;;  %5049 = vmatpush.bf16.msrb.mxu0 %v5742_v3  ;;  %v5748_v3 = vld [vmem:[#allocation7 + $0x50] sm:$0xff] }
 0x5be   : > { %11939 = vst [vmem:[#allocation103_spill] sm:$0xff] %v8946_v54  ;;  %v8966_v54 = vpop.eup %6039  ;;  %6051 = vrcp.f32 %v8983_v30  ;;  %v9018_v29 = vmul.f32 0.70710677, %v8986_v52  ;;  %5098 = vmatpush.bf16.msrb.mxu1 %v5750_v18  ;;  %v9033_v18 = vpop.f32.mrf.mxu3  ;;  %v9036_v4 = vmul.f32 %v8928_v61, %v2834_v50 }
 0x5bf   : > { %11941 = vst [vmem:[#allocation54_spill] sm:$0xff] %v8951_v24  ;;  %v8975_v6 = vpop.eup %6041  ;;  %v2848_v45 = vmul.f32 %v8966_v54, %v8886_v13  ;;  %v1789_v13 = vadd.f32 %v7876_v21, %v1772_v62  ;;  %v9024_v62 = vadd.f32 %v8893_v15, %v7960_v36  ;;  %6053 = vpow2.f32 %v4227_v46  ;;  %v5749_v15 = vld [vmem:[#allocation7 + $0x58] sm:$0xff] }
 0x5c0   : > { %11942 = vst [vmem:[#allocation104_spill] sm:$0xff] %v8954_v35  ;;  %v2863_v11 = vmul.f32 %v8975_v6, %v8901_v12  ;;  %v5758_v35 = vld [vmem:[#allocation7 + $0xa0] sm:$0xff]  ;;  %v9045_v46 = vmul.f32 0.5, %v8835_v40  ;;  %v2352_v50 = vand.u32 2147483647, %v9018_v29 }
 0x5c1   : > { %11943 = vst [vmem:[#allocation105_spill] sm:$0xff] %v8957_v1  ;;  %v2030_v1 = vpop.f32.mrf.mxu0  ;;  %v2079_v25 = vpop.f32.mrf.mxu1  ;;  %5147 = vmatpush.bf16.msrb.mxu2 %v5758_v35  ;;  %v9039_v35 = vadd.f32 1.0, %v2415_v53  ;;  %v9059_v53 = vadd.f32 %v8926_v59, %v7965_v39  ;;  %5050 = vmatpush.bf16.msrb.mxu0 %v5741_v56  ;;  %v5740_v59 = vld [vmem:[#allocation7 + $0x10] sm:$0xff] }
 0x5c2   : > { %11944 = vst [vmem:[#allocation106_spill] sm:$0xff] %v8960_v0  ;;  %v2819_v0 = vsub.f32 1.0, %v2818_v17  ;;  %v8979_v41 = vadd.f32 %v2030_v1, %v7960_v36  ;;  %v1773_v1 = vmul.f32 %v7869_v48, %v1756_v27  ;;  %v9006_v48 = vadd.f32 %v2079_v25, %v7965_v39  ;;  %v5766_v27 = vld [vmem:[#allocation7 + $0xe0] sm:$0xff]  ;;  %5099 = vmatpush.bf16.msrb.mxu1 %v5749_v15 }
 0x5c3   : > { %11946 = vst [vmem:[#allocation57_spill] sm:$0xff] %v8966_v54  ;;  %5196 = vmatpush.bf16.msrb.mxu3 %v5766_v27  ;;  %v2903_v15 = vand.u32 2147483648, %v8983_v30  ;;  %6055 = vrcp.f32 %v9039_v35 }
 0x5c4   : > { %11947 = vst [vmem:[#allocation107_spill] sm:$0xff] %v8969_v33  ;;  %v8991_v17 = vmul.f32 0.70710677, %v8979_v41  ;;  %v9000_v33 = vpop.eup %6043  ;;  %v1790_v31 = vadd.f32 %v7876_v21, %v1773_v1  ;;  %v9013_v28 = vmul.f32 %v8916_v43, %v2819_v0  ;;  %v9028_v0 = vmul.f32 0.70710677, %v9006_v48 }
 0x5c5   : > { %11948 = vst [vmem:[#allocation108_spill] sm:$0xff] %v8975_v6  ;;  %v9010_v60 = vpop.eup %6045  ;;  %v2849_v43 = vsub.f32 1.0, %v2848_v45  ;;  %5148 = vmatpush.bf16.msrb.mxu2 %v5757_v63  ;;  %v9080_v63 = vadd.f32 %v8988_v58, %v7973_v10  ;;  %5051 = vmatpush.bf16.msrb.mxu0 %v5740_v59  ;;  %v4080_v59 = vsub.f32 0.0, %v2352_v50 }
 0x5c6   : > { %11949 = vst [vmem:[#allocation109_spill] sm:$0xff] %v8983_v30  ;;  %v9003_v7 = vand.u32 2147483647, %v8991_v17  ;;  %v9020_v25 = vpop.eup %6047  ;;  %v1798_v1 = vpack.c.bf16 %v1790_v31, %v1789_v13  ;;  %v9042_v13 = vand.u32 2147483647, %v9028_v0  ;;  %v5765_v31 = vld [vmem:[#allocation7 + $0xd8] sm:$0xff]  ;;  %5100 = vmatpush.bf16.msrb.mxu1 %v5748_v3 }
 0x5c7   : > { %11950 = vst [vmem:[#allocation110_spill] sm:$0xff] %v8991_v17  ;;  %v4141_v17 = vmul.f32 %v4077_v49, %v8884_v5  ;;  %v2878_v45 = vmul.f32 %v9020_v25, %v8951_v24  ;;  %v9052_v5 = vmul.f32 0.5, %v8865_v23  ;;  %v9055_v49 = vmul.f32 0.70710677, %v9024_v62  ;;  %5197 = vmatpush.bf16.msrb.mxu3 %v5765_v31 }
 0x5c8   : > { %11951 = vst [vmem:[#allocation111_spill] sm:$0xff] %v9000_v33  ;;  %v4078_v33 = vsub.f32 0.0, %v8924_v32  ;;  %v2421_v21 = vmul.f32 0.3275911, %v9003_v7  ;;  %2044 = vmatmul.bf16.gmra.mxu0 %v1798_v1  ;;  %2093 = vmatmul.bf16.gmra.mxu1 %v1798_v1  ;;  %v4079_v23 = vsub.f32 0.0, %v8973_v20  ;;  %v9170_v12 = vmul.f32 0.5, %v9080_v63 }
 0x5c9   : > { %11952 = vst [vmem:[#allocation112_spill] sm:$0xff] %v9010_v60  ;;  %v9030_v60 = vpop.eup %6049  ;;  %2142 = vmatmul.bf16.gmra.mxu2 %v1798_v1  ;;  %2191 = vmatmul.bf16.gmra.mxu3 %v1798_v1  ;;  %v2422_v1 = vmul.f32 0.3275911, %v9042_v13  ;;  %v4229_v56 = vmul.f32 1.442695, %v4141_v17 }
 0x5ca   : > { %11953 = vst [vmem:[#allocation113_spill] sm:$0xff] %v9013_v28  ;;  %v2864_v28 = vsub.f32 1.0, %v2863_v11  ;;  %v4142_v11 = vmul.f32 %v4078_v33, %v8924_v32  ;;  %v9061_v40 = vadd.f32 1.0, %v2421_v21  ;;  %v9063_v27 = vpop.eup %6051  ;;  %v9066_v32 = vmul.f32 %v8966_v54, %v2849_v43  ;;  %v2128_v43 = vpop.f32.mrf.mxu2 }
 0x5cb   : > { %11954 = vst [vmem:[#allocation114_spill] sm:$0xff] %v9018_v29  ;;  %v2888_v21 = vand.u32 2147483648, %v8951_v24  ;;  %v5756_v29 = vld [vmem:[#allocation7 + $0x90] sm:$0xff]  ;;  %v2353_v31 = vand.u32 2147483647, %v9055_v49  ;;  %v9087_v24 = vadd.f32 1.0, %v2422_v1  ;;  %v4143_v58 = vmul.f32 %v4079_v23, %v8973_v20  ;;  %v2177_v20 = vpop.f32.mrf.mxu3 }
 0x5cc   : > { %11955 = vst [vmem:[#allocation115_spill] sm:$0xff] %v9020_v25  ;;  %v9069_v33 = vmul.f32 %v8975_v6, %v2864_v28  ;;  %v9076_v28 = vpop.eup %6053  ;;  %v2416_v6 = vmul.f32 0.3275911, %v2352_v50  ;;  %v9084_v17 = vmul.f32 0.70710677, %v9059_v53  ;;  %6057 = vrcp.f32 %v9061_v40  ;;  %5149 = vmatpush.bf16.msrb.mxu2 %v5756_v29 }
 0x5cd   : > { %11956 = vst [vmem:[#allocation116_spill] sm:$0xff] %v9030_v60  ;;  %v4231_v60 = vmul.f32 1.442695, %v4142_v11  ;;  %v9092_v11 = vmul.f32 0.5, %v8907_v19  ;;  %6059 = vpow2.f32 %v4229_v56  ;;  %v9100_v1 = vor.u32 1.1754944e-38, %v2903_v15  ;;  %v9110_v23 = vpop.eup %6055  ;;  %v2032_v56 = vpop.f32.mrf.mxu0 }
 0x5ce   : > { %11957 = vst [vmem:[#allocation117_spill] sm:$0xff] %v9036_v4  ;;  %v9108_v19 = vmul.f32 0.70710677, %v9080_v63  ;;  %v2918_v29 = vand.u32 2147483648, %v9039_v35  ;;  %vm3002_vm3 = vweird.f32 %v9061_v40  ;;  %v3023_v4 = vand.u32 2147483648, %v9087_v24 }
 0x5cf   : > { %11958 = vst [vmem:[#allocation118_spill] sm:$0xff] %v9039_v35  ;;  %6061 = vpow2.f32 %v4231_v60  ;;  %v9116_v60 = vmul.f32 0.5, %v8986_v52  ;;  %vm3017_vm7 = vweird.f32 %v9087_v24 }
 0x5d0   : > { %11959 = vst [vmem:[#allocation119_spill] sm:$0xff] %v9045_v46  ;;  %v2879_v46 = vsub.f32 1.0, %v2878_v45  ;;  %v2893_v45 = vmul.f32 %v9063_v27, %v8983_v30  ;;  %v9105_v30 = vadd.f32 1.0, %v2416_v6  ;;  %6063 = vrcp.f32 %v9087_v24 }
 0x5d1   : > { %11960 = vst [vmem:[#allocation120_spill] sm:$0xff] %v9052_v5  ;;  %v5764_v5 = vld [vmem:[#allocation7 + $0xd0] sm:$0xff]  ;;  %v9133_v52 = vand.u32 2147483647, %v9108_v19 }
 0x5d2   : > { %11961 = vst [vmem:[#allocation121_spill] sm:$0xff] %v9055_v49  ;;  %5198 = vmatpush.bf16.msrb.mxu3 %v5764_v5  ;;  %v9098_v49 = vor.u32 1.1754944e-38, %v2888_v21  ;;  %v9103_v3 = vmul.f32 %v9020_v25, %v2879_v46  ;;  %v4081_v5 = vsub.f32 0.0, %v2353_v31  ;;  %v2354_v21 = vand.u32 2147483647, %v9084_v17 }
 0x5d3   : > { %11962 = vst [vmem:[#allocation122_spill] sm:$0xff] %v9063_v27  ;;  %v2894_v15 = vsub.f32 1.0, %v2893_v45  ;;  %v4233_v46 = vmul.f32 1.442695, %v4143_v58  ;;  %v2908_v45 = vmul.f32 %v9110_v23, %v9039_v35  ;;  %6065 = vrcp.f32 %v9105_v30 }
 0x5d4   : > { %11963 = vst [vmem:[#allocation123_spill] sm:$0xff] %v9066_v32  ;;  %v9136_v58 = vadd.f32 %v2032_v56, %v7960_v36  ;;  %v2418_v35 = vmul.f32 0.3275911, %v2354_v21 }
 0x5d5   : > { %11964 = vst [vmem:[#allocation124_spill] sm:$0xff] %v9069_v33  ;;  %6067 = vpow2.f32 %v4233_v46  ;;  %v2909_v46 = vsub.f32 1.0, %v2908_v45 }
 0x5d6   : > { %11965 = vst [vmem:[#allocation125_spill] sm:$0xff] %v9076_v28  ;;  %v9096_v28 = vadd.f32 %v2128_v43, %v7973_v10  ;;  %v9121_v43 = vpop.eup %6057 }
 0x5d7   : > { %11966 = vst [vmem:[#allocation126_spill] sm:$0xff] %v9084_v17  ;;  %v9127_v17 = vadd.f32 %v2177_v20, %v7976_v16  ;;  %v4082_v20 = vsub.f32 0.0, %v2354_v21  ;;  %vm3003_vm1 = vweird.f32 %v9121_v43 }
 0x5d8   : > { %11967 = vst [vmem:[#allocation127_spill] sm:$0xff] %v9092_v11  ;;  %v9119_v6 = vmul.f32 0.70710677, %v9096_v28  ;;  %v4144_v11 = vmul.f32 %v4080_v59, %v2352_v50  ;;  %v9140_v50 = vor.u32 1.1754944e-38, %v2918_v29  ;;  %v4145_v59 = vmul.f32 %v4081_v5, %v2353_v31  ;;  %vm9254_vm4 = vmor %vm3002_vm3, %vm3003_vm1 }
 0x5d9   : > { %11968 = vst [vmem:[#allocation128_spill] sm:$0xff] %v9098_v49  ;;  %v2417_v49 = vmul.f32 0.3275911, %v2353_v31  ;;  %v9155_v29 = vmul.f32 0.5, %v9059_v53  ;;  %v9158_v31 = vmul.f32 0.70710677, %v9127_v17  ;;  %v9161_v5 = vmul.f32 %v9063_v27, %v2894_v15 }
 0x5da   : > { %11969 = vst [vmem:[#allocation129_spill] sm:$0xff] %v9100_v1  ;;  %v9124_v1 = vmul.f32 0.5, %v9024_v62  ;;  %v2933_v62 = vand.u32 2147483648, %v9105_v30  ;;  %v4235_v25 = vmul.f32 1.442695, %v4144_v11  ;;  %v5763_v27 = vld [vmem:[#allocation7 + $0xc8] sm:$0xff] }
 0x5db   : > { %11970 = vst [vmem:[#allocation130_spill] sm:$0xff] %v9103_v3  ;;  %v2998_v3 = vmul.f32 %v9121_v43, %v9061_v40  ;;  %v4237_v11 = vmul.f32 1.442695, %v4145_v59  ;;  %5199 = vmatpush.bf16.msrb.mxu3 %v5763_v27 }
 0x5dc   : > { %11971 = vst [vmem:[#allocation131_spill] sm:$0xff] %v9105_v30  ;;  %v9167_v33 = vor.u32 1.1754944e-38, %v2933_v62  ;;  %6069 = vpow2.f32 %v4235_v25  ;;  %v2175_v62 = vadd.f32 %v9033_v18, %v7976_v16  ;;  %v2081_v25 = vpop.f32.mrf.mxu1 }
 0x5dd   : > { %11972 = vst [vmem:[#allocation132_spill] sm:$0xff] %v9108_v19  ;;  %v9148_v19 = vand.u32 2147483647, %v9119_v6 }
 0x5de   : > { %11973 = vst [vmem:[#allocation133_spill] sm:$0xff] %v9110_v23 }
 0x5df   : > { %11974 = vst [vmem:[#allocation134_spill] sm:$0xff] %v9116_v60  ;;  %v9138_v60 = vpop.eup %6059  ;;  %v2423_v45 = vmul.f32 0.3275911, %v9148_v19 }
 0x5e0   : > { %11975 = vst [vmem:[#allocation135_spill] sm:$0xff] %v9119_v6 }
 0x5e1   : > { %11976 = vst [vmem:[#allocation136_spill] sm:$0xff] %v9124_v1  ;;  %v9143_v1 = vpop.eup %6061 }
 0x5e2   : > { %11977 = vst [vmem:[#allocation137_spill] sm:$0xff] %v9127_v17  ;;  %v9150_v56 = vpop.eup %6063  ;;  %v9174_v17 = vadd.f32 1.0, %v2418_v35  ;;  %v9188_v35 = vmul.f32 %v9110_v23, %v2909_v46  ;;  %v5755_v23 = vld [vmem:[#allocation7 + $0x88] sm:$0xff] }
 0x5e3   : > { %11978 = vst [vmem:[#allocation138_spill] sm:$0xff] %v9136_v58  ;;  %v9172_v53 = vpop.eup %6065  ;;  %v3013_v15 = vmul.f32 %v9150_v56, %v9087_v24  ;;  %5150 = vmatpush.bf16.msrb.mxu2 %v5755_v23  ;;  %vm3018_vm5 = vweird.f32 %v9150_v56 }
 0x5e4   : > { %11979 = vst [vmem:[#allocation139_spill] sm:$0xff] %v9138_v60  ;;  %v9152_v60 = vadd.f32 1.0, %v2417_v49  ;;  %v4146_v49 = vmul.f32 %v4082_v20, %v2354_v21  ;;  %v9183_v21 = vand.u32 2147483647, %v9158_v31  ;;  %v9185_v63 = vpop.eup %6067  ;;  %v9198_v20 = vmul.f32 %v9172_v53, %v9105_v30  ;;  %vm9288_vm8 = vmor %vm3017_vm7, %vm3018_vm5 }
 0x5e5   : > { %11980 = vst [vmem:[#allocation140_spill] sm:$0xff] %v9140_v50  ;;  %v9165_v50 = vmul.f32 0.70710677, %v9136_v58  ;;  %v9206_v30 = vmul.f32 0.70710677, %v2175_v62  ;;  %v9218_v46 = vpop.eup %6069 }
 0x5e6   : > { %11981 = vst [vmem:[#allocation141_spill] sm:$0xff] %v9143_v1  ;;  %v2419_v1 = vmul.f32 0.3275911, %v9133_v52  ;;  %6071 = vrcp.f32 %v9152_v60  ;;  %v4239_v18 = vmul.f32 1.442695, %v4146_v49  ;;  %v9210_v49 = vadd.f32 %v2081_v25, %v7965_v39 }
 0x5e7   : > { %11982 = vst [vmem:[#allocation142_spill] sm:$0xff] %v9152_v60  ;;  %v9194_v59 = vand.u32 2147483647, %v9165_v50  ;;  %6073 = vpow2.f32 %v4237_v11  ;;  %v2424_v11 = vmul.f32 0.3275911, %v9183_v21 }
 0x5e8   : > { %11983 = vst [vmem:[#allocation143_spill] sm:$0xff] %v9155_v29  ;;  %v2999_v29 = vsub.f32 1.0, %v2998_v3  ;;  %v9191_v3 = vadd.f32 1.0, %v2419_v1  ;;  %v3014_v1 = vsub.f32 1.0, %v3013_v15  ;;  %6075 = vrcp.f32 %v9174_v17 }
 0x5e9   : > { %11984 = vst [vmem:[#allocation144_spill] sm:$0xff] %v9158_v31  ;;  %v5739_v31 = vld [vmem:[#allocation7 + $0x8] sm:$0xff]  ;;  %v2425_v15 = vmul.f32 0.3275911, %v9194_v59 }
 0x5ea   : > { %11985 = vst [vmem:[#allocation145_spill] sm:$0xff] %v9161_v5  ;;  %v4083_v5 = vsub.f32 0.0, %v9133_v52  ;;  %5052 = vmatpush.bf16.msrb.mxu0 %v5739_v31  ;;  %6077 = vrcp.f32 %v9191_v3  ;;  %v3015_v27 = vmul.f32 %v9150_v56, %v3014_v1  ;;  %v3006_v1 = vand.u32 2147483647, %v9061_v40 }
 0x5eb   : > { %11986 = vst [vmem:[#allocation146_spill] sm:$0xff] %v9165_v50  ;;  %6079 = vpow2.f32 %v4239_v18  ;;  %v2356_v18 = vand.u32 2147483647, %v9206_v30  ;;  %v5762_v50 = vld [vmem:[#allocation7 + $0xc0] sm:$0xff] }
 0x5ec   : > { %11987 = vst [vmem:[#allocation147_spill] sm:$0xff] %v9167_v33  ;;  %v9203_v33 = vadd.f32 1.0, %v2423_v45  ;;  %v9225_v54 = vpop.eup %6071  ;;  %v9246_v45 = vadd.f32 1.0, %v2425_v15  ;;  %vm3007_vm6 = vcmp.eq.f32.partialorder %v3006_v1, 8.507059e+37  ;;  %v4759_v1 = vpack.c.bf16 %v8633_v9, %v8493_v47  ;;  %5200 = vmatpush.bf16.msrb.mxu3 %v5762_v50 }
 0x5ed   : > { %11988 = vst [vmem:[#allocation148_spill] sm:$0xff] %v9170_v12  ;;  %v5747_v12 = vld [vmem:[#allocation7 + $0x48] sm:$0xff]  ;;  %v2420_v61 = vmul.f32 0.3275911, %v2356_v18  ;;  %v2701_v47 = vadd.f32 %v8600_v42, %v8669_v57  ;;  %v12015_v50 = vpack.c.bf16 %v8563_v2, %v8470_v14 }
 0x5ee   : > { %11989 = vst [vmem:[#allocation149_spill] sm:$0xff] %v9174_v17  ;;  %5101 = vmatpush.bf16.msrb.mxu1 %v5747_v12  ;;  %v4147_v12 = vmul.f32 %v4083_v5, %v9133_v52  ;;  %6081 = vrcp.f32 %v9203_v33  ;;  %v3008_v52 = vand.u32 2147483648, %v9061_v40  ;;  %v9236_v5 = vadd.f32 1.0, %v2424_v11 }
 0x5ef   : > { %11990 = vst [vmem:[#allocation150_spill] sm:$0xff] %v9185_v63  ;;  %v3000_v63 = vmul.f32 %v9121_v43, %v2999_v29  ;;  %v9232_v29 = vpop.eup %6073  ;;  %v2641_v40 = vadd.f32 %v8467_v26, %v8539_v38  ;;  %v9315_v9 = vadd.f32 1.0, %v2420_v61  ;;  %vm3032_vm0 = vweird.f32 %v9203_v33 }
 0x5f0   : > { %11991 = vst [vmem:[#allocation151_spill] sm:$0xff] %v9188_v35  ;;  %v2130_v35 = vpop.f32.mrf.mxu2  ;;  %v9248_v25 = vpop.eup %6075  ;;  %6083 = vrcp.f32 %v9236_v5  ;;  %vm3047_vm3 = vweird.f32 %v9236_v5  ;;  %vm3062_vm7 = vweird.f32 %v9246_v45 }
 0x5f1   : > { %11992 = vst [vmem:[#allocation152_spill] sm:$0xff] %v9191_v3  ;;  %v9223_v31 = vadd.f32 %v2130_v35, %v7973_v10  ;;  %v3001_v23 = vadd.f32 %v9121_v43, %v3000_v63  ;;  %v9239_v35 = vmul.f32 0.70710677, %v9210_v49  ;;  %v9242_v63 = vmul.f32 0.5, %v2175_v62  ;;  %v9265_v15 = vpop.eup %6077 }
 0x5f2   : > { %11993 = vst [vmem:[#allocation153_spill] sm:$0xff] %v9206_v30  ;;  %v9275_v32 = vpop.eup %6079  ;;  %v3009_v62 = vor.u32 1.1754944e-38, %v3008_v52  ;;  %6085 = vrcp.f32 %v9246_v45 }
 0x5f3   : > { %11994 = vst [vmem:[#allocation154_spill] sm:$0xff] %v9210_v49  ;;  %v9259_v30 = vmul.f32 0.70710677, %v9223_v31  ;;  %6087 = vrcp.f32 %v9315_v9 }
 0x5f4   : > { %11995 = vst [vmem:[#allocation155_spill] sm:$0xff] %v9218_v46  ;;  %v9250_v46 = vmul.f32 1.442695, %v4147_v12  ;;  %v3005_v12 = vsel %vm9254_vm4, %v9121_v43, %v3001_v23  ;;  %v9279_v38 = vpop.eup %6081  ;;  %v3021_v43 = vand.u32 2147483647, %v9087_v24  ;;  %v2938_v23 = vmul.f32 %v9225_v54, %v9152_v60 }
 0x5f5   : > { %11996 = vst [vmem:[#allocation156_spill] sm:$0xff] %v9223_v31  ;;  %v2646_v60 = vand.u32 2147483647, %v8419_v34  ;;  %v2645_v34 = vsel %vm9307_vm10, %v8467_v26, %v2641_v40  ;;  %v2953_v26 = vmul.f32 %v9248_v25, %v9174_v17  ;;  %v5738_v40 = vld [vmem:[#allocation7] sm:$0xff]  ;;  %vm3033_vm15 = vweird.f32 %v9279_v38 }
 0x5f6   : > { %11997 = vst [vmem:[#allocation157_spill] sm:$0xff] %v9232_v29  ;;  %v9273_v29 = vand.u32 2147483647, %v9239_v35  ;;  %vm3022_vm11 = vcmp.eq.f32.partialorder %v3021_v43, 8.507059e+37  ;;  %v9321_v52 = vpop.eup %6083  ;;  %v5746_v43 = vld [vmem:[#allocation7 + $0x40] sm:$0xff]  ;;  %5053 = vmatpush.bf16.msrb.mxu0 %v5738_v40  ;;  %v9400_v40 = vmul.f32 0.5, %v8979_v41  ;;  %vm9415_vm1 = vmor %vm3032_vm0, %vm3033_vm15 }
 0x5f7   : > { %11998 = vst [vmem:[#allocation158_spill] sm:$0xff] %v9239_v35  ;;  %v2939_v35 = vsub.f32 1.0, %v2938_v23  ;;  %v5754_v23 = vld [vmem:[#allocation7 + $0x80] sm:$0xff]  ;;  %vm2647_vm13 = vcmp.eq.f32.partialorder %v2646_v60, 8.507059e+37  ;;  %5102 = vmatpush.bf16.msrb.mxu1 %v5746_v43  ;;  %v12011_v60 = vand.u32 2147483648, %v8536_v8  ;;  %v4085_v41 = vsub.f32 0.0, %v9003_v7 }
 0x5f8   : > { %11999 = vst [vmem:[#allocation159_spill] sm:$0xff] %v9242_v63  ;;  %v3016_v63 = vadd.f32 %v9150_v56, %v3015_v27  ;;  %v9286_v27 = vsel %vm3007_vm6, %v3009_v62, %v3005_v12  ;;  %v2426_v11 = vmul.f32 0.3275911, %v9273_v29  ;;  %v4084_v12 = vsub.f32 0.0, %v2356_v18  ;;  %v9336_v61 = vpop.eup %6085  ;;  %5151 = vmatpush.bf16.msrb.mxu2 %v5754_v23 }
 0x5f9   : > { %12002 = vst [vmem:[#allocation160_spill] sm:$0xff] %v9259_v30  ;;  %v9344_v6 = vsel %vm2647_vm13, %v8525_v37, %v2645_v34  ;;  %v2709_v58 = vor.u32 1.1754944e-38, %v12011_v60  ;;  %v3058_v37 = vmul.f32 %v9336_v61, %v9246_v45  ;;  %vm3048_vm4 = vweird.f32 %v9321_v52 }
 0x5fa   : > { %12003 = vst [vmem:[#allocation161_spill] sm:$0xff] %v9275_v32  ;;  %v9294_v32 = vand.u32 2147483647, %v9259_v30  ;;  %v3020_v24 = vsel %vm9288_vm8, %v9150_v56, %v3016_v63  ;;  %v3024_v30 = vor.u32 1.1754944e-38, %v3023_v4  ;;  %v3028_v56 = vmul.f32 %v9279_v38, %v9203_v33  ;;  %5103 = vmatmul.bf16.vlgmr.msrb.gmra.mxu1 %v12015_v50  ;;  %vm9446_vm6 = vmor %vm3047_vm3, %vm3048_vm4 }
 0x5fb   : > { %v3509_v63 = vmul.f32 1.0614054, %v9286_v27  ;;  %v9325_v4 = vadd.f32 1.0, %v2426_v11  ;;  %v2706_v11 = vand.u32 2147483647, %v8536_v8  ;;  %v12012_v8 = vsub.f32 1.0, %v9198_v20  ;;  %5152 = vmatmul.bf16.vlgmr.msrb.gmra.mxu2 %v4759_v1 }
 0x5fc   : > { %12006 = vst [vmem:[#allocation162_spill] sm:$0xff] %v9294_v32  ;;  %v9323_v31 = vsel %vm3022_vm11, %v3024_v30, %v3020_v24  ;;  %v2427_v49 = vmul.f32 0.3275911, %v9294_v32  ;;  %v2968_v30 = vmul.f32 %v9265_v15, %v9191_v3  ;;  %v4148_v24 = vmul.f32 %v4084_v12, %v2356_v18 }
 0x5fd   : > { %v3029_v62 = vsub.f32 1.0, %v3028_v56  ;;  %v2705_v32 = vsel %vm9332_vm12, %v8600_v42, %v2701_v47  ;;  %v3573_v17 = vadd.f32 -1.4531521, %v3509_v63  ;;  %v3510_v3 = vmul.f32 1.0614054, %v9323_v31 }
 0x5fe   : > { %v3043_v18 = vmul.f32 %v9321_v52, %v9236_v5  ;;  %6089 = vrcp.f32 %v9325_v4  ;;  %v9358_v12 = vadd.f32 1.0, %v2427_v49  ;;  %v2954_v42 = vsub.f32 1.0, %v2953_v26 }
 0x5ff   : > { %v2969_v56 = vsub.f32 1.0, %v2968_v30  ;;  %v4760_v47 = vpack.c.bf16 %v8648_v44, %v8502_v22  ;;  %vm2707_vm14 = vcmp.eq.f32.partialorder %v2706_v11, 8.507059e+37  ;;  %v9365_v63 = vmul.f32 %v9172_v53, %v12012_v8 }
 0x600   : > { %6091 = vpow2.f32 %v9250_v46  ;;  %v3030_v34 = vmul.f32 %v9279_v38, %v3029_v62  ;;  %v12014_v49 = vpack.c.bf16 %v8532_v51, %v8460_v55  ;;  %v9375_v57 = vsel %vm2707_vm14, %v2709_v58, %v2705_v32  ;;  %v9383_v51 = vpop.eup %6087 }
 0x601   : > { %12013 = vst [vmem:[#allocation163_spill] sm:$0xff] %v9365_v63  ;;  %v9378_v22 = vmul.f32 %v9225_v54, %v2939_v35  ;;  %v4243_v44 = vmul.f32 1.442695, %v4148_v24  ;;  %v3637_v20 = vmul.f32 %v3573_v17, %v9286_v27  ;;  %5201 = vmatmul.bf16.vlgmr.msrb.gmra.mxu3 %v4760_v47  ;;  %v3485_v46 = vmul.f32 1.0614054, %v9344_v6 }
 0x602   : > { %5054 = vmatmul.bf16.vlgmr.msrb.gmra.mxu0 %v12014_v49  ;;  %v3574_v26 = vadd.f32 -1.4531521, %v3510_v3  ;;  %v3044_v30 = vsub.f32 1.0, %v3043_v18  ;;  %v3059_v55 = vsub.f32 1.0, %v3058_v37  ;;  %6093 = vrcp.f32 %v9358_v12  ;;  %12016 = vst [vmem:[#allocation164_spill] sm:$0xff] %v9383_v51  ;;  %v2179_v49 = vpop.f32.mrf.mxu3 }
 0x603   : > { %v9386_v14 = vmul.f32 %v9248_v25, %v2954_v42  ;;  %v9389_v2 = vmul.f32 %v9265_v15, %v2969_v56  ;;  %v3489_v17 = vmul.f32 1.0614054, %v9375_v57  ;;  %v3031_v3 = vadd.f32 %v9279_v38, %v3030_v34 }
 0x604   : > { %v9393_v58 = vpop.eup %6089  ;;  %v3036_v35 = vand.u32 2147483647, %v9203_v33  ;;  %v3038_v1 = vand.u32 2147483648, %v9203_v33  ;;  %6095 = vpow2.f32 %v4243_v44  ;;  %v3701_v43 = vadd.f32 1.4214138, %v3637_v20 }
 0x605   : > { %v9402_v23 = vadd.f32 -1.4531521, %v3485_v46  ;;  %v3638_v24 = vmul.f32 %v3574_v26, %v9323_v31  ;;  %v3045_v62 = vmul.f32 %v9321_v52, %v3044_v30  ;;  %v3060_v60 = vmul.f32 %v9336_v61, %v3059_v55 }
 0x606   : > { %v9404_v11 = vpop.eup %6091  ;;  %v9412_v18 = vmul.f32 %v9383_v51, %v9315_v9  ;;  %v3073_v42 = vmul.f32 %v9393_v58, %v9325_v4  ;;  %v9421_v56 = vadd.f32 -1.4531521, %v3489_v17  ;;  %v4086_v47 = vsub.f32 0.0, %v9042_v13 }
 0x607   : > { %12017 = vst [vmem:[#allocation165_spill] sm:$0xff] %v9404_v11  ;;  %v3035_v8 = vsel %vm9415_vm1, %v9279_v38, %v3031_v3  ;;  %vm3037_vm2 = vcmp.eq.f32.partialorder %v3036_v35, 8.507059e+37  ;;  %v3039_v34 = vor.u32 1.1754944e-38, %v3038_v1  ;;  %v3765_v50 = vmul.f32 %v3701_v43, %v9286_v27  ;;  %v2084_v1 = vpop.f32.mrf.mxu1 }
 0x608   : > { %v9423_v33 = vpop.eup %6093  ;;  %v3068_v44 = vand.u32 2147483648, %v9246_v45  ;;  %v3702_v20 = vadd.f32 1.4214138, %v3638_v24  ;;  %v3046_v46 = vadd.f32 %v9321_v52, %v3045_v62  ;;  %v3061_v26 = vadd.f32 %v9336_v61, %v3060_v60  ;;  %v2035_v62 = vpop.f32.mrf.mxu0 }
 0x609   : > { %vm3063_vm5 = vweird.f32 %v9336_v61  ;;  %v9438_v38 = vsel %vm3037_vm2, %v3039_v34, %v3035_v8  ;;  %v3074_v55 = vsub.f32 1.0, %v3073_v42  ;;  %v3088_v17 = vmul.f32 %v9423_v33, %v9358_v12 }
 0x60a   : > { %v9436_v30 = vpop.eup %6095  ;;  %v9443_v3 = vadd.f32 %v2179_v49, %v7976_v16  ;;  %v4149_v35 = vmul.f32 %v4085_v41, %v9003_v7  ;;  %v3053_v43 = vand.u32 2147483648, %v9236_v5  ;;  %v3066_v24 = vand.u32 2147483647, %v9246_v45  ;;  %vm9457_vm8 = vmor %vm3062_vm7, %vm3063_vm5 }
 0x60b   : > { %12020 = vst [vmem:[#allocation166_spill] sm:$0xff] %v9436_v30  ;;  %v3829_v60 = vadd.f32 -0.28449672, %v3765_v50  ;;  %v4150_v37 = vmul.f32 %v4086_v47, %v9042_v13  ;;  %v3051_v42 = vand.u32 2147483647, %v9236_v5  ;;  %v3069_v41 = vor.u32 1.1754944e-38, %v3068_v44 }
 0x60c   : > { %12021 = vst [vmem:[#allocation167_spill] sm:$0xff] %v9443_v3  ;;  %v3766_v8 = vmul.f32 %v3702_v20, %v9323_v31  ;;  %v3511_v34 = vmul.f32 1.0614054, %v9438_v38  ;;  %v3050_v45 = vsel %vm9446_vm6, %v9321_v52, %v3046_v46  ;;  %v3065_v13 = vsel %vm9457_vm8, %v9336_v61, %v3061_v26 }
 0x60d   : > { %v3075_v5 = vmul.f32 %v9393_v58, %v3074_v55  ;;  %v3089_v47 = vsub.f32 1.0, %v3088_v17  ;;  %v9471_v49 = vmul.f32 0.70710677, %v9443_v3  ;;  %v9474_v50 = vadd.f32 %v2035_v62, %v7960_v36 }
 0x60e   : > { %v4245_v44 = vmul.f32 1.442695, %v4149_v35  ;;  %v9477_v20 = vmul.f32 0.5, %v9006_v48  ;;  %v3054_v32 = vor.u32 1.1754944e-38, %v3053_v43  ;;  %vm3067_vm9 = vcmp.eq.f32.partialorder %v3066_v24, 8.507059e+37 }
 0x60f   : > { %12026 = vst [vmem:[#allocation168_spill] sm:$0xff] %v9471_v49  ;;  %v3893_v52 = vmul.f32 %v3829_v60, %v9286_v27  ;;  %v4247_v46 = vmul.f32 1.442695, %v4150_v37  ;;  %vm3052_vm10 = vcmp.eq.f32.partialorder %v3051_v42, 8.507059e+37  ;;  %v9480_v61 = vsel %vm3067_vm9, %v3069_v41, %v3065_v13 }
 0x610   : > { %v3830_v26 = vadd.f32 -0.28449672, %v3766_v8  ;;  %v3575_v55 = vadd.f32 -1.4531521, %v3511_v34  ;;  %v9482_v17 = vsel %vm3052_vm10, %v3054_v32, %v3050_v45  ;;  %vm3078_vm11 = vweird.f32 %v9393_v58 }
 0x611   : > { %v3076_v35 = vadd.f32 %v9393_v58, %v3075_v5  ;;  %v3090_v48 = vmul.f32 %v9423_v33, %v3089_v47  ;;  %v9488_v43 = vand.u32 2147483647, %v9471_v49  ;;  %v9491_v24 = vmul.f32 0.70710677, %v9474_v50 }
 0x612   : > { %v2984_v62 = vsub.f32 1.0, %v9412_v18  ;;  %v3513_v60 = vmul.f32 1.0614054, %v9480_v61  ;;  %v3081_v32 = vand.u32 2147483647, %v9325_v4  ;;  %v3083_v37 = vand.u32 2147483648, %v9325_v4 }
 0x613   : > { %12027 = vst [vmem:[#allocation169_spill] sm:$0xff] %v9491_v24  ;;  %v3957_v42 = vadd.f32 0.2548296, %v3893_v52  ;;  %6097 = vpow2.f32 %v4245_v44  ;;  %vm3077_vm12 = vweird.f32 %v9325_v4  ;;  %v9499_v7 = vadd.f32 %v2084_v1, %v7965_v39 }
 0x614   : > { %v3894_v41 = vmul.f32 %v3830_v26, %v9323_v31  ;;  %v3639_v8 = vmul.f32 %v3575_v55, %v9438_v38  ;;  %v3512_v34 = vmul.f32 1.0614054, %v9482_v17  ;;  %vm9506_vm13 = vmor %vm3077_vm12, %vm3078_vm11  ;;  %vm3093_vm14 = vweird.f32 %v9423_v33 }
 0x615   : > { %12028 = vst [vmem:[#allocation170_spill] sm:$0xff] %v9499_v7  ;;  %v3080_v4 = vsel %vm9506_vm13, %v9393_v58, %v3076_v35  ;;  %v3091_v45 = vadd.f32 %v9423_v33, %v3090_v48  ;;  %v2428_v13 = vmul.f32 0.3275911, %v9488_v43  ;;  %v9517_v5 = vand.u32 2147483647, %v9491_v24 }
 0x616   : > { %v3577_v47 = vadd.f32 -1.4531521, %v3513_v60  ;;  %vm3082_vm15 = vcmp.eq.f32.partialorder %v3081_v32, 8.507059e+37  ;;  %v3084_v44 = vor.u32 1.1754944e-38, %v3083_v37  ;;  %v3098_v52 = vand.u32 2147483648, %v9358_v12 }
 0x617   : > { %vm3092_vm0 = vweird.f32 %v9358_v12  ;;  %v3096_v26 = vand.u32 2147483647, %v9358_v12  ;;  %v2429_v55 = vmul.f32 0.3275911, %v9517_v5  ;;  %v9524_v58 = vmul.f32 0.70710677, %v9499_v7 }
 0x618   : > { %v3958_v1 = vadd.f32 0.2548296, %v3894_v41  ;;  %6099 = vpow2.f32 %v4247_v46  ;;  %v3703_v35 = vadd.f32 1.4214138, %v3639_v8  ;;  %v9526_v48 = vsel %vm3082_vm15, %v3084_v44, %v3080_v4  ;;  %vm9530_vm1 = vmor %vm3092_vm0, %vm3093_vm14 }
 0x619   : > { %12031 = vst [vmem:[#allocation171_spill] sm:$0xff] %v9524_v58  ;;  %v6098_v32 = vpop.eup %6097  ;;  %v3095_v12 = vsel %vm9530_vm1, %v9423_v33, %v3091_v45  ;;  %v9537_v37 = vadd.f32 1.0, %v2428_v13  ;;  %v9539_v18 = vadd.f32 1.0, %v2429_v55  ;;  %v9542_v46 = vand.u32 2147483647, %v9524_v58 }
 0x61a   : > { %v4021_v41 = vmul.f32 %v3957_v42, %v9286_v27  ;;  %v3576_v8 = vadd.f32 -1.4531521, %v3512_v34  ;;  %v3641_v4 = vmul.f32 %v3577_v47, %v9480_v61  ;;  %v3099_v44 = vor.u32 1.1754944e-38, %v3098_v52 }
 0x61b   : > { %v4087_v3 = vsub.f32 0.0, %v9148_v19  ;;  %v3514_v7 = vmul.f32 1.0614054, %v9526_v48  ;;  %vm3097_vm2 = vcmp.eq.f32.partialorder %v3096_v26, 8.507059e+37  ;;  %6101 = vrcp.f32 %v9539_v18 }
 0x61c   : > { %v4022_v33 = vmul.f32 %v3958_v1, %v9323_v31  ;;  %v3767_v45 = vmul.f32 %v3703_v35, %v9438_v38  ;;  %v4088_v13 = vsub.f32 0.0, %v9183_v21  ;;  %v9552_v55 = vsel %vm3097_vm2, %v3099_v44, %v3095_v12  ;;  %v2133_v1 = vpop.f32.mrf.mxu2 }
 0x61d   : > { %v4089_v27 = vsub.f32 0.0, %v9194_v59  ;;  %6103 = vrcp.f32 %v9537_v37  ;;  %v2430_v42 = vmul.f32 0.3275911, %v9542_v46  ;;  %v3613_v34 = vmul.f32 %v9402_v23, %v9344_v6 }
 0x61e   : > { %v6100_v47 = vpop.eup %6099  ;;  %v4341_v52 = vmul.f32 %v6098_v32, %v4021_v41  ;;  %v3640_v26 = vmul.f32 %v3576_v8, %v9482_v17  ;;  %v3705_v31 = vadd.f32 1.4214138, %v3641_v4  ;;  %v3617_v35 = vmul.f32 %v9421_v56, %v9375_v57  ;;  %v12035_v8 = vld [vmem:[#allocation110_spill] sm:$0xff] }
 0x61f   : > { %v4151_v60 = vmul.f32 %v4087_v3, %v9148_v19  ;;  %v3578_v12 = vadd.f32 -1.4531521, %v3514_v7  ;;  %v3515_v44 = vmul.f32 1.0614054, %v9552_v55  ;;  %v9564_v49 = vadd.f32 1.0, %v2430_v42 }
 0x620   : > { %v9567_v58 = vmul.f32 %v9383_v51, %v2984_v62  ;;  %v4342_v23 = vmul.f32 %v6100_v47, %v4022_v33  ;;  %v3831_v30 = vadd.f32 -0.28449672, %v3767_v45  ;;  %v4152_v32 = vmul.f32 %v4088_v13, %v9183_v21 }
 0x621   : > { %v9570_v41 = vpop.eup %6101  ;;  %vm4469_vm3 = vcmp.lt.f32.partialorder %v12035_v8, 0.0  ;;  %v4153_v56 = vmul.f32 %v4089_v27, %v9194_v59  ;;  %v4090_v19 = vsub.f32 0.0, %v9273_v29  ;;  %v9576_v3 = vadd.f32 %v2133_v1, %v7973_v10 }
 0x622   : > { %12034 = vst [vmem:[#allocation172_spill] sm:$0xff] %v9567_v58  ;;  %v9578_v7 = vadd.f32 1.4214138, %v3613_v34  ;;  %v4405_v4 = vsub.f32 1.0, %v4341_v52  ;;  %v3704_v62 = vadd.f32 1.4214138, %v3640_v26  ;;  %v3769_v33 = vmul.f32 %v3705_v31, %v9480_v61 }
 0x623   : > { %12036 = vst [vmem:[#allocation110_spill] sm:$0xff] %v9576_v3  ;;  %v3118_v21 = vmul.f32 %v9570_v41, %v9539_v18  ;;  %v9583_v45 = vpop.eup %6103  ;;  %vm4470_vm4 = vcmp.lt.f32.partialorder %v9028_v0, 0.0  ;;  %v4249_v13 = vmul.f32 1.442695, %v4151_v60  ;;  %v3642_v59 = vmul.f32 %v3578_v12, %v9526_v48 }
 0x624   : > { %v3579_v27 = vadd.f32 -1.4531521, %v3515_v44  ;;  %6105 = vrcp.f32 %v9564_v49  ;;  %v4406_v42 = vsub.f32 1.0, %v4342_v23  ;;  %v3895_v34 = vmul.f32 %v3831_v30, %v9438_v38 }
 0x625   : > { %v4251_v47 = vmul.f32 1.442695, %v4152_v32  ;;  %v3119_v52 = vsub.f32 1.0, %v3118_v21  ;;  %v4253_v26 = vmul.f32 1.442695, %v4153_v56  ;;  %v4154_v31 = vmul.f32 %v4090_v19, %v9273_v29  ;;  %v12039_v21 = vld [vmem:[#allocation138_spill] sm:$0xff] }
 0x626   : > { %v9591_v1 = vmul.f32 0.70710677, %v9576_v3  ;;  %v9593_v24 = vadd.f32 1.4214138, %v3617_v35  ;;  %v4533_v11 = vsub.f32 0.0, %v4405_v4  ;;  %v3768_v60 = vmul.f32 %v3704_v62, %v9482_v17 }
 0x627   : > { %v3833_v12 = vadd.f32 -0.28449672, %v3769_v33  ;;  %v3103_v44 = vmul.f32 %v9583_v45, %v9537_v37  ;;  %6107 = vpow2.f32 %v4249_v13  ;;  %v3706_v23 = vadd.f32 1.4214138, %v3642_v59 }
 0x628   : > { %12037 = vst [vmem:[#allocation173_spill] sm:$0xff] %v9591_v1  ;;  %v3643_v30 = vmul.f32 %v3579_v27, %v9552_v55  ;;  %v3120_v32 = vmul.f32 %v9570_v41, %v3119_v52  ;;  %v4534_v56 = vsub.f32 0.0, %v4406_v42  ;;  %v9601_v29 = vmul.f32 0.5, %v9096_v28 }
 0x629   : > { %v3959_v19 = vadd.f32 0.2548296, %v3895_v34  ;;  %6109 = vpow2.f32 %v4251_v47  ;;  %v9606_v62 = vmul.f32 0.5, %v12039_v21  ;;  %v4255_v33 = vmul.f32 1.442695, %v4154_v31 }
 0x62a   : > { %12038 = vst [vmem:[#allocation174_spill] sm:$0xff] %v9601_v29  ;;  %v9603_v35 = vpop.eup %6105  ;;  %6111 = vpow2.f32 %v4253_v26  ;;  %v9609_v13 = vand.u32 2147483647, %v9591_v1  ;;  %v4597_v59 = vsel %vm4469_vm3, %v4533_v11, %v4405_v4  ;;  %v3832_v27 = vadd.f32 -0.28449672, %v3768_v60  ;;  %v12040_v4 = vld [vmem:[#allocation162_spill] sm:$0xff] }
 0x62b   : > { %v3897_v52 = vmul.f32 %v3833_v12, %v9480_v61  ;;  %v3104_v28 = vsub.f32 1.0, %v3103_v44  ;;  %v3770_v34 = vmul.f32 %v3706_v23, %v9526_v48  ;;  %v3707_v47 = vadd.f32 1.4214138, %v3643_v30 }
 0x62c   : > { %v3121_v3 = vadd.f32 %v9570_v41, %v3120_v32  ;;  %vm3123_vm5 = vweird.f32 %v9570_v41  ;;  %v4598_v26 = vsel %vm4470_vm4, %v4534_v56, %v4406_v42  ;;  %v4023_v31 = vmul.f32 %v3959_v19, %v9438_v38  ;;  %v2182_v32 = vpop.f32.mrf.mxu3 }
 0x62d   : > { %v3128_v21 = vand.u32 2147483648, %v9539_v18  ;;  %v3133_v11 = vmul.f32 %v9603_v35, %v9564_v49  ;;  %v6108_v8 = vpop.eup %6107  ;;  %v4091_v60 = vsub.f32 0.0, %v12040_v4  ;;  %vm3122_vm6 = vweird.f32 %v9539_v18 }
 0x62e   : > { %v3126_v12 = vand.u32 2147483647, %v9539_v18  ;;  %v2431_v44 = vmul.f32 0.3275911, %v9609_v13  ;;  %v9629_v0 = vadd.f32 1.0, %v4597_v59  ;;  %v3896_v38 = vmul.f32 %v3832_v27, %v9482_v17  ;;  %vm9635_vm7 = vmor %vm3122_vm6, %vm3123_vm5  ;;  %v2037_v27 = vpop.f32.mrf.mxu0 }
 0x62f   : > { %v9627_v23 = vpop.eup %6109  ;;  %6113 = vpow2.f32 %v4255_v33  ;;  %v3105_v42 = vmul.f32 %v9583_v45, %v3104_v28  ;;  %v3961_v18 = vadd.f32 0.2548296, %v3897_v52  ;;  %v3834_v19 = vadd.f32 -0.28449672, %v3770_v34 }
 0x630   : > { %v6112_v56 = vpop.eup %6111  ;;  %v3771_v1 = vmul.f32 %v3707_v47, %v9552_v55  ;;  %v3125_v59 = vsel %vm9635_vm7, %v9570_v41, %v3121_v3  ;;  %v9643_v33 = vadd.f32 1.0, %v4598_v26  ;;  %v9645_v28 = vmul.f32 %v6108_v8, %v4023_v31 }
 0x631   : > { %v3129_v29 = vor.u32 1.1754944e-38, %v3128_v21  ;;  %v3134_v51 = vsub.f32 1.0, %v3133_v11  ;;  %v4155_v58 = vmul.f32 %v4091_v60, %v12040_v4  ;;  %vm3127_vm8 = vcmp.eq.f32.partialorder %v3126_v12, 8.507059e+37  ;;  %v2086_v11 = vpop.f32.mrf.mxu1 }
 0x632   : > { %v9648_v63 = vadd.f32 1.0, %v2431_v44  ;;  %v9651_v52 = vadd.f32 %v2182_v32, %v7976_v16  ;;  %v3106_v34 = vadd.f32 %v9583_v45, %v3105_v42  ;;  %vm3108_vm9 = vweird.f32 %v9583_v45 }
 0x633   : > { %v9655_v41 = vsel %vm3127_vm8, %v3129_v29, %v3125_v59  ;;  %v9658_v3 = vadd.f32 %v2037_v27, %v7960_v36  ;;  %v4025_v47 = vmul.f32 %v3961_v18, %v9480_v61  ;;  %v3898_v26 = vmul.f32 %v3834_v19, %v9526_v48  ;;  %v12048_v59 = vld [vmem:[#allocation135_spill] sm:$0xff] }
 0x634   : > { %12043 = vst [vmem:[#allocation138_spill] sm:$0xff] %v9651_v52  ;;  %v3835_v31 = vadd.f32 -0.28449672, %v3771_v1  ;;  %v3113_v21 = vand.u32 2147483648, %v9537_v37  ;;  %v3960_v4 = vadd.f32 0.2548296, %v3896_v38  ;;  %vm3107_vm10 = vweird.f32 %v9537_v37 }
 0x635   : > { %v6114_v8 = vpop.eup %6113  ;;  %v3111_v60 = vand.u32 2147483647, %v9537_v37  ;;  %v3135_v29 = vmul.f32 %v9603_v35, %v3134_v51  ;;  %v4407_v12 = vsub.f32 1.0, %v9645_v28  ;;  %vm9667_vm11 = vmor %vm3107_vm10, %vm3108_vm9  ;;  %v3517_v61 = vmul.f32 1.0614054, %v9655_v41 }
 0x636   : > { %6115 = vrcp.f32 %v9648_v63  ;;  %v9674_v1 = vmul.f32 0.70710677, %v9651_v52  ;;  %v4257_v38 = vmul.f32 1.442695, %v4155_v58  ;;  %v3110_v37 = vsel %vm9667_vm11, %v9583_v45, %v3106_v34 }
 0x637   : > { %v9680_v51 = vmul.f32 0.70710677, %v9658_v3  ;;  %v9683_v42 = vadd.f32 %v2086_v11, %v7965_v39  ;;  %v4345_v30 = vmul.f32 %v6112_v56, %v4025_v47  ;;  %v3962_v32 = vadd.f32 0.2548296, %v3898_v26 }
 0x638   : > { %12046 = vst [vmem:[#allocation162_spill] sm:$0xff] %v9674_v1  ;;  %v3899_v18 = vmul.f32 %v3835_v31, %v9552_v55  ;;  %v3114_v19 = vor.u32 1.1754944e-38, %v3113_v21  ;;  %vm4471_vm12 = vcmp.lt.f32.partialorder %v12048_v59, 0.0  ;;  %vm3112_vm13 = vcmp.eq.f32.partialorder %v3111_v60, 8.507059e+37  ;;  %v12051_v60 = vld [vmem:[#allocation146_spill] sm:$0xff] }
 0x639   : > { %12047 = vst [vmem:[#allocation175_spill] sm:$0xff] %v9683_v42  ;;  %v3136_v58 = vadd.f32 %v9603_v35, %v3135_v29  ;;  %vm3138_vm14 = vweird.f32 %v9603_v35  ;;  %v3143_v45 = vand.u32 2147483648, %v9564_v49  ;;  %v3581_v28 = vadd.f32 -1.4531521, %v3517_v61 }
 0x63a   : > { %v9690_v27 = vsel %vm3112_vm13, %v3114_v19, %v3110_v37  ;;  %v9693_v34 = vand.u32 2147483647, %v9674_v1  ;;  %v9696_v56 = vand.u32 2147483647, %v9680_v51  ;;  %v4024_v47 = vmul.f32 %v3960_v4, %v9482_v17 }
 0x63b   : > { %vm3137_vm15 = vweird.f32 %v9564_v49  ;;  %v3141_v26 = vand.u32 2147483647, %v9564_v49  ;;  %v9702_v31 = vmul.f32 0.70710677, %v9683_v42  ;;  %v4535_v11 = vsub.f32 0.0, %v4407_v12 }
 0x63c   : > { %12049 = vst [vmem:[#allocation135_spill] sm:$0xff] %v9693_v34  ;;  %v9704_v21 = vpop.eup %6115  ;;  %vm4473_vm0 = vcmp.lt.f32.partialorder %v12051_v60, 0.0  ;;  %v4026_v29 = vmul.f32 %v3962_v32, %v9526_v48  ;;  %v3963_v44 = vadd.f32 0.2548296, %v3899_v18  ;;  %vm9710_vm1 = vmor %vm3137_vm15, %vm3138_vm14  ;;  %v2433_v17 = vmul.f32 0.3275911, %v9696_v56 }
 0x63d   : > { %12050 = vst [vmem:[#allocation176_spill] sm:$0xff] %v9702_v31  ;;  %v4409_v49 = vsub.f32 1.0, %v4345_v30  ;;  %6117 = vpow2.f32 %v4257_v38  ;;  %v3516_v4 = vmul.f32 1.0614054, %v9690_v27  ;;  %v3140_v37 = vsel %vm9710_vm1, %v9603_v35, %v3136_v58 }
 0x63e   : > { %v3645_v19 = vmul.f32 %v3581_v28, %v9655_v41  ;;  %v3144_v48 = vor.u32 1.1754944e-38, %v3143_v45  ;;  %v2432_v32 = vmul.f32 0.3275911, %v9693_v34  ;;  %v9721_v18 = vadd.f32 1.0, %v2433_v17  ;;  %v12055_v28 = vld [vmem:[#allocation154_spill] sm:$0xff]  ;;  %v12056_v17 = vld [vmem:[#allocation156_spill] sm:$0xff] }
 0x63f   : > { %v9724_v52 = vmul.f32 %v9627_v23, %v4024_v47  ;;  %vm3142_vm2 = vcmp.eq.f32.partialorder %v3141_v26, 8.507059e+37  ;;  %v3148_v38 = vmul.f32 %v9704_v21, %v9648_v63  ;;  %v9729_v30 = vand.u32 2147483647, %v9702_v31 }
 0x640   : > { %v4346_v39 = vmul.f32 %v6114_v8, %v4026_v29  ;;  %v4027_v35 = vmul.f32 %v3963_v44, %v9552_v55  ;;  %v9732_v58 = vsel %vm3142_vm2, %v3144_v48, %v3140_v37  ;;  %6119 = vrcp.f32 %v9721_v18  ;;  %v12058_v37 = vld [vmem:[#allocation158_spill] sm:$0xff] }
 0x641   : > { %12054 = vst [vmem:[#allocation146_spill] sm:$0xff] %v9724_v52  ;;  %v4537_v45 = vsub.f32 0.0, %v4409_v49  ;;  %v9736_v61 = vmul.f32 0.5, %v12055_v28  ;;  %v3580_v23 = vadd.f32 -1.4531521, %v3516_v4  ;;  %v4092_v47 = vsub.f32 0.0, %v9488_v43 }
 0x642   : > { %v4599_v26 = vsel %vm4471_vm12, %v4535_v11, %v4407_v12  ;;  %v9742_v1 = vmul.f32 0.5, %v12056_v17  ;;  %v3709_v8 = vadd.f32 1.4214138, %v3645_v19  ;;  %v9744_v29 = vadd.f32 1.0, %v2432_v32 }
 0x643   : > { %v6118_v55 = vpop.eup %6117  ;;  %v9748_v44 = vmul.f32 %v9629_v0, %v9400_v40  ;;  %vm4474_vm3 = vcmp.lt.f32.partialorder %v12058_v37, 0.0  ;;  %v3518_v4 = vmul.f32 1.0614054, %v9732_v58  ;;  %v3149_v48 = vsub.f32 1.0, %v3148_v38  ;;  %v2135_v38 = vpop.f32.mrf.mxu2 }
 0x644   : > { %12057 = vst [vmem:[#allocation154_spill] sm:$0xff] %v9742_v1  ;;  %v2434_v28 = vmul.f32 0.3275911, %v9729_v30  ;;  %v9755_v12 = vmul.f32 %v9643_v33, %v9477_v20  ;;  %v4410_v11 = vsub.f32 1.0, %v4346_v39  ;;  %v4347_v19 = vmul.f32 %v6118_v55, %v4027_v35 }
 0x645   : > { %v9758_v32 = vadd.f32 1.0, %v4599_v26  ;;  %v4601_v40 = vsel %vm4473_vm0, %v4537_v45, %v4409_v49  ;;  %v3644_v0 = vmul.f32 %v3580_v23, %v9690_v27  ;;  %v4156_v17 = vmul.f32 %v4092_v47, %v9488_v43  ;;  %v12061_v23 = vld [vmem:[#allocation160_spill] sm:$0xff] }
 0x646   : > { %12059 = vst [vmem:[#allocation156_spill] sm:$0xff] %v9755_v12  ;;  %v9764_v36 = vpop.eup %6119  ;;  %v3773_v42 = vmul.f32 %v3709_v8, %v9655_v41  ;;  %v4093_v20 = vsub.f32 0.0, %v9517_v5  ;;  %v4094_v33 = vsub.f32 0.0, %v9542_v46  ;;  %6121 = vrcp.f32 %v9744_v29 }
 0x647   : > { %12060 = vst [vmem:[#allocation158_spill] sm:$0xff] %v9758_v32  ;;  %v3582_v39 = vadd.f32 -1.4531521, %v3518_v4  ;;  %v3150_v35 = vmul.f32 %v9704_v21, %v3149_v48  ;;  %v3178_v60 = vmul.f32 %v9764_v36, %v9721_v18  ;;  %v9773_v49 = vadd.f32 1.0, %v2434_v28 }
 0x648   : > { %v4538_v43 = vsub.f32 0.0, %v4410_v11  ;;  %v4411_v45 = vsub.f32 1.0, %v4347_v19  ;;  %vm4475_vm4 = vcmp.lt.f32.partialorder %v12061_v23, 0.0  ;;  %v9777_v47 = vmul.f32 0.5, %v9474_v50 }
 0x649   : > { %v9780_v26 = vadd.f32 %v2135_v38, %v7973_v10  ;;  %v4665_v8 = vadd.f32 1.0, %v4601_v40  ;;  %v3708_v55 = vadd.f32 1.4214138, %v3644_v0  ;;  %v4259_v4 = vmul.f32 1.442695, %v4156_v17 }
 0x64a   : > { %12062 = vst [vmem:[#allocation160_spill] sm:$0xff] %v9777_v47  ;;  %v4095_v48 = vsub.f32 0.0, %v9609_v13  ;;  %v3837_v59 = vadd.f32 -0.28449672, %v3773_v42  ;;  %v4157_v52 = vmul.f32 %v4093_v20, %v9517_v5  ;;  %v4158_v28 = vmul.f32 %v4094_v33, %v9542_v46 }
 0x64b   : > { %12063 = vst [vmem:[#allocation177_spill] sm:$0xff] %v9780_v26  ;;  %v3179_v32 = vsub.f32 1.0, %v3178_v60  ;;  %v3646_v19 = vmul.f32 %v3582_v39, %v9732_v58  ;;  %v3151_v1 = vadd.f32 %v9704_v21, %v3150_v35  ;;  %vm3153_vm5 = vweird.f32 %v9704_v21 }
 0x64c   : > { %6123 = vrcp.f32 %v9773_v49  ;;  %v9789_v50 = vpop.eup %6121  ;;  %v4602_v40 = vsel %vm4474_vm3, %v4538_v43, %v4410_v11  ;;  %v4539_v0 = vsub.f32 0.0, %v4411_v45  ;;  %v3158_v42 = vand.u32 2147483648, %v9648_v63 }
 0x64d   : > { %v9795_v5 = vmul.f32 0.70710677, %v9780_v26  ;;  %v3772_v46 = vmul.f32 %v3708_v55, %v9690_v27  ;;  %vm3152_vm6 = vweird.f32 %v9648_v63  ;;  %v3156_v17 = vand.u32 2147483647, %v9648_v63 }
 0x64e   : > { %v4159_v38 = vmul.f32 %v4095_v48, %v9609_v13  ;;  %v9802_v20 = vmul.f32 %v4665_v8, %v9606_v62  ;;  %6125 = vpow2.f32 %v4259_v4  ;;  %v3901_v37 = vmul.f32 %v3837_v59, %v9655_v41  ;;  %vm9805_vm7 = vmor %vm3152_vm6, %vm3153_vm5 }
 0x64f   : > { %12064 = vst [vmem:[#allocation178_spill] sm:$0xff] %v9795_v5  ;;  %v3180_v33 = vmul.f32 %v9764_v36, %v3179_v32  ;;  %v4261_v39 = vmul.f32 1.442695, %v4157_v52  ;;  %v3710_v35 = vadd.f32 1.4214138, %v3646_v19  ;;  %v3155_v63 = vsel %vm9805_vm7, %v9704_v21, %v3151_v1 }
 0x650   : > { %v3163_v13 = vmul.f32 %v9789_v50, %v9744_v29  ;;  %v4666_v62 = vadd.f32 1.0, %v4602_v40  ;;  %v4263_v60 = vmul.f32 1.442695, %v4158_v28  ;;  %v3159_v43 = vor.u32 1.1754944e-38, %v3158_v42 }
 0x651   : > { %v9816_v59 = vand.u32 2147483647, %v9795_v5  ;;  %v4603_v32 = vsel %vm4475_vm4, %v4539_v0, %v4411_v45  ;;  %v3836_v52 = vadd.f32 -0.28449672, %v3772_v46  ;;  %vm3157_vm8 = vcmp.eq.f32.partialorder %v3156_v17, 8.507059e+37  ;;  %v12107_v5 = vld [vmem:[#allocation68_spill] sm:$0xff] }
 0x652   : > { %v9818_v8 = vpop.eup %6123  ;;  %v4265_v55 = vmul.f32 1.442695, %v4159_v38  ;;  %v3965_v4 = vadd.f32 0.2548296, %v3901_v37  ;;  %v9822_v48 = vsel %vm3157_vm8, %v3159_v43, %v3155_v63  ;;  %v3181_v1 = vadd.f32 %v9764_v36, %v3180_v33  ;;  %v2184_v37 = vpop.f32.mrf.mxu3  ;;  %v12077_v38 = vld [vmem:[#allocation19_spill] sm:$0xff] }
 0x653   : > { %vm3183_vm9 = vweird.f32 %v9764_v36  ;;  %6127 = vpow2.f32 %v4261_v39  ;;  %v3774_v21 = vmul.f32 %v3710_v35, %v9732_v58  ;;  %v3164_v28 = vsub.f32 1.0, %v3163_v13 }
 0x654   : > { %v3188_v19 = vand.u32 2147483648, %v9721_v18  ;;  %v9828_v40 = vpop.eup %6125  ;;  %vm3182_vm10 = vweird.f32 %v9721_v18  ;;  %v3186_v45 = vand.u32 2147483647, %v9721_v18  ;;  %v3193_v23 = vmul.f32 %v9818_v8, %v9773_v49 }
 0x655   : > { %12067 = vst [vmem:[#allocation179_spill] sm:$0xff] %v9828_v40  ;;  %v2435_v0 = vmul.f32 0.3275911, %v9816_v59  ;;  %v9836_v42 = vmul.f32 %v4666_v62, %v9736_v61  ;;  %v9838_v46 = vadd.f32 1.0, %v4603_v32  ;;  %6129 = vpow2.f32 %v4263_v60  ;;  %vm9841_vm11 = vmor %vm3182_vm10, %vm3183_vm9  ;;  %v12090_v32 = vld [vmem:[#allocation64_spill] sm:$0xff] }
 0x656   : > { %v3519_v17 = vmul.f32 1.0614054, %v9822_v48  ;;  %v3900_v18 = vmul.f32 %v3836_v52, %v9690_v27  ;;  %v4029_v11 = vmul.f32 %v3965_v4, %v9655_v41  ;;  %6131 = vpow2.f32 %v4265_v55 }
 0x657   : > { %12068 = vst [vmem:[#allocation180_spill] sm:$0xff] %v9836_v42  ;;  %v3185_v61 = vsel %vm9841_vm11, %v9764_v36, %v3181_v1  ;;  %v3838_v33 = vadd.f32 -0.28449672, %v3774_v21  ;;  %v3165_v39 = vmul.f32 %v9789_v50, %v3164_v28  ;;  %v3189_v35 = vor.u32 1.1754944e-38, %v3188_v19 }
 0x658   : > { %12069 = vst [vmem:[#allocation181_spill] sm:$0xff] %v9838_v46  ;;  %v3741_v63 = vmul.f32 %v9578_v7, %v9344_v6  ;;  %vm3187_vm12 = vcmp.eq.f32.partialorder %v3186_v45, 8.507059e+37  ;;  %v3194_v13 = vsub.f32 1.0, %v3193_v23  ;;  %v9853_v62 = vadd.f32 1.0, %v2435_v0 }
 0x659   : > { %v9856_v60 = vadd.f32 %v2184_v37, %v7976_v16  ;;  %v6128_v41 = vpop.eup %6127  ;;  %v3583_v43 = vadd.f32 -1.4531521, %v3519_v17  ;;  %v9859_v52 = vsel %vm3187_vm12, %v3189_v35, %v3185_v61  ;;  %v3745_v36 = vmul.f32 %v9593_v24, %v9375_v57  ;;  %v12093_v16 = vld [vmem:[#allocation34_spill] sm:$0xff] }
 0x65a   : > { %v3964_v55 = vadd.f32 0.2548296, %v3900_v18  ;;  %v9863_v4 = vmul.f32 %v6128_v41, %v4029_v11  ;;  %v3171_v7 = vand.u32 2147483647, %v9744_v29  ;;  %v4097_v1 = vsub.f32 0.0, %v9696_v56 }
 0x65b   : > { %12072 = vst [vmem:[#allocation182_spill] sm:$0xff] %v9856_v60  ;;  %v9867_v21 = vpop.eup %6129  ;;  %v3902_v28 = vmul.f32 %v3838_v33, %v9732_v58  ;;  %v3166_v19 = vadd.f32 %v9789_v50, %v3165_v39  ;;  %vm3168_vm13 = vweird.f32 %v9789_v50  ;;  %v3805_v45 = vadd.f32 -0.28449672, %v3741_v63 }
 0x65c   : > { %12073 = vst [vmem:[#allocation183_spill] sm:$0xff] %v9863_v4  ;;  %v9872_v23 = vpop.eup %6131  ;;  %v3521_v24 = vmul.f32 1.0614054, %v9859_v52  ;;  %v3195_v0 = vmul.f32 %v9818_v8, %v3194_v13  ;;  %6133 = vrcp.f32 %v9853_v62  ;;  %v9878_v17 = vmul.f32 0.70710677, %v9856_v60  ;;  %v12082_v13 = vld [vmem:[#allocation47_spill] sm:$0xff] }
 0x65d   : > { %12074 = vst [vmem:[#allocation184_spill] sm:$0xff] %v9867_v21  ;;  %vm2658_vm14 = vweird.f32 %v12077_v38  ;;  %v3647_v37 = vmul.f32 %v3583_v43, %v9822_v48  ;;  %vm3167_vm15 = vweird.f32 %v9744_v29  ;;  %v3173_v18 = vand.u32 2147483648, %v9744_v29 }
 0x65e   : > { %12075 = vst [vmem:[#allocation185_spill] sm:$0xff] %v9872_v23  ;;  %v3809_v11 = vadd.f32 -0.28449672, %v3745_v36  ;;  %v9885_v61 = vmul.f32 %v3964_v55, %v9690_v27  ;;  %v11618_v33 = vsub.f32 1.0, %v9863_v4  ;;  %vm9888_vm0 = vmor %vm3167_vm15, %vm3168_vm13  ;;  %v9893_v35 = vmul.f32 0.5, %v9658_v3  ;;  %v12108_v23 = vld [vmem:[#allocation55_spill] sm:$0xff] }
 0x65f   : > { %12076 = vst [vmem:[#allocation186_spill] sm:$0xff] %v9878_v17  ;;  %v4161_v63 = vmul.f32 %v4097_v1, %v9696_v56  ;;  %vm2657_vm1 = vweird.f32 %v12082_v13  ;;  %v3966_v41 = vadd.f32 0.2548296, %v3902_v28  ;;  %v3170_v29 = vsel %vm9888_vm0, %v9789_v50, %v3166_v19  ;;  %v12147_v4 = vld [vmem:[#allocation69_spill] sm:$0xff] }
 0x660   : > { %12078 = vst [vmem:[#allocation19_spill] sm:$0xff] %v9885_v61  ;;  %vm9900_vm2 = vcmp.eq.f32.partialorder %v3171_v7, 8.507059e+37  ;;  %v3869_v43 = vmul.f32 %v3805_v45, %v9344_v6  ;;  %v3585_v36 = vadd.f32 -1.4531521, %v3521_v24  ;;  %v3196_v55 = vadd.f32 %v9818_v8, %v3195_v0  ;;  %v12086_v7 = vld [vmem:[#allocation15_spill] sm:$0xff]  ;;  %vm9958_vm11 = vmor %vm2657_vm1, %vm2658_vm14 }
 0x661   : > { %12081 = vst [vmem:[#allocation187_spill] sm:$0xff] %v9893_v35  ;;  %vm3198_vm3 = vweird.f32 %v9818_v8  ;;  %v9908_v3 = vand.u32 2147483647, %v9878_v17  ;;  %v3711_v56 = vadd.f32 1.4214138, %v3647_v37  ;;  %v3174_v1 = vor.u32 1.1754944e-38, %v3173_v18 }
 0x662   : > { %v3873_v28 = vmul.f32 %v3809_v11, %v9375_v57  ;;  %v3933_v39 = vadd.f32 0.2548296, %v3869_v43  ;;  %v9911_v50 = vpop.eup %6133  ;;  %vm4445_vm4 = vcmp.lt.f32.partialorder %v12086_v7, 0.0  ;;  %v9916_v19 = vsub.f32 0.0, %v11618_v33  ;;  %v12095_v37 = vld [vmem:[#allocation49_spill] sm:$0xff]  ;;  %v12132_v35 = vld [vmem:[#allocation24_spill] sm:$0xff] }
 0x663   : > { %12085 = vst [vmem:[#allocation47_spill] sm:$0xff] %v9908_v3  ;;  %v4269_v45 = vmul.f32 1.442695, %v4161_v63  ;;  %vm3197_vm5 = vweird.f32 %v9773_v49  ;;  %v3203_v24 = vand.u32 2147483648, %v9773_v49  ;;  %v9922_v0 = vsel %vm9900_vm2, %v3174_v1, %v3170_v29  ;;  %v12091_v63 = vld [vmem:[#allocation48_spill] sm:$0xff] }
 0x664   : > { %12087 = vst [vmem:[#allocation15_spill] sm:$0xff] %v9916_v19  ;;  %vm9924_vm6 = vmor %vm3197_vm5, %vm3198_vm3  ;;  %v3201_v18 = vand.u32 2147483647, %v9773_v49  ;;  %v3937_v11 = vadd.f32 0.2548296, %v3873_v28  ;;  %v3997_v43 = vmul.f32 %v3933_v39, %v9344_v6  ;;  %vm4449_vm7 = vcmp.lt.f32.partialorder %v12090_v32, 0.0 }
 0x665   : > { %vm2717_vm8 = vweird.f32 %v12091_v63  ;;  %v9933_v33 = vmul.f32 %v3966_v41, %v9732_v58  ;;  %v3649_v27 = vmul.f32 %v3585_v36, %v9859_v52  ;;  %v3200_v29 = vsel %vm9924_vm6, %v9818_v8, %v3196_v55  ;;  %v12092_v28 = vld [vmem:[#allocation37_spill] sm:$0xff]  ;;  %v12094_v55 = vld [vmem:[#allocation22_spill] sm:$0xff] }
 0x666   : > { %v2436_v1 = vmul.f32 0.3275911, %v9908_v3  ;;  %v3208_v49 = vmul.f32 %v9911_v50, %v9853_v62  ;;  %v4001_v6 = vmul.f32 %v3937_v11, %v9375_v57  ;;  %v4317_v39 = vmul.f32 %v12092_v28, %v3997_v43 }
 0x667   : > { %v2656_v10 = vadd.f32 %v12077_v38, %v12093_v16  ;;  %v9947_v58 = vmul.f32 %v3711_v56, %v9822_v48  ;;  %v3520_v41 = vmul.f32 1.0614054, %v9922_v0  ;;  %v3204_v36 = vor.u32 1.1754944e-38, %v3203_v24 }
 0x668   : > { %v4098_v8 = vsub.f32 0.0, %v9729_v30  ;;  %vm2673_vm9 = vweird.f32 %v12094_v55  ;;  %vm3202_vm10 = vcmp.eq.f32.partialorder %v3201_v18, 8.507059e+37  ;;  %v4321_v60 = vmul.f32 %v12095_v37, %v4001_v6  ;;  %v12098_v18 = vld [vmem:[#allocation40_spill] sm:$0xff] }
 0x669   : > { %v4381_v17 = vsub.f32 1.0, %v4317_v39  ;;  %v2661_v57 = vand.u32 2147483647, %v12082_v13  ;;  %v3713_v56 = vadd.f32 1.4214138, %v3649_v27  ;;  %6135 = vpow2.f32 %v4269_v45  ;;  %v12099_v27 = vld [vmem:[#allocation36_spill] sm:$0xff] }
 0x66a   : > { %v9962_v24 = vsel %vm3202_vm10, %v3204_v36, %v3200_v29  ;;  %v9964_v11 = vadd.f32 1.0, %v2436_v1  ;;  %vm2672_vm12 = vweird.f32 %v12098_v18  ;;  %v3209_v43 = vsub.f32 1.0, %v3208_v49  ;;  %v12100_v45 = vld [vmem:[#allocation59_spill] sm:$0xff] }
 0x66b   : > { %v4385_v6 = vsub.f32 1.0, %v4321_v60  ;;  %v4509_v28 = vsub.f32 0.0, %v4381_v17  ;;  %v2660_v39 = vsel %vm9958_vm11, %v12077_v38, %v2656_v10  ;;  %v9970_v13 = vadd.f32 -1.4531521, %v3520_v41  ;;  %v12101_v10 = vld [vmem:[#allocation26_spill] sm:$0xff]  ;;  %v12102_v41 = vld [vmem:[#allocation61_spill] sm:$0xff]  ;;  %vm10021_vm5 = vmor %vm2672_vm12, %vm2673_vm9 }
 0x66c   : > { %v9973_v37 = vmul.f32 %v4098_v8, %v9729_v30  ;;  %v2716_v29 = vadd.f32 %v12100_v45, %v12099_v27  ;;  %vm2718_vm13 = vweird.f32 %v12100_v45  ;;  %v3522_v1 = vmul.f32 1.0614054, %v9962_v24 }
 0x66d   : > { %v4513_v36 = vsub.f32 0.0, %v4385_v6  ;;  %v4573_v60 = vsel %vm4445_vm4, %v4509_v28, %v4381_v17  ;;  %vm2662_vm14 = vcmp.eq.f32.partialorder %v2661_v57, 8.507059e+37  ;;  %v3777_v49 = vmul.f32 %v3713_v56, %v9859_v52  ;;  %vm9994_vm1 = vmor %vm2717_vm8, %vm2718_vm13 }
 0x66e   : > { %vm3212_vm15 = vweird.f32 %v9853_v62  ;;  %v9984_v38 = vsel %vm2662_vm14, %v12101_v10, %v2660_v39  ;;  %v2721_v30 = vand.u32 2147483647, %v12091_v63  ;;  %vm2732_vm0 = vweird.f32 %v12102_v41 }
 0x66f   : > { %v3210_v8 = vmul.f32 %v9911_v50, %v3209_v43  ;;  %6137 = vrcp.f32 %v9964_v11  ;;  %v4577_v7 = vsel %vm4449_vm7, %v4513_v36, %v4385_v6  ;;  %v4637_v17 = vadd.f32 1.0, %v4573_v60  ;;  %v9998_v16 = vpop.eup %6135  ;;  %v12106_v60 = vld [vmem:[#allocation43_spill] sm:$0xff] }
 0x670   : > { %v3216_v56 = vand.u32 2147483647, %v9853_v62  ;;  %v3218_v28 = vand.u32 2147483648, %v9853_v62  ;;  %v4641_v39 = vadd.f32 1.0, %v4577_v7  ;;  %v2720_v43 = vsel %vm9994_vm1, %v12100_v45, %v2716_v29  ;;  %v12109_v7 = vld [vmem:[#allocation41_spill] sm:$0xff] }
 0x671   : > { %v3586_v32 = vadd.f32 -1.4531521, %v3522_v1  ;;  %v12105_v6 = vand.u32 2147483648, %v12091_v63  ;;  %v3486_v36 = vmul.f32 1.0614054, %v9984_v38  ;;  %v2671_v10 = vadd.f32 %v12094_v55, %v12106_v60  ;;  %v12119_v60 = vld [vmem:[#allocation27_spill] sm:$0xff] }
 0x672   : > { %v3841_v26 = vadd.f32 -0.28449672, %v3777_v49  ;;  %v4701_v46 = vmul.f32 %v4637_v17, %v12107_v5  ;;  %v4705_v31 = vmul.f32 %v4641_v39, %v12108_v23  ;;  %vm2722_vm2 = vcmp.eq.f32.partialorder %v2721_v30, 8.507059e+37 }
 0x673   : > { %v2724_v27 = vor.u32 1.1754944e-38, %v12105_v6  ;;  %vm2688_vm3 = vweird.f32 %v12109_v7  ;;  %v3211_v57 = vadd.f32 %v9911_v50, %v3210_v8  ;;  %vm3213_vm4 = vweird.f32 %v9911_v50  ;;  %v12114_v8 = vld [vmem:[#allocation46_spill] sm:$0xff]  ;;  %v12116_v6 = vld [vmem:[#allocation44_spill] sm:$0xff] }
 0x674   : > { %v3550_v63 = vadd.f32 -1.4531521, %v3486_v36  ;;  %vm10025_vm6 = vcmp.eq.f32.partialorder %v3216_v56, 8.507059e+37  ;;  %v3219_v23 = vor.u32 1.1754944e-38, %v3218_v28  ;;  %v4761_v1 = vpack.c.bf16 %v4705_v31, %v4701_v46  ;;  %v12115_v56 = vld [vmem:[#allocation84_spill] sm:$0xff]  ;;  %vm10046_vm8 = vmor %vm3212_vm15, %vm3213_vm4 }
 0x675   : > { %v10015_v45 = vsel %vm2722_vm2, %v2724_v27, %v2720_v43  ;;  %v10030_v30 = vpop.eup %6137  ;;  %vm2687_vm7 = vweird.f32 %v12114_v8  ;;  %v2675_v39 = vsel %vm10021_vm5, %v12094_v55, %v2671_v10  ;;  %v2676_v43 = vand.u32 2147483647, %v12098_v18 }
 0x676   : > { %v3490_v49 = vmul.f32 1.0614054, %v10015_v45  ;;  %v3614_v17 = vmul.f32 %v3550_v63, %v9984_v38  ;;  %v2731_v27 = vadd.f32 %v12116_v6, %v12115_v56  ;;  %v3905_v28 = vmul.f32 %v3841_v26, %v9859_v52  ;;  %5059 = vmatmul.bf16.gmra.mxu0 %v4761_v1  ;;  %vm10088_vm14 = vmor %vm2687_vm7, %vm2688_vm3 }
 0x677   : > { %v3650_v31 = vmul.f32 %v3586_v32, %v9962_v24  ;;  %vm2733_vm9 = vweird.f32 %v12116_v6  ;;  %v3215_v55 = vsel %vm10046_vm8, %v9911_v50, %v3211_v57  ;;  %vm2677_vm10 = vcmp.eq.f32.partialorder %v2676_v43, 8.507059e+37 }
 0x678   : > { %v3554_v36 = vadd.f32 -1.4531521, %v3490_v49  ;;  %v3678_v18 = vadd.f32 1.4214138, %v3614_v17  ;;  %v2736_v26 = vand.u32 2147483647, %v12102_v41  ;;  %v3223_v32 = vmul.f32 %v10030_v30, %v9964_v11  ;;  %vm2734_vm11 = vmor %vm2732_vm0, %vm2733_vm9 }
 0x679   : > { %v10059_v10 = vsel %vm2677_vm10, %v12119_v60, %v2675_v39  ;;  %v12120_v63 = vand.u32 2147483648, %v12102_v41  ;;  %v2735_v57 = vsel %vm2734_vm11, %v12116_v6, %v2731_v27  ;;  %v12121_v49 = vld [vmem:[#allocation32_spill] sm:$0xff]  ;;  %v3714_v17 = vadd.f32 1.4214138, %v3650_v31 }
 0x67a   : > { %v3618_v62 = vmul.f32 %v3554_v36, %v10015_v45  ;;  %v3742_v50 = vmul.f32 %v3678_v18, %v9984_v38  ;;  %vm2737_vm12 = vcmp.eq.f32.partialorder %v2736_v26, 8.507059e+37  ;;  %v3487_v1 = vmul.f32 1.0614054, %v10059_v10  ;;  %v12122_v18 = vld [vmem:[#allocation45_spill] sm:$0xff]  ;;  %v12128_v26 = vld [vmem:[#allocation16_spill] sm:$0xff] }
 0x67b   : > { %v2739_v29 = vor.u32 1.1754944e-38, %v12120_v63  ;;  %vm2747_vm13 = vweird.f32 %v12121_v49  ;;  %v10071_v39 = vsel %vm10025_vm6, %v3219_v23, %v3215_v55  ;;  %v2686_v6 = vadd.f32 %v12109_v7, %v12122_v18  ;;  %v12127_v18 = vld [vmem:[#allocation66_spill] sm:$0xff] }
 0x67c   : > { %v3682_v43 = vadd.f32 1.4214138, %v3618_v62  ;;  %v3806_v46 = vadd.f32 -0.28449672, %v3742_v50  ;;  %v3551_v36 = vadd.f32 -1.4531521, %v3487_v1  ;;  %v10096_v50 = vmul.f32 %v3714_v17, %v9962_v24 }
 0x67d   : > { %v10073_v56 = vsel %vm2737_vm12, %v2739_v29, %v2735_v57  ;;  %v3224_v27 = vsub.f32 1.0, %v3223_v32  ;;  %v3233_v60 = vand.u32 2147483648, %v9964_v11  ;;  %v2691_v62 = vand.u32 2147483647, %v12114_v8  ;;  %v12125_v32 = vld [vmem:[#allocation51_spill] sm:$0xff]  ;;  %v12130_v63 = vld [vmem:[#allocation70_spill] sm:$0xff] }
 0x67e   : > { %v3491_v41 = vmul.f32 1.0614054, %v10073_v56  ;;  %v3746_v31 = vmul.f32 %v3682_v43, %v10015_v45  ;;  %v3870_v5 = vmul.f32 %v3806_v46, %v9984_v38  ;;  %v3615_v55 = vmul.f32 %v3551_v36, %v10059_v10  ;;  %v12126_v36 = vld [vmem:[#allocation18_spill] sm:$0xff] }
 0x67f   : > { %vm2763_vm15 = vweird.f32 %v12125_v32  ;;  %v10093_v29 = vadd.f32 0.2548296, %v3905_v28  ;;  %v3523_v57 = vmul.f32 1.0614054, %v10071_v39  ;;  %v2690_v8 = vsel %vm10088_vm14, %v12109_v7, %v2686_v6 }
 0x680   : > { %v3555_v23 = vadd.f32 -1.4531521, %v3491_v41  ;;  %v3810_v1 = vadd.f32 -0.28449672, %v3746_v31  ;;  %v3934_v43 = vadd.f32 0.2548296, %v3870_v5  ;;  %vm2762_vm1 = vweird.f32 %v12127_v18 }
 0x681   : > { %v3679_v41 = vadd.f32 1.4214138, %v3615_v55  ;;  %vm4446_vm0 = vcmp.lt.f32.partialorder %v12126_v36, 0.0  ;;  %v3225_v28 = vmul.f32 %v10030_v30, %v3224_v27  ;;  %vm3228_vm2 = vweird.f32 %v10030_v30  ;;  %v12129_v31 = vld [vmem:[#allocation78_spill] sm:$0xff]  ;;  %vm10147_vm11 = vmor %vm2762_vm1, %vm2763_vm15 }
 0x682   : > { %v3619_v46 = vmul.f32 %v3555_v23, %v10073_v56  ;;  %v3874_v17 = vmul.f32 %v3810_v1, %v10015_v45  ;;  %v2746_v5 = vadd.f32 %v12129_v31, %v12128_v26  ;;  %vm3227_vm3 = vweird.f32 %v9964_v11  ;;  %v12131_v1 = vld [vmem:[#allocation56_spill] sm:$0xff] }
 0x683   : > { %v3998_v23 = vmul.f32 %v3934_v43, %v9984_v38  ;;  %v3743_v7 = vmul.f32 %v3679_v41, %v10059_v10  ;;  %vm2692_vm4 = vcmp.eq.f32.partialorder %v2691_v62, 8.507059e+37  ;;  %vm2748_vm5 = vweird.f32 %v12129_v31  ;;  %vm10163_vm14 = vmor %vm3227_vm3, %vm3228_vm2 }
 0x684   : > { %v3683_v55 = vadd.f32 1.4214138, %v3619_v46  ;;  %v3938_v6 = vadd.f32 0.2548296, %v3874_v17  ;;  %v10114_v47 = vsel %vm2692_vm4, %v12130_v63, %v2690_v8  ;;  %v2751_v27 = vand.u32 2147483647, %v12121_v49  ;;  %vm2749_vm7 = vmor %vm2747_vm13, %vm2748_vm5 }
 0x685   : > { %vm4450_vm6 = vcmp.lt.f32.partialorder %v12131_v1, 0.0  ;;  %v4318_v26 = vmul.f32 %v12132_v35, %v3998_v23  ;;  %v3807_v42 = vadd.f32 -0.28449672, %v3743_v7  ;;  %v12133_v38 = vand.u32 2147483648, %v12121_v49  ;;  %v12134_v23 = vld [vmem:[#allocation87_spill] sm:$0xff]  ;;  %v12135_v7 = vld [vmem:[#allocation81_spill] sm:$0xff] }
 0x686   : > { %v3747_v34 = vmul.f32 %v3683_v55, %v10073_v56  ;;  %v3587_v43 = vadd.f32 -1.4531521, %v3523_v57  ;;  %v4002_v46 = vmul.f32 %v3938_v6, %v10015_v45  ;;  %v2750_v41 = vsel %vm2749_vm7, %v12129_v31, %v2746_v5  ;;  %v12150_v1 = vld [vmem:[#allocation89_spill] sm:$0xff] }
 0x687   : > { %v2754_v62 = vor.u32 1.1754944e-38, %v12133_v38  ;;  %vm2752_vm8 = vcmp.eq.f32.partialorder %v2751_v27, 8.507059e+37  ;;  %v4382_v8 = vsub.f32 1.0, %v4318_v26  ;;  %v3871_v63 = vmul.f32 %v3807_v42, %v10059_v10  ;;  %v12137_v27 = vld [vmem:[#allocation29_spill] sm:$0xff] }
 0x688   : > { %v3811_v17 = vadd.f32 -0.28449672, %v3747_v34  ;;  %vm2822_vm9 = vweird.f32 %v12134_v23  ;;  %v10132_v55 = vadd.f32 %v10030_v30, %v3225_v28  ;;  %v4322_v49 = vmul.f32 %v12135_v7, %v4002_v46  ;;  %v12136_v34 = vld [vmem:[#allocation85_spill] sm:$0xff]  ;;  %v12149_v46 = vld [vmem:[#allocation100_spill] sm:$0xff] }
 0x689   : > { %v10128_v35 = vsel %vm2752_vm8, %v2754_v62, %v2750_v41  ;;  %v3488_v57 = vmul.f32 1.0614054, %v10114_v47  ;;  %v4510_v6 = vsub.f32 0.0, %v4382_v8  ;;  %v3935_v5 = vadd.f32 0.2548296, %v3871_v63  ;;  %v12140_v41 = vld [vmem:[#allocation21_spill] sm:$0xff] }
 0x68a   : > { %v3492_v45 = vmul.f32 1.0614054, %v10128_v35  ;;  %v3875_v31 = vmul.f32 %v3811_v17, %v10073_v56  ;;  %v2761_v42 = vadd.f32 %v12125_v32, %v12136_v34  ;;  %vm4447_vm10 = vcmp.lt.f32.partialorder %v12137_v27, 0.0 }
 0x68b   : > { %v10141_v26 = vor.u32 1.1754944e-38, %v3233_v60  ;;  %v4386_v38 = vsub.f32 1.0, %v4322_v49  ;;  %v3552_v28 = vadd.f32 -1.4531521, %v3488_v57  ;;  %vm2778_vm12 = vweird.f32 %v12140_v41  ;;  %v12141_v49 = vld [vmem:[#allocation52_spill] sm:$0xff] }
 0x68c   : > { %v3556_v62 = vadd.f32 -1.4531521, %v3492_v45  ;;  %v10153_v17 = vmul.f32 %v3587_v43, %v10071_v39  ;;  %v4574_v60 = vsel %vm4446_vm0, %v4510_v6, %v4382_v8  ;;  %v3939_v63 = vadd.f32 0.2548296, %v3875_v31  ;;  %v12144_v8 = vld [vmem:[#allocation62_spill] sm:$0xff]  ;;  %v12145_v31 = vld [vmem:[#allocation80_spill] sm:$0xff] }
 0x68d   : > { %v3999_v7 = vmul.f32 %v3935_v5, %v10059_v10  ;;  %vm4451_vm13 = vcmp.lt.f32.partialorder %v12141_v49, 0.0  ;;  %v4514_v45 = vsub.f32 0.0, %v4386_v38  ;;  %v4638_v34 = vadd.f32 1.0, %v4574_v60  ;;  %v12146_v60 = vld [vmem:[#allocation74_spill] sm:$0xff] }
 0x68e   : > { %v3616_v43 = vmul.f32 %v3552_v28, %v10114_v47  ;;  %v3620_v36 = vmul.f32 %v3556_v62, %v10128_v35  ;;  %vm2777_vm15 = vweird.f32 %v12144_v8  ;;  %v4003_v6 = vmul.f32 %v3939_v63, %v10073_v56 }
 0x68f   : > { %v4319_v5 = vmul.f32 %v12145_v31, %v3999_v7  ;;  %v2765_v12 = vsel %vm10147_vm11, %v12125_v32, %v2761_v42  ;;  %v4578_v28 = vsel %vm4450_vm6, %v4514_v45, %v4386_v38  ;;  %v4702_v62 = vmul.f32 %v4638_v34, %v12146_v60  ;;  %v12148_v7 = vld [vmem:[#allocation113_spill] sm:$0xff]  ;;  %v12151_v42 = vld [vmem:[#allocation60_spill] sm:$0xff]  ;;  %vm10221_vm7 = vmor %vm2777_vm15, %vm2778_vm12 }
 0x690   : > { %v3680_v40 = vadd.f32 1.4214138, %v3616_v43  ;;  %v3684_v61 = vadd.f32 1.4214138, %v3620_v36  ;;  %v4642_v19 = vadd.f32 1.0, %v4578_v28  ;;  %v4323_v3 = vmul.f32 %v12147_v4, %v4003_v6  ;;  %v12155_v6 = vld [vmem:[#allocation88_spill] sm:$0xff] }
 0x691   : > { %v4383_v21 = vsub.f32 1.0, %v4319_v5  ;;  %v2766_v10 = vand.u32 2147483647, %v12127_v18  ;;  %v2821_v32 = vadd.f32 %v12149_v46, %v12148_v7  ;;  %vm2823_vm0 = vweird.f32 %v12149_v46  ;;  %v12154_v18 = vld [vmem:[#allocation82_spill] sm:$0xff] }
 0x692   : > { %v3744_v56 = vmul.f32 %v3680_v40, %v10114_v47  ;;  %v3748_v63 = vmul.f32 %v3684_v61, %v10128_v35  ;;  %vm2837_vm1 = vweird.f32 %v12150_v1  ;;  %v4706_v38 = vmul.f32 %v4642_v19, %v12151_v42  ;;  %vm10193_vm3 = vmor %vm2822_vm9, %vm2823_vm0 }
 0x693   : > { %v4387_v45 = vsub.f32 1.0, %v4323_v3  ;;  %v4511_v34 = vsub.f32 0.0, %v4383_v21  ;;  %vm2767_vm2 = vcmp.eq.f32.partialorder %v2766_v10, 8.507059e+37  ;;  %v2825_v36 = vsel %vm10193_vm3, %v12149_v46, %v2821_v32  ;;  %v12161_v32 = vld [vmem:[#allocation65_spill] sm:$0xff] }
 0x694   : > { %v3808_v40 = vadd.f32 -0.28449672, %v3744_v56  ;;  %v3812_v61 = vadd.f32 -0.28449672, %v3748_v63  ;;  %v10198_v43 = vsel %vm2767_vm2, %v12154_v18, %v2765_v12  ;;  %vm2793_vm4 = vweird.f32 %v12155_v6  ;;  %v12157_v63 = vld [vmem:[#allocation71_spill] sm:$0xff] }
 0x695   : > { %v4762_v3 = vpack.c.bf16 %v4706_v38, %v4702_v62  ;;  %v4515_v19 = vsub.f32 0.0, %v4387_v45  ;;  %v4575_v10 = vsel %vm4447_vm10, %v4511_v34, %v4383_v21  ;;  %v2826_v31 = vand.u32 2147483647, %v12134_v23  ;;  %v12158_v21 = vld [vmem:[#allocation93_spill] sm:$0xff]  ;;  %v12163_v34 = vld [vmem:[#allocation76_spill] sm:$0xff] }
 0x696   : > { %v4639_v5 = vadd.f32 1.0, %v4575_v10  ;;  %v3872_v28 = vmul.f32 %v3808_v40, %v10114_v47  ;;  %v3876_v60 = vmul.f32 %v3812_v61, %v10128_v35  ;;  %v12156_v12 = vand.u32 2147483648, %v12134_v23 }
 0x697   : > { %vm2792_vm5 = vweird.f32 %v12157_v63  ;;  %5108 = vmatmul.bf16.gmra.mxu1 %v4762_v3  ;;  %v4579_v62 = vsel %vm4451_vm13, %v4515_v19, %v4387_v45  ;;  %vm2827_vm6 = vcmp.eq.f32.partialorder %v2826_v31, 8.507059e+37  ;;  %v3493_v27 = vmul.f32 1.0614054, %v10198_v43  ;;  %v12162_v45 = vld [vmem:[#allocation50_spill] sm:$0xff]  ;;  %v12164_v3 = vld [vmem:[#allocation77_spill] sm:$0xff] }
 0x698   : > { %v2829_v56 = vor.u32 1.1754944e-38, %v12156_v12  ;;  %v2776_v7 = vadd.f32 %v12140_v41, %v12158_v21  ;;  %v4643_v23 = vadd.f32 1.0, %v4579_v62  ;;  %v4703_v42 = vmul.f32 %v4639_v5, %v12161_v32  ;;  %vm10269_vm0 = vmor %vm2792_vm5, %vm2793_vm4 }
 0x699   : > { %v3936_v38 = vadd.f32 0.2548296, %v3872_v28  ;;  %v3940_v49 = vadd.f32 0.2548296, %v3876_v60  ;;  %vm4448_vm8 = vcmp.lt.f32.partialorder %v12162_v45, 0.0  ;;  %vm4452_vm9 = vcmp.lt.f32.partialorder %v12163_v34, 0.0 }
 0x69a   : > { %v10228_v4 = vsel %vm2827_vm6, %v2829_v56, %v2825_v36  ;;  %v3557_v40 = vadd.f32 -1.4531521, %v3493_v27  ;;  %v2780_v61 = vsel %vm10221_vm7, %v12140_v41, %v2776_v7  ;;  %v2781_v18 = vand.u32 2147483647, %v12144_v8  ;;  %v12165_v36 = vld [vmem:[#allocation117_spill] sm:$0xff]  ;;  %v12167_v41 = vld [vmem:[#allocation42_spill] sm:$0xff] }
 0x69b   : > { %v4707_v19 = vmul.f32 %v4643_v23, %v12164_v3  ;;  %v4000_v10 = vmul.f32 %v3936_v38, %v10114_v47  ;;  %v4004_v31 = vmul.f32 %v3940_v49, %v10128_v35  ;;  %v3497_v5 = vmul.f32 1.0614054, %v10228_v4  ;;  %v12166_v60 = vld [vmem:[#allocation101_spill] sm:$0xff]  ;;  %v12171_v7 = vld [vmem:[#allocation12_spill] sm:$0xff] }
 0x69c   : > { %v3621_v28 = vmul.f32 %v3557_v40, %v10198_v43  ;;  %vm2782_vm10 = vcmp.eq.f32.partialorder %v2781_v18, 8.507059e+37  ;;  %v2836_v12 = vadd.f32 %v12166_v60, %v12165_v36  ;;  %vm2838_vm11 = vweird.f32 %v12166_v60  ;;  %v12168_v8 = vld [vmem:[#allocation33_spill] sm:$0xff] }
 0x69d   : > { %v4763_v56 = vpack.c.bf16 %v4707_v19, %v4703_v42  ;;  %v4320_v62 = vmul.f32 %v12167_v41, %v4000_v10  ;;  %v4324_v27 = vmul.f32 %v12168_v8, %v4004_v31  ;;  %v3561_v21 = vadd.f32 -1.4531521, %v3497_v5  ;;  %vm10246_vm12 = vmor %vm2837_vm1, %vm2838_vm11  ;;  %v12172_v42 = vld [vmem:[#allocation96_spill] sm:$0xff]  ;;  %v12174_v10 = vld [vmem:[#allocation103_spill] sm:$0xff] }
 0x69e   : > { %v3685_v35 = vadd.f32 1.4214138, %v3621_v28  ;;  %v10251_v46 = vsel %vm2782_vm10, %v12171_v7, %v2780_v61  ;;  %v2840_v23 = vsel %vm10246_vm12, %v12166_v60, %v2836_v12  ;;  %v2841_v32 = vand.u32 2147483647, %v12150_v1  ;;  %v12177_v28 = vld [vmem:[#allocation92_spill] sm:$0xff]  ;;  %v12182_v34 = vld [vmem:[#allocation25_spill] sm:$0xff] }
 0x69f   : > { %vm2852_vm13 = vweird.f32 %v12172_v42  ;;  %5157 = vmatmul.bf16.gmra.mxu2 %v4763_v56  ;;  %v4384_v38 = vsub.f32 1.0, %v4320_v62  ;;  %v4388_v49 = vsub.f32 1.0, %v4324_v27  ;;  %v3625_v40 = vmul.f32 %v3561_v21, %v10228_v4  ;;  %v12178_v27 = vld [vmem:[#allocation14_spill] sm:$0xff] }
 0x6a0   : > { %v12173_v18 = vand.u32 2147483648, %v12150_v1  ;;  %v3749_v19 = vmul.f32 %v3685_v35, %v10198_v43  ;;  %vm2842_vm15 = vcmp.eq.f32.partialorder %v2841_v32, 8.507059e+37  ;;  %v3494_v61 = vmul.f32 1.0614054, %v10251_v46 }
 0x6a1   : > { %v2791_v31 = vadd.f32 %v12155_v6, %v12174_v10  ;;  %vm2808_vm1 = vweird.f32 %v12177_v28  ;;  %v4512_v1 = vsub.f32 0.0, %v4384_v38  ;;  %v4516_v36 = vsub.f32 0.0, %v4388_v49 }
 0x6a2   : > { %v2844_v3 = vor.u32 1.1754944e-38, %v12173_v18  ;;  %v3689_v60 = vadd.f32 1.4214138, %v3625_v40  ;;  %v3813_v56 = vadd.f32 -0.28449672, %v3749_v19  ;;  %vm2807_vm2 = vweird.f32 %v12178_v27  ;;  %v12179_v19 = vld [vmem:[#allocation123_spill] sm:$0xff] }
 0x6a3   : > { %v3558_v62 = vadd.f32 -1.4531521, %v3494_v61  ;;  %v2795_v8 = vsel %vm10269_vm0, %v12155_v6, %v2791_v31  ;;  %v4576_v21 = vsel %vm4448_vm8, %v4512_v1, %v4384_v38  ;;  %v4580_v47 = vsel %vm4452_vm9, %v4516_v36, %v4388_v49  ;;  %v12180_v61 = vld [vmem:[#allocation57_spill] sm:$0xff]  ;;  %vm10322_vm10 = vmor %vm2807_vm2, %vm2808_vm1 }
 0x6a4   : > { %v10274_v12 = vsel %vm2842_vm15, %v2844_v3, %v2840_v23  ;;  %v3753_v35 = vmul.f32 %v3689_v60, %v10228_v4  ;;  %v2796_v7 = vand.u32 2147483647, %v12157_v63  ;;  %v4640_v23 = vadd.f32 1.0, %v4576_v21  ;;  %v12181_v38 = vld [vmem:[#allocation17_spill] sm:$0xff]  ;;  %v12183_v63 = vld [vmem:[#allocation67_spill] sm:$0xff]  ;;  %v12184_v60 = vld [vmem:[#allocation86_spill] sm:$0xff] }
 0x6a5   : > { %v3498_v41 = vmul.f32 1.0614054, %v10274_v12  ;;  %v4644_v32 = vadd.f32 1.0, %v4580_v47  ;;  %v3877_v40 = vmul.f32 %v3813_v56, %v10198_v43  ;;  %v3622_v6 = vmul.f32 %v3558_v62, %v10251_v46 }
 0x6a6   : > { %v3817_v3 = vadd.f32 -0.28449672, %v3753_v35  ;;  %vm2797_vm3 = vcmp.eq.f32.partialorder %v2796_v7, 8.507059e+37  ;;  %v2851_v45 = vadd.f32 %v12180_v61, %v12179_v19  ;;  %v4704_v10 = vmul.f32 %v4640_v23, %v12181_v38 }
 0x6a7   : > { %v3562_v18 = vadd.f32 -1.4531521, %v3498_v41  ;;  %v4708_v49 = vmul.f32 %v4644_v32, %v12182_v34  ;;  %v3941_v31 = vadd.f32 0.2548296, %v3877_v40  ;;  %vm4453_vm4 = vcmp.lt.f32.partialorder %v12183_v63, 0.0  ;;  %v12185_v41 = vld [vmem:[#allocation99_spill] sm:$0xff] }
 0x6a8   : > { %v3881_v1 = vmul.f32 %v3817_v3, %v10228_v4  ;;  %v3686_v36 = vadd.f32 1.4214138, %v3622_v6  ;;  %v10297_v56 = vsel %vm2797_vm3, %v12184_v60, %v2795_v8  ;;  %vm2853_vm5 = vweird.f32 %v12180_v61  ;;  %v12188_v3 = vld [vmem:[#allocation20_spill] sm:$0xff]  ;;  %v12194_v60 = vld [vmem:[#allocation111_spill] sm:$0xff] }
 0x6a9   : > { %v3626_v5 = vmul.f32 %v3562_v18, %v10274_v12  ;;  %vm2867_vm6 = vweird.f32 %v12185_v41  ;;  %v4764_v62 = vpack.c.bf16 %v4708_v49, %v4704_v10  ;;  %v4005_v21 = vmul.f32 %v3941_v31, %v10198_v43  ;;  %vm2854_vm7 = vmor %vm2852_vm13, %vm2853_vm5  ;;  %v12187_v18 = vld [vmem:[#allocation53_spill] sm:$0xff]  ;;  %v12189_v49 = vld [vmem:[#allocation107_spill] sm:$0xff] }
 0x6aa   : > { %v2856_v35 = vand.u32 2147483647, %v12172_v42  ;;  %v3945_v7 = vadd.f32 0.2548296, %v3881_v1  ;;  %v3750_v23 = vmul.f32 %v3686_v36, %v10251_v46  ;;  %v2855_v32 = vsel %vm2854_vm7, %v12180_v61, %v2851_v45  ;;  %v12192_v1 = vld [vmem:[#allocation124_spill] sm:$0xff] }
 0x6ab   : > { %v3690_v47 = vadd.f32 1.4214138, %v3626_v5  ;;  %v12186_v8 = vand.u32 2147483648, %v12172_v42  ;;  %vm4457_vm8 = vcmp.lt.f32.partialorder %v12187_v18, 0.0  ;;  %5206 = vmatmul.bf16.gmra.mxu3 %v4764_v62  ;;  %v4325_v6 = vmul.f32 %v12188_v3, %v4005_v21 }
 0x6ac   : > { %vm2857_vm9 = vcmp.eq.f32.partialorder %v2856_v35, 8.507059e+37  ;;  %v3495_v19 = vmul.f32 1.0614054, %v10297_v56  ;;  %v4009_v38 = vmul.f32 %v3945_v7, %v10228_v4  ;;  %v3814_v10 = vadd.f32 -0.28449672, %v3750_v23  ;;  %v12193_v4 = vld [vmem:[#allocation108_spill] sm:$0xff] }
 0x6ad   : > { %v2859_v40 = vor.u32 1.1754944e-38, %v12186_v8  ;;  %v3754_v43 = vmul.f32 %v3690_v47, %v10274_v12  ;;  %v2806_v61 = vadd.f32 %v12177_v28, %v12189_v49  ;;  %v4389_v45 = vsub.f32 1.0, %v4325_v6  ;;  %v12197_v49 = vld [vmem:[#allocation30_spill] sm:$0xff] }
 0x6ae   : > { %v2866_v36 = vadd.f32 %v12193_v4, %v12192_v1  ;;  %v4329_v62 = vmul.f32 %v12194_v60, %v4009_v38  ;;  %v3878_v21 = vmul.f32 %v3814_v10, %v10251_v46  ;;  %v3559_v47 = vadd.f32 -1.4531521, %v3495_v19  ;;  %v12196_v38 = vld [vmem:[#allocation83_spill] sm:$0xff] }
 0x6af   : > { %v10314_v34 = vsel %vm2857_vm9, %v2859_v40, %v2855_v32  ;;  %v3818_v31 = vadd.f32 -0.28449672, %v3754_v43  ;;  %v2810_v35 = vsel %vm10322_vm10, %v12177_v28, %v2806_v61  ;;  %v4517_v7 = vsub.f32 0.0, %v4389_v45  ;;  %v12195_v40 = vld [vmem:[#allocation115_spill] sm:$0xff] }
 0x6b0   : > { %v3499_v5 = vmul.f32 1.0614054, %v10314_v34  ;;  %v2811_v8 = vand.u32 2147483647, %v12178_v27  ;;  %vm2883_vm11 = vweird.f32 %v12195_v40  ;;  %v4393_v3 = vsub.f32 1.0, %v4329_v62  ;;  %v12198_v27 = vld [vmem:[#allocation54_spill] sm:$0xff] }
 0x6b1   : > { %v3882_v23 = vmul.f32 %v3818_v31, %v10274_v12  ;;  %v3942_v6 = vadd.f32 0.2548296, %v3878_v21  ;;  %v3623_v43 = vmul.f32 %v3559_v47, %v10297_v56  ;;  %vm2868_vm12 = vweird.f32 %v12193_v4  ;;  %v12201_v60 = vld [vmem:[#allocation95_spill] sm:$0xff] }
 0x6b2   : > { %v3563_v32 = vadd.f32 -1.4531521, %v3499_v5  ;;  %vm4454_vm13 = vcmp.lt.f32.partialorder %v12196_v38, 0.0  ;;  %v4581_v19 = vsel %vm4453_vm4, %v4517_v7, %v4389_v45  ;;  %vm2812_vm15 = vcmp.eq.f32.partialorder %v2811_v8, 8.507059e+37  ;;  %vm10348_vm2 = vmor %vm2867_vm6, %vm2868_vm12  ;;  %v12202_v47 = vld [vmem:[#allocation63_spill] sm:$0xff] }
 0x6b3   : > { %v3946_v28 = vadd.f32 0.2548296, %v3882_v23  ;;  %vm4458_vm0 = vcmp.lt.f32.partialorder %v12197_v49, 0.0  ;;  %vm2882_vm1 = vweird.f32 %v12198_v27  ;;  %v4521_v61 = vsub.f32 0.0, %v4393_v3  ;;  %v12203_v23 = vld [vmem:[#allocation94_spill] sm:$0xff] }
 0x6b4   : > { %v3627_v10 = vmul.f32 %v3563_v32, %v10314_v34  ;;  %v4645_v42 = vadd.f32 1.0, %v4581_v19  ;;  %v4006_v31 = vmul.f32 %v3942_v6, %v10251_v46  ;;  %v3687_v5 = vadd.f32 1.4214138, %v3623_v43  ;;  %v12204_v43 = vld [vmem:[#allocation112_spill] sm:$0xff]  ;;  %vm10393_vm7 = vmor %vm2882_vm1, %vm2883_vm11 }
 0x6b5   : > { %v4010_v63 = vmul.f32 %v3946_v28, %v10274_v12  ;;  %v10354_v62 = vsel %vm2812_vm15, %v12201_v60, %v2810_v35  ;;  %v2870_v21 = vsel %vm10348_vm2, %v12193_v4, %v2866_v36  ;;  %v4585_v46 = vsel %vm4457_vm8, %v4521_v61, %v4393_v3  ;;  %v12206_v3 = vld [vmem:[#allocation142_spill] sm:$0xff] }
 0x6b6   : > { %v3691_v45 = vadd.f32 1.4214138, %v3627_v10  ;;  %v4709_v7 = vmul.f32 %v4645_v42, %v12202_v47  ;;  %v4326_v32 = vmul.f32 %v12203_v23, %v4006_v31  ;;  %v3751_v8 = vmul.f32 %v3687_v5, %v10297_v56  ;;  %v12207_v61 = vld [vmem:[#allocation38_spill] sm:$0xff] }
 0x6b7   : > { %v4649_v6 = vadd.f32 1.0, %v4585_v46  ;;  %v4330_v12 = vmul.f32 %v12204_v43, %v4010_v63  ;;  %v2871_v35 = vand.u32 2147483647, %v12185_v41  ;;  %v12205_v4 = vand.u32 2147483648, %v12185_v41 }
 0x6b8   : > { %v3755_v19 = vmul.f32 %v3691_v45, %v10314_v34  ;;  %v4390_v28 = vsub.f32 1.0, %v4326_v32  ;;  %v3815_v10 = vadd.f32 -0.28449672, %v3751_v8  ;;  %v3496_v18 = vmul.f32 1.0614054, %v10354_v62  ;;  %v12229_v8 = vld [vmem:[#allocation133_spill] sm:$0xff] }
 0x6b9   : > { %v2874_v36 = vor.u32 1.1754944e-38, %v12205_v4  ;;  %vm2942_vm3 = vweird.f32 %v12206_v3  ;;  %v4713_v42 = vmul.f32 %v4649_v6, %v12207_v61  ;;  %v4394_v31 = vsub.f32 1.0, %v4330_v12  ;;  %v12211_v12 = vld [vmem:[#allocation130_spill] sm:$0xff]  ;;  %v12215_v4 = vld [vmem:[#allocation31_spill] sm:$0xff] }
 0x6ba   : > { %v3819_v5 = vadd.f32 -0.28449672, %v3755_v19  ;;  %vm2872_vm4 = vcmp.eq.f32.partialorder %v2871_v35, 8.507059e+37  ;;  %v4518_v1 = vsub.f32 0.0, %v4390_v28  ;;  %v3879_v63 = vmul.f32 %v3815_v10, %v10297_v56  ;;  %v12212_v19 = vld [vmem:[#allocation39_spill] sm:$0xff] }
 0x6bb   : > { %v10373_v45 = vsel %vm2872_vm4, %v2874_v36, %v2870_v21  ;;  %v3560_v60 = vadd.f32 -1.4531521, %v3496_v18  ;;  %v4765_v46 = vpack.c.bf16 %v4713_v42, %v4709_v7  ;;  %v4522_v47 = vsub.f32 0.0, %v4394_v31  ;;  %v12216_v36 = vld [vmem:[#allocation122_spill] sm:$0xff] }
 0x6bc   : > { %v3883_v41 = vmul.f32 %v3819_v5, %v10314_v34  ;;  %v3500_v23 = vmul.f32 1.0614054, %v10373_v45  ;;  %v12208_v32 = vand.u32 2147483647, %v9964_v11  ;;  %v4582_v6 = vsel %vm4454_vm13, %v4518_v1, %v4390_v28  ;;  %v12217_v1 = vld [vmem:[#allocation58_spill] sm:$0xff] }
 0x6bd   : > { %v3943_v43 = vadd.f32 0.2548296, %v3879_v63  ;;  %v3624_v21 = vmul.f32 %v3560_v60, %v10354_v62  ;;  %v2881_v7 = vadd.f32 %v12195_v40, %v12211_v12  ;;  %vm4455_vm6 = vcmp.lt.f32.partialorder %v12212_v19, 0.0  ;;  %5064 = vmatmul.bf16.gmra.mxu0 %v4765_v46  ;;  %v12218_v46 = vld [vmem:[#allocation109_spill] sm:$0xff] }
 0x6be   : > { %vm10379_vm5 = vcmp.eq.f32.partialorder %v12208_v32, 8.507059e+37  ;;  %v4586_v38 = vsel %vm4458_vm0, %v4522_v47, %v4394_v31  ;;  %v4646_v35 = vadd.f32 1.0, %v4582_v6  ;;  %v3947_v28 = vadd.f32 0.2548296, %v3883_v41  ;;  %v12219_v47 = vld [vmem:[#allocation91_spill] sm:$0xff] }
 0x6bf   : > { %v3564_v10 = vadd.f32 -1.4531521, %v3500_v23  ;;  %vm4459_vm8 = vcmp.lt.f32.partialorder %v12215_v4, 0.0  ;;  %vm2898_vm9 = vweird.f32 %v12216_v36  ;;  %v4650_v18 = vadd.f32 1.0, %v4586_v38  ;;  %v12220_v23 = vld [vmem:[#allocation98_spill] sm:$0xff] }
 0x6c0   : > { %v4007_v61 = vmul.f32 %v3943_v43, %v10297_v56  ;;  %v3688_v42 = vadd.f32 1.4214138, %v3624_v21  ;;  %v2885_v5 = vsel %vm10393_vm7, %v12195_v40, %v2881_v7  ;;  %v4710_v63 = vmul.f32 %v4646_v35, %v12217_v1  ;;  %v12221_v40 = vld [vmem:[#allocation116_spill] sm:$0xff]  ;;  %v12235_v38 = vld [vmem:[#allocation118_spill] sm:$0xff] }
 0x6c1   : > { %v4011_v49 = vmul.f32 %v3947_v28, %v10314_v34  ;;  %v3628_v31 = vmul.f32 %v3564_v10, %v10373_v45  ;;  %v2886_v60 = vand.u32 2147483647, %v12198_v27  ;;  %vm2897_vm10 = vweird.f32 %v12218_v46  ;;  %v12222_v7 = vld [vmem:[#allocation128_spill] sm:$0xff] }
 0x6c2   : > { %v4714_v41 = vmul.f32 %v4650_v18, %v12219_v47  ;;  %v4327_v32 = vmul.f32 %v12220_v23, %v4007_v61  ;;  %v3752_v56 = vmul.f32 %v3688_v42, %v10354_v62  ;;  %v2941_v6 = vadd.f32 %v9225_v54, %v9378_v22  ;;  %vm10464_vm2 = vmor %vm2897_vm10, %vm2898_vm9 }
 0x6c3   : > { %v4331_v43 = vmul.f32 %v12221_v40, %v4011_v49  ;;  %v3692_v21 = vadd.f32 1.4214138, %v3628_v31  ;;  %vm2887_vm11 = vcmp.eq.f32.partialorder %v2886_v60, 8.507059e+37  ;;  %vm2943_vm12 = vweird.f32 %v9225_v54  ;;  %v12230_v40 = vld [vmem:[#allocation145_spill] sm:$0xff] }
 0x6c4   : > { %v4766_v34 = vpack.c.bf16 %v4714_v41, %v4710_v63  ;;  %v4391_v12 = vsub.f32 1.0, %v4327_v32  ;;  %v3816_v27 = vadd.f32 -0.28449672, %v3752_v56  ;;  %v10418_v11 = vsel %vm2887_vm11, %v12222_v7, %v2885_v5  ;;  %vm10422_vm13 = vmor %vm2942_vm3, %vm2943_vm12  ;;  %v12226_v63 = vld [vmem:[#allocation149_spill] sm:$0xff]  ;;  %v12228_v32 = vld [vmem:[#allocation28_spill] sm:$0xff] }
 0x6c5   : > { %v4395_v35 = vsub.f32 1.0, %v4331_v43  ;;  %v3756_v22 = vmul.f32 %v3692_v21, %v10373_v45  ;;  %v2945_v28 = vsel %vm10422_vm13, %v9225_v54, %v2941_v6  ;;  %v2946_v10 = vand.u32 2147483647, %v12206_v3  ;;  %v12233_v21 = vld [vmem:[#allocation72_spill] sm:$0xff] }
 0x6c6   : > { %5113 = vmatmul.bf16.gmra.mxu1 %v4766_v34  ;;  %v4519_v18 = vsub.f32 0.0, %v4391_v12  ;;  %v3880_v61 = vmul.f32 %v3816_v27, %v10354_v62  ;;  %v12225_v42 = vand.u32 2147483648, %v12206_v3  ;;  %v3501_v1 = vmul.f32 1.0614054, %v10418_v11 }
 0x6c7   : > { %vm2957_vm15 = vweird.f32 %v12226_v63  ;;  %v12227_v49 = vsel %vm10163_vm14, %v10030_v30, %v10132_v55  ;;  %v4523_v31 = vsub.f32 0.0, %v4395_v35  ;;  %v3820_v60 = vadd.f32 -0.28449672, %v3756_v22 }
 0x6c8   : > { %v2949_v5 = vor.u32 1.1754944e-38, %v12225_v42  ;;  %v10444_v54 = vsel %vm10379_vm5, %v10141_v26, %v12227_v49  ;;  %vm2947_vm0 = vcmp.eq.f32.partialorder %v2946_v10, 8.507059e+37  ;;  %v4583_v3 = vsel %vm4455_vm6, %v4519_v18, %v4391_v12 }
 0x6c9   : > { %v3944_v47 = vadd.f32 0.2548296, %v3880_v61  ;;  %v3565_v23 = vadd.f32 -1.4531521, %v3501_v1  ;;  %vm4456_vm1 = vcmp.lt.f32.partialorder %v12228_v32, 0.0  ;;  %v4587_v30 = vsel %vm4459_vm8, %v4523_v31, %v4395_v35  ;;  %v12236_v35 = vld [vmem:[#allocation104_spill] sm:$0xff] }
 0x6ca   : > { %v10448_v41 = vsel %vm2947_vm0, %v2949_v5, %v2945_v28  ;;  %v4647_v55 = vadd.f32 1.0, %v4583_v3  ;;  %v3884_v57 = vmul.f32 %v3820_v60, %v10373_v45  ;;  %vm2913_vm14 = vweird.f32 %v12229_v8  ;;  %v12237_v28 = vld [vmem:[#allocation106_spill] sm:$0xff]  ;;  %v12238_v60 = vld [vmem:[#allocation129_spill] sm:$0xff] }
 0x6cb   : > { %v3505_v26 = vmul.f32 1.0614054, %v10448_v41  ;;  %v4651_v56 = vadd.f32 1.0, %v4587_v30  ;;  %v4008_v19 = vmul.f32 %v3944_v47, %v10354_v62  ;;  %v3629_v6 = vmul.f32 %v3565_v23, %v10418_v11  ;;  %v12234_v62 = vld [vmem:[#allocation75_spill] sm:$0xff]  ;;  %v12239_v47 = vld [vmem:[#allocation125_spill] sm:$0xff] }
 0x6cc   : > { %v2896_v43 = vadd.f32 %v12216_v36, %v12230_v40  ;;  %v4711_v34 = vmul.f32 %v4647_v55, %v12233_v21  ;;  %v3948_v12 = vadd.f32 0.2548296, %v3884_v57  ;;  %v2901_v7 = vand.u32 2147483647, %v12218_v46 }
 0x6cd   : > { %v3569_v27 = vadd.f32 -1.4531521, %v3505_v26  ;;  %vm4460_vm3 = vcmp.lt.f32.partialorder %v12234_v62, 0.0  ;;  %vm2912_vm4 = vweird.f32 %v12235_v38  ;;  %v4715_v22 = vmul.f32 %v4651_v56, %v12236_v35  ;;  %v12241_v56 = vld [vmem:[#allocation152_spill] sm:$0xff] }
 0x6ce   : > { %v4328_v10 = vmul.f32 %v12237_v28, %v4008_v19  ;;  %v3693_v18 = vadd.f32 1.4214138, %v3629_v6  ;;  %v2900_v61 = vsel %vm10464_vm2, %v12216_v36, %v2896_v43  ;;  %v4012_v42 = vmul.f32 %v3948_v12, %v10373_v45  ;;  %vm10512_vm12 = vmor %vm2912_vm4, %vm2913_vm14 }
 0x6cf   : > { %v3633_v5 = vmul.f32 %v3569_v27, %v10448_v41  ;;  %vm2902_vm5 = vcmp.eq.f32.partialorder %v2901_v7, 8.507059e+37  ;;  %v2956_v46 = vadd.f32 %v9248_v25, %v9386_v14  ;;  %v4767_v1 = vpack.c.bf16 %v4715_v22, %v4711_v34 }
 0x6d0   : > { %v4392_v49 = vsub.f32 1.0, %v4328_v10  ;;  %v3757_v31 = vmul.f32 %v3693_v18, %v10418_v11  ;;  %v10483_v3 = vsel %vm2902_vm5, %v12238_v60, %v2900_v61  ;;  %v4332_v23 = vmul.f32 %v12239_v47, %v4012_v42  ;;  %v12243_v10 = vld [vmem:[#allocation90_spill] sm:$0xff]  ;;  %v12246_v42 = vld [vmem:[#allocation13_spill] sm:$0xff] }
 0x6d1   : > { %v3697_v30 = vadd.f32 1.4214138, %v3633_v5  ;;  %vm2958_vm6 = vweird.f32 %v9248_v25  ;;  %v2961_v45 = vand.u32 2147483647, %v12226_v63  ;;  %5162 = vmatmul.bf16.gmra.mxu2 %v4767_v1  ;;  %v12240_v14 = vand.u32 2147483648, %v12226_v63 }
 0x6d2   : > { %v4520_v36 = vsub.f32 0.0, %v4392_v49  ;;  %v3821_v55 = vadd.f32 -0.28449672, %v3757_v31  ;;  %vm2959_vm7 = vmor %vm2957_vm15, %vm2958_vm6  ;;  %v3502_v26 = vmul.f32 1.0614054, %v10483_v3  ;;  %vm2972_vm8 = vweird.f32 %v12241_v56 }
 0x6d3   : > { %v2964_v57 = vor.u32 1.1754944e-38, %v12240_v14  ;;  %v4396_v19 = vsub.f32 1.0, %v4332_v23  ;;  %v3761_v6 = vmul.f32 %v3697_v30, %v10448_v41  ;;  %v2960_v40 = vsel %vm2959_vm7, %v9248_v25, %v2956_v46  ;;  %v12242_v25 = vld [vmem:[#allocation151_spill] sm:$0xff] }
 0x6d4   : > { %vm2962_vm9 = vcmp.eq.f32.partialorder %v2961_v45, 8.507059e+37  ;;  %v4584_v43 = vsel %vm4456_vm1, %v4520_v36, %v4392_v49  ;;  %v3885_v4 = vmul.f32 %v3821_v55, %v10418_v11  ;;  %v3566_v34 = vadd.f32 -1.4531521, %v3502_v26  ;;  %v12247_v49 = vld [vmem:[#allocation131_spill] sm:$0xff]  ;;  %v12248_v45 = vld [vmem:[#allocation121_spill] sm:$0xff]  ;;  %v12251_v26 = vld [vmem:[#allocation140_spill] sm:$0xff] }
 0x6d5   : > { %v10499_v21 = vsel %vm2962_vm9, %v2964_v57, %v2960_v40  ;;  %v4524_v63 = vsub.f32 0.0, %v4396_v19  ;;  %v4648_v12 = vadd.f32 1.0, %v4584_v43  ;;  %v3825_v27 = vadd.f32 -0.28449672, %v3761_v6  ;;  %v12249_v36 = vld [vmem:[#allocation105_spill] sm:$0xff]  ;;  %v12250_v14 = vld [vmem:[#allocation139_spill] sm:$0xff] }
 0x6d6   : > { %v3506_v7 = vmul.f32 1.0614054, %v10499_v21  ;;  %vm2928_vm10 = vweird.f32 %v9172_v53  ;;  %v3949_v35 = vadd.f32 0.2548296, %v3885_v4  ;;  %v3630_v22 = vmul.f32 %v3566_v34, %v10483_v3 }
 0x6d7   : > { %v2911_v28 = vadd.f32 %v12229_v8, %v12242_v25  ;;  %v2916_v32 = vand.u32 2147483647, %v12235_v38  ;;  %vm4461_vm11 = vcmp.lt.f32.partialorder %v12243_v10, 0.0  ;;  %v4588_v61 = vsel %vm4460_vm3, %v4524_v63, %v4396_v19 }
 0x6d8   : > { %v4712_v5 = vmul.f32 %v4648_v12, %v12246_v42  ;;  %v3889_v46 = vmul.f32 %v3825_v27, %v10448_v41  ;;  %v3570_v1 = vadd.f32 -1.4531521, %v3506_v7  ;;  %vm2927_vm13 = vweird.f32 %v12247_v49  ;;  %v12253_v12 = vld [vmem:[#allocation157_spill] sm:$0xff] }
 0x6d9   : > { %v4652_v31 = vadd.f32 1.0, %v4588_v61  ;;  %v4013_v60 = vmul.f32 %v3949_v35, %v10418_v11  ;;  %v3694_v47 = vadd.f32 1.4214138, %v3630_v22  ;;  %v2915_v38 = vsel %vm10512_vm12, %v12229_v8, %v2911_v28  ;;  %v12254_v61 = vld [vmem:[#allocation163_spill] sm:$0xff]  ;;  %vm10561_vm5 = vmor %vm2927_vm13, %vm2928_vm10 }
 0x6da   : > { %v3953_v23 = vadd.f32 0.2548296, %v3889_v46  ;;  %v3634_v30 = vmul.f32 %v3570_v1, %v10499_v21  ;;  %vm2917_vm15 = vcmp.eq.f32.partialorder %v2916_v32, 8.507059e+37  ;;  %v2971_v62 = vadd.f32 %v9265_v15, %v9389_v2 }
 0x6db   : > { %vm4465_vm0 = vcmp.lt.f32.partialorder %v12248_v45, 0.0  ;;  %v4716_v55 = vmul.f32 %v4652_v31, %v12249_v36  ;;  %v4333_v57 = vmul.f32 %v12250_v14, %v4013_v60  ;;  %v3758_v11 = vmul.f32 %v3694_v47, %v10483_v3  ;;  %v12255_v31 = vld [vmem:[#allocation97_spill] sm:$0xff]  ;;  %v12263_v45 = vld [vmem:[#allocation164_spill] sm:$0xff] }
 0x6dc   : > { %v10533_v19 = vsel %vm2917_vm15, %v12251_v26, %v2915_v38  ;;  %v4017_v8 = vmul.f32 %v3953_v23, %v10448_v41  ;;  %v3698_v6 = vadd.f32 1.4214138, %v3634_v30  ;;  %vm2973_vm1 = vweird.f32 %v9265_v15  ;;  %v12259_v26 = vld [vmem:[#allocation126_spill] sm:$0xff] }
 0x6dd   : > { %v2976_v40 = vand.u32 2147483647, %v12241_v56  ;;  %v4768_v43 = vpack.c.bf16 %v4716_v55, %v4712_v5  ;;  %v4397_v2 = vsub.f32 1.0, %v4333_v57  ;;  %v3822_v4 = vadd.f32 -0.28449672, %v3758_v11  ;;  %vm2974_vm14 = vmor %vm2972_vm8, %vm2973_vm1  ;;  %v12258_v55 = vld [vmem:[#allocation119_spill] sm:$0xff] }
 0x6de   : > { %v12252_v34 = vand.u32 2147483648, %v12241_v56  ;;  %vm2987_vm2 = vweird.f32 %v9315_v9  ;;  %v4337_v27 = vmul.f32 %v12253_v12, %v4017_v8  ;;  %v3762_v41 = vmul.f32 %v3698_v6, %v10499_v21  ;;  %v12260_v6 = vld [vmem:[#allocation141_spill] sm:$0xff]  ;;  %v12264_v12 = vld [vmem:[#allocation136_spill] sm:$0xff] }
 0x6df   : > { %v2975_v7 = vsel %vm2974_vm14, %v9265_v15, %v2971_v62  ;;  %vm2977_vm3 = vcmp.eq.f32.partialorder %v2976_v40, 8.507059e+37  ;;  %5211 = vmatmul.bf16.gmra.mxu3 %v4768_v43  ;;  %v4525_v35 = vsub.f32 0.0, %v4397_v2  ;;  %v3886_v22 = vmul.f32 %v3822_v4, %v10483_v3  ;;  %v12261_v43 = vld [vmem:[#allocation147_spill] sm:$0xff] }
 0x6e0   : > { %v2979_v63 = vor.u32 1.1754944e-38, %v12252_v34  ;;  %v3503_v28 = vmul.f32 1.0614054, %v10533_v19  ;;  %v4401_v32 = vsub.f32 1.0, %v4337_v27  ;;  %v3826_v56 = vadd.f32 -0.28449672, %v3762_v41 }
 0x6e1   : > { %v2926_v42 = vadd.f32 %v9172_v53, %v12254_v61  ;;  %v4589_v5 = vsel %vm4461_vm11, %v4525_v35, %v4397_v2  ;;  %v3950_v15 = vadd.f32 0.2548296, %v3886_v22  ;;  %v2931_v1 = vand.u32 2147483647, %v12247_v49  ;;  %v12262_v34 = vld [vmem:[#allocation172_spill] sm:$0xff]  ;;  %v12265_v22 = vld [vmem:[#allocation161_spill] sm:$0xff] }
 0x6e2   : > { %v10547_v25 = vsel %vm2977_vm3, %v2979_v63, %v2975_v7  ;;  %v3567_v46 = vadd.f32 -1.4531521, %v3503_v28  ;;  %vm4462_vm4 = vcmp.lt.f32.partialorder %v12255_v31, 0.0  ;;  %v4529_v47 = vsub.f32 0.0, %v4401_v32 }
 0x6e3   : > { %v3507_v18 = vmul.f32 1.0614054, %v10547_v25  ;;  %v4653_v38 = vadd.f32 1.0, %v4589_v5  ;;  %v3890_v23 = vmul.f32 %v3826_v56, %v10499_v21  ;;  %v4014_v30 = vmul.f32 %v3950_v15, %v10483_v3 }
 0x6e4   : > { %v3631_v62 = vmul.f32 %v3567_v46, %v10533_v19  ;;  %v2930_v36 = vsel %vm10561_vm5, %v9172_v53, %v2926_v42  ;;  %vm2932_vm6 = vcmp.eq.f32.partialorder %v2931_v1, 8.507059e+37  ;;  %v4593_v49 = vsel %vm4465_vm0, %v4529_v47, %v4401_v32 }
 0x6e5   : > { %v3571_v10 = vadd.f32 -1.4531521, %v3507_v18  ;;  %v4717_v14 = vmul.f32 %v4653_v38, %v12258_v55  ;;  %v3954_v57 = vadd.f32 0.2548296, %v3890_v23  ;;  %vm4466_vm7 = vcmp.lt.f32.partialorder %v12259_v26, 0.0  ;;  %v12269_v26 = vld [vmem:[#allocation120_spill] sm:$0xff] }
 0x6e6   : > { %v4657_v8 = vadd.f32 1.0, %v4593_v49  ;;  %v4334_v3 = vmul.f32 %v12260_v6, %v4014_v30  ;;  %v3695_v40 = vadd.f32 1.4214138, %v3631_v62  ;;  %v10578_v2 = vsel %vm2932_vm6, %v12261_v43, %v2930_v36 }
 0x6e7   : > { %v3635_v11 = vmul.f32 %v3571_v10, %v10547_v25  ;;  %v4018_v53 = vmul.f32 %v3954_v57, %v10499_v21  ;;  %v2986_v63 = vadd.f32 %v12263_v45, %v12262_v34  ;;  %vm2988_vm8 = vweird.f32 %v12263_v45  ;;  %v12267_v57 = vld [vmem:[#allocation102_spill] sm:$0xff] }
 0x6e8   : > { %v4721_v27 = vmul.f32 %v4657_v8, %v12264_v12  ;;  %v4398_v41 = vsub.f32 1.0, %v4334_v3  ;;  %v3759_v7 = vmul.f32 %v3695_v40, %v10533_v19  ;;  %vm2989_vm9 = vmor %vm2987_vm2, %vm2988_vm8  ;;  %v2991_v35 = vand.u32 2147483647, %v9315_v9  ;;  %v12268_v3 = vld [vmem:[#allocation132_spill] sm:$0xff] }
 0x6e9   : > { %v3699_v4 = vadd.f32 1.4214138, %v3635_v11  ;;  %v4338_v28 = vmul.f32 %v12265_v22, %v4018_v53  ;;  %v2990_v32 = vsel %vm2989_vm9, %v12263_v45, %v2986_v63  ;;  %v12266_v56 = vand.u32 2147483648, %v9315_v9  ;;  %v12270_v63 = vld [vmem:[#allocation143_spill] sm:$0xff] }
 0x6ea   : > { %v4769_v61 = vpack.c.bf16 %v4721_v27, %v4717_v14  ;;  %v4526_v42 = vsub.f32 0.0, %v4398_v41  ;;  %v3823_v5 = vadd.f32 -0.28449672, %v3759_v7  ;;  %vm2992_vm10 = vcmp.eq.f32.partialorder %v2991_v35, 8.507059e+37  ;;  %v12271_v27 = vld [vmem:[#allocation150_spill] sm:$0xff] }
 0x6eb   : > { %v3763_v21 = vmul.f32 %v3699_v4, %v10547_v25  ;;  %v2994_v18 = vor.u32 1.1754944e-38, %v12266_v56  ;;  %v4402_v15 = vsub.f32 1.0, %v4338_v28  ;;  %v3504_v60 = vmul.f32 1.0614054, %v10578_v2 }
 0x6ec   : > { %v3842_v47 = vadd.f32 -0.28449672, %v10096_v50  ;;  %5069 = vmatmul.bf16.gmra.mxu0 %v4769_v61  ;;  %v4590_v38 = vsel %vm4462_vm4, %v4526_v42, %v4398_v41  ;;  %v3887_v23 = vmul.f32 %v3823_v5, %v10533_v19  ;;  %v3524_v10 = vmul.f32 1.0614054, %v10444_v54 }
 0x6ed   : > { %v3827_v46 = vadd.f32 -0.28449672, %v3763_v21  ;;  %v10594_v1 = vsel %vm2992_vm10, %v2994_v18, %v2990_v32  ;;  %v4530_v30 = vsub.f32 0.0, %v4402_v15  ;;  %v3568_v36 = vadd.f32 -1.4531521, %v3504_v60  ;;  %v12273_v60 = vld [vmem:[#allocation169_spill] sm:$0xff] }
 0x6ee   : > { %v3508_v9 = vmul.f32 1.0614054, %v10594_v1  ;;  %v4033_v49 = vmul.f32 %v10093_v29, %v9859_v52  ;;  %v4654_v55 = vadd.f32 1.0, %v4590_v38  ;;  %v3951_v14 = vadd.f32 0.2548296, %v3887_v23 }
 0x6ef   : > { %v3891_v62 = vmul.f32 %v3827_v46, %v10547_v25  ;;  %vm4463_vm11 = vcmp.lt.f32.partialorder %v12267_v57, 0.0  ;;  %v3715_v31 = vadd.f32 1.4214138, %v10153_v17  ;;  %v4594_v11 = vsel %vm4466_vm7, %v4530_v30, %v4402_v15 }
 0x6f0   : > { %v3572_v50 = vadd.f32 -1.4531521, %v3508_v9  ;;  %v3632_v6 = vmul.f32 %v3568_v36, %v10578_v2  ;;  %vm4467_vm12 = vcmp.lt.f32.partialorder %v12268_v3, 0.0  ;;  %v4271_v40 = vmul.f32 1.442695, %v9973_v37 }
 0x6f1   : > { %v3955_v8 = vadd.f32 0.2548296, %v3891_v62  ;;  %v4658_v43 = vadd.f32 1.0, %v4594_v11  ;;  %v4015_v52 = vmul.f32 %v3951_v14, %v10533_v19  ;;  %v3906_v53 = vmul.f32 %v3842_v47, %v9962_v24  ;;  %v12272_v19 = vld [vmem:[#allocation165_spill] sm:$0xff] }
 0x6f2   : > { %v3636_v29 = vmul.f32 %v3572_v50, %v10594_v1  ;;  %v3588_v4 = vadd.f32 -1.4531521, %v3524_v10  ;;  %v3696_v34 = vadd.f32 1.4214138, %v3632_v6  ;;  %v4718_v45 = vmul.f32 %v4654_v55, %v12269_v26  ;;  %v12274_v50 = vld [vmem:[#allocation114_spill] sm:$0xff] }
 0x6f3   : > { %v4019_v17 = vmul.f32 %v3955_v8, %v10547_v25  ;;  %v4722_v12 = vmul.f32 %v4658_v43, %v12270_v63  ;;  %v4335_v41 = vmul.f32 %v12271_v27, %v4015_v52  ;;  %v4353_v37 = vmul.f32 %v9998_v16, %v4033_v49  ;;  %v12276_v52 = vld [vmem:[#allocation127_spill] sm:$0xff]  ;;  %v12280_v27 = vld [vmem:[#allocation166_spill] sm:$0xff] }
 0x6f4   : > { %v3700_v7 = vadd.f32 1.4214138, %v3636_v29  ;;  %v3779_v35 = vmul.f32 %v3715_v31, %v10071_v39  ;;  %v3760_v28 = vmul.f32 %v3696_v34, %v10578_v2  ;;  %v4099_v21 = vsub.f32 0.0, %v9816_v59 }
 0x6f5   : > { %v4339_v22 = vmul.f32 %v12272_v19, %v4019_v17  ;;  %v4770_v32 = vpack.c.bf16 %v4722_v12, %v4718_v45  ;;  %v4399_v25 = vsub.f32 1.0, %v4335_v41  ;;  %v3648_v18 = vmul.f32 %v9970_v13, %v9922_v0  ;;  %v12279_v45 = vld [vmem:[#allocation184_spill] sm:$0xff] }
 0x6f6   : > { %v3764_v56 = vmul.f32 %v3700_v7, %v10594_v1  ;;  %v3970_v61 = vadd.f32 0.2548296, %v3906_v53  ;;  %v3824_v5 = vadd.f32 -0.28449672, %v3760_v28  ;;  %6139 = vpow2.f32 %v4271_v40  ;;  %v12277_v53 = vld [vmem:[#allocation148_spill] sm:$0xff] }
 0x6f7   : > { %v4403_v42 = vsub.f32 1.0, %v4339_v22  ;;  %v3652_v16 = vmul.f32 %v3588_v4, %v10444_v54  ;;  %5118 = vmatmul.bf16.gmra.mxu1 %v4770_v32  ;;  %v4527_v15 = vsub.f32 0.0, %v4399_v25  ;;  %vm4477_vm13 = vcmp.lt.f32.partialorder %v12273_v60, 0.0  ;;  %v12282_v22 = vld [vmem:[#allocation183_spill] sm:$0xff] }
 0x6f8   : > { %v3828_v46 = vadd.f32 -0.28449672, %v3764_v56  ;;  %v4417_v47 = vsub.f32 1.0, %v4353_v37  ;;  %v3843_v38 = vadd.f32 -0.28449672, %v3779_v35  ;;  %v3888_v9 = vmul.f32 %v3824_v5, %v10578_v2  ;;  %v12281_v35 = vld [vmem:[#allocation47_spill] sm:$0xff] }
 0x6f9   : > { %v4531_v23 = vsub.f32 0.0, %v4403_v42  ;;  %v3839_v10 = vadd.f32 -0.28449672, %v9947_v58  ;;  %v4163_v13 = vmul.f32 %v4099_v21, %v9816_v59  ;;  %v4591_v30 = vsel %vm4463_vm11, %v4527_v15, %v4399_v25  ;;  %v12275_v58 = vld [vmem:[#allocation153_spill] sm:$0xff]  ;;  %v12284_v21 = vld [vmem:[#allocation15_spill] sm:$0xff] }
 0x6fa   : > { %v3892_v62 = vmul.f32 %v3828_v46, %v10594_v1  ;;  %v4034_v36 = vmul.f32 %v3970_v61, %v9962_v24  ;;  %v4655_v55 = vadd.f32 1.0, %v4591_v30  ;;  %v3952_v14 = vadd.f32 0.2548296, %v3888_v9  ;;  %v12285_v25 = vld [vmem:[#allocation19_spill] sm:$0xff] }
 0x6fb   : > { %v4595_v49 = vsel %vm4467_vm12, %v4531_v23, %v4403_v42  ;;  %vm4464_vm15 = vcmp.lt.f32.partialorder %v12274_v50, 0.0  ;;  %v3716_v31 = vadd.f32 1.4214138, %v3652_v16  ;;  %v4773_v59 = vpack.c.bf16 %v9802_v20, %v9748_v44  ;;  %v12278_v20 = vld [vmem:[#allocation155_spill] sm:$0xff] }
 0x6fc   : > { %v4659_v11 = vadd.f32 1.0, %v4595_v49  ;;  %v3956_v8 = vadd.f32 0.2548296, %v3892_v62  ;;  %vm4468_vm0 = vcmp.lt.f32.partialorder %v12275_v58, 0.0  ;;  %v3712_v57 = vadd.f32 1.4214138, %v3648_v18  ;;  %v6140_v3 = vpop.eup %6139 }
 0x6fd   : > { %v4545_v6 = vsub.f32 0.0, %v4417_v47  ;;  %v3907_v40 = vmul.f32 %v3843_v38, %v10071_v39  ;;  %v4016_v24 = vmul.f32 %v3952_v14, %v10578_v2  ;;  %v4273_v43 = vmul.f32 1.442695, %v4163_v13  ;;  %5074 = vmatmul.bf16.gmra.mxu0 %v4773_v59  ;;  %v12286_v56 = vld [vmem:[#allocation179_spill] sm:$0xff]  ;;  %v12287_v62 = vld [vmem:[#allocation156_spill] sm:$0xff] }
 0x6fe   : > { %v4719_v29 = vmul.f32 %v4655_v55, %v12276_v52  ;;  %v4723_v4 = vmul.f32 %v4659_v11, %v12277_v53  ;;  %v4020_v17 = vmul.f32 %v3956_v8, %v10594_v1  ;;  %v3903_v34 = vmul.f32 %v3839_v10, %v9822_v48  ;;  %v12289_v14 = vld [vmem:[#allocation135_spill] sm:$0xff]  ;;  %v12294_v53 = vld [vmem:[#allocation160_spill] sm:$0xff] }
 0x6ff   : > { %vm4481_vm1 = vcmp.lt.f32.partialorder %v9680_v51, 0.0  ;;  %v4354_v44 = vmul.f32 %v6140_v3, %v4034_v36  ;;  %v4336_v26 = vmul.f32 %v12278_v20, %v4016_v24  ;;  %v4350_v63 = vmul.f32 %v12279_v45, %v9933_v33  ;;  %v12288_v36 = vld [vmem:[#allocation180_spill] sm:$0xff]  ;;  %v12297_v20 = vld [vmem:[#allocation185_spill] sm:$0xff] }
 0x700   : > { %v3780_v2 = vmul.f32 %v3716_v31, %v10444_v54  ;;  %v4771_v12 = vpack.c.bf16 %v4723_v4, %v4719_v29  ;;  %v4340_v41 = vmul.f32 %v12280_v27, %v4020_v17  ;;  %v4609_v7 = vsel %vm4481_vm1, %v4545_v6, %v4417_v47  ;;  %v12291_v6 = vld [vmem:[#allocation187_spill] sm:$0xff]  ;;  %v12299_v27 = vld [vmem:[#allocation181_spill] sm:$0xff] }
 0x701   : > { %v3971_v37 = vadd.f32 0.2548296, %v3907_v40  ;;  %v4100_v1 = vsub.f32 0.0, %v12281_v35  ;;  %v4400_v19 = vsub.f32 1.0, %v4336_v26  ;;  %v12283_v28 = vsub.f32 1.0, %v12282_v22  ;;  %v12293_v29 = vld [vmem:[#allocation159_spill] sm:$0xff] }
 0x702   : > { %v3776_v32 = vmul.f32 %v3712_v57, %v9922_v0  ;;  %6141 = vpow2.f32 %v4273_v43  ;;  %5167 = vmatmul.bf16.gmra.mxu2 %v4771_v12  ;;  %v4404_v33 = vsub.f32 1.0, %v4340_v41  ;;  %v4348_v18 = vmul.f32 %v12286_v56, %v12285_v25  ;;  %v12292_v43 = vld [vmem:[#allocation134_spill] sm:$0xff]  ;;  %v12295_v17 = vld [vmem:[#allocation171_spill] sm:$0xff] }
 0x703   : > { %v4605_v51 = vsel %vm4477_vm13, %v12284_v21, %v12283_v28  ;;  %v3967_v61 = vadd.f32 0.2548296, %v3903_v34  ;;  %v4418_v42 = vsub.f32 1.0, %v4354_v44  ;;  %v4528_v5 = vsub.f32 0.0, %v4400_v19  ;;  %v12296_v44 = vld [vmem:[#allocation176_spill] sm:$0xff]  ;;  %v12298_v12 = vld [vmem:[#allocation154_spill] sm:$0xff] }
 0x704   : > { %v4414_v16 = vsub.f32 1.0, %v4350_v63  ;;  %v4673_v15 = vadd.f32 1.0, %v4609_v7  ;;  %v3844_v46 = vadd.f32 -0.28449672, %v3780_v2  ;;  %v4532_v47 = vsub.f32 0.0, %v4404_v33  ;;  %v12300_v22 = vld [vmem:[#allocation174_spill] sm:$0xff] }
 0x705   : > { %v4669_v38 = vadd.f32 1.0, %v4605_v51  ;;  %v4035_v23 = vmul.f32 %v3971_v37, %v10071_v39  ;;  %v4164_v60 = vmul.f32 %v4100_v1, %v12281_v35  ;;  %v4592_v9 = vsel %vm4464_vm15, %v4528_v5, %v4400_v19  ;;  %v12301_v28 = vld [vmem:[#allocation158_spill] sm:$0xff] }
 0x706   : > { %v3840_v10 = vadd.f32 -0.28449672, %v3776_v32  ;;  %v4596_v13 = vsel %vm4468_vm0, %v4532_v47, %v4404_v33  ;;  %v4656_v30 = vadd.f32 1.0, %v4592_v9  ;;  %v4774_v49 = vpack.c.bf16 %v12288_v36, %v12287_v62  ;;  %v12302_v51 = vld [vmem:[#allocation146_spill] sm:$0xff] }
 0x707   : > { %v4031_v55 = vmul.f32 %v3967_v61, %v9822_v48  ;;  %v12290_v31 = vsub.f32 0.0, %v12289_v14  ;;  %v4546_v39 = vsub.f32 0.0, %v4418_v42  ;;  %v4660_v8 = vadd.f32 1.0, %v4596_v13 }
 0x708   : > { %v6142_v59 = vpop.eup %6141  ;;  %v4412_v57 = vsub.f32 1.0, %v4348_v18  ;;  %v4542_v50 = vsub.f32 0.0, %v4414_v16  ;;  %v4737_v40 = vmul.f32 %v4673_v15, %v12291_v6  ;;  %v3908_v58 = vmul.f32 %v3844_v46, %v10444_v54  ;;  %5123 = vmatmul.bf16.gmra.mxu1 %v4774_v49  ;;  %v12304_v18 = vld [vmem:[#allocation168_spill] sm:$0xff]  ;;  %v12311_v6 = vld [vmem:[#allocation173_spill] sm:$0xff] }
 0x709   : > { %v4160_v11 = vmul.f32 %v12290_v31, %v12289_v14  ;;  %v4355_v24 = vmul.f32 %v6142_v59, %v4035_v23  ;;  %v4275_v3 = vmul.f32 1.442695, %v4164_v60  ;;  %v4720_v52 = vmul.f32 %v4656_v30, %v12292_v43  ;;  %v12309_v31 = vld [vmem:[#allocation178_spill] sm:$0xff] }
 0x70a   : > { %v4724_v48 = vmul.f32 %v4660_v8, %v12293_v29  ;;  %v4733_v4 = vmul.f32 %v4669_v38, %v12294_v53  ;;  %vm4478_vm14 = vcmp.lt.f32.partialorder %v12295_v17, 0.0  ;;  %v3904_v34 = vmul.f32 %v3840_v10, %v9922_v0  ;;  %v12306_v38 = vld [vmem:[#allocation144_spill] sm:$0xff]  ;;  %v12308_v10 = vld [vmem:[#allocation170_spill] sm:$0xff]  ;;  %v12310_v8 = vld [vmem:[#allocation167_spill] sm:$0xff] }
 0x70b   : > { %vm4482_vm2 = vcmp.lt.f32.partialorder %v12296_v44, 0.0  ;;  %v4351_v26 = vmul.f32 %v12297_v20, %v4031_v55  ;;  %v4267_v45 = vmul.f32 1.442695, %v4160_v11  ;;  %v4731_v41 = vmul.f32 %v12299_v27, %v12298_v12  ;;  %v12314_v44 = vld [vmem:[#allocation177_spill] sm:$0xff] }
 0x70c   : > { %v4610_v63 = vsel %vm4482_vm2, %v4546_v39, %v4418_v42  ;;  %v4772_v2 = vpack.c.bf16 %v4724_v48, %v4720_v52  ;;  %v4540_v7 = vsub.f32 0.0, %v4412_v57  ;;  %v3972_v37 = vadd.f32 0.2548296, %v3908_v58  ;;  %v12305_v42 = vld [vmem:[#allocation175_spill] sm:$0xff] }
 0x70d   : > { %v4777_v35 = vpack.c.bf16 %v4737_v40, %v4733_v4  ;;  %v4606_v1 = vsel %vm4478_vm14, %v4542_v50, %v4414_v16  ;;  %v4419_v19 = vsub.f32 1.0, %v4355_v24  ;;  %6143 = vpow2.f32 %v4275_v3  ;;  %v2040_v50 = vpop.f32.mrf.mxu0  ;;  %v12313_v48 = vld [vmem:[#allocation23_spill] sm:$0xff] }
 0x70e   : > { %5216 = vmatmul.bf16.gmra.mxu3 %v4772_v2  ;;  %v4727_v21 = vmul.f32 %v12301_v28, %v12300_v22  ;;  %v12303_v32 = vsub.f32 1.0, %v12302_v51  ;;  %v3968_v25 = vadd.f32 0.2548296, %v3904_v34  ;;  %v4674_v56 = vadd.f32 1.0, %v4610_v63  ;;  %v12317_v22 = vld [vmem:[#allocation162_spill] sm:$0xff] }
 0x70f   : > { %5079 = vmatmul.bf16.gmra.mxu0 %v4777_v35  ;;  %vm4476_vm3 = vcmp.lt.f32.partialorder %v12304_v18, 0.0  ;;  %v4415_v61 = vsub.f32 1.0, %v4351_v26  ;;  %6145 = vpow2.f32 %v4267_v45  ;;  %v2242_v5 = vmul.f32 0.5, %v12305_v42  ;;  %v12315_v45 = vld [vmem:[#allocation110_spill] sm:$0xff]  ;;  %v12319_v18 = vld [vmem:[#allocation35_spill] sm:$0xff] }
 0x710   : > { %v4536_v33 = vsub.f32 0.0, %v12303_v32  ;;  %v4604_v15 = vsel %vm4476_vm3, %v4540_v7, %v4412_v57  ;;  %v4670_v16 = vadd.f32 1.0, %v4606_v1  ;;  %v4036_v46 = vmul.f32 %v3972_v37, %v10444_v54  ;;  %v12316_v37 = vld [vmem:[#allocation186_spill] sm:$0xff] }
 0x711   : > { %v4775_v47 = vpack.c.bf16 %v4731_v41, %v4727_v21  ;;  %vm4472_vm4 = vcmp.lt.f32.partialorder %v12306_v38, 0.0  ;;  %v4547_v23 = vsub.f32 0.0, %v4419_v19  ;;  %v12307_v60 = vmov %v12303_v32  ;;  %v2089_v32 = vpop.f32.mrf.mxu1  ;;  %v12320_v42 = vld [vmem:[#allocation138_spill] sm:$0xff] }
 0x712   : > { %v4600_v9 = vsel %vm4472_vm4, %v4536_v33, %v12307_v60  ;;  %v2238_v13 = vmul.f32 0.5, %v12308_v10  ;;  %v4032_v30 = vmul.f32 %v3968_v25, %v9922_v0  ;;  %v4738_v62 = vmul.f32 %v4674_v56, %v2242_v5  ;;  %v12312_v0 = vld [vmem:[#allocation137_spill] sm:$0xff]  ;;  %v12318_v25 = vld [vmem:[#allocation182_spill] sm:$0xff] }
 0x713   : > { %5172 = vmatmul.bf16.gmra.mxu2 %v4775_v47  ;;  %v6144_v36 = vpop.eup %6143  ;;  %v4668_v49 = vadd.f32 1.0, %v4604_v15  ;;  %v4543_v55 = vsub.f32 0.0, %v4415_v61  ;;  %vm4483_vm5 = vcmp.lt.f32.partialorder %v12309_v31, 0.0  ;;  %v4664_v39 = vadd.f32 1.0, %v4600_v9 }
 0x714   : > { %v4734_v14 = vmul.f32 %v4670_v16, %v2238_v13  ;;  %v4356_v54 = vmul.f32 %v6144_v36, %v4036_v46  ;;  %v2236_v59 = vmul.f32 0.5, %v12310_v8  ;;  %v4611_v57 = vsel %vm4483_vm5, %v4547_v23, %v4419_v19 }
 0x715   : > { %v6146_v11 = vpop.eup %6145  ;;  %vm4479_vm6 = vcmp.lt.f32.partialorder %v12311_v6, 0.0  ;;  %v2232_v24 = vmul.f32 0.5, %v12312_v0  ;;  %v4675_v52 = vadd.f32 1.0, %v4611_v57  ;;  %v10704_v53 = vadd.f32 %v2040_v50, %v12313_v48 }
 0x716   : > { %v4352_v40 = vmul.f32 %v6146_v11, %v4032_v30  ;;  %v4778_v58 = vpack.c.bf16 %v4738_v62, %v4734_v14  ;;  %v4732_v3 = vmul.f32 %v4668_v49, %v2236_v59  ;;  %v4607_v43 = vsel %vm4479_vm6, %v4543_v55, %v4415_v61  ;;  %v2138_v49 = vpop.f32.mrf.mxu2  ;;  %v12321_v55 = vld [vmem:[#allocation73_spill] sm:$0xff] }
 0x717   : > { %v4420_v29 = vsub.f32 1.0, %v4356_v54  ;;  %v4728_v4 = vmul.f32 %v4664_v39, %v2232_v24  ;;  %v4671_v17 = vadd.f32 1.0, %v4607_v43  ;;  %v2243_v20 = vmul.f32 0.5, %v12314_v44 }
 0x718   : > { %5128 = vmatmul.bf16.gmra.mxu1 %v4778_v58  ;;  %v4416_v34 = vsub.f32 1.0, %v4352_v40  ;;  %v2239_v63 = vmul.f32 0.5, %v12315_v45  ;;  %v10709_v27 = vmul.f32 0.70710677, %v10704_v53  ;;  %vm4484_vm7 = vcmp.lt.f32.partialorder %v12316_v37, 0.0 }
 0x719   : > { %v4776_v26 = vpack.c.bf16 %v4732_v3, %v4728_v4  ;;  %v4739_v2 = vmul.f32 %v4675_v52, %v2243_v20  ;;  %v4548_v12 = vsub.f32 0.0, %v4420_v29  ;;  %vm4480_vm8 = vcmp.lt.f32.partialorder %v12317_v22, 0.0 }
 0x71a   : > { %v4735_v41 = vmul.f32 %v4671_v17, %v2239_v63  ;;  %v4544_v7 = vsub.f32 0.0, %v4416_v34  ;;  %v10713_v19 = vand.u32 2147483647, %v10709_v27  ;;  %v2244_v56 = vmul.f32 0.5, %v12318_v25 }
 0x71b   : > { %v4612_v35 = vsel %vm4484_vm7, %v4548_v12, %v4420_v29  ;;  %v10719_v61 = vadd.f32 %v2089_v32, %v12319_v18  ;;  %v2240_v5 = vmul.f32 0.5, %v12320_v42  ;;  %v10730_v14 = vadd.f32 %v2138_v49, %v12321_v55  ;;  %v2187_v12 = vpop.f32.mrf.mxu3 }
 0x71c   : > { %v4779_v1 = vpack.c.bf16 %v4739_v2, %v4735_v41  ;;  %v4608_v28 = vsel %vm4480_vm8, %v4544_v7, %v4416_v34  ;;  %v4676_v21 = vadd.f32 1.0, %v4612_v35  ;;  %v2437_v51 = vmul.f32 0.3275911, %v10713_v19  ;;  %v12322_v7 = vld [vmem:[#allocation79_spill] sm:$0xff] }
 0x71d   : > { %v4672_v33 = vadd.f32 1.0, %v4608_v28  ;;  %v10723_v16 = vmul.f32 0.70710677, %v10719_v61  ;;  %v10733_v54 = vmul.f32 0.70710677, %v10730_v14  ;;  %v10747_v37 = vadd.f32 %v2187_v12, %v12322_v7 }
 0x71e   : > { %5221 = vmatmul.bf16.gmra.mxu3 %v4776_v26  ;;  %v4740_v15 = vmul.f32 %v4676_v21, %v2244_v56  ;;  %v2501_v46 = vadd.f32 1.0, %v2437_v51 }
 0x71f   : > { %v4736_v47 = vmul.f32 %v4672_v33, %v2240_v5  ;;  %v10726_v38 = vand.u32 2147483647, %v10723_v16  ;;  %v10736_v39 = vand.u32 2147483647, %v10733_v54 }
 0x720   : > { %6147 = vrcp.f32 %v2501_v46  ;;  %v3248_v59 = vand.u32 2147483648, %v2501_v46  ;;  %vm3242_vm10 = vweird.f32 %v2501_v46  ;;  %v3246_v50 = vand.u32 2147483647, %v2501_v46 }
 0x721   : > { %v4780_v23 = vpack.c.bf16 %v4740_v15, %v4736_v47  ;;  %v2438_v60 = vmul.f32 0.3275911, %v10726_v38  ;;  %v2439_v57 = vmul.f32 0.3275911, %v10736_v39 }
 0x722   : > { %v3249_v0 = vor.u32 1.1754944e-38, %v3248_v59  ;;  %vm3247_vm12 = vcmp.eq.f32.partialorder %v3246_v50, 8.507059e+37 }
 0x723   : > { %5177 = vmatmul.bf16.gmra.mxu2 %v4779_v1  ;;  %v2502_v9 = vadd.f32 1.0, %v2438_v60  ;;  %v2503_v40 = vadd.f32 1.0, %v2439_v57  ;;  %v10750_v1 = vmul.f32 0.70710677, %v10747_v37 }
 0x725   : > { %6149 = vrcp.f32 %v2502_v9  ;;  %v3263_v43 = vand.u32 2147483648, %v2502_v9  ;;  %vm3257_vm15 = vweird.f32 %v2502_v9  ;;  %v3261_v52 = vand.u32 2147483647, %v2502_v9 }
 0x726   : > { %v6148_v10 = vpop.eup %6147  ;;  %6151 = vrcp.f32 %v2503_v40  ;;  %v3278_v21 = vand.u32 2147483648, %v2503_v40  ;;  %v10753_v51 = vand.u32 2147483647, %v10750_v1  ;;  %vm3272_vm2 = vweird.f32 %v2503_v40 }
 0x727   : > { %v3238_v13 = vmul.f32 %v6148_v10, %v2501_v46  ;;  %vm3243_vm9 = vweird.f32 %v6148_v10  ;;  %v3264_v34 = vor.u32 1.1754944e-38, %v3263_v43  ;;  %vm3262_vm1 = vcmp.eq.f32.partialorder %v3261_v52, 8.507059e+37 }
 0x728   : > { %vm3244_vm11 = vmor %vm3242_vm10, %vm3243_vm9  ;;  %v3276_v32 = vand.u32 2147483647, %v2503_v40  ;;  %v2440_v25 = vmul.f32 0.3275911, %v10753_v51  ;;  %v3279_v5 = vor.u32 1.1754944e-38, %v3278_v21  ;;  %v4101_v46 = vsub.f32 0.0, %v10713_v19 }
 0x729   : > { %v3239_v62 = vsub.f32 1.0, %v3238_v13  ;;  %vm4485_vm9 = vcmp.lt.f32.partialorder %v10709_v27, 0.0 }
 0x72a   : > { %v2504_v15 = vadd.f32 1.0, %v2440_v25  ;;  %vm3277_vm4 = vcmp.eq.f32.partialorder %v3276_v32, 8.507059e+37 }
 0x72b   : > { %v6150_v30 = vpop.eup %6149  ;;  %v3240_v31 = vmul.f32 %v6148_v10, %v3239_v62 }
 0x72c   : > { %v3253_v36 = vmul.f32 %v6150_v30, %v2502_v9  ;;  %vm3258_vm13 = vweird.f32 %v6150_v30  ;;  %v6152_v17 = vpop.eup %6151  ;;  %6153 = vrcp.f32 %v2504_v15  ;;  %vm3287_vm6 = vweird.f32 %v2504_v15 }
 0x72d   : > { %v3241_v8 = vadd.f32 %v6148_v10, %v3240_v31  ;;  %vm3259_vm0 = vmor %vm3257_vm15, %vm3258_vm13  ;;  %v3268_v44 = vmul.f32 %v6152_v17, %v2503_v40  ;;  %vm3273_vm14 = vweird.f32 %v6152_v17 }
 0x72e   : > { %5226 = vmatmul.bf16.gmra.mxu3 %v4780_v23  ;;  %v3254_v11 = vsub.f32 1.0, %v3253_v36  ;;  %vm3274_vm3 = vmor %vm3272_vm2, %vm3273_vm14 }
 0x72f   : > { %v3245_v58 = vsel %vm3244_vm11, %v6148_v10, %v3241_v8  ;;  %v3269_v45 = vsub.f32 1.0, %v3268_v44  ;;  %v4165_v10 = vmul.f32 %v4101_v46, %v10713_v19  ;;  %v3293_v19 = vand.u32 2147483648, %v2504_v15 }
 0x730   : > { %v3255_v6 = vmul.f32 %v6150_v30, %v3254_v11  ;;  %v10739_v3 = vsel %vm3247_vm12, %v3249_v0, %v3245_v58  ;;  %v3291_v0 = vand.u32 2147483647, %v2504_v15  ;;  %vm4486_vm11 = vcmp.lt.f32.partialorder %v10723_v16, 0.0 }
 0x731   : > { %v3525_v29 = vmul.f32 1.0614054, %v10739_v3  ;;  %v3270_v2 = vmul.f32 %v6152_v17, %v3269_v45  ;;  %v4277_v11 = vmul.f32 1.442695, %v4165_v10 }
 0x732   : > { %v3256_v24 = vadd.f32 %v6150_v30, %v3255_v6  ;;  %v6154_v62 = vpop.eup %6153  ;;  %vm3292_vm8 = vcmp.eq.f32.partialorder %v3291_v0, 8.507059e+37 }
 0x733   : > { %v3589_v26 = vadd.f32 -1.4531521, %v3525_v29  ;;  %v3271_v22 = vadd.f32 %v6152_v17, %v3270_v2  ;;  %v3283_v31 = vmul.f32 %v6154_v62, %v2504_v15  ;;  %vm3288_vm5 = vweird.f32 %v6154_v62 }
 0x734   : > { %v3260_v4 = vsel %vm3259_vm0, %v6150_v30, %v3256_v24  ;;  %v4102_v30 = vsub.f32 0.0, %v10726_v38  ;;  %6155 = vpow2.f32 %v4277_v11  ;;  %v2042_v24 = vpop.f32.mrf.mxu0  ;;  %vm3289_vm7 = vmor %vm3287_vm6, %vm3288_vm5  ;;  %vm4487_vm0 = vcmp.lt.f32.partialorder %v10733_v54, 0.0 }
 0x735   : > { %v10742_v20 = vsel %vm3262_vm1, %v3264_v34, %v3260_v4  ;;  %v3653_v41 = vmul.f32 %v3589_v26, %v10739_v3  ;;  %v3275_v56 = vsel %vm3274_vm3, %v6152_v17, %v3271_v22  ;;  %v3284_v57 = vsub.f32 1.0, %v3283_v31 }
 0x736   : > { %v3526_v63 = vmul.f32 1.0614054, %v10742_v20  ;;  %v10759_v23 = vsel %vm3277_vm4, %v3279_v5, %v3275_v56  ;;  %v4166_v59 = vmul.f32 %v4102_v30, %v10726_v38  ;;  %v10770_v29 = vadd.f32 %v2042_v24, %v12313_v48 }
 0x737   : > { %v3717_v28 = vadd.f32 1.4214138, %v3653_v41  ;;  %v3527_v9 = vmul.f32 1.0614054, %v10759_v23  ;;  %v3285_v40 = vmul.f32 %v6154_v62, %v3284_v57  ;;  %v3294_v34 = vor.u32 1.1754944e-38, %v3293_v19 }
 0x738   : > { %v3590_v35 = vadd.f32 -1.4531521, %v3526_v63  ;;  %v4279_v43 = vmul.f32 1.442695, %v4166_v59  ;;  %v10774_v44 = vmul.f32 0.70710677, %v10770_v29  ;;  %v2189_v59 = vpop.f32.mrf.mxu3 }
 0x739   : > { %v3781_v42 = vmul.f32 %v3717_v28, %v10739_v3  ;;  %v3591_v49 = vadd.f32 -1.4531521, %v3527_v9  ;;  %v3286_v52 = vadd.f32 %v6154_v62, %v3285_v40  ;;  %v4104_v19 = vsub.f32 0.0, %v10753_v51 }
 0x73a   : > { %v3654_v33 = vmul.f32 %v3590_v35, %v10742_v20  ;;  %6157 = vpow2.f32 %v4279_v43  ;;  %v10779_v63 = vand.u32 2147483647, %v10774_v44  ;;  %v6156_v2 = vpop.eup %6155  ;;  %v10811_v43 = vadd.f32 %v2189_v59, %v12322_v7 }
 0x73b   : > { %v3845_v60 = vadd.f32 -0.28449672, %v3781_v42  ;;  %v3655_v6 = vmul.f32 %v3591_v49, %v10759_v23  ;;  %v3290_v17 = vsel %vm3289_vm7, %v6154_v62, %v3286_v52  ;;  %v2091_v42 = vpop.f32.mrf.mxu1  ;;  %v2140_v62 = vpop.f32.mrf.mxu2 }
 0x73c   : > { %v3718_v47 = vadd.f32 1.4214138, %v3654_v33  ;;  %v10776_v45 = vsel %vm3292_vm8, %v3294_v34, %v3290_v17  ;;  %v2441_v35 = vmul.f32 0.3275911, %v10779_v63  ;;  %v10788_v46 = vadd.f32 %v2091_v42, %v12319_v18 }
 0x73d   : > { %v3909_v36 = vmul.f32 %v3845_v60, %v10739_v3  ;;  %v3719_v4 = vadd.f32 1.4214138, %v3655_v6  ;;  %v3528_v28 = vmul.f32 1.0614054, %v10776_v45 }
 0x73e   : > { %v3782_v13 = vmul.f32 %v3718_v47, %v10742_v20  ;;  %v2505_v21 = vadd.f32 1.0, %v2441_v35  ;;  %v10791_v47 = vmul.f32 0.70710677, %v10788_v46 }
 0x73f   : > { %v3973_v50 = vadd.f32 0.2548296, %v3909_v36  ;;  %v3783_v41 = vmul.f32 %v3719_v4, %v10759_v23  ;;  %v3592_v15 = vadd.f32 -1.4531521, %v3528_v28  ;;  %v2045_v4 = vpop.f32.mrf.mxu0  ;;  %v2245_v28 = vmul.f32 0.5, %v10704_v53 }
 0x740   : > { %v3846_v8 = vadd.f32 -0.28449672, %v3782_v13  ;;  %v6158_v32 = vpop.eup %6157  ;;  %6159 = vrcp.f32 %v2505_v21  ;;  %v10796_v30 = vand.u32 2147483647, %v10791_v47  ;;  %v3308_v0 = vand.u32 2147483648, %v2505_v21 }
 0x741   : > { %v4037_v38 = vmul.f32 %v3973_v50, %v10739_v3  ;;  %v4103_v3 = vsub.f32 0.0, %v10736_v39  ;;  %v3847_v25 = vadd.f32 -0.28449672, %v3783_v41  ;;  %v3656_v13 = vmul.f32 %v3592_v15, %v10776_v45 }
 0x742   : > { %v3910_v58 = vmul.f32 %v3846_v8, %v10742_v20  ;;  %v2442_v49 = vmul.f32 0.3275911, %v10796_v30  ;;  %v10801_v8 = vadd.f32 %v2140_v62, %v12321_v55  ;;  %vm3302_vm12 = vweird.f32 %v2505_v21 }
 0x743   : > { %v4357_v12 = vmul.f32 %v6156_v2, %v4037_v38  ;;  %v4167_v56 = vmul.f32 %v4103_v3, %v10736_v39  ;;  %v3720_v50 = vadd.f32 1.4214138, %v3656_v13  ;;  %v4168_v41 = vmul.f32 %v4104_v19, %v10753_v51 }
 0x744   : > { %v3974_v26 = vadd.f32 0.2548296, %v3910_v58  ;;  %v10803_v40 = vadd.f32 1.0, %v2442_v49  ;;  %v3306_v58 = vand.u32 2147483647, %v2505_v21  ;;  %v3309_v3 = vor.u32 1.1754944e-38, %v3308_v0 }
 0x745   : > { %v4421_v33 = vsub.f32 1.0, %v4357_v12  ;;  %v4281_v9 = vmul.f32 1.442695, %v4167_v56  ;;  %v10807_v27 = vmul.f32 0.70710677, %v10801_v8  ;;  %v3784_v12 = vmul.f32 %v3720_v50, %v10776_v45  ;;  %v2094_v50 = vpop.f32.mrf.mxu1 }
 0x746   : > { %v4038_v22 = vmul.f32 %v3974_v26, %v10742_v20  ;;  %v3911_v20 = vmul.f32 %v3847_v25, %v10759_v23  ;;  %v6160_v39 = vpop.eup %6159  ;;  %vm3307_vm15 = vcmp.eq.f32.partialorder %v3306_v58, 8.507059e+37  ;;  %v2246_v25 = vmul.f32 0.5, %v10719_v61 }
 0x747   : > { %v4549_v60 = vsub.f32 0.0, %v4421_v33  ;;  %v3298_v36 = vmul.f32 %v6160_v39, %v2505_v21  ;;  %6161 = vpow2.f32 %v4281_v9  ;;  %vm3303_vm10 = vweird.f32 %v6160_v39 }
 0x748   : > { %v4358_v5 = vmul.f32 %v6158_v32, %v4038_v22  ;;  %v3975_v11 = vadd.f32 0.2548296, %v3911_v20  ;;  %6163 = vrcp.f32 %v10803_v40  ;;  %v10816_v38 = vand.u32 2147483647, %v10807_v27  ;;  %vm3304_vm13 = vmor %vm3302_vm12, %vm3303_vm10 }
 0x749   : > { %v4613_v31 = vsel %vm4485_vm9, %v4549_v60, %v4421_v33  ;;  %v3299_v6 = vsub.f32 1.0, %v3298_v36  ;;  %v10825_v22 = vadd.f32 %v2045_v4, %v12313_v48  ;;  %v10838_v15 = vmul.f32 0.5, %v10730_v14 }
 0x74a   : > { %v4422_v10 = vsub.f32 1.0, %v4358_v5  ;;  %v4039_v52 = vmul.f32 %v3975_v11, %v10759_v23  ;;  %v4677_v17 = vadd.f32 1.0, %v4613_v31  ;;  %v2443_v35 = vmul.f32 0.3275911, %v10816_v38 }
 0x74b   : > { %v3300_v24 = vmul.f32 %v6160_v39, %v3299_v6  ;;  %v10822_v23 = vmul.f32 0.70710677, %v10811_v43  ;;  %v4283_v60 = vmul.f32 1.442695, %v4168_v41  ;;  %v3848_v9 = vadd.f32 -0.28449672, %v3784_v12 }
 0x74c   : > { %v4550_v57 = vsub.f32 0.0, %v4422_v10  ;;  %v10830_v33 = vadd.f32 1.0, %v2443_v35  ;;  %v10842_v20 = vmul.f32 %v4677_v17, %v2245_v28  ;;  %v10845_v61 = vmul.f32 0.70710677, %v10825_v22 }
 0x74d   : > { %v3301_v26 = vadd.f32 %v6160_v39, %v3300_v24  ;;  %v6162_v2 = vpop.eup %6161  ;;  %v10835_v5 = vand.u32 2147483647, %v10822_v23  ;;  %v10852_v36 = vmul.f32 0.5, %v10747_v37  ;;  %v3321_v49 = vand.u32 2147483647, %v10803_v40 }
 0x74e   : > { %v4614_v34 = vsel %vm4486_vm11, %v4550_v57, %v4422_v10  ;;  %v4359_v21 = vmul.f32 %v6162_v2, %v4039_v52  ;;  %v6164_v51 = vpop.eup %6163  ;;  %6165 = vrcp.f32 %v10830_v33  ;;  %v3323_v31 = vand.u32 2147483648, %v10803_v40 }
 0x74f   : > { %v3305_v16 = vsel %vm3304_vm13, %v6160_v39, %v3301_v26  ;;  %v4678_v56 = vadd.f32 1.0, %v4614_v34  ;;  %v3313_v53 = vmul.f32 %v6164_v51, %v10803_v40  ;;  %v2444_v62 = vmul.f32 0.3275911, %v10835_v5 }
 0x750   : > { %v10828_v32 = vsel %vm3307_vm15, %v3309_v3, %v3305_v16  ;;  %v4423_v13 = vsub.f32 1.0, %v4359_v21  ;;  %vm3318_vm1 = vweird.f32 %v6164_v51  ;;  %v3912_v6 = vmul.f32 %v3848_v9, %v10776_v45 }
 0x751   : > { %v3529_v42 = vmul.f32 1.0614054, %v10828_v32  ;;  %v3314_v39 = vsub.f32 1.0, %v3313_v53  ;;  %v10849_v14 = vmul.f32 %v4678_v56, %v2246_v25  ;;  %v10857_v57 = vadd.f32 1.0, %v2444_v62 }
 0x752   : > { %6167 = vpow2.f32 %v4283_v60  ;;  %v10861_v19 = vmul.f32 0.5, %v10770_v29  ;;  %v10864_v37 = vand.u32 2147483647, %v10845_v61  ;;  %v4551_v0 = vsub.f32 0.0, %v4423_v13 }
 0x753   : > { %v3593_v10 = vadd.f32 -1.4531521, %v3529_v42  ;;  %v3315_v59 = vmul.f32 %v6164_v51, %v3314_v39  ;;  %vm3317_vm14 = vweird.f32 %v10803_v40  ;;  %6169 = vrcp.f32 %v10857_v57 }
 0x754   : > { %v6166_v58 = vpop.eup %6165  ;;  %v4105_v52 = vsub.f32 0.0, %v10779_v63  ;;  %vm3319_vm2 = vmor %vm3317_vm14, %vm3318_vm1  ;;  %v3324_v4 = vor.u32 1.1754944e-38, %v3323_v31  ;;  %v10871_v34 = vadd.f32 %v2094_v50, %v12319_v18  ;;  %vm3322_vm3 = vcmp.eq.f32.partialorder %v3321_v49, 8.507059e+37 }
 0x755   : > { %v3657_v11 = vmul.f32 %v3593_v10, %v10828_v32  ;;  %v3316_v24 = vadd.f32 %v6164_v51, %v3315_v59  ;;  %v3328_v17 = vmul.f32 %v6166_v58, %v10830_v33  ;;  %v2445_v2 = vmul.f32 0.3275911, %v10864_v37 }
 0x756   : > { %12323 = vst [vmem:[#allocation64_spill] sm:$0xff] %v10871_v34  ;;  %v3976_v12 = vadd.f32 0.2548296, %v3912_v6  ;;  %v4106_v40 = vsub.f32 0.0, %v10796_v30  ;;  %v3336_v16 = vand.u32 2147483647, %v10830_v33  ;;  %vm3333_vm4 = vweird.f32 %v6166_v58 }
 0x757   : > { %v3721_v29 = vadd.f32 1.4214138, %v3657_v11  ;;  %v3320_v26 = vsel %vm3319_vm2, %v6164_v51, %v3316_v24  ;;  %v3329_v3 = vsub.f32 1.0, %v3328_v17  ;;  %v3338_v28 = vand.u32 2147483648, %v10830_v33 }
 0x758   : > { %v10874_v41 = vsel %vm3322_vm3, %v3324_v4, %v3320_v26  ;;  %v10880_v21 = vadd.f32 1.0, %v2445_v2  ;;  %v6168_v25 = vpop.eup %6167  ;;  %v4615_v51 = vsel %vm4487_vm0, %v4551_v0, %v4423_v13  ;;  %v10885_v42 = vmul.f32 0.70710677, %v10871_v34 }
 0x759   : > { %v3530_v35 = vmul.f32 1.0614054, %v10874_v41  ;;  %v3330_v56 = vmul.f32 %v6166_v58, %v3329_v3  ;;  %v6170_v60 = vpop.eup %6169  ;;  %v3785_v53 = vmul.f32 %v3721_v29, %v10828_v32  ;;  %v4169_v9 = vmul.f32 %v4105_v52, %v10779_v63 }
 0x75a   : > { %6171 = vrcp.f32 %v10880_v21  ;;  %v4040_v39 = vmul.f32 %v3976_v12, %v10776_v45  ;;  %vm3332_vm5 = vweird.f32 %v10830_v33  ;;  %v3343_v54 = vmul.f32 %v6170_v60, %v10857_v57 }
 0x75b   : > { %v3594_v10 = vadd.f32 -1.4531521, %v3530_v35  ;;  %v3331_v62 = vadd.f32 %v6166_v58, %v3330_v56  ;;  %v4170_v49 = vmul.f32 %v4106_v40, %v10796_v30  ;;  %vm3334_vm6 = vmor %vm3332_vm5, %vm3333_vm4  ;;  %vm3337_vm7 = vcmp.eq.f32.partialorder %v3336_v16, 8.507059e+37 }
 0x75c   : > { %v3339_v31 = vor.u32 1.1754944e-38, %v3338_v28  ;;  %v3344_v59 = vsub.f32 1.0, %v3343_v54  ;;  %v3351_v63 = vand.u32 2147483647, %v10857_v57  ;;  %v10897_v50 = vand.u32 2147483647, %v10885_v42 }
 0x75d   : > { %v3658_v13 = vmul.f32 %v3594_v10, %v10874_v41  ;;  %v3335_v11 = vsel %vm3334_vm6, %v6166_v58, %v3331_v62  ;;  %v3849_v45 = vadd.f32 -0.28449672, %v3785_v53  ;;  %v3353_v33 = vand.u32 2147483648, %v10857_v57 }
 0x75e   : > { %v10899_v0 = vsel %vm3337_vm7, %v3339_v31, %v3335_v11  ;;  %v3345_v52 = vmul.f32 %v6170_v60, %v3344_v59  ;;  %vm3348_vm8 = vweird.f32 %v6170_v60  ;;  %v2446_v30 = vmul.f32 0.3275911, %v10897_v50  ;;  %v2143_v59 = vpop.f32.mrf.mxu2 }
 0x75f   : > { %v3722_v6 = vadd.f32 1.4214138, %v3658_v13  ;;  %v3531_v24 = vmul.f32 1.0614054, %v10899_v0  ;;  %v4679_v58 = vadd.f32 1.0, %v4615_v51  ;;  %v10904_v17 = vmul.f32 %v6168_v25, %v4040_v39 }
 0x760   : > { %v6172_v4 = vpop.eup %6171  ;;  %v4285_v29 = vmul.f32 1.442695, %v4169_v9  ;;  %v4287_v26 = vmul.f32 1.442695, %v4170_v49  ;;  %v3346_v12 = vadd.f32 %v6170_v60, %v3345_v52  ;;  %vm3347_vm9 = vweird.f32 %v10857_v57 }
 0x761   : > { %v3595_v2 = vadd.f32 -1.4531521, %v3531_v24  ;;  %v3358_v40 = vmul.f32 %v6172_v4, %v10880_v21  ;;  %v3786_v3 = vmul.f32 %v3722_v6, %v10874_v41  ;;  %vm3349_vm10 = vmor %vm3347_vm9, %vm3348_vm8  ;;  %vm3352_vm11 = vcmp.eq.f32.partialorder %v3351_v63, 8.507059e+37  ;;  %v2192_v24 = vpop.f32.mrf.mxu3 }
 0x762   : > { %v3354_v35 = vor.u32 1.1754944e-38, %v3353_v33  ;;  %v10909_v16 = vadd.f32 1.0, %v2446_v30  ;;  %v3913_v28 = vmul.f32 %v3849_v45, %v10828_v32  ;;  %v3350_v51 = vsel %vm3349_vm10, %v6170_v60, %v3346_v12 }
 0x763   : > { %v3659_v25 = vmul.f32 %v3595_v2, %v10899_v0  ;;  %v3359_v56 = vsub.f32 1.0, %v3358_v40  ;;  %v3366_v9 = vand.u32 2147483647, %v10880_v21  ;;  %v3368_v57 = vand.u32 2147483648, %v10880_v21 }
 0x764   : > { %v10913_v53 = vsel %vm3352_vm11, %v3354_v35, %v3350_v51  ;;  %6173 = vrcp.f32 %v10909_v16  ;;  %vm3363_vm12 = vweird.f32 %v6172_v4  ;;  %v10920_v54 = vmul.f32 %v4679_v58, %v10838_v15 }
 0x765   : > { %v3723_v10 = vadd.f32 1.4214138, %v3659_v25  ;;  %v3532_v39 = vmul.f32 1.0614054, %v10913_v53  ;;  %v3360_v62 = vmul.f32 %v6172_v4, %v3359_v56  ;;  %6175 = vpow2.f32 %v4285_v29 }
 0x766   : > { %v10923_v60 = vmul.f32 0.5, %v10788_v46  ;;  %v3850_v13 = vadd.f32 -0.28449672, %v3786_v3  ;;  %v4424_v49 = vsub.f32 1.0, %v10904_v17  ;;  %vm3362_vm13 = vweird.f32 %v10880_v21 }
 0x767   : > { %v3596_v31 = vadd.f32 -1.4531521, %v3532_v39  ;;  %v3361_v11 = vadd.f32 %v6172_v4, %v3360_v62  ;;  %6177 = vpow2.f32 %v4287_v26  ;;  %v3787_v63 = vmul.f32 %v3723_v10, %v10899_v0  ;;  %vm3364_vm15 = vmor %vm3362_vm13, %vm3363_vm12 }
 0x768   : > { %v4107_v45 = vsub.f32 0.0, %v10816_v38  ;;  %v3369_v15 = vor.u32 1.1754944e-38, %v3368_v57  ;;  %v3977_v6 = vadd.f32 0.2548296, %v3913_v28  ;;  %vm3367_vm0 = vcmp.eq.f32.partialorder %v3366_v9, 8.507059e+37 }
 0x769   : > { %v3660_v33 = vmul.f32 %v3596_v31, %v10913_v53  ;;  %v3365_v46 = vsel %vm3364_vm15, %v6172_v4, %v3361_v11  ;;  %v3914_v30 = vmul.f32 %v3850_v13, %v10874_v41  ;;  %v4108_v58 = vsub.f32 0.0, %v10835_v5 }
 0x76a   : > { %v6174_v52 = vpop.eup %6173  ;;  %v10932_v21 = vsel %vm3367_vm0, %v3369_v15, %v3365_v46  ;;  %v10935_v29 = vadd.f32 %v2143_v59, %v12321_v55  ;;  %v4552_v26 = vsub.f32 0.0, %v4424_v49  ;;  %vm4488_vm1 = vcmp.lt.f32.partialorder %v10750_v1, 0.0 }
 0x76b   : > { %v3724_v2 = vadd.f32 1.4214138, %v3660_v33  ;;  %v3533_v12 = vmul.f32 1.0614054, %v10932_v21  ;;  %v3373_v4 = vmul.f32 %v6174_v52, %v10909_v16  ;;  %v6176_v40 = vpop.eup %6175  ;;  %v3851_v3 = vadd.f32 -0.28449672, %v3787_v63 }
 0x76c   : > { %12324 = vst [vmem:[#allocation48_spill] sm:$0xff] %v10935_v29  ;;  %v4171_v35 = vmul.f32 %v4107_v45, %v10816_v38  ;;  %v10944_v28 = vmul.f32 0.70710677, %v10935_v29  ;;  %v10947_v25 = vadd.f32 %v2192_v24, %v12322_v7  ;;  %v4041_v51 = vmul.f32 %v3977_v6, %v10828_v32 }
 0x76d   : > { %v3788_v56 = vmul.f32 %v3724_v2, %v10913_v53  ;;  %v3597_v9 = vadd.f32 -1.4531521, %v3533_v12  ;;  %v3374_v57 = vsub.f32 1.0, %v3373_v4  ;;  %v6178_v10 = vpop.eup %6177  ;;  %v3978_v39 = vadd.f32 0.2548296, %v3914_v30 }
 0x76e   : > { %12325 = vst [vmem:[#allocation37_spill] sm:$0xff] %v10944_v28  ;;  %v4172_v62 = vmul.f32 %v4108_v58, %v10835_v5  ;;  %v3381_v13 = vand.u32 2147483647, %v10909_v16  ;;  %v10954_v38 = vand.u32 2147483647, %v10944_v28  ;;  %v3383_v63 = vand.u32 2147483648, %v10909_v16 }
 0x76f   : > { %12326 = vst [vmem:[#allocation34_spill] sm:$0xff] %v10947_v25  ;;  %v3852_v31 = vadd.f32 -0.28449672, %v3788_v56  ;;  %v3661_v11 = vmul.f32 %v3597_v9, %v10932_v21  ;;  %v3375_v59 = vmul.f32 %v6174_v52, %v3374_v57  ;;  %v3915_v32 = vmul.f32 %v3851_v3, %v10899_v0  ;;  %v2047_v56 = vpop.f32.mrf.mxu0 }
 0x770   : > { %vm3378_vm14 = vweird.f32 %v6174_v52  ;;  %v2447_v45 = vmul.f32 0.3275911, %v10954_v38  ;;  %v10961_v15 = vmul.f32 0.70710677, %v10947_v25  ;;  %v4361_v5 = vmul.f32 %v6176_v40, %v4041_v51 }
 0x771   : > { %v4289_v6 = vmul.f32 1.442695, %v4171_v35  ;;  %v3725_v33 = vadd.f32 1.4214138, %v3661_v11  ;;  %v4109_v46 = vsub.f32 0.0, %v10864_v37  ;;  %v3916_v24 = vmul.f32 %v3852_v31, %v10913_v53 }
 0x772   : > { %12327 = vst [vmem:[#allocation22_spill] sm:$0xff] %v10961_v15  ;;  %v3376_v30 = vadd.f32 %v6174_v52, %v3375_v59  ;;  %vm3377_vm2 = vweird.f32 %v10909_v16  ;;  %v10966_v58 = vadd.f32 1.0, %v2447_v45  ;;  %v4042_v2 = vmul.f32 %v3978_v39, %v10874_v41 }
 0x773   : > { %v4291_v12 = vmul.f32 1.442695, %v4172_v62  ;;  %vm3379_vm3 = vmor %vm3377_vm2, %vm3378_vm14  ;;  %v3384_v4 = vor.u32 1.1754944e-38, %v3383_v63  ;;  %v10970_v3 = vand.u32 2147483647, %v10961_v15  ;;  %vm3382_vm4 = vcmp.eq.f32.partialorder %v3381_v13, 8.507059e+37 }
 0x774   : > { %v3979_v40 = vadd.f32 0.2548296, %v3915_v32  ;;  %v3380_v35 = vsel %vm3379_vm3, %v6174_v52, %v3376_v30  ;;  %6179 = vrcp.f32 %v10966_v58  ;;  %v4616_v16 = vsel %vm4488_vm1, %v4552_v26, %v4424_v49 }
 0x775   : > { %6181 = vpow2.f32 %v4289_v6  ;;  %v3789_v51 = vmul.f32 %v3725_v33, %v10932_v21  ;;  %v10978_v41 = vsel %vm3382_vm4, %v3384_v4, %v3380_v35  ;;  %v4425_v9 = vsub.f32 1.0, %v4361_v5 }
 0x776   : > { %v3980_v57 = vadd.f32 0.2548296, %v3916_v24  ;;  %v4173_v39 = vmul.f32 %v4109_v46, %v10864_v37  ;;  %v3534_v52 = vmul.f32 1.0614054, %v10978_v41  ;;  %v10982_v62 = vmul.f32 %v6178_v10, %v4042_v2  ;;  %v2096_v46 = vpop.f32.mrf.mxu1  ;;  %v11005_v24 = vpop.f32.mrf.mxu2 }
 0x777   : > { %6183 = vpow2.f32 %v4291_v12  ;;  %v4110_v17 = vsub.f32 0.0, %v10897_v50  ;;  %v2448_v1 = vmul.f32 0.3275911, %v10970_v3  ;;  %vm4489_vm5 = vcmp.lt.f32.partialorder %v10774_v44, 0.0 }
 0x778   : > { %v10988_v49 = vmul.f32 0.5, %v10801_v8  ;;  %v4043_v26 = vmul.f32 %v3979_v40, %v10899_v0  ;;  %v3598_v13 = vadd.f32 -1.4531521, %v3534_v52  ;;  %v4680_v31 = vadd.f32 1.0, %v4616_v16 }
 0x779   : > { %v10992_v37 = vmul.f32 0.5, %v10811_v43  ;;  %v3853_v11 = vadd.f32 -0.28449672, %v3789_v51  ;;  %v10994_v10 = vadd.f32 1.0, %v2448_v1  ;;  %v4553_v63 = vsub.f32 0.0, %v4425_v9 }
 0x77a   : > { %v6180_v59 = vpop.eup %6179  ;;  %v4044_v32 = vmul.f32 %v3980_v57, %v10913_v53  ;;  %v4293_v45 = vmul.f32 1.442695, %v4173_v39  ;;  %v3662_v5 = vmul.f32 %v3598_v13, %v10978_v41  ;;  %v4426_v8 = vsub.f32 1.0, %v10982_v62 }
 0x77b   : > { %v6182_v6 = vpop.eup %6181  ;;  %vm4490_vm6 = vcmp.lt.f32.partialorder %v10791_v47, 0.0  ;;  %v11001_v0 = vmul.f32 0.5, %v10825_v22  ;;  %v4174_v43 = vmul.f32 %v4110_v17, %v10897_v50  ;;  %v3388_v33 = vmul.f32 %v6180_v59, %v10966_v58 }
 0x77c   : > { %v11007_v30 = vmul.f32 %v6182_v6, %v4043_v26  ;;  %v3726_v53 = vadd.f32 1.4214138, %v3662_v5  ;;  %6185 = vrcp.f32 %v10994_v10  ;;  %v11011_v2 = vadd.f32 %v2047_v56, %v12313_v48  ;;  %v11022_v56 = vpop.f32.mrf.mxu0  ;;  %v11032_v26 = vpop.f32.mrf.mxu3 }
 0x77d   : > { %v6184_v12 = vpop.eup %6183  ;;  %v11014_v4 = vmul.f32 %v4680_v31, %v10852_v36  ;;  %v3917_v22 = vmul.f32 %v3853_v11, %v10932_v21  ;;  %v3389_v50 = vsub.f32 1.0, %v3388_v33  ;;  %v3398_v40 = vand.u32 2147483648, %v10966_v58 }
 0x77e   : > { %v4617_v35 = vsel %vm4489_vm5, %v4553_v63, %v4425_v9  ;;  %v4364_v16 = vmul.f32 %v6184_v12, %v4044_v32  ;;  %6187 = vpow2.f32 %v4293_v45  ;;  %v3790_v51 = vmul.f32 %v3726_v53, %v10978_v41 }
 0x77f   : > { %v4295_v57 = vmul.f32 1.442695, %v4174_v43  ;;  %v3390_v39 = vmul.f32 %v6180_v59, %v3389_v50  ;;  %vm3393_vm7 = vweird.f32 %v6180_v59  ;;  %v3396_v48 = vand.u32 2147483647, %v10966_v58 }
 0x780   : > { %v4554_v36 = vsub.f32 0.0, %v4426_v8  ;;  %v4427_v52 = vsub.f32 1.0, %v11007_v30  ;;  %vm4491_vm8 = vcmp.lt.f32.partialorder %v10807_v27, 0.0  ;;  %v4111_v62 = vsub.f32 0.0, %v10954_v38 }
 0x781   : > { %v11028_v44 = vmul.f32 0.70710677, %v11011_v2  ;;  %vm4492_vm9 = vcmp.lt.f32.partialorder %v10822_v23, 0.0  ;;  %v3981_v9 = vadd.f32 0.2548296, %v3917_v22  ;;  %v3391_v17 = vadd.f32 %v6180_v59, %v3390_v39  ;;  %v11052_v22 = vpop.f32.mrf.mxu2 }
 0x782   : > { %vm3392_vm10 = vweird.f32 %v10966_v58  ;;  %v3399_v1 = vor.u32 1.1754944e-38, %v3398_v40  ;;  %v6186_v13 = vpop.eup %6185  ;;  %v4428_v31 = vsub.f32 1.0, %v4364_v16  ;;  %v3854_v11 = vadd.f32 -0.28449672, %v3790_v51 }
 0x783   : > { %vm3394_vm11 = vmor %vm3392_vm10, %vm3393_vm7  ;;  %v11036_v63 = vand.u32 2147483647, %v11028_v44  ;;  %v11039_v32 = vadd.f32 %v2096_v46, %v12319_v18  ;;  %6189 = vpow2.f32 %v4295_v57  ;;  %vm3397_vm12 = vcmp.eq.f32.partialorder %v3396_v48, 8.507059e+37 }
 0x784   : > { %v3395_v45 = vsel %vm3394_vm11, %v6180_v59, %v3391_v17  ;;  %v3403_v5 = vmul.f32 %v6186_v13, %v10994_v10  ;;  %v6188_v58 = vpop.eup %6187  ;;  %v4618_v6 = vsel %vm4490_vm6, %v4554_v36, %v4426_v8  ;;  %v4175_v33 = vmul.f32 %v4111_v62, %v10954_v38  ;;  %v11050_v59 = vpop.f32.mrf.mxu1 }
 0x785   : > { %v11044_v43 = vsel %vm3397_vm12, %v3399_v1, %v3395_v45  ;;  %v2449_v30 = vmul.f32 0.3275911, %v11036_v63  ;;  %v4555_v53 = vsub.f32 0.0, %v4427_v52  ;;  %v4045_v12 = vmul.f32 %v3981_v9, %v10932_v21  ;;  %v11066_v17 = vpop.f32.mrf.mxu0 }
 0x786   : > { %v3535_v18 = vmul.f32 1.0614054, %v11044_v43  ;;  %v3404_v46 = vsub.f32 1.0, %v3403_v5  ;;  %v4556_v50 = vsub.f32 0.0, %v4428_v31  ;;  %v3918_v47 = vmul.f32 %v3854_v11, %v10978_v41 }
 0x787   : > { %v11055_v8 = vadd.f32 1.0, %v2449_v30  ;;  %v11058_v40 = vmul.f32 0.70710677, %v11039_v32  ;;  %vm3408_vm13 = vweird.f32 %v6186_v13  ;;  %v3413_v21 = vand.u32 2147483648, %v10994_v10 }
 0x788   : > { %v3599_v38 = vadd.f32 -1.4531521, %v3535_v18  ;;  %v3405_v16 = vmul.f32 %v6186_v13, %v3404_v46  ;;  %v4681_v51 = vadd.f32 1.0, %v4617_v35  ;;  %v4682_v57 = vadd.f32 1.0, %v4618_v6 }
 0x789   : > { %v3411_v39 = vand.u32 2147483647, %v10994_v10  ;;  %6191 = vrcp.f32 %v11055_v8  ;;  %v6190_v48 = vpop.eup %6189  ;;  %v4619_v36 = vsel %vm4491_vm8, %v4555_v53, %v4427_v52  ;;  %v4365_v62 = vmul.f32 %v6188_v58, %v4045_v12 }
 0x78a   : > { %v3406_v9 = vadd.f32 %v6186_v13, %v3405_v16  ;;  %vm3407_vm15 = vweird.f32 %v10994_v10  ;;  %v4620_v1 = vsel %vm4492_vm9, %v4556_v50, %v4428_v31  ;;  %v3982_v11 = vadd.f32 0.2548296, %v3918_v47  ;;  %v11084_v31 = vpop.f32.mrf.mxu3 }
 0x78b   : > { %vm11070_vm0 = vmor %vm3407_vm15, %vm3408_vm13  ;;  %v11075_v45 = vand.u32 2147483647, %v11058_v40  ;;  %v11079_v27 = vadd.f32 %v11005_v24, %v12321_v55  ;;  %v3663_v52 = vmul.f32 %v3599_v38, %v11044_v43  ;;  %v4297_v10 = vmul.f32 1.442695, %v4175_v33 }
 0x78c   : > { %v3410_v5 = vsel %vm11070_vm0, %v6186_v13, %v3406_v9  ;;  %v3414_v23 = vor.u32 1.1754944e-38, %v3413_v21  ;;  %v4683_v58 = vadd.f32 1.0, %v4619_v36  ;;  %vm4493_vm1 = vcmp.lt.f32.partialorder %v10845_v61, 0.0  ;;  %v11105_v16 = vpop.f32.mrf.mxu1  ;;  %v11107_v21 = vpop.f32.mrf.mxu2 }
 0x78d   : > { %12330 = vst [vmem:[#allocation49_spill] sm:$0xff] %v11079_v27  ;;  %vm3412_vm14 = vcmp.eq.f32.partialorder %v3411_v39, 8.507059e+37  ;;  %v4112_v6 = vsub.f32 0.0, %v10970_v3  ;;  %v2450_v30 = vmul.f32 0.3275911, %v11075_v45  ;;  %v11090_v55 = vmul.f32 %v4681_v51, %v10861_v19 }
 0x78e   : > { %v4684_v24 = vadd.f32 1.0, %v4620_v1  ;;  %v4429_v53 = vsub.f32 1.0, %v4365_v62  ;;  %v11092_v33 = vsel %vm3412_vm14, %v3414_v23, %v3410_v5  ;;  %v4046_v13 = vmul.f32 %v3982_v11, %v10978_v41 }
 0x78f   : > { %v6192_v12 = vpop.eup %6191  ;;  %v4113_v18 = vsub.f32 0.0, %v11036_v63  ;;  %v11096_v46 = vadd.f32 1.0, %v2450_v30  ;;  %v11099_v50 = vmul.f32 0.70710677, %v11079_v27  ;;  %v11102_v47 = vmul.f32 %v4682_v57, %v10923_v60 }
 0x790   : > { %v3727_v38 = vadd.f32 1.4214138, %v3663_v52  ;;  %6193 = vpow2.f32 %v4297_v10  ;;  %v3418_v19 = vmul.f32 %v6192_v12, %v11055_v8  ;;  %v11110_v41 = vmul.f32 %v4683_v58, %v10988_v49  ;;  %v11130_v52 = vpop.f32.mrf.mxu0 }
 0x791   : > { %12331 = vst [vmem:[#allocation40_spill] sm:$0xff] %v11099_v50  ;;  %v3536_v51 = vmul.f32 1.0614054, %v11092_v33  ;;  %v4176_v39 = vmul.f32 %v4112_v6, %v10970_v3  ;;  %6195 = vrcp.f32 %v11096_v46  ;;  %v11116_v60 = vmul.f32 %v4684_v24, %v10992_v37 }
 0x792   : > { %v4557_v57 = vsub.f32 0.0, %v4429_v53  ;;  %v11119_v36 = vmul.f32 0.5, %v11011_v2  ;;  %v3419_v62 = vsub.f32 1.0, %v3418_v19  ;;  %v11121_v9 = vmul.f32 %v6190_v48, %v4046_v13  ;;  %v11143_v30 = vpop.f32.mrf.mxu3 }
 0x793   : > { %v3428_v1 = vand.u32 2147483648, %v11055_v8  ;;  %v4177_v49 = vmul.f32 %v4113_v18, %v11036_v63  ;;  %v11126_v11 = vand.u32 2147483647, %v11099_v50  ;;  %v3791_v3 = vmul.f32 %v3727_v38, %v11044_v43 }
 0x794   : > { %v3420_v35 = vmul.f32 %v6192_v12, %v3419_v62  ;;  %vm3423_vm2 = vweird.f32 %v6192_v12  ;;  %v3426_v37 = vand.u32 2147483647, %v11055_v8  ;;  %v3600_v2 = vadd.f32 -1.4531521, %v3536_v51 }
 0x795   : > { %v4299_v10 = vmul.f32 1.442695, %v4176_v39  ;;  %v2451_v48 = vmul.f32 0.3275911, %v11126_v11  ;;  %v11135_v5 = vadd.f32 %v11032_v26, %v12322_v7  ;;  %v4621_v23 = vsel %vm4493_vm1, %v4557_v57, %v4429_v53 }
 0x796   : > { %v11137_v63 = vpop.eup %6193  ;;  %v3421_v58 = vadd.f32 %v6192_v12, %v3420_v35  ;;  %vm3422_vm3 = vweird.f32 %v11055_v8  ;;  %v4114_v6 = vsub.f32 0.0, %v11075_v45  ;;  %v11634_v13 = vsub.f32 1.0, %v11121_v9 }
 0x797   : > { %12332 = vst [vmem:[#allocation36_spill] sm:$0xff] %v11135_v5  ;;  %v6196_v24 = vpop.eup %6195  ;;  %vm3424_vm4 = vmor %vm3422_vm3, %vm3423_vm2  ;;  %v3429_v18 = vor.u32 1.1754944e-38, %v3428_v1  ;;  %v4301_v7 = vmul.f32 1.442695, %v4177_v49  ;;  %v11147_v26 = vadd.f32 1.0, %v2451_v48  ;;  %vm3427_vm5 = vcmp.eq.f32.partialorder %v3426_v37, 8.507059e+37  ;;  %v11159_v1 = vpop.f32.mrf.mxu1 }
 0x798   : > { %v3855_v38 = vadd.f32 -0.28449672, %v3791_v3  ;;  %v3425_v19 = vsel %vm3424_vm4, %v6192_v12, %v3421_v58  ;;  %v3433_v61 = vmul.f32 %v6196_v24, %v11096_v46  ;;  %v3664_v8 = vmul.f32 %v3600_v2, %v11092_v33  ;;  %v11161_v12 = vpop.f32.mrf.mxu2  ;;  %v6233_v37 = vld [vmem:[%s11412_s2] sm:$0xf] }
 0x799   : > { %v11151_v53 = vsel %vm3427_vm5, %v3429_v18, %v3425_v19  ;;  %6197 = vrcp.f32 %v11147_v26  ;;  %v11155_v51 = vmul.f32 0.70710677, %v11135_v5  ;;  %v4178_v62 = vmul.f32 %v4114_v6, %v11075_v45  ;;  %v11182_v5 = vpop.f32.mrf.mxu0 }
 0x79a   : > { %6199 = vpow2.f32 %v4299_v10  ;;  %v3537_v39 = vmul.f32 1.0614054, %v11151_v53  ;;  %v3434_v57 = vsub.f32 1.0, %v3433_v61  ;;  %v11163_v49 = vadd.f32 1.0, %v4621_v23 }
 0x79b   : > { %12333 = vst [vmem:[#allocation59_spill] sm:$0xff] %v11155_v51  ;;  %v3441_v3 = vand.u32 2147483647, %v11096_v46  ;;  %v3443_v35 = vand.u32 2147483648, %v11096_v46  ;;  %v11170_v2 = vperm.slane %v6233_v37, 2  ;;  %v3919_v10 = vmul.f32 %v3855_v38, %v11044_v43 }
 0x79c   : > { %v3601_v48 = vadd.f32 -1.4531521, %v3537_v39  ;;  %v3435_v45 = vmul.f32 %v6196_v24, %v3434_v57  ;;  %vm3438_vm6 = vweird.f32 %v6196_v24  ;;  %v11175_v58 = vsub.f32 0.0, %v11634_v13 }
 0x79d   : > { %v3728_v23 = vadd.f32 1.4214138, %v3664_v8  ;;  %6201 = vpow2.f32 %v4301_v7  ;;  %v11178_v6 = vand.u32 2147483647, %v11155_v51  ;;  %vm3437_vm7 = vweird.f32 %v11096_v46  ;;  %v11190_v46 = vpop.f32.mrf.mxu3 }
 0x79e   : > { %v3665_v18 = vmul.f32 %v3601_v48, %v11151_v53  ;;  %v3436_v19 = vadd.f32 %v6196_v24, %v3435_v45  ;;  %v4303_v61 = vmul.f32 1.442695, %v4178_v62  ;;  %vm3439_vm8 = vmor %vm3437_vm7, %vm3438_vm6  ;;  %vm3442_vm9 = vcmp.eq.f32.partialorder %v3441_v3, 8.507059e+37 }
 0x79f   : > { %v6198_v38 = vpop.eup %6197  ;;  %v3444_v39 = vor.u32 1.1754944e-38, %v3443_v35  ;;  %v2452_v57 = vmul.f32 0.3275911, %v11178_v6  ;;  %v5056_v7 = vadd.f32 %v11022_v56, %v11170_v2  ;;  %v3983_v13 = vadd.f32 0.2548296, %v3919_v10 }
 0x7a0   : > { %v11187_v8 = vpop.eup %6199  ;;  %v3729_v25 = vadd.f32 1.4214138, %v3665_v18  ;;  %v3440_v48 = vsel %vm3439_vm8, %v6196_v24, %v3436_v19  ;;  %v3448_v45 = vmul.f32 %v6198_v38, %v11147_v26  ;;  %v3792_v62 = vmul.f32 %v3728_v23, %v11092_v33 }
 0x7a1   : > { %v11193_v51 = vsel %vm3442_vm9, %v3444_v39, %v3440_v48  ;;  %v4115_v3 = vsub.f32 0.0, %v11126_v11  ;;  %v11196_v35 = vadd.f32 1.0, %v2452_v57  ;;  %6203 = vpow2.f32 %v4303_v61  ;;  %v11204_v57 = vpop.f32.mrf.mxu1 }
 0x7a2   : > { %v3793_v15 = vmul.f32 %v3729_v25, %v11151_v53  ;;  %v3538_v56 = vmul.f32 1.0614054, %v11193_v51  ;;  %v3449_v10 = vsub.f32 1.0, %v3448_v45  ;;  %v3456_v24 = vand.u32 2147483647, %v11147_v26  ;;  %v11206_v25 = vpop.f32.mrf.mxu2 }
 0x7a3   : > { %v6202_v18 = vpop.eup %6201  ;;  %v3458_v19 = vand.u32 2147483648, %v11147_v26  ;;  %6205 = vrcp.f32 %v11196_v35  ;;  %v5105_v23 = vadd.f32 %v11050_v59, %v5056_v7  ;;  %vm3453_vm10 = vweird.f32 %v6198_v38 }
 0x7a4   : > { %v3857_v39 = vadd.f32 -0.28449672, %v3793_v15  ;;  %v3602_v48 = vadd.f32 -1.4531521, %v3538_v56  ;;  %v3450_v27 = vmul.f32 %v6198_v38, %v3449_v10  ;;  %v4047_v61 = vmul.f32 %v3983_v13, %v11044_v43 }
 0x7a5   : > { %v3856_v45 = vadd.f32 -0.28449672, %v3792_v62  ;;  %v4179_v29 = vmul.f32 %v4115_v3, %v11126_v11  ;;  %v5154_v50 = vadd.f32 %v11052_v22, %v5105_v23  ;;  %vm3452_vm11 = vweird.f32 %v11147_v26  ;;  %v11219_v3 = vpop.f32.mrf.mxu0 }
 0x7a6   : > { %v3921_v28 = vmul.f32 %v3857_v39, %v11151_v53  ;;  %v3666_v34 = vmul.f32 %v3602_v48, %v11193_v51  ;;  %v3451_v59 = vadd.f32 %v6198_v38, %v3450_v27  ;;  %vm3454_vm12 = vmor %vm3452_vm11, %vm3453_vm10  ;;  %vm3457_vm13 = vcmp.eq.f32.partialorder %v3456_v24, 8.507059e+37 }
 0x7a7   : > { %v3459_v15 = vor.u32 1.1754944e-38, %v3458_v19  ;;  %v5203_v7 = vadd.f32 %v11084_v31, %v5154_v50  ;;  %v11215_v56 = vperm.slane %v6233_v37, 3  ;;  %v6204_v43 = vpop.eup %6203  ;;  %v5058_v22 = vadd.f32 %v11066_v17, %v11170_v2  ;;  %v11233_v37 = vpop.f32.mrf.mxu3 }
 0x7a8   : > { %v3985_v13 = vadd.f32 0.2548296, %v3921_v28  ;;  %v3730_v62 = vadd.f32 1.4214138, %v3666_v34  ;;  %v3455_v11 = vsel %vm3454_vm12, %v6198_v38, %v3451_v59  ;;  %v11222_v27 = vmul.f32 %v11137_v63, %v4047_v61 }
 0x7a9   : > { %v6206_v10 = vpop.eup %6205  ;;  %v3920_v26 = vmul.f32 %v3856_v45, %v11092_v33  ;;  %v11225_v24 = vsel %vm3457_vm13, %v3459_v15, %v3455_v11  ;;  %v5243_v31 = vmul.f32 %v11215_v56, %v5203_v7  ;;  %vm4497_vm15 = vcmp.lt.f32.partialorder %v11028_v44, 0.0 }
 0x7aa   : > { %v4049_v50 = vmul.f32 %v3985_v13, %v11151_v53  ;;  %v3794_v34 = vmul.f32 %v3730_v62, %v11193_v51  ;;  %v3539_v28 = vmul.f32 1.0614054, %v11225_v24  ;;  %v3463_v17 = vmul.f32 %v6206_v10, %v11196_v35  ;;  %v11244_v62 = vpop.f32.mrf.mxu1 }
 0x7ab   : > { %v4305_v63 = vmul.f32 1.442695, %v4179_v29  ;;  %v3471_v38 = vand.u32 2147483647, %v11196_v35  ;;  %v5107_v19 = vadd.f32 %v11105_v16, %v5058_v22  ;;  %5259 = vxpose.xlu0.b32.start [1/16] %v5243_v31, 128  ;;  %v5061_v23 = vadd.f32 %v11130_v52, %v11170_v2  ;;  %v11246_v52 = vpop.f32.mrf.mxu2 }
 0x7ac   : > { %v4369_v53 = vmul.f32 %v6202_v18, %v4049_v50  ;;  %v3858_v39 = vadd.f32 -0.28449672, %v3794_v34  ;;  %v3603_v48 = vadd.f32 -1.4531521, %v3539_v28  ;;  %v3464_v61 = vsub.f32 1.0, %v3463_v17 }
 0x7ad   : > { %vm3468_vm0 = vweird.f32 %v6206_v10  ;;  %v3473_v45 = vand.u32 2147483648, %v11196_v35  ;;  %v5156_v59 = vadd.f32 %v11107_v21, %v5107_v19  ;;  %v5110_v15 = vadd.f32 %v11159_v1, %v5061_v23  ;;  %v11260_v19 = vpop.f32.mrf.mxu0 }
 0x7ae   : > { %v4433_v29 = vsub.f32 1.0, %v4369_v53  ;;  %v3922_v7 = vmul.f32 %v3858_v39, %v11193_v51  ;;  %v3667_v16 = vmul.f32 %v3603_v48, %v11225_v24  ;;  %v3465_v13 = vmul.f32 %v6206_v10, %v3464_v61 }
 0x7af   : > { %v3984_v18 = vadd.f32 0.2548296, %v3920_v26  ;;  %vm3467_vm1 = vweird.f32 %v11196_v35  ;;  %v5205_v11 = vadd.f32 %v11143_v30, %v5156_v59  ;;  %v5159_v22 = vadd.f32 %v11161_v12, %v5110_v15 }
 0x7b0   : > { %vm4494_vm14 = vcmp.lt.f32.partialorder %v10885_v42, 0.0  ;;  %v4561_v21 = vsub.f32 0.0, %v4433_v29  ;;  %v3986_v1 = vadd.f32 0.2548296, %v3922_v7  ;;  %v3731_v31 = vadd.f32 1.4214138, %v3667_v16  ;;  %vm3469_vm2 = vmor %vm3467_vm1, %vm3468_vm0 }
 0x7b1   : > { %v3466_v50 = vadd.f32 %v6206_v10, %v3465_v13  ;;  %v3474_v34 = vor.u32 1.1754944e-38, %v3473_v45  ;;  %v5244_v28 = vmul.f32 %v11215_v56, %v5205_v11  ;;  %v5063_v26 = vadd.f32 %v11182_v5, %v11170_v2 }
 0x7b2   : > { %v4781_v35 = vpack.c.bf16 %v11090_v55, %v10842_v20  ;;  %v4050_v30 = vmul.f32 %v3986_v1, %v11193_v51  ;;  %v3795_v12 = vmul.f32 %v3731_v31, %v11225_v24  ;;  %vm3472_vm3 = vcmp.eq.f32.partialorder %v3471_v38, 8.507059e+37  ;;  %v11271_v38 = vpop.f32.mrf.mxu3 }
 0x7b3   : > { %v3470_v17 = vsel %vm3469_vm2, %v6206_v10, %v3466_v50  ;;  %v4625_v23 = vsel %vm4497_vm15, %v4561_v21, %v4433_v29  ;;  %v4116_v39 = vsub.f32 0.0, %v11178_v6  ;;  %5260 = vxpose.xlu0.b32.cont [2/16] %v5244_v28, 128  ;;  %v5208_v5 = vadd.f32 %v11190_v46, %v5159_v22  ;;  %v5116_v29 = vpop.f32.mrf.mxu1  ;;  %v5165_v7 = vpop.f32.mrf.mxu2 }
 0x7b4   : > { %v11264_v53 = vsel %vm3472_vm3, %v3474_v34, %v3470_v17  ;;  %5084 = vmatmul.bf16.gmra.mxu0 %v4781_v35  ;;  %v4370_v20 = vmul.f32 %v6204_v43, %v4050_v30  ;;  %v3859_v55 = vadd.f32 -0.28449672, %v3795_v12  ;;  %v4782_v10 = vpack.c.bf16 %v11102_v47, %v10849_v14  ;;  %v12336_v34 = vld [vmem:[#allocation37_spill] sm:$0xff] }
 0x7b5   : > { %v3540_v51 = vmul.f32 1.0614054, %v11264_v53  ;;  %v4431_v44 = vsub.f32 1.0, %v11222_v27  ;;  %6207 = vpow2.f32 %v4305_v63  ;;  %v5112_v48 = vadd.f32 %v11204_v57, %v5063_v26 }
 0x7b6   : > { %v4783_v61 = vpack.c.bf16 %v11110_v41, %v10920_v54  ;;  %v4434_v45 = vsub.f32 1.0, %v4370_v20  ;;  %v3923_v46 = vmul.f32 %v3859_v55, %v11225_v24  ;;  %5133 = vmatmul.bf16.gmra.mxu1 %v4782_v10  ;;  %v4784_v59 = vpack.c.bf16 %v11116_v60, %v11014_v4  ;;  %v12337_v20 = vld [vmem:[#allocation40_spill] sm:$0xff] }
 0x7b7   : > { %v3604_v43 = vadd.f32 -1.4531521, %v3540_v51  ;;  %v4689_v15 = vadd.f32 1.0, %v4625_v23  ;;  %v4180_v14 = vmul.f32 %v4116_v39, %v11178_v6  ;;  %v5245_v47 = vmul.f32 %v11215_v56, %v5208_v5 }
 0x7b8   : > { %v5161_v27 = vadd.f32 %v11206_v25, %v5112_v48  ;;  %5182 = vmatmul.bf16.gmra.mxu2 %v4783_v61  ;;  %v4048_v57 = vmul.f32 %v3984_v18, %v11092_v33  ;;  %v4562_v63 = vsub.f32 0.0, %v4434_v45  ;;  %v3987_v54 = vadd.f32 0.2548296, %v3923_v46  ;;  %5231 = vmatmul.bf16.gmra.mxu3 %v4784_v59  ;;  %v12338_v61 = vld [vmem:[#allocation48_spill] sm:$0xff] }
 0x7b9   : > { %v3668_v41 = vmul.f32 %v3604_v43, %v11264_v53  ;;  %v12334_v16 = vsub.f32 1.0, %v11121_v9  ;;  %v2258_v60 = vmul.f32 0.5, %v11039_v32  ;;  %vm4498_vm4 = vcmp.lt.f32.partialorder %v11058_v40, 0.0 }
 0x7ba   : > { %v5066_v33 = vadd.f32 %v11219_v3, %v11170_v2  ;;  %v4559_v6 = vsub.f32 0.0, %v4431_v44  ;;  %v4626_v25 = vsel %vm4498_vm4, %v4562_v63, %v4434_v45  ;;  %v4051_v13 = vmul.f32 %v3987_v54, %v11225_v24  ;;  %v5070_v3 = vpop.f32.mrf.mxu0  ;;  %v12335_v24 = vld [vmem:[#allocation64_spill] sm:$0xff]  ;;  %v5214_v30 = vpop.f32.mrf.mxu3 }
 0x7bb   : > { %v4622_v4 = vsel %vm4494_vm14, %v11175_v58, %v12334_v16  ;;  %v3732_v18 = vadd.f32 1.4214138, %v3668_v41  ;;  %v6208_v11 = vpop.eup %6207  ;;  %v4753_v22 = vmul.f32 %v4689_v15, %v11119_v36  ;;  %v4690_v9 = vadd.f32 1.0, %v4626_v25  ;;  %5261 = vxpose.xlu0.b32.cont [3/16] %v5245_v47, 128  ;;  %v5119_v10 = vpop.f32.mrf.mxu1  ;;  %v12340_v41 = vld [vmem:[#allocation22_spill] sm:$0xff] }
 0x7bc   : > { %v4307_v21 = vmul.f32 1.442695, %v4180_v14  ;;  %v5210_v42 = vadd.f32 %v11233_v37, %v5161_v27  ;;  %v4686_v58 = vadd.f32 1.0, %v4622_v4  ;;  %v4368_v32 = vmul.f32 %v11187_v8, %v4048_v57  ;;  %v5168_v48 = vpop.f32.mrf.mxu2 }
 0x7bd   : > { %v4371_v40 = vmul.f32 %v6208_v11, %v4051_v13  ;;  %v3796_v1 = vmul.f32 %v3732_v18, %v11264_v53  ;;  %v4749_v31 = vmul.f32 %v11163_v49, %v11001_v0  ;;  %v2254_v50 = vmul.f32 0.5, %v12335_v24  ;;  %v12341_v18 = vld [vmem:[#allocation59_spill] sm:$0xff] }
 0x7be   : > { %vm4495_vm5 = vcmp.lt.f32.partialorder %v12336_v34, 0.0  ;;  %v5115_v36 = vadd.f32 %v11244_v62, %v5066_v33  ;;  %v4754_v26 = vmul.f32 %v4690_v9, %v2258_v60  ;;  %6209 = vpow2.f32 %v4307_v21  ;;  %v12342_v21 = vld [vmem:[#allocation34_spill] sm:$0xff] }
 0x7bf   : > { %v4623_v28 = vsel %vm4495_vm5, %v4559_v6, %v4431_v44  ;;  %v4435_v35 = vsub.f32 1.0, %v4371_v40  ;;  %v3860_v37 = vadd.f32 -0.28449672, %v3796_v1  ;;  %v5246_v8 = vmul.f32 %v11215_v56, %v5210_v42 }
 0x7c0   : > { %v5164_v12 = vadd.f32 %v11246_v52, %v5115_v36  ;;  %v4785_v17 = vpack.c.bf16 %v4753_v22, %v4749_v31  ;;  %v4750_v23 = vmul.f32 %v4686_v58, %v2254_v50  ;;  %v4432_v39 = vsub.f32 1.0, %v4368_v32  ;;  %v12339_v52 = vld [vmem:[#allocation49_spill] sm:$0xff]  ;;  %v12343_v58 = vld [vmem:[#allocation36_spill] sm:$0xff] }
 0x7c1   : > { %v4563_v0 = vsub.f32 0.0, %v4435_v35  ;;  %v3924_v49 = vmul.f32 %v3860_v37, %v11264_v53  ;;  %v4687_v5 = vadd.f32 1.0, %v4623_v28  ;;  %vm4499_vm6 = vcmp.lt.f32.partialorder %v12337_v20, 0.0 }
 0x7c2   : > { %v5068_v62 = vadd.f32 %v11260_v19, %v11170_v2  ;;  %v4786_v44 = vpack.c.bf16 %v4754_v26, %v4750_v23  ;;  %v2255_v45 = vmul.f32 0.5, %v12338_v61  ;;  %v2259_v46 = vmul.f32 0.5, %v12339_v52  ;;  %v5072_v54 = vpop.f32.mrf.mxu0 }
 0x7c3   : > { %v4627_v55 = vsel %vm4499_vm6, %v4563_v0, %v4435_v35  ;;  %v3988_v51 = vadd.f32 0.2548296, %v3924_v49  ;;  %5262 = vxpose.xlu0.b32.cont [4/16] %v5246_v8, 128  ;;  %v5213_v59 = vadd.f32 %v11271_v38, %v5164_v12  ;;  %v4560_v15 = vsub.f32 0.0, %v4432_v39  ;;  %v5217_v38 = vpop.f32.mrf.mxu3  ;;  %v5121_v22 = vpop.f32.mrf.mxu1 }
 0x7c4   : > { %v4691_v43 = vadd.f32 1.0, %v4627_v55  ;;  %5089 = vmatmul.bf16.gmra.mxu0 %v4785_v17  ;;  %v6210_v47 = vpop.eup %6209  ;;  %v4751_v27 = vmul.f32 %v4687_v5, %v2255_v45  ;;  %v5117_v57 = vadd.f32 %v5116_v29, %v5068_v62  ;;  %vm4496_vm7 = vcmp.lt.f32.partialorder %v12340_v41, 0.0  ;;  %v5170_v9 = vpop.f32.mrf.mxu2 }
 0x7c5   : > { %v4052_v14 = vmul.f32 %v3988_v51, %v11264_v53  ;;  %v5247_v16 = vmul.f32 %v11215_v56, %v5213_v59  ;;  %v4624_v33 = vsel %vm4496_vm7, %v4560_v15, %v4432_v39  ;;  %v5071_v25 = vadd.f32 %v5070_v3, %v11170_v2 }
 0x7c6   : > { %v4755_v19 = vmul.f32 %v4691_v43, %v2259_v46  ;;  %5138 = vmatmul.bf16.gmra.mxu1 %v4786_v44  ;;  %v5166_v4 = vadd.f32 %v5165_v7, %v5117_v57  ;;  %v4688_v13 = vadd.f32 1.0, %v4624_v33  ;;  %vm4500_vm8 = vcmp.lt.f32.partialorder %v12341_v18, 0.0 }
 0x7c7   : > { %v4372_v63 = vmul.f32 %v6210_v47, %v4052_v14  ;;  %v2256_v42 = vmul.f32 0.5, %v12342_v21  ;;  %v2260_v7 = vmul.f32 0.5, %v12343_v58  ;;  %v5120_v40 = vadd.f32 %v5119_v10, %v5071_v25 }
 0x7c8   : > { %v4787_v60 = vpack.c.bf16 %v4755_v19, %v4751_v27  ;;  %v5215_v29 = vadd.f32 %v5214_v30, %v5166_v4  ;;  %v5073_v34 = vadd.f32 %v5072_v54, %v11170_v2 }
 0x7c9   : > { %v4436_v6 = vsub.f32 1.0, %v4372_v63  ;;  %v4752_v1 = vmul.f32 %v4688_v13, %v2256_v42  ;;  %v5169_v24 = vadd.f32 %v5168_v48, %v5120_v40 }
 0x7ca   : > { %5187 = vmatmul.bf16.gmra.mxu2 %v4787_v60  ;;  %v5248_v3 = vmul.f32 %v11215_v56, %v5215_v29  ;;  %v5075_v50 = vpop.f32.mrf.mxu0  ;;  %v5122_v35 = vadd.f32 %v5121_v22, %v5073_v34 }
 0x7cb   : > { %v4564_v53 = vsub.f32 0.0, %v4436_v6  ;;  %5263 = vxpose.xlu0.b32.cont [5/16] %v5247_v16, 128  ;;  %v5219_v28 = vpop.f32.mrf.mxu3  ;;  %v5218_v26 = vadd.f32 %v5217_v38, %v5169_v24  ;;  %v5124_v37 = vpop.f32.mrf.mxu1  ;;  %v5076_v17 = vadd.f32 %v5075_v50, %v11170_v2 }
 0x7cc   : > { %v5173_v30 = vpop.f32.mrf.mxu2  ;;  %v5171_v12 = vadd.f32 %v5170_v9, %v5122_v35 }
 0x7cd   : > { %v4628_v11 = vsel %vm4500_vm8, %v4564_v53, %v4436_v6  ;;  %v5249_v8 = vmul.f32 %v11215_v56, %v5218_v26  ;;  %v5125_v49 = vadd.f32 %v5124_v37, %v5076_v17 }
 0x7ce   : > { %v4692_v32 = vadd.f32 1.0, %v4628_v11  ;;  %v5220_v39 = vadd.f32 %v5219_v28, %v5171_v12 }
 0x7cf   : > { %v5174_v20 = vadd.f32 %v5173_v30, %v5125_v49 }
 0x7d0   : > { %v4756_v31 = vmul.f32 %v4692_v32, %v2260_v7  ;;  %v5250_v5 = vmul.f32 %v11215_v56, %v5220_v39 }
 0x7d2   : > { %v4788_v36 = vpack.c.bf16 %v4756_v31, %v4752_v1  ;;  %v5077_v23 = vpop.f32.mrf.mxu0 }
 0x7d3   : > { %5264 = vxpose.xlu0.b32.cont [6/16] %v5248_v3, 128  ;;  %v5222_v0 = vpop.f32.mrf.mxu3  ;;  %v5126_v62 = vpop.f32.mrf.mxu1  ;;  %v5078_v51 = vadd.f32 %v5077_v23, %v11170_v2 }
 0x7d4   : > { %5236 = vmatmul.bf16.gmra.mxu3 %v4788_v36  ;;  %v5175_v55 = vpop.f32.mrf.mxu2  ;;  %v5223_v10 = vadd.f32 %v5222_v0, %v5174_v20 }
 0x7d5   : > { %v5127_v48 = vadd.f32 %v5126_v62, %v5078_v51 }
 0x7d6   : > { %v5251_v45 = vmul.f32 %v11215_v56, %v5223_v10 }
 0x7d7   : > { %v5176_v52 = vadd.f32 %v5175_v55, %v5127_v48  ;;  %v6235_v48 = vld [vmem:[%s6574_s10 + $0x8] sm:$0xff] }
 0x7da   : > { %v5080_v44 = vpop.f32.mrf.mxu0 }
 0x7db   : > { %5265 = vxpose.xlu0.b32.cont [7/16] %v5249_v8, 128  ;;  %v5224_v61 = vpop.f32.mrf.mxu3  ;;  %v5081_v46 = vadd.f32 %v5080_v44, %v11170_v2  ;;  %v5129_v43 = vpop.f32.mrf.mxu1 }
 0x7dc   : > { %v5178_v59 = vpop.f32.mrf.mxu2  ;;  %v5225_v15 = vadd.f32 %v5224_v61, %v5176_v52 }
 0x7dd   : > { %v5130_v14 = vadd.f32 %v5129_v43, %v5081_v46  ;;  %v6237_v43 = vld [vmem:[%s6574_s10 + $0x18] sm:$0xff] }
 0x7de   : > { %v5252_v27 = vmul.f32 %v11215_v56, %v5225_v15 }
 0x7df   : > { %v5179_v19 = vadd.f32 %v5178_v59, %v5130_v14  ;;  %v6238_v14 = vld [vmem:[%s6574_s10 + $0x20] sm:$0xff] }
 0x7e2   : > { %v5082_v47 = vpop.f32.mrf.mxu0 }
 0x7e3   : > { %5266 = vxpose.xlu0.b32.cont [8/16] %v5250_v5, 128  ;;  %v5227_v57 = vpop.f32.mrf.mxu3  ;;  %v5083_v63 = vadd.f32 %v5082_v47, %v11170_v2  ;;  %v5131_v41 = vpop.f32.mrf.mxu1 }
 0x7e4   : > { %v5228_v54 = vadd.f32 %v5227_v57, %v5179_v19  ;;  %v5180_v16 = vpop.f32.mrf.mxu2  ;;  %v6239_v19 = vld [vmem:[%s6574_s10 + $0x28] sm:$0xff] }
 0x7e5   : > { %v5132_v4 = vadd.f32 %v5131_v41, %v5083_v63 }
 0x7e6   : > { %v5253_v60 = vmul.f32 %v11215_v56, %v5228_v54  ;;  %v6240_v54 = vld [vmem:[%s6574_s10 + $0x30] sm:$0xff] }
 0x7e7   : > { %v5181_v33 = vadd.f32 %v5180_v16, %v5132_v4  ;;  %v6241_v4 = vld [vmem:[%s6574_s10 + $0x38] sm:$0xff] }
 0x7eb   : > { %5267 = vxpose.xlu0.b32.cont [9/16] %v5251_v45, 128  ;;  %v5229_v6 = vpop.f32.mrf.mxu3  ;;  %v6236_v45 = vld [vmem:[%s6574_s10 + $0x10] sm:$0xff] }
 0x7ec   : > { %v5230_v38 = vadd.f32 %v5229_v6, %v5181_v33  ;;  %v6242_v6 = vld [vmem:[%s6574_s10 + $0x40] sm:$0xff] }
 0x7ee   : > { %v5254_v25 = vmul.f32 %v11215_v56, %v5230_v38 }
 0x7f3   : > { %5268 = vxpose.xlu0.b32.cont [10/16] %v5252_v27, 128 }
 0x7fb   : > { %5269 = vxpose.xlu0.b32.cont [11/16] %v5253_v60, 128 }
 0x803   : > { %5270 = vxpose.xlu0.b32.cont [12/16] %v5254_v25, 128 }
 0x831   : > { %v5085_v53 = vpop.f32.mrf.mxu0 }
 0x832   : > { %v5086_v13 = vadd.f32 %v5085_v53, %v11170_v2  ;;  %v6243_v53 = vld [vmem:[%s6574_s10 + $0x48] sm:$0xff] }
 0x833   : > { %v5134_v18 = vpop.f32.mrf.mxu1 }
 0x834   : > { %v5135_v29 = vadd.f32 %v5134_v18, %v5086_v13 }
 0x839   : > { %v5087_v11 = vpop.f32.mrf.mxu0 }
 0x83a   : > { %v5088_v42 = vadd.f32 %v5087_v11, %v11170_v2 }
 0x83b   : > { %v5183_v22 = vpop.f32.mrf.mxu2  ;;  %v5232_v21 = vpop.f32.mrf.mxu3 }
 0x83c   : > { %v5184_v9 = vadd.f32 %v5183_v22, %v5135_v29  ;;  %v5136_v32 = vpop.f32.mrf.mxu1  ;;  %v6244_v29 = vld [vmem:[%s6574_s10 + $0x50] sm:$0xff] }
 0x83d   : > { %v5137_v40 = vadd.f32 %v5136_v32, %v5088_v42 }
 0x83e   : > { %v5233_v58 = vadd.f32 %v5232_v21, %v5184_v9  ;;  %v6245_v9 = vld [vmem:[%s6574_s10 + $0x58] sm:$0xff] }
 0x840   : > { %v5255_v7 = vmul.f32 %v11215_v56, %v5233_v58  ;;  %v6246_v58 = vld [vmem:[%s6574_s10 + $0x60] sm:$0xff] }
 0x841   : > { %v5090_v34 = vpop.f32.mrf.mxu0 }
 0x842   : > { %5271 = vxpose.xlu0.b32.cont [13/16] %v5255_v7, 128  ;;  %v5091_v36 = vadd.f32 %v5090_v34, %v11170_v2  ;;  %v6249_v34 = vld [vmem:[%s6574_s10 + $0x78] sm:$0xff] }
 0x843   : > { %v5185_v1 = vpop.f32.mrf.mxu2  ;;  %v5234_v3 = vpop.f32.mrf.mxu3 }
 0x844   : > { %v5186_v31 = vadd.f32 %v5185_v1, %v5137_v40  ;;  %v5139_v28 = vpop.f32.mrf.mxu1  ;;  %v6247_v40 = vld [vmem:[%s6574_s10 + $0x68] sm:$0xff] }
 0x845   : > { %v5140_v35 = vadd.f32 %v5139_v28, %v5091_v36 }
 0x846   : > { %v5235_v24 = vadd.f32 %v5234_v3, %v5186_v31  ;;  %v6248_v3 = vld [vmem:[%s6574_s10 + $0x70] sm:$0xff] }
 0x848   : > { %v5256_v50 = vmul.f32 %v11215_v56, %v5235_v24 }
 0x849   : > { %v5092_v37 = vpop.f32.mrf.mxu0 }
 0x84a   : > { %5272 = vxpose.xlu0.b32.cont [14/16] %v5256_v50, 128  ;;  %v5093_v8 = vadd.f32 %v5092_v37, %v11170_v2  ;;  %v6234_v2 = vld [vmem:[%s6574_s10] sm:$0xff] }
 0x84c   : > { %v5141_v23 = vpop.f32.mrf.mxu1 }
 0x84d   : > { %v5188_v26 = vpop.f32.mrf.mxu2  ;;  %v5142_v0 = vadd.f32 %v5141_v23, %v5093_v8 }
 0x84e   : > { %v5189_v30 = vadd.f32 %v5188_v26, %v5140_v35 }
 0x855   : > { %v5190_v39 = vpop.f32.mrf.mxu2 }
 0x856   : > { %v5191_v5 = vadd.f32 %v5190_v39, %v5142_v0 }
 0x857   : > { %v5237_v12 = vpop.f32.mrf.mxu3 }
 0x858   : > { %v5238_v17 = vadd.f32 %v5237_v12, %v5189_v30 }
 0x85a   : > { %v5257_v49 = vmul.f32 %v11215_v56, %v5238_v17 }
 0x85c   : > { %5273 = vxpose.xlu0.b32.cont [15/16] %v5257_v49, 128 }
 0x85f   : > { %v5239_v20 = vpop.f32.mrf.mxu3 }
 0x860   : > { %v5240_v62 = vadd.f32 %v5239_v20, %v5191_v5 }
 0x862   : > { %v5258_v55 = vmul.f32 %v11215_v56, %v5240_v62 }
 0x864   : > { %5274 = vxpose.xlu0.b32.end [16/16] %v5258_v55, 128 }
 0x890   : > { %v5275_v51 = vpop.trf.xlu0 }
 0x891   : > { %v5291_v10 = vadd.f32 %v6234_v2, %v5275_v51 }
 0x893   : > { %5307 = vst [vmem:[%s11343_s13] sm:$0xff] %v5291_v10 }
 0x898   : > { %v5276_v44 = vpop.trf.xlu0 }
 0x899   : > { %v5292_v61 = vadd.f32 %v6235_v48, %v5276_v44 }
 0x89b   : > { %5308 = vst [vmem:[%s11343_s13 + $0x8] sm:$0xff] %v5292_v61 }
 0x8a0   : > { %v5277_v56 = vpop.trf.xlu0 }
 0x8a1   : > { %v5293_v52 = vadd.f32 %v6236_v45, %v5277_v56 }
 0x8a3   : > { %5309 = vst [vmem:[%s11343_s13 + $0x10] sm:$0xff] %v5293_v52 }
 0x8a8   : > { %v5278_v46 = vpop.trf.xlu0 }
 0x8a9   : > { %v5294_v59 = vadd.f32 %v6237_v43, %v5278_v46 }
 0x8ab   : > { %5310 = vst [vmem:[%s11343_s13 + $0x18] sm:$0xff] %v5294_v59 }
 0x8b0   : > { %v5279_v15 = vpop.trf.xlu0 }
 0x8b1   : > { %v5295_v47 = vadd.f32 %v6238_v14, %v5279_v15 }
 0x8b3   : > { %5311 = vst [vmem:[%s11343_s13 + $0x20] sm:$0xff] %v5295_v47 }
 0x8b8   : > { %v5280_v27 = vpop.trf.xlu0 }
 0x8b9   : > { %v5296_v57 = vadd.f32 %v6239_v19, %v5280_v27 }
 0x8bb   : > { %5312 = vst [vmem:[%s11343_s13 + $0x28] sm:$0xff] %v5296_v57 }
 0x8c0   : > { %v5281_v63 = vpop.trf.xlu0 }
 0x8c1   : > { %v5297_v41 = vadd.f32 %v6240_v54, %v5281_v63 }
 0x8c3   : > { %5313 = vst [vmem:[%s11343_s13 + $0x30] sm:$0xff] %v5297_v41 }
 0x8c8   : > { %v5282_v16 = vpop.trf.xlu0 }
 0x8c9   : > { %v5298_v60 = vadd.f32 %v6241_v4, %v5282_v16 }
 0x8cb   : > { %5314 = vst [vmem:[%s11343_s13 + $0x38] sm:$0xff] %v5298_v60 }
 0x8d0   : > { %v5283_v33 = vpop.trf.xlu0 }
 0x8d1   : > { %v5299_v38 = vadd.f32 %v6242_v6, %v5283_v33 }
 0x8d3   : > { %5315 = vst [vmem:[%s11343_s13 + $0x40] sm:$0xff] %v5299_v38 }
 0x8d8   : > { %v5284_v25 = vpop.trf.xlu0 }
 0x8d9   : > { %v5300_v13 = vadd.f32 %v6243_v53, %v5284_v25 }
 0x8db   : > { %5316 = vst [vmem:[%s11343_s13 + $0x48] sm:$0xff] %v5300_v13 }
 0x8e0   : > { %v5285_v18 = vpop.trf.xlu0 }
 0x8e1   : > { %v5301_v11 = vadd.f32 %v6244_v29, %v5285_v18 }
 0x8e3   : > { %5317 = vst [vmem:[%s11343_s13 + $0x50] sm:$0xff] %v5301_v11 }
 0x8e8   : > { %v5286_v22 = vpop.trf.xlu0 }
 0x8e9   : > { %v5302_v21 = vadd.f32 %v6245_v9, %v5286_v22 }
 0x8eb   : > { %5318 = vst [vmem:[%s11343_s13 + $0x58] sm:$0xff] %v5302_v21 }
 0x8f0   : > { %v5287_v42 = vpop.trf.xlu0 }
 0x8f1   : > { %v5303_v7 = vadd.f32 %v6246_v58, %v5287_v42 }
 0x8f3   : > { %5319 = vst [vmem:[%s11343_s13 + $0x60] sm:$0xff] %v5303_v7 }
 0x8f8   : > { %v5288_v32 = vpop.trf.xlu0 }
 0x8f9   : > { %v5304_v1 = vadd.f32 %v6247_v40, %v5288_v32 }
 0x8fb   : > { %5320 = vst [vmem:[%s11343_s13 + $0x68] sm:$0xff] %v5304_v1 }
 0x900   : > { %v5289_v31 = vpop.trf.xlu0 }
 0x901   : > { %v5305_v24 = vadd.f32 %v6248_v3, %v5289_v31 }
 0x903   : > { %5321 = vst [vmem:[%s11343_s13 + $0x70] sm:$0xff] %v5305_v24 }
 0x908   : > { %v5290_v50 = vpop.trf.xlu0 }
 0x909   : > { %v5306_v36 = vadd.f32 %v6249_v34, %v5290_v50 }
 0x90b   : > { %5322 = vst [vmem:[%s11343_s13 + $0x78] sm:$0xff] %v5306_v36 }
 0x90c   : > { %6367 = shalt.err (!%p6364_p10)
}
 0x90d   : > { %s6435_s11 = smov 128   ;;  %s6436_s10 = smov 8  }
 0x90e   : > { %5781 = dma.vmem_to_hbm [thread:$0]  (%p6541_p5), %s5337_s17, 2048, %s5339_s18, %s5324_s29, %s6435_s11, %s6435_s11, %s6436_s10  }
 0x90f PF: > { %s5353_s13 = sand.u32 1, %s6398_s21   ;;  %p12344_p12 = scmp.ge.s32.totalorder %s6410_s24, 2 }
 0x910   : > { %s5354_s14 = scalar_lea.sflag [#allocation4], %s5353_s13 }
 0x911   : > { %p5795_p13 = pnand %p12344_p12, %p6507_p6 }
 0x913   : > { %p5796_p0 = pneg %p5795_p13 }
 0x915   : > { %6393 = dma.done.wait (%p5796_p0), %s5354_s14, 2048  }
 0x916   : > { %6395 = vsyncadd (%p5796_p0), %s5354_s14, 4294965248  ;;  %p20_p3 = scmp.ge.s32.totalorder %s6528_s20, 4   ;;  %s12345_s21 = smov %s6402_s22 }
 0x917   : > { %s12346_s22 = smov %s6406_s23  ;;  %s12347_s23 = smov %s6537_s30 }
 0x918   : > { %s12348_s24 = smov %s6528_s20  ;;  %22 = sbr.rel (!%p20_p3) target bundleno = 6 (0x6), region = 97 }
 0x91d   :  { %5360 = vsyncpa [#allocation3], 1 }
 0x91e   :  { %5362 = vsyncpa [#allocation3 + $0x1], 1 }
 0x91f   :  { %5363 = vsyncpa [#allocation6], 1 }
 0x920   :  { %5364 = vsyncpa [#allocation4], 1 }
 0x921   :  { %5366 = vsyncpa [#allocation4 + $0x1], 1 }

</bundles_post_ra>
